<compile_context>
chip_gen: v7x
topology: tpu7x:2x2x1
jax: 0.10.0
libtpu: 0.0.40
codegen_flags: <defaults>
</compile_context>

<pallas_src>
import math

import jax
import jax.numpy as jnp
from jax.experimental import pallas as pl
from jax.experimental.pallas import tpu as pltpu

BN_EPS = 1e-5
BN_SCALE = 1.0 / math.sqrt(1.0 + BN_EPS)   # gamma / sqrt(running_var + eps)
CPAD = 128                                 # lane-dense channel padding
C1PAD = 8                                  # conv1 input-channel padding (3 -> 8)


# ---------------------------------------------------------------------------
# In-kernel helpers
# ---------------------------------------------------------------------------
def _zero_halo(xp_ref):
    """Zero only the 1-pixel halo of the (H+2, W+2, C) staging buffer."""
    Hp, Wp, C = xp_ref.shape
    xp_ref[0:1, :, :] = jnp.zeros((1, Wp, C), jnp.float32)
    xp_ref[Hp - 1:Hp, :, :] = jnp.zeros((1, Wp, C), jnp.float32)
    xp_ref[:, 0:1, :] = jnp.zeros((Hp, 1, C), jnp.float32)
    xp_ref[:, Wp - 1:Wp, :] = jnp.zeros((Hp, 1, C), jnp.float32)


def _dw3x3_from_padded(xp_ref, dw, H, W, stride):
    """Depthwise 3x3 from the zero-halo-padded staging ref.

    xp_ref: (H+2, W+2, C) ref with the input in its interior and zero halo.
    dw: (3, 3, C) value.  For stride 2 the taps are read with strided pl.ds
    windows so only the Ho*Wo output positions are ever computed.
    Returns an (Ho, Wo, C) value.
    """
    Ho, Wo = H // stride, W // stride
    taps = []
    for di in range(3):
        for dj in range(3):
            w_t = dw[di:di + 1, dj:dj + 1, :]              # hoisted broadcast
            if stride == 1:
                x_t = xp_ref[di:di + H, dj:dj + W, :]
            else:
                x_t = xp_ref[pl.ds(di, Ho, stride), pl.ds(dj, Wo, stride), :]
            taps.append(x_t * w_t)
    while len(taps) > 1:      # pairwise tree: shorter f32 dependency chain
        nxt = [taps[i] + taps[i + 1] for i in range(0, len(taps) - 1, 2)]
        if len(taps) % 2:
            nxt.append(taps[-1])
        taps = nxt
    return taps[0]


# ---------------------------------------------------------------------------
# Kernels
# ---------------------------------------------------------------------------
def _make_stage_kernel(stride):
    """Fused BaseBlockDW(linear=True, relu=True):
    depthwise 3x3 (stride) -> 1x1 conv (BN folded) -> bias -> ReLU."""
    def kernel(x_ref, dw_ref, pw_ref, b_ref, o_ref, xp_ref):
        _, H, W, C = x_ref.shape
        Ho, Wo = H // stride, W // stride
        _zero_halo(xp_ref)
        xp_ref[1:H + 1, 1:W + 1, :] = x_ref[0]
        acc = _dw3x3_from_padded(xp_ref, dw_ref[...], H, W, stride)
        y = jnp.dot(acc.reshape(Ho * Wo, C), pw_ref[...],
                    preferred_element_type=jnp.float32)
        y = jnp.maximum(y + b_ref[...], 0.0)
        o_ref[...] = y.reshape(o_ref.shape)
    return kernel


def _make_res_unit_kernel(has_b1, relu_b2b):
    """Fused residual unit: relu( b2b(b2a(x)) + (b1(x) if has_b1 else x) ).

    b2a: dw3x3 -> 1x1+BN -> ReLU (relu=True in the reference)
    b2b: dw3x3 -> 1x1+BN -> [ReLU iff relu_b2b]   (only res2a uses relu=True)
    b1 : 1x1 conv + BN (no ReLU)  -- projection skip, else identity skip.
    """
    def kernel(*refs):
        if has_b1:
            (x_ref, dwa_ref, pwa_ref, ba_ref, dwb_ref, pwb_ref, bb_ref,
             wb1_ref, bb1_ref, o_ref, xp_ref) = refs
        else:
            (x_ref, dwa_ref, pwa_ref, ba_ref, dwb_ref, pwb_ref, bb_ref,
             o_ref, xp_ref) = refs

        _, H, W, C = x_ref.shape
        M = H * W
        x = x_ref[0]                                             # (H, W, C)

        # branch b2a: dw3x3 -> 1x1 (+folded BN bias) -> ReLU
        _zero_halo(xp_ref)
        xp_ref[1:H + 1, 1:W + 1, :] = x
        acc_a = _dw3x3_from_padded(xp_ref, dwa_ref[...], H, W, 1)
        ya = jnp.dot(acc_a.reshape(M, C), pwa_ref[...],
                     preferred_element_type=jnp.float32)
        ya = jnp.maximum(ya + ba_ref[...], 0.0)

        # branch b2b: reuse the staging buffer (halo still zero); the
        # intermediate never leaves VMEM.
        xp_ref[1:H + 1, 1:W + 1, :] = ya.reshape(H, W, C)
        acc_b = _dw3x3_from_padded(xp_ref, dwb_ref[...], H, W, 1)
        yb = jnp.dot(acc_b.reshape(M, C), pwb_ref[...],
                     preferred_element_type=jnp.float32) + bb_ref[...]
        if relu_b2b:
            yb = jnp.maximum(yb, 0.0)

        # skip branch
        xflat = x.reshape(M, C)
        if has_b1:
            r = jnp.dot(xflat, wb1_ref[...],
                        preferred_element_type=jnp.float32) + bb1_ref[...]
        else:
            r = xflat

        o_ref[...] = jnp.maximum(yb + r, 0.0).reshape(o_ref.shape)
    return kernel


def _conv1_kernel(x_ref, w_ref, b_ref, o_ref, xp_ref):
    """conv1 (BaseBlockRelu): dense 3x3 stride-2 conv fused in-kernel.
    9 accumulating (Ho*Wo, Ci) x (Ci, Co) matmuls on strided taps of the
    zero-halo padded buffer (no HBM im2col patch tensor)."""
    _, H, W, Ci = x_ref.shape
    Ho, Wo = H // 2, W // 2
    _zero_halo(xp_ref)
    xp_ref[1:H + 1, 1:W + 1, :] = x_ref[0]
    acc = None
    for di in range(3):
        for dj in range(3):
            tap = xp_ref[pl.ds(di, Ho, 2), pl.ds(dj, Wo, 2), :]
            c = jnp.dot(tap.reshape(Ho * Wo, Ci), w_ref[di * 3 + dj],
                        preferred_element_type=jnp.float32)
            acc = c if acc is None else acc + c
    y = jnp.maximum(acc + b_ref[...], 0.0)
    o_ref[...] = y.reshape(o_ref.shape)


# ---------------------------------------------------------------------------
# Host-side wrappers (one pallas_call per fused block)
# ---------------------------------------------------------------------------
def _compiler_params(io_block_bytes, scratch_bytes):
    # Inputs/outputs are double-buffered by the BlockSpec pipeline; 2x headroom
    # on top, floored at 32 MiB and capped at 64 MiB (v7x physical VMEM/TC).
    need = 2 * io_block_bytes + scratch_bytes
    limit = min(max(2 * need + (4 << 20), 32 << 20), 64 << 20)
    return pltpu.CompilerParams(dimension_semantics=("parallel",),
                                vmem_limit_bytes=limit)


def _stage_block(x, p, stride):
    N, H, W, C = x.shape
    if stride == 2:
        assert H % 2 == 0 and W % 2 == 0, "stride-2 block needs even H, W"
    Ho, Wo = H // stride, W // stride
    Co = p['pw'].shape[1]
    io_bytes = 4 * (H * W * C + 9 * C + C * Co + Co + Ho * Wo * Co)
    scratch_bytes = 4 * (H + 2) * (W + 2) * C
    out = pl.pallas_call(
        _make_stage_kernel(stride),
        out_shape=jax.ShapeDtypeStruct((N, Ho * Wo, Co), jnp.float32),
        grid=(N,),
        in_specs=[
            pl.BlockSpec((1, H, W, C), lambda n: (n, 0, 0, 0)),
            pl.BlockSpec((3, 3, C), lambda n: (0, 0, 0)),
            pl.BlockSpec((C, Co), lambda n: (0, 0)),
            pl.BlockSpec((1, Co), lambda n: (0, 0)),
        ],
        out_specs=pl.BlockSpec((1, Ho * Wo, Co), lambda n: (n, 0, 0)),
        scratch_shapes=[pltpu.VMEM((H + 2, W + 2, C), jnp.float32)],
        compiler_params=_compiler_params(io_bytes, scratch_bytes),
    )(x, p['dw'], p['pw'], p['bias'])
    return out.reshape(N, Ho, Wo, Co)


def _res_unit(x, pa, pb, pb1=None, relu_b2b=False):
    N, H, W, C = x.shape
    M = H * W
    has_b1 = pb1 is not None
    args = [x, pa['dw'], pa['pw'], pa['bias'], pb['dw'], pb['pw'], pb['bias']]
    in_specs = [
        pl.BlockSpec((1, H, W, C), lambda n: (n, 0, 0, 0)),
        pl.BlockSpec((3, 3, C), lambda n: (0, 0, 0)),
        pl.BlockSpec((C, C), lambda n: (0, 0)),
        pl.BlockSpec((1, C), lambda n: (0, 0)),
        pl.BlockSpec((3, 3, C), lambda n: (0, 0, 0)),
        pl.BlockSpec((C, C), lambda n: (0, 0)),
        pl.BlockSpec((1, C), lambda n: (0, 0)),
    ]
    io_bytes = 4 * (H * W * C + 2 * (9 * C + C * C + C) + M * C)
    if has_b1:
        args += [pb1['w'], pb1['bias']]
        in_specs += [pl.BlockSpec((C, C), lambda n: (0, 0)),
                     pl.BlockSpec((1, C), lambda n: (0, 0))]
        io_bytes += 4 * (C * C + C)
    scratch_bytes = 4 * (H + 2) * (W + 2) * C
    out = pl.pallas_call(
        _make_res_unit_kernel(has_b1, relu_b2b),
        out_shape=jax.ShapeDtypeStruct((N, M, C), jnp.float32),
        grid=(N,),
        in_specs=in_specs,
        out_specs=pl.BlockSpec((1, M, C), lambda n: (n, 0, 0)),
        scratch_shapes=[pltpu.VMEM((H + 2, W + 2, C), jnp.float32)],
        compiler_params=_compiler_params(io_bytes, scratch_bytes),
    )(*args)
    return out.reshape(N, H, W, C)


def _conv1(x, p):
    """Dense 3x3 stride-2 conv (3->16, padded 8->128) + BN + ReLU, fused."""
    N, H, W, Ci_raw = x.shape
    assert H % 2 == 0 and W % 2 == 0, "conv1 stride-2 needs even H, W"
    Ho, Wo = H // 2, W // 2
    Ci, Co = p['w'].shape[1], p['w'].shape[2]
    x = jnp.pad(x, ((0, 0), (0, 0), (0, 0), (0, Ci - Ci_raw)))
    io_bytes = 4 * (H * W * Ci + 9 * Ci * Co + Co + Ho * Wo * Co)
    scratch_bytes = 4 * (H + 2) * (W + 2) * CPAD   # lanes padded to 128
    out = pl.pallas_call(
        _conv1_kernel,
        out_shape=jax.ShapeDtypeStruct((N, Ho * Wo, Co), jnp.float32),
        grid=(N,),
        in_specs=[
            pl.BlockSpec((1, H, W, Ci), lambda n: (n, 0, 0, 0)),
            pl.BlockSpec((9, Ci, Co), lambda n: (0, 0, 0)),
            pl.BlockSpec((1, Co), lambda n: (0, 0)),
        ],
        out_specs=pl.BlockSpec((1, Ho * Wo, Co), lambda n: (n, 0, 0)),
        scratch_shapes=[pltpu.VMEM((H + 2, W + 2, Ci), jnp.float32)],
        compiler_params=_compiler_params(io_bytes, scratch_bytes),
    )(x, p['w'], p['bias'])
    return out.reshape(N, Ho, Wo, Co)


# ---------------------------------------------------------------------------
# Parameter init (kaiming-normal fan_out, BN folded, channels padded to 128)
# ---------------------------------------------------------------------------
def _kaiming(key, shape, fan_out):
    return jax.random.normal(key, shape, jnp.float32) * math.sqrt(2.0 / fan_out)


def init_params(key):
    keys = iter(jax.random.split(key, 64))
    zbias = jnp.zeros((1, CPAD), jnp.float32)

    def pad_dw(w):                       # (3,3,c)   -> (3,3,CPAD)
        return jnp.pad(w, ((0, 0), (0, 0), (0, CPAD - w.shape[2])))

    def pad_mat(w):                      # (ci,co)   -> (CPAD,CPAD)
        return jnp.pad(w, ((0, CPAD - w.shape[0]), (0, CPAD - w.shape[1])))

    def dwp(inp, oup):
        # depthwise weight: PyTorch shape (inp,1,3,3) -> fan_out = inp*9
        dw = _kaiming(next(keys), (3, 3, inp), fan_out=inp * 9)
        # 1x1 weight: (oup,inp,1,1) -> fan_out = oup; BN scale folded in
        pw = _kaiming(next(keys), (inp, oup), fan_out=oup) * BN_SCALE
        return dict(dw=pad_dw(dw), pw=pad_mat(pw), bias=zbias)

    def bbp(inp, oup):
        w = _kaiming(next(keys), (inp, oup), fan_out=oup) * BN_SCALE
        return dict(w=pad_mat(w), bias=zbias)

    p = {}
    # conv1 weight in (kh,kw,cin,cout) order; per-tap matrices (9, C1PAD, CPAD).
    # NOTE: loading real PyTorch weights (Cout,Cin,kH,kW) would need a
    # transpose to this layout first.
    w1 = _kaiming(next(keys), (3, 3, 3, 16), fan_out=16 * 9) * BN_SCALE
    w1 = w1.reshape(9, 3, 16)
    p['conv1'] = dict(w=jnp.pad(w1, ((0, 0), (0, C1PAD - 3), (0, CPAD - 16))),
                      bias=zbias)

    p['conv2_1'] = dwp(16, 32); p['conv2_2'] = dwp(32, 16); p['conv2_3'] = dwp(16, 32)
    p['res2a_b1'] = bbp(32, 32)
    p['res2a_b2a'] = dwp(32, 32); p['res2a_b2b'] = dwp(32, 32)
    p['res2b_b2a'] = dwp(32, 32); p['res2b_b2b'] = dwp(32, 32)

    p['conv3_1'] = dwp(32, 64); p['conv3_2'] = dwp(64, 32); p['conv3_3'] = dwp(32, 64)
    p['res3a_b1'] = bbp(64, 64)
    p['res3a_b2a'] = dwp(64, 64); p['res3a_b2b'] = dwp(64, 64)
    p['res3b_b2a'] = dwp(64, 64); p['res3b_b2b'] = dwp(64, 64)
    p['res3c_b2a'] = dwp(64, 64); p['res3c_b2b'] = dwp(64, 64)

    p['conv4_1'] = dwp(64, 128); p['conv4_2'] = dwp(128, 64); p['conv4_3'] = dwp(64, 128)
    p['res4a_b1'] = bbp(128, 128)
    p['res4a_b2a'] = dwp(128, 128); p['res4a_b2b'] = dwp(128, 128)
    p['res4b_b2a'] = dwp(128, 128); p['res4b_b2b'] = dwp(128, 128)
    p['res4c_b2a'] = dwp(128, 128); p['res4c_b2b'] = dwp(128, 128)
    p['res4d_b2a'] = dwp(128, 128); p['res4d_b2b'] = dwp(128, 128)
    return p


# ---------------------------------------------------------------------------
# Full forward
# ---------------------------------------------------------------------------
def densebox_forward(params, x):
    """x: (N, 3, H, W) float32 (NCHW as in PyTorch).  Returns [res4d] (NCHW)."""
    p = params
    x = jnp.transpose(x, (0, 2, 3, 1))                     # NCHW -> NHWC

    x = _conv1(x, p['conv1'])                              # (N, H/2, W/2, 128)

    x = _stage_block(x, p['conv2_1'], 2)
    x = _stage_block(x, p['conv2_2'], 1)
    x = _stage_block(x, p['conv2_3'], 1)
    # NOTE: res2a_b2b has relu=True in the reference (unlike res3a/res4a).
    x = _res_unit(x, p['res2a_b2a'], p['res2a_b2b'], pb1=p['res2a_b1'], relu_b2b=True)
    x = _res_unit(x, p['res2b_b2a'], p['res2b_b2b'])

    x = _stage_block(x, p['conv3_1'], 2)
    x = _stage_block(x, p['conv3_2'], 1)
    x = _stage_block(x, p['conv3_3'], 1)
    x = _res_unit(x, p['res3a_b2a'], p['res3a_b2b'], pb1=p['res3a_b1'])
    x = _res_unit(x, p['res3b_b2a'], p['res3b_b2b'])
    x = _res_unit(x, p['res3c_b2a'], p['res3c_b2b'])

    x = _stage_block(x, p['conv4_1'], 2)
    x = _stage_block(x, p['conv4_2'], 1)
    x = _stage_block(x, p['conv4_3'], 1)
    x = _res_unit(x, p['res4a_b2a'], p['res4a_b2b'], pb1=p['res4a_b1'])
    x = _res_unit(x, p['res4b_b2a'], p['res4b_b2b'])
    x = _res_unit(x, p['res4c_b2a'], p['res4c_b2b'])
    x = _res_unit(x, p['res4d_b2a'], p['res4d_b2b'])

    res4d = jnp.transpose(x, (0, 3, 1, 2))                 # NHWC -> NCHW
    return [res4d]


if __name__ == "__main__":
    key = jax.random.PRNGKey(0)
    kp, kx = jax.random.split(key)
    params = init_params(kp)
    x = jax.random.normal(kx, (2, 3, 16, 16), jnp.float32)   # small NCHW input

    fwd = jax.jit(densebox_forward)
    out = fwd(params, x)
    jax.block_until_ready(out)

    assert out[0].shape == (2, 128, 1, 1), out[0].shape
    assert bool(jnp.all(jnp.isfinite(out[0])))
    print("KERNEL_OK")
</pallas_src>

<mosaic_0001>
module attributes {stable_mosaic.version = 11 : i64} {
  func.func @kernel(%arg0: i32, %arg1: memref<1x8x8x128xf32, #tpu.memory_space<vmem>>, %arg2: memref<3x3x128xf32, #tpu.memory_space<vmem>>, %arg3: memref<128x128xf32, #tpu.memory_space<vmem>>, %arg4: memref<1x128xf32, #tpu.memory_space<vmem>>, %arg5: memref<1x16x128xf32, #tpu.memory_space<vmem>>, %arg6: memref<10x10x128xf32, #tpu.memory_space<vmem>>) attributes {dimension_semantics = [#tpu.dimension_semantics<parallel>], iteration_bounds = array<i64: 2>, scalar_prefetch = 0 : i64, scratch_operands = 1 : i64, tpu.core_type = #tpu.core_type<tc>, window_params = [{transform_indices = @transform_0, window_bounds = array<i64: 1, 8, 8, 128>}, {pipeline_mode = #tpu.pipeline_mode<synchronous>, transform_indices = @transform_1, window_bounds = array<i64: 3, 3, 128>}, {pipeline_mode = #tpu.pipeline_mode<synchronous>, transform_indices = @transform_2, window_bounds = array<i64: 128, 128>}, {pipeline_mode = #tpu.pipeline_mode<synchronous>, transform_indices = @transform_3, window_bounds = array<i64: 1, 128>}, {transform_indices = @transform_4, window_bounds = array<i64: 1, 16, 128>}]} {
    %cst = arith.constant 0.000000e+00 : f32
    %0 = vector.broadcast %cst : f32 to vector<1x10x128xf32>
    %c0 = arith.constant 0 : index
    %c0_0 = arith.constant 0 : index
    %c0_1 = arith.constant 0 : index
    %1 = vector.load %arg6[%c0, %c0_0, %c0_1] : memref<10x10x128xf32, #tpu.memory_space<vmem>>, vector<1x10x128xf32>
    tpu.vector_store %arg6[%c0, %c0_0, %c0_1], %0 {strides = array<i32>} : memref<10x10x128xf32, #tpu.memory_space<vmem>>, vector<1x10x128xf32>,
    %cst_2 = arith.constant 0.000000e+00 : f32
    %2 = vector.broadcast %cst_2 : f32 to vector<1x10x128xf32>
    %c9 = arith.constant 9 : index
    %c0_3 = arith.constant 0 : index
    %c0_4 = arith.constant 0 : index
    %3 = vector.load %arg6[%c9, %c0_3, %c0_4] : memref<10x10x128xf32, #tpu.memory_space<vmem>>, vector<1x10x128xf32>
    tpu.vector_store %arg6[%c9, %c0_3, %c0_4], %2 {strides = array<i32>} : memref<10x10x128xf32, #tpu.memory_space<vmem>>, vector<1x10x128xf32>,
    %cst_5 = arith.constant 0.000000e+00 : f32
    %4 = vector.broadcast %cst_5 : f32 to vector<10x1x128xf32>
    %c0_6 = arith.constant 0 : index
    %c0_7 = arith.constant 0 : index
    %c0_8 = arith.constant 0 : index
    %5 = vector.load %arg6[%c0_6, %c0_7, %c0_8] : memref<10x10x128xf32, #tpu.memory_space<vmem>>, vector<10x1x128xf32>
    tpu.vector_store %arg6[%c0_6, %c0_7, %c0_8], %4 {strides = array<i32>} : memref<10x10x128xf32, #tpu.memory_space<vmem>>, vector<10x1x128xf32>,
    %cst_9 = arith.constant 0.000000e+00 : f32
    %6 = vector.broadcast %cst_9 : f32 to vector<10x1x128xf32>
    %c0_10 = arith.constant 0 : index
    %c9_11 = arith.constant 9 : index
    %c0_12 = arith.constant 0 : index
    %7 = vector.load %arg6[%c0_10, %c9_11, %c0_12] : memref<10x10x128xf32, #tpu.memory_space<vmem>>, vector<10x1x128xf32>
    tpu.vector_store %arg6[%c0_10, %c9_11, %c0_12], %6 {strides = array<i32>} : memref<10x10x128xf32, #tpu.memory_space<vmem>>, vector<10x1x128xf32>,
    %c0_13 = arith.constant 0 : index
    %c0_14 = arith.constant 0 : index
    %c0_15 = arith.constant 0 : index
    %c0_16 = arith.constant 0 : index
    %8 = vector.load %arg1[%c0_13, %c0_14, %c0_15, %c0_16] : memref<1x8x8x128xf32, #tpu.memory_space<vmem>>, vector<1x8x8x128xf32>
    %9 = vector.shape_cast %8 : vector<1x8x8x128xf32> to vector<8x8x128xf32>
    %c1 = arith.constant 1 : index
    %c1_17 = arith.constant 1 : index
    %c0_18 = arith.constant 0 : index
    %10 = vector.load %arg6[%c1, %c1_17, %c0_18] : memref<10x10x128xf32, #tpu.memory_space<vmem>>, vector<8x8x128xf32>
    tpu.vector_store %arg6[%c1, %c1_17, %c0_18], %9 {strides = array<i32>} : memref<10x10x128xf32, #tpu.memory_space<vmem>>, vector<8x8x128xf32>,
    %c0_19 = arith.constant 0 : index
    %c0_20 = arith.constant 0 : index
    %c0_21 = arith.constant 0 : index
    %11 = vector.load %arg2[%c0_19, %c0_20, %c0_21] : memref<3x3x128xf32, #tpu.memory_space<vmem>>, vector<3x3x128xf32>
    %12 = vector.extract_strided_slice %11 {offsets = [0, 0, 0], sizes = [1, 1, 128], strides = [1, 1, 1]} : vector<3x3x128xf32> to vector<1x1x128xf32>
    %c0_22 = arith.constant 0 : index
    %c0_23 = arith.constant 0 : index
    %c0_24 = arith.constant 0 : index
    %13 = tpu.strided_load %arg6[%c0_22, %c0_23, %c0_24] {strides = array<i32: 2, 2, 1>} : memref<10x10x128xf32, #tpu.memory_space<vmem>>, vector<4x4x128xf32>
    %14 = vector.broadcast %12 : vector<1x1x128xf32> to vector<4x4x128xf32>
    %15 = arith.mulf %13, %14 : vector<4x4x128xf32>
    %16 = vector.extract_strided_slice %11 {offsets = [0, 1, 0], sizes = [1, 1, 128], strides = [1, 1, 1]} : vector<3x3x128xf32> to vector<1x1x128xf32>
    %c0_25 = arith.constant 0 : index
    %c1_26 = arith.constant 1 : index
    %c0_27 = arith.constant 0 : index
    %17 = tpu.strided_load %arg6[%c0_25, %c1_26, %c0_27] {strides = array<i32: 2, 2, 1>} : memref<10x10x128xf32, #tpu.memory_space<vmem>>, vector<4x4x128xf32>
    %18 = vector.broadcast %16 : vector<1x1x128xf32> to vector<4x4x128xf32>
    %19 = arith.mulf %17, %18 : vector<4x4x128xf32>
    %20 = vector.extract_strided_slice %11 {offsets = [0, 2, 0], sizes = [1, 1, 128], strides = [1, 1, 1]} : vector<3x3x128xf32> to vector<1x1x128xf32>
    %c0_28 = arith.constant 0 : index
    %c2 = arith.constant 2 : index
    %c0_29 = arith.constant 0 : index
    %21 = tpu.strided_load %arg6[%c0_28, %c2, %c0_29] {strides = array<i32: 2, 2, 1>} : memref<10x10x128xf32, #tpu.memory_space<vmem>>, vector<4x4x128xf32>
    %22 = vector.broadcast %20 : vector<1x1x128xf32> to vector<4x4x128xf32>
    %23 = arith.mulf %21, %22 : vector<4x4x128xf32>
    %24 = vector.extract_strided_slice %11 {offsets = [1, 0, 0], sizes = [1, 1, 128], strides = [1, 1, 1]} : vector<3x3x128xf32> to vector<1x1x128xf32>
    %c1_30 = arith.constant 1 : index
    %c0_31 = arith.constant 0 : index
    %c0_32 = arith.constant 0 : index
    %25 = tpu.strided_load %arg6[%c1_30, %c0_31, %c0_32] {strides = array<i32: 2, 2, 1>} : memref<10x10x128xf32, #tpu.memory_space<vmem>>, vector<4x4x128xf32>
    %26 = vector.broadcast %24 : vector<1x1x128xf32> to vector<4x4x128xf32>
    %27 = arith.mulf %25, %26 : vector<4x4x128xf32>
    %28 = vector.extract_strided_slice %11 {offsets = [1, 1, 0], sizes = [1, 1, 128], strides = [1, 1, 1]} : vector<3x3x128xf32> to vector<1x1x128xf32>
    %c1_33 = arith.constant 1 : index
    %c1_34 = arith.constant 1 : index
    %c0_35 = arith.constant 0 : index
    %29 = tpu.strided_load %arg6[%c1_33, %c1_34, %c0_35] {strides = array<i32: 2, 2, 1>} : memref<10x10x128xf32, #tpu.memory_space<vmem>>, vector<4x4x128xf32>
    %30 = vector.broadcast %28 : vector<1x1x128xf32> to vector<4x4x128xf32>
    %31 = arith.mulf %29, %30 : vector<4x4x128xf32>
    %32 = vector.extract_strided_slice %11 {offsets = [1, 2, 0], sizes = [1, 1, 128], strides = [1, 1, 1]} : vector<3x3x128xf32> to vector<1x1x128xf32>
    %c1_36 = arith.constant 1 : index
    %c2_37 = arith.constant 2 : index
    %c0_38 = arith.constant 0 : index
    %33 = tpu.strided_load %arg6[%c1_36, %c2_37, %c0_38] {strides = array<i32: 2, 2, 1>} : memref<10x10x128xf32, #tpu.memory_space<vmem>>, vector<4x4x128xf32>
    %34 = vector.broadcast %32 : vector<1x1x128xf32> to vector<4x4x128xf32>
    %35 = arith.mulf %33, %34 : vector<4x4x128xf32>
    %36 = vector.extract_strided_slice %11 {offsets = [2, 0, 0], sizes = [1, 1, 128], strides = [1, 1, 1]} : vector<3x3x128xf32> to vector<1x1x128xf32>
    %c2_39 = arith.constant 2 : index
    %c0_40 = arith.constant 0 : index
    %c0_41 = arith.constant 0 : index
    %37 = tpu.strided_load %arg6[%c2_39, %c0_40, %c0_41] {strides = array<i32: 2, 2, 1>} : memref<10x10x128xf32, #tpu.memory_space<vmem>>, vector<4x4x128xf32>
    %38 = vector.broadcast %36 : vector<1x1x128xf32> to vector<4x4x128xf32>
    %39 = arith.mulf %37, %38 : vector<4x4x128xf32>
    %40 = vector.extract_strided_slice %11 {offsets = [2, 1, 0], sizes = [1, 1, 128], strides = [1, 1, 1]} : vector<3x3x128xf32> to vector<1x1x128xf32>
    %c2_42 = arith.constant 2 : index
    %c1_43 = arith.constant 1 : index
    %c0_44 = arith.constant 0 : index
    %41 = tpu.strided_load %arg6[%c2_42, %c1_43, %c0_44] {strides = array<i32: 2, 2, 1>} : memref<10x10x128xf32, #tpu.memory_space<vmem>>, vector<4x4x128xf32>
    %42 = vector.broadcast %40 : vector<1x1x128xf32> to vector<4x4x128xf32>
    %43 = arith.mulf %41, %42 : vector<4x4x128xf32>
    %44 = vector.extract_strided_slice %11 {offsets = [2, 2, 0], sizes = [1, 1, 128], strides = [1, 1, 1]} : vector<3x3x128xf32> to vector<1x1x128xf32>
    %c2_45 = arith.constant 2 : index
    %c2_46 = arith.constant 2 : index
    %c0_47 = arith.constant 0 : index
    %45 = tpu.strided_load %arg6[%c2_45, %c2_46, %c0_47] {strides = array<i32: 2, 2, 1>} : memref<10x10x128xf32, #tpu.memory_space<vmem>>, vector<4x4x128xf32>
    %46 = vector.broadcast %44 : vector<1x1x128xf32> to vector<4x4x128xf32>
    %47 = arith.mulf %45, %46 : vector<4x4x128xf32>
    %48 = arith.addf %15, %19 : vector<4x4x128xf32>
    %49 = arith.addf %23, %27 : vector<4x4x128xf32>
    %50 = arith.addf %31, %35 : vector<4x4x128xf32>
    %51 = arith.addf %39, %43 : vector<4x4x128xf32>
    %52 = arith.addf %48, %49 : vector<4x4x128xf32>
    %53 = arith.addf %50, %51 : vector<4x4x128xf32>
    %54 = arith.addf %52, %53 : vector<4x4x128xf32>
    %55 = arith.addf %54, %47 : vector<4x4x128xf32>
    %56 = vector.shape_cast %55 : vector<4x4x128xf32> to vector<16x128xf32>
    %c0_48 = arith.constant 0 : index
    %c0_49 = arith.constant 0 : index
    %57 = vector.load %arg3[%c0_48, %c0_49] : memref<128x128xf32, #tpu.memory_space<vmem>>, vector<128x128xf32>
    %cst_50 = arith.constant dense<0.000000e+00> : vector<16x128xf32>
    %58 = tpu.matmul %56, %57, %cst_50 {dimension_numbers = #tpu.dot_dimension_numbers<[1], [0], [0], [1], [0, 0, 1, 1], [], []>} : vector<16x128xf32>, vector<128x128xf32>, vector<16x128xf32> -> vector<16x128xf32>
    %c0_51 = arith.constant 0 : index
    %c0_52 = arith.constant 0 : index
    %59 = vector.load %arg4[%c0_51, %c0_52] : memref<1x128xf32, #tpu.memory_space<vmem>>, vector<1x128xf32>
    %60 = vector.broadcast %59 : vector<1x128xf32> to vector<16x128xf32>
    %61 = arith.addf %58, %60 : vector<16x128xf32>
    %cst_53 = arith.constant 0.000000e+00 : f32
    %62 = vector.broadcast %cst_53 : f32 to vector<16x128xf32>
    %63 = arith.maximumf %61, %62 : vector<16x128xf32>
    %64 = vector.shape_cast %63 : vector<16x128xf32> to vector<1x16x128xf32>
    %c0_54 = arith.constant 0 : index
    %c0_55 = arith.constant 0 : index
    %c0_56 = arith.constant 0 : index
    %65 = vector.load %arg5[%c0_54, %c0_55, %c0_56] : memref<1x16x128xf32, #tpu.memory_space<vmem>>, vector<1x16x128xf32>
    tpu.vector_store %arg5[%c0_54, %c0_55, %c0_56], %64 {strides = array<i32>} : memref<1x16x128xf32, #tpu.memory_space<vmem>>, vector<1x16x128xf32>,
    return
  }
  func.func @transform_0(%arg0: i32) -> (i32, i32, i32, i32) {
    %c0_i32 = arith.constant 0 : i32
    %c0_i32_0 = arith.constant 0 : i32
    %c0_i32_1 = arith.constant 0 : i32
    %c0_i32_2 = arith.constant 0 : i32
    return %arg0, %c0_i32, %c0_i32_0, %c0_i32_1 : i32, i32, i32, i32
  }
  func.func @transform_1(%arg0: i32) -> (i32, i32, i32) {
    %c0_i32 = arith.constant 0 : i32
    %c0_i32_0 = arith.constant 0 : i32
    %c0_i32_1 = arith.constant 0 : i32
    %c0_i32_2 = arith.constant 0 : i32
    return %c0_i32, %c0_i32_0, %c0_i32_1 : i32, i32, i32
  }
  func.func @transform_2(%arg0: i32) -> (i32, i32) {
    %c0_i32 = arith.constant 0 : i32
    %c0_i32_0 = arith.constant 0 : i32
    %c0_i32_1 = arith.constant 0 : i32
    return %c0_i32, %c0_i32_0 : i32, i32
  }
  func.func @transform_3(%arg0: i32) -> (i32, i32) {
    %c0_i32 = arith.constant 0 : i32
    %c0_i32_0 = arith.constant 0 : i32
    %c0_i32_1 = arith.constant 0 : i32
    return %c0_i32, %c0_i32_0 : i32, i32
  }
  func.func @transform_4(%arg0: i32) -> (i32, i32, i32) {
    %c0_i32 = arith.constant 0 : i32
    %c0_i32_0 = arith.constant 0 : i32
    %c0_i32_1 = arith.constant 0 : i32
    return %arg0, %c0_i32, %c0_i32_0 : i32, i32, i32
  }
}

module attributes {stable_mosaic.version = 11 : i64} {
  func.func @_conv1_kernel(%arg0: i32, %arg1: memref<1x16x16x8xf32, #tpu.memory_space<vmem>>, %arg2: memref<9x8x128xf32, #tpu.memory_space<vmem>>, %arg3: memref<1x128xf32, #tpu.memory_space<vmem>>, %arg4: memref<1x64x128xf32, #tpu.memory_space<vmem>>, %arg5: memref<18x18x8xf32, #tpu.memory_space<vmem>>) attributes {dimension_semantics = [#tpu.dimension_semantics<parallel>], iteration_bounds = array<i64: 2>, scalar_prefetch = 0 : i64, scratch_operands = 1 : i64, tpu.core_type = #tpu.core_type<tc>, window_params = [{transform_indices = @transform_0, window_bounds = array<i64: 1, 16, 16, 8>}, {pipeline_mode = #tpu.pipeline_mode<synchronous>, transform_indices = @transform_1, window_bounds = array<i64: 9, 8, 128>}, {pipeline_mode = #tpu.pipeline_mode<synchronous>, transform_indices = @transform_2, window_bounds = array<i64: 1, 128>}, {transform_indices = @transform_3, window_bounds = array<i64: 1, 64, 128>}]} {
    %cst = arith.constant 0.000000e+00 : f32
    %0 = vector.broadcast %cst : f32 to vector<1x18x8xf32>
    %c0 = arith.constant 0 : index
    %c0_0 = arith.constant 0 : index
    %c0_1 = arith.constant 0 : index
    %1 = vector.load %arg5[%c0, %c0_0, %c0_1] : memref<18x18x8xf32, #tpu.memory_space<vmem>>, vector<1x18x8xf32>
    tpu.vector_store %arg5[%c0, %c0_0, %c0_1], %0 {strides = array<i32>} : memref<18x18x8xf32, #tpu.memory_space<vmem>>, vector<1x18x8xf32>,
    %cst_2 = arith.constant 0.000000e+00 : f32
    %2 = vector.broadcast %cst_2 : f32 to vector<1x18x8xf32>
    %c17 = arith.constant 17 : index
    %c0_3 = arith.constant 0 : index
    %c0_4 = arith.constant 0 : index
    %3 = vector.load %arg5[%c17, %c0_3, %c0_4] : memref<18x18x8xf32, #tpu.memory_space<vmem>>, vector<1x18x8xf32>
    tpu.vector_store %arg5[%c17, %c0_3, %c0_4], %2 {strides = array<i32>} : memref<18x18x8xf32, #tpu.memory_space<vmem>>, vector<1x18x8xf32>,
    %cst_5 = arith.constant 0.000000e+00 : f32
    %4 = vector.broadcast %cst_5 : f32 to vector<18x1x8xf32>
    %c0_6 = arith.constant 0 : index
    %c0_7 = arith.constant 0 : index
    %c0_8 = arith.constant 0 : index
    %5 = vector.load %arg5[%c0_6, %c0_7, %c0_8] : memref<18x18x8xf32, #tpu.memory_space<vmem>>, vector<18x1x8xf32>
    tpu.vector_store %arg5[%c0_6, %c0_7, %c0_8], %4 {strides = array<i32>} : memref<18x18x8xf32, #tpu.memory_space<vmem>>, vector<18x1x8xf32>,
    %cst_9 = arith.constant 0.000000e+00 : f32
    %6 = vector.broadcast %cst_9 : f32 to vector<18x1x8xf32>
    %c0_10 = arith.constant 0 : index
    %c17_11 = arith.constant 17 : index
    %c0_12 = arith.constant 0 : index
    %7 = vector.load %arg5[%c0_10, %c17_11, %c0_12] : memref<18x18x8xf32, #tpu.memory_space<vmem>>, vector<18x1x8xf32>
    tpu.vector_store %arg5[%c0_10, %c17_11, %c0_12], %6 {strides = array<i32>} : memref<18x18x8xf32, #tpu.memory_space<vmem>>, vector<18x1x8xf32>,
    %c0_13 = arith.constant 0 : index
    %c0_14 = arith.constant 0 : index
    %c0_15 = arith.constant 0 : index
    %c0_16 = arith.constant 0 : index
    %8 = vector.load %arg1[%c0_13, %c0_14, %c0_15, %c0_16] : memref<1x16x16x8xf32, #tpu.memory_space<vmem>>, vector<1x16x16x8xf32>
    %9 = vector.shape_cast %8 : vector<1x16x16x8xf32> to vector<16x16x8xf32>
    %c1 = arith.constant 1 : index
    %c1_17 = arith.constant 1 : index
    %c0_18 = arith.constant 0 : index
    %10 = vector.load %arg5[%c1, %c1_17, %c0_18] : memref<18x18x8xf32, #tpu.memory_space<vmem>>, vector<16x16x8xf32>
    tpu.vector_store %arg5[%c1, %c1_17, %c0_18], %9 {strides = array<i32>} : memref<18x18x8xf32, #tpu.memory_space<vmem>>, vector<16x16x8xf32>,
    %c0_19 = arith.constant 0 : index
    %c0_20 = arith.constant 0 : index
    %c0_21 = arith.constant 0 : index
    %11 = tpu.strided_load %arg5[%c0_19, %c0_20, %c0_21] {strides = array<i32: 2, 2, 1>} : memref<18x18x8xf32, #tpu.memory_space<vmem>>, vector<8x8x8xf32>
    %12 = vector.shape_cast %11 : vector<8x8x8xf32> to vector<64x8xf32>
    %c0_22 = arith.constant 0 : index
    %c0_23 = arith.constant 0 : index
    %c0_24 = arith.constant 0 : index
    %13 = vector.load %arg2[%c0_22, %c0_23, %c0_24] : memref<9x8x128xf32, #tpu.memory_space<vmem>>, vector<1x8x128xf32>
    %14 = vector.shape_cast %13 : vector<1x8x128xf32> to vector<8x128xf32>
    %cst_25 = arith.constant dense<0.000000e+00> : vector<64x128xf32>
    %15 = tpu.matmul %12, %14, %cst_25 {dimension_numbers = #tpu.dot_dimension_numbers<[1], [0], [0], [1], [0, 0, 1, 1], [], []>} : vector<64x8xf32>, vector<8x128xf32>, vector<64x128xf32> -> vector<64x128xf32>
    %c0_26 = arith.constant 0 : index
    %c1_27 = arith.constant 1 : index
    %c0_28 = arith.constant 0 : index
    %16 = tpu.strided_load %arg5[%c0_26, %c1_27, %c0_28] {strides = array<i32: 2, 2, 1>} : memref<18x18x8xf32, #tpu.memory_space<vmem>>, vector<8x8x8xf32>
    %17 = vector.shape_cast %16 : vector<8x8x8xf32> to vector<64x8xf32>
    %c1_29 = arith.constant 1 : index
    %c0_30 = arith.constant 0 : index
    %c0_31 = arith.constant 0 : index
    %18 = vector.load %arg2[%c1_29, %c0_30, %c0_31] : memref<9x8x128xf32, #tpu.memory_space<vmem>>, vector<1x8x128xf32>
    %19 = vector.shape_cast %18 : vector<1x8x128xf32> to vector<8x128xf32>
    %cst_32 = arith.constant dense<0.000000e+00> : vector<64x128xf32>
    %20 = tpu.matmul %17, %19, %cst_32 {dimension_numbers = #tpu.dot_dimension_numbers<[1], [0], [0], [1], [0, 0, 1, 1], [], []>} : vector<64x8xf32>, vector<8x128xf32>, vector<64x128xf32> -> vector<64x128xf32>
    %21 = arith.addf %15, %20 : vector<64x128xf32>
    %c0_33 = arith.constant 0 : index
    %c2 = arith.constant 2 : index
    %c0_34 = arith.constant 0 : index
    %22 = tpu.strided_load %arg5[%c0_33, %c2, %c0_34] {strides = array<i32: 2, 2, 1>} : memref<18x18x8xf32, #tpu.memory_space<vmem>>, vector<8x8x8xf32>
    %23 = vector.shape_cast %22 : vector<8x8x8xf32> to vector<64x8xf32>
    %c2_35 = arith.constant 2 : index
    %c0_36 = arith.constant 0 : index
    %c0_37 = arith.constant 0 : index
    %24 = vector.load %arg2[%c2_35, %c0_36, %c0_37] : memref<9x8x128xf32, #tpu.memory_space<vmem>>, vector<1x8x128xf32>
    %25 = vector.shape_cast %24 : vector<1x8x128xf32> to vector<8x128xf32>
    %cst_38 = arith.constant dense<0.000000e+00> : vector<64x128xf32>
    %26 = tpu.matmul %23, %25, %cst_38 {dimension_numbers = #tpu.dot_dimension_numbers<[1], [0], [0], [1], [0, 0, 1, 1], [], []>} : vector<64x8xf32>, vector<8x128xf32>, vector<64x128xf32> -> vector<64x128xf32>
    %27 = arith.addf %21, %26 : vector<64x128xf32>
    %c1_39 = arith.constant 1 : index
    %c0_40 = arith.constant 0 : index
    %c0_41 = arith.constant 0 : index
    %28 = tpu.strided_load %arg5[%c1_39, %c0_40, %c0_41] {strides = array<i32: 2, 2, 1>} : memref<18x18x8xf32, #tpu.memory_space<vmem>>, vector<8x8x8xf32>
    %29 = vector.shape_cast %28 : vector<8x8x8xf32> to vector<64x8xf32>
    %c3 = arith.constant 3 : index
    %c0_42 = arith.constant 0 : index
    %c0_43 = arith.constant 0 : index
    %30 = vector.load %arg2[%c3, %c0_42, %c0_43] : memref<9x8x128xf32, #tpu.memory_space<vmem>>, vector<1x8x128xf32>
    %31 = vector.shape_cast %30 : vector<1x8x128xf32> to vector<8x128xf32>
    %cst_44 = arith.constant dense<0.000000e+00> : vector<64x128xf32>
    %32 = tpu.matmul %29, %31, %cst_44 {dimension_numbers = #tpu.dot_dimension_numbers<[1], [0], [0], [1], [0, 0, 1, 1], [], []>} : vector<64x8xf32>, vector<8x128xf32>, vector<64x128xf32> -> vector<64x128xf32>
    %33 = arith.addf %27, %32 : vector<64x128xf32>
    %c1_45 = arith.constant 1 : index
    %c1_46 = arith.constant 1 : index
    %c0_47 = arith.constant 0 : index
    %34 = tpu.strided_load %arg5[%c1_45, %c1_46, %c0_47] {strides = array<i32: 2, 2, 1>} : memref<18x18x8xf32, #tpu.memory_space<vmem>>, vector<8x8x8xf32>
    %35 = vector.shape_cast %34 : vector<8x8x8xf32> to vector<64x8xf32>
    %c4 = arith.constant 4 : index
    %c0_48 = arith.constant 0 : index
    %c0_49 = arith.constant 0 : index
    %36 = vector.load %arg2[%c4, %c0_48, %c0_49] : memref<9x8x128xf32, #tpu.memory_space<vmem>>, vector<1x8x128xf32>
    %37 = vector.shape_cast %36 : vector<1x8x128xf32> to vector<8x128xf32>
    %cst_50 = arith.constant dense<0.000000e+00> : vector<64x128xf32>
    %38 = tpu.matmul %35, %37, %cst_50 {dimension_numbers = #tpu.dot_dimension_numbers<[1], [0], [0], [1], [0, 0, 1, 1], [], []>} : vector<64x8xf32>, vector<8x128xf32>, vector<64x128xf32> -> vector<64x128xf32>
    %39 = arith.addf %33, %38 : vector<64x128xf32>
    %c1_51 = arith.constant 1 : index
    %c2_52 = arith.constant 2 : index
    %c0_53 = arith.constant 0 : index
    %40 = tpu.strided_load %arg5[%c1_51, %c2_52, %c0_53] {strides = array<i32: 2, 2, 1>} : memref<18x18x8xf32, #tpu.memory_space<vmem>>, vector<8x8x8xf32>
    %41 = vector.shape_cast %40 : vector<8x8x8xf32> to vector<64x8xf32>
    %c5 = arith.constant 5 : index
    %c0_54 = arith.constant 0 : index
    %c0_55 = arith.constant 0 : index
    %42 = vector.load %arg2[%c5, %c0_54, %c0_55] : memref<9x8x128xf32, #tpu.memory_space<vmem>>, vector<1x8x128xf32>
    %43 = vector.shape_cast %42 : vector<1x8x128xf32> to vector<8x128xf32>
    %cst_56 = arith.constant dense<0.000000e+00> : vector<64x128xf32>
    %44 = tpu.matmul %41, %43, %cst_56 {dimension_numbers = #tpu.dot_dimension_numbers<[1], [0], [0], [1], [0, 0, 1, 1], [], []>} : vector<64x8xf32>, vector<8x128xf32>, vector<64x128xf32> -> vector<64x128xf32>
    %45 = arith.addf %39, %44 : vector<64x128xf32>
    %c2_57 = arith.constant 2 : index
    %c0_58 = arith.constant 0 : index
    %c0_59 = arith.constant 0 : index
    %46 = tpu.strided_load %arg5[%c2_57, %c0_58, %c0_59] {strides = array<i32: 2, 2, 1>} : memref<18x18x8xf32, #tpu.memory_space<vmem>>, vector<8x8x8xf32>
    %47 = vector.shape_cast %46 : vector<8x8x8xf32> to vector<64x8xf32>
    %c6 = arith.constant 6 : index
    %c0_60 = arith.constant 0 : index
    %c0_61 = arith.constant 0 : index
    %48 = vector.load %arg2[%c6, %c0_60, %c0_61] : memref<9x8x128xf32, #tpu.memory_space<vmem>>, vector<1x8x128xf32>
    %49 = vector.shape_cast %48 : vector<1x8x128xf32> to vector<8x128xf32>
    %cst_62 = arith.constant dense<0.000000e+00> : vector<64x128xf32>
    %50 = tpu.matmul %47, %49, %cst_62 {dimension_numbers = #tpu.dot_dimension_numbers<[1], [0], [0], [1], [0, 0, 1, 1], [], []>} : vector<64x8xf32>, vector<8x128xf32>, vector<64x128xf32> -> vector<64x128xf32>
    %51 = arith.addf %45, %50 : vector<64x128xf32>
    %c2_63 = arith.constant 2 : index
    %c1_64 = arith.constant 1 : index
    %c0_65 = arith.constant 0 : index
    %52 = tpu.strided_load %arg5[%c2_63, %c1_64, %c0_65] {strides = array<i32: 2, 2, 1>} : memref<18x18x8xf32, #tpu.memory_space<vmem>>, vector<8x8x8xf32>
    %53 = vector.shape_cast %52 : vector<8x8x8xf32> to vector<64x8xf32>
    %c7 = arith.constant 7 : index
    %c0_66 = arith.constant 0 : index
    %c0_67 = arith.constant 0 : index
    %54 = vector.load %arg2[%c7, %c0_66, %c0_67] : memref<9x8x128xf32, #tpu.memory_space<vmem>>, vector<1x8x128xf32>
    %55 = vector.shape_cast %54 : vector<1x8x128xf32> to vector<8x128xf32>
    %cst_68 = arith.constant dense<0.000000e+00> : vector<64x128xf32>
    %56 = tpu.matmul %53, %55, %cst_68 {dimension_numbers = #tpu.dot_dimension_numbers<[1], [0], [0], [1], [0, 0, 1, 1], [], []>} : vector<64x8xf32>, vector<8x128xf32>, vector<64x128xf32> -> vector<64x128xf32>
    %57 = arith.addf %51, %56 : vector<64x128xf32>
    %c2_69 = arith.constant 2 : index
    %c2_70 = arith.constant 2 : index
    %c0_71 = arith.constant 0 : index
    %58 = tpu.strided_load %arg5[%c2_69, %c2_70, %c0_71] {strides = array<i32: 2, 2, 1>} : memref<18x18x8xf32, #tpu.memory_space<vmem>>, vector<8x8x8xf32>
    %59 = vector.shape_cast %58 : vector<8x8x8xf32> to vector<64x8xf32>
    %c8 = arith.constant 8 : index
    %c0_72 = arith.constant 0 : index
    %c0_73 = arith.constant 0 : index
    %60 = vector.load %arg2[%c8, %c0_72, %c0_73] : memref<9x8x128xf32, #tpu.memory_space<vmem>>, vector<1x8x128xf32>
    %61 = vector.shape_cast %60 : vector<1x8x128xf32> to vector<8x128xf32>
    %cst_74 = arith.constant dense<0.000000e+00> : vector<64x128xf32>
    %62 = tpu.matmul %59, %61, %cst_74 {dimension_numbers = #tpu.dot_dimension_numbers<[1], [0], [0], [1], [0, 0, 1, 1], [], []>} : vector<64x8xf32>, vector<8x128xf32>, vector<64x128xf32> -> vector<64x128xf32>
    %63 = arith.addf %57, %62 : vector<64x128xf32>
    %c0_75 = arith.constant 0 : index
    %c0_76 = arith.constant 0 : index
    %64 = vector.load %arg3[%c0_75, %c0_76] : memref<1x128xf32, #tpu.memory_space<vmem>>, vector<1x128xf32>
    %65 = vector.broadcast %64 : vector<1x128xf32> to vector<64x128xf32>
    %66 = arith.addf %63, %65 : vector<64x128xf32>
    %cst_77 = arith.constant 0.000000e+00 : f32
    %67 = vector.broadcast %cst_77 : f32 to vector<64x128xf32>
    %68 = arith.maximumf %66, %67 : vector<64x128xf32>
    %69 = vector.shape_cast %68 : vector<64x128xf32> to vector<1x64x128xf32>
    %c0_78 = arith.constant 0 : index
    %c0_79 = arith.constant 0 : index
    %c0_80 = arith.constant 0 : index
    %70 = vector.load %arg4[%c0_78, %c0_79, %c0_80] : memref<1x64x128xf32, #tpu.memory_space<vmem>>, vector<1x64x128xf32>
    tpu.vector_store %arg4[%c0_78, %c0_79, %c0_80], %69 {strides = array<i32>} : memref<1x64x128xf32, #tpu.memory_space<vmem>>, vector<1x64x128xf32>,
    return
  }
  func.func @transform_0(%arg0: i32) -> (i32, i32, i32, i32) {
    %c0_i32 = arith.constant 0 : i32
    %c0_i32_0 = arith.constant 0 : i32
    %c0_i32_1 = arith.constant 0 : i32
    %c0_i32_2 = arith.constant 0 : i32
    return %arg0, %c0_i32, %c0_i32_0, %c0_i32_1 : i32, i32, i32, i32
  }
  func.func @transform_1(%arg0: i32) -> (i32, i32, i32) {
    %c0_i32 = arith.constant 0 : i32
    %c0_i32_0 = arith.constant 0 : i32
    %c0_i32_1 = arith.constant 0 : i32
    %c0_i32_2 = arith.constant 0 : i32
    return %c0_i32, %c0_i32_0, %c0_i32_1 : i32, i32, i32
  }
  func.func @transform_2(%arg0: i32) -> (i32, i32) {
    %c0_i32 = arith.constant 0 : i32
    %c0_i32_0 = arith.constant 0 : i32
    %c0_i32_1 = arith.constant 0 : i32
    return %c0_i32, %c0_i32_0 : i32, i32
  }
  func.func @transform_3(%arg0: i32) -> (i32, i32, i32) {
    %c0_i32 = arith.constant 0 : i32
    %c0_i32_0 = arith.constant 0 : i32
    %c0_i32_1 = arith.constant 0 : i32
    return %arg0, %c0_i32, %c0_i32_0 : i32, i32, i32
  }
}

module attributes {stable_mosaic.version = 11 : i64} {
  func.func @kernel(%arg0: i32, %arg1: memref<1x4x4x128xf32, #tpu.memory_space<vmem>>, %arg2: memref<3x3x128xf32, #tpu.memory_space<vmem>>, %arg3: memref<128x128xf32, #tpu.memory_space<vmem>>, %arg4: memref<1x128xf32, #tpu.memory_space<vmem>>, %arg5: memref<1x16x128xf32, #tpu.memory_space<vmem>>, %arg6: memref<6x6x128xf32, #tpu.memory_space<vmem>>) attributes {dimension_semantics = [#tpu.dimension_semantics<parallel>], iteration_bounds = array<i64: 2>, scalar_prefetch = 0 : i64, scratch_operands = 1 : i64, tpu.core_type = #tpu.core_type<tc>, window_params = [{transform_indices = @transform_0, window_bounds = array<i64: 1, 4, 4, 128>}, {pipeline_mode = #tpu.pipeline_mode<synchronous>, transform_indices = @transform_1, window_bounds = array<i64: 3, 3, 128>}, {pipeline_mode = #tpu.pipeline_mode<synchronous>, transform_indices = @transform_2, window_bounds = array<i64: 128, 128>}, {pipeline_mode = #tpu.pipeline_mode<synchronous>, transform_indices = @transform_3, window_bounds = array<i64: 1, 128>}, {transform_indices = @transform_4, window_bounds = array<i64: 1, 16, 128>}]} {
    %cst = arith.constant 0.000000e+00 : f32
    %0 = vector.broadcast %cst : f32 to vector<1x6x128xf32>
    %c0 = arith.constant 0 : index
    %c0_0 = arith.constant 0 : index
    %c0_1 = arith.constant 0 : index
    %1 = vector.load %arg6[%c0, %c0_0, %c0_1] : memref<6x6x128xf32, #tpu.memory_space<vmem>>, vector<1x6x128xf32>
    tpu.vector_store %arg6[%c0, %c0_0, %c0_1], %0 {strides = array<i32>} : memref<6x6x128xf32, #tpu.memory_space<vmem>>, vector<1x6x128xf32>,
    %cst_2 = arith.constant 0.000000e+00 : f32
    %2 = vector.broadcast %cst_2 : f32 to vector<1x6x128xf32>
    %c5 = arith.constant 5 : index
    %c0_3 = arith.constant 0 : index
    %c0_4 = arith.constant 0 : index
    %3 = vector.load %arg6[%c5, %c0_3, %c0_4] : memref<6x6x128xf32, #tpu.memory_space<vmem>>, vector<1x6x128xf32>
    tpu.vector_store %arg6[%c5, %c0_3, %c0_4], %2 {strides = array<i32>} : memref<6x6x128xf32, #tpu.memory_space<vmem>>, vector<1x6x128xf32>,
    %cst_5 = arith.constant 0.000000e+00 : f32
    %4 = vector.broadcast %cst_5 : f32 to vector<6x1x128xf32>
    %c0_6 = arith.constant 0 : index
    %c0_7 = arith.constant 0 : index
    %c0_8 = arith.constant 0 : index
    %5 = vector.load %arg6[%c0_6, %c0_7, %c0_8] : memref<6x6x128xf32, #tpu.memory_space<vmem>>, vector<6x1x128xf32>
    tpu.vector_store %arg6[%c0_6, %c0_7, %c0_8], %4 {strides = array<i32>} : memref<6x6x128xf32, #tpu.memory_space<vmem>>, vector<6x1x128xf32>,
    %cst_9 = arith.constant 0.000000e+00 : f32
    %6 = vector.broadcast %cst_9 : f32 to vector<6x1x128xf32>
    %c0_10 = arith.constant 0 : index
    %c5_11 = arith.constant 5 : index
    %c0_12 = arith.constant 0 : index
    %7 = vector.load %arg6[%c0_10, %c5_11, %c0_12] : memref<6x6x128xf32, #tpu.memory_space<vmem>>, vector<6x1x128xf32>
    tpu.vector_store %arg6[%c0_10, %c5_11, %c0_12], %6 {strides = array<i32>} : memref<6x6x128xf32, #tpu.memory_space<vmem>>, vector<6x1x128xf32>,
    %c0_13 = arith.constant 0 : index
    %c0_14 = arith.constant 0 : index
    %c0_15 = arith.constant 0 : index
    %c0_16 = arith.constant 0 : index
    %8 = vector.load %arg1[%c0_13, %c0_14, %c0_15, %c0_16] : memref<1x4x4x128xf32, #tpu.memory_space<vmem>>, vector<1x4x4x128xf32>
    %9 = vector.shape_cast %8 : vector<1x4x4x128xf32> to vector<4x4x128xf32>
    %c1 = arith.constant 1 : index
    %c1_17 = arith.constant 1 : index
    %c0_18 = arith.constant 0 : index
    %10 = vector.load %arg6[%c1, %c1_17, %c0_18] : memref<6x6x128xf32, #tpu.memory_space<vmem>>, vector<4x4x128xf32>
    tpu.vector_store %arg6[%c1, %c1_17, %c0_18], %9 {strides = array<i32>} : memref<6x6x128xf32, #tpu.memory_space<vmem>>, vector<4x4x128xf32>,
    %c0_19 = arith.constant 0 : index
    %c0_20 = arith.constant 0 : index
    %c0_21 = arith.constant 0 : index
    %11 = vector.load %arg2[%c0_19, %c0_20, %c0_21] : memref<3x3x128xf32, #tpu.memory_space<vmem>>, vector<3x3x128xf32>
    %12 = vector.extract_strided_slice %11 {offsets = [0, 0, 0], sizes = [1, 1, 128], strides = [1, 1, 1]} : vector<3x3x128xf32> to vector<1x1x128xf32>
    %c0_22 = arith.constant 0 : index
    %c0_23 = arith.constant 0 : index
    %c0_24 = arith.constant 0 : index
    %13 = vector.load %arg6[%c0_22, %c0_23, %c0_24] : memref<6x6x128xf32, #tpu.memory_space<vmem>>, vector<4x4x128xf32>
    %14 = vector.broadcast %12 : vector<1x1x128xf32> to vector<4x4x128xf32>
    %15 = arith.mulf %13, %14 : vector<4x4x128xf32>
    %16 = vector.extract_strided_slice %11 {offsets = [0, 1, 0], sizes = [1, 1, 128], strides = [1, 1, 1]} : vector<3x3x128xf32> to vector<1x1x128xf32>
    %c0_25 = arith.constant 0 : index
    %c1_26 = arith.constant 1 : index
    %c0_27 = arith.constant 0 : index
    %17 = vector.load %arg6[%c0_25, %c1_26, %c0_27] : memref<6x6x128xf32, #tpu.memory_space<vmem>>, vector<4x4x128xf32>
    %18 = vector.broadcast %16 : vector<1x1x128xf32> to vector<4x4x128xf32>
    %19 = arith.mulf %17, %18 : vector<4x4x128xf32>
    %20 = vector.extract_strided_slice %11 {offsets = [0, 2, 0], sizes = [1, 1, 128], strides = [1, 1, 1]} : vector<3x3x128xf32> to vector<1x1x128xf32>
    %c0_28 = arith.constant 0 : index
    %c2 = arith.constant 2 : index
    %c0_29 = arith.constant 0 : index
    %21 = vector.load %arg6[%c0_28, %c2, %c0_29] : memref<6x6x128xf32, #tpu.memory_space<vmem>>, vector<4x4x128xf32>
    %22 = vector.broadcast %20 : vector<1x1x128xf32> to vector<4x4x128xf32>
    %23 = arith.mulf %21, %22 : vector<4x4x128xf32>
    %24 = vector.extract_strided_slice %11 {offsets = [1, 0, 0], sizes = [1, 1, 128], strides = [1, 1, 1]} : vector<3x3x128xf32> to vector<1x1x128xf32>
    %c1_30 = arith.constant 1 : index
    %c0_31 = arith.constant 0 : index
    %c0_32 = arith.constant 0 : index
    %25 = vector.load %arg6[%c1_30, %c0_31, %c0_32] : memref<6x6x128xf32, #tpu.memory_space<vmem>>, vector<4x4x128xf32>
    %26 = vector.broadcast %24 : vector<1x1x128xf32> to vector<4x4x128xf32>
    %27 = arith.mulf %25, %26 : vector<4x4x128xf32>
    %28 = vector.extract_strided_slice %11 {offsets = [1, 1, 0], sizes = [1, 1, 128], strides = [1, 1, 1]} : vector<3x3x128xf32> to vector<1x1x128xf32>
    %c1_33 = arith.constant 1 : index
    %c1_34 = arith.constant 1 : index
    %c0_35 = arith.constant 0 : index
    %29 = vector.load %arg6[%c1_33, %c1_34, %c0_35] : memref<6x6x128xf32, #tpu.memory_space<vmem>>, vector<4x4x128xf32>
    %30 = vector.broadcast %28 : vector<1x1x128xf32> to vector<4x4x128xf32>
    %31 = arith.mulf %29, %30 : vector<4x4x128xf32>
    %32 = vector.extract_strided_slice %11 {offsets = [1, 2, 0], sizes = [1, 1, 128], strides = [1, 1, 1]} : vector<3x3x128xf32> to vector<1x1x128xf32>
    %c1_36 = arith.constant 1 : index
    %c2_37 = arith.constant 2 : index
    %c0_38 = arith.constant 0 : index
    %33 = vector.load %arg6[%c1_36, %c2_37, %c0_38] : memref<6x6x128xf32, #tpu.memory_space<vmem>>, vector<4x4x128xf32>
    %34 = vector.broadcast %32 : vector<1x1x128xf32> to vector<4x4x128xf32>
    %35 = arith.mulf %33, %34 : vector<4x4x128xf32>
    %36 = vector.extract_strided_slice %11 {offsets = [2, 0, 0], sizes = [1, 1, 128], strides = [1, 1, 1]} : vector<3x3x128xf32> to vector<1x1x128xf32>
    %c2_39 = arith.constant 2 : index
    %c0_40 = arith.constant 0 : index
    %c0_41 = arith.constant 0 : index
    %37 = vector.load %arg6[%c2_39, %c0_40, %c0_41] : memref<6x6x128xf32, #tpu.memory_space<vmem>>, vector<4x4x128xf32>
    %38 = vector.broadcast %36 : vector<1x1x128xf32> to vector<4x4x128xf32>
    %39 = arith.mulf %37, %38 : vector<4x4x128xf32>
    %40 = vector.extract_strided_slice %11 {offsets = [2, 1, 0], sizes = [1, 1, 128], strides = [1, 1, 1]} : vector<3x3x128xf32> to vector<1x1x128xf32>
    %c2_42 = arith.constant 2 : index
    %c1_43 = arith.constant 1 : index
    %c0_44 = arith.constant 0 : index
    %41 = vector.load %arg6[%c2_42, %c1_43, %c0_44] : memref<6x6x128xf32, #tpu.memory_space<vmem>>, vector<4x4x128xf32>
    %42 = vector.broadcast %40 : vector<1x1x128xf32> to vector<4x4x128xf32>
    %43 = arith.mulf %41, %42 : vector<4x4x128xf32>
    %44 = vector.extract_strided_slice %11 {offsets = [2, 2, 0], sizes = [1, 1, 128], strides = [1, 1, 1]} : vector<3x3x128xf32> to vector<1x1x128xf32>
    %c2_45 = arith.constant 2 : index
    %c2_46 = arith.constant 2 : index
    %c0_47 = arith.constant 0 : index
    %45 = vector.load %arg6[%c2_45, %c2_46, %c0_47] : memref<6x6x128xf32, #tpu.memory_space<vmem>>, vector<4x4x128xf32>
    %46 = vector.broadcast %44 : vector<1x1x128xf32> to vector<4x4x128xf32>
    %47 = arith.mulf %45, %46 : vector<4x4x128xf32>
    %48 = arith.addf %15, %19 : vector<4x4x128xf32>
    %49 = arith.addf %23, %27 : vector<4x4x128xf32>
    %50 = arith.addf %31, %35 : vector<4x4x128xf32>
    %51 = arith.addf %39, %43 : vector<4x4x128xf32>
    %52 = arith.addf %48, %49 : vector<4x4x128xf32>
    %53 = arith.addf %50, %51 : vector<4x4x128xf32>
    %54 = arith.addf %52, %53 : vector<4x4x128xf32>
    %55 = arith.addf %54, %47 : vector<4x4x128xf32>
    %56 = vector.shape_cast %55 : vector<4x4x128xf32> to vector<16x128xf32>
    %c0_48 = arith.constant 0 : index
    %c0_49 = arith.constant 0 : index
    %57 = vector.load %arg3[%c0_48, %c0_49] : memref<128x128xf32, #tpu.memory_space<vmem>>, vector<128x128xf32>
    %cst_50 = arith.constant dense<0.000000e+00> : vector<16x128xf32>
    %58 = tpu.matmul %56, %57, %cst_50 {dimension_numbers = #tpu.dot_dimension_numbers<[1], [0], [0], [1], [0, 0, 1, 1], [], []>} : vector<16x128xf32>, vector<128x128xf32>, vector<16x128xf32> -> vector<16x128xf32>
    %c0_51 = arith.constant 0 : index
    %c0_52 = arith.constant 0 : index
    %59 = vector.load %arg4[%c0_51, %c0_52] : memref<1x128xf32, #tpu.memory_space<vmem>>, vector<1x128xf32>
    %60 = vector.broadcast %59 : vector<1x128xf32> to vector<16x128xf32>
    %61 = arith.addf %58, %60 : vector<16x128xf32>
    %cst_53 = arith.constant 0.000000e+00 : f32
    %62 = vector.broadcast %cst_53 : f32 to vector<16x128xf32>
    %63 = arith.maximumf %61, %62 : vector<16x128xf32>
    %64 = vector.shape_cast %63 : vector<16x128xf32> to vector<1x16x128xf32>
    %c0_54 = arith.constant 0 : index
    %c0_55 = arith.constant 0 : index
    %c0_56 = arith.constant 0 : index
    %65 = vector.load %arg5[%c0_54, %c0_55, %c0_56] : memref<1x16x128xf32, #tpu.memory_space<vmem>>, vector<1x16x128xf32>
    tpu.vector_store %arg5[%c0_54, %c0_55, %c0_56], %64 {strides = array<i32>} : memref<1x16x128xf32, #tpu.memory_space<vmem>>, vector<1x16x128xf32>,
    return
  }
  func.func @transform_0(%arg0: i32) -> (i32, i32, i32, i32) {
    %c0_i32 = arith.constant 0 : i32
    %c0_i32_0 = arith.constant 0 : i32
    %c0_i32_1 = arith.constant 0 : i32
    %c0_i32_2 = arith.constant 0 : i32
    return %arg0, %c0_i32, %c0_i32_0, %c0_i32_1 : i32, i32, i32, i32
  }
  func.func @transform_1(%arg0: i32) -> (i32, i32, i32) {
    %c0_i32 = arith.constant 0 : i32
    %c0_i32_0 = arith.constant 0 : i32
    %c0_i32_1 = arith.constant 0 : i32
    %c0_i32_2 = arith.constant 0 : i32
    return %c0_i32, %c0_i32_0, %c0_i32_1 : i32, i32, i32
  }
  func.func @transform_2(%arg0: i32) -> (i32, i32) {
    %c0_i32 = arith.constant 0 : i32
    %c0_i32_0 = arith.constant 0 : i32
    %c0_i32_1 = arith.constant 0 : i32
    return %c0_i32, %c0_i32_0 : i32, i32
  }
  func.func @transform_3(%arg0: i32) -> (i32, i32) {
    %c0_i32 = arith.constant 0 : i32
    %c0_i32_0 = arith.constant 0 : i32
    %c0_i32_1 = arith.constant 0 : i32
    return %c0_i32, %c0_i32_0 : i32, i32
  }
  func.func @transform_4(%arg0: i32) -> (i32, i32, i32) {
    %c0_i32 = arith.constant 0 : i32
    %c0_i32_0 = arith.constant 0 : i32
    %c0_i32_1 = arith.constant 0 : i32
    return %arg0, %c0_i32, %c0_i32_0 : i32, i32, i32
  }
}

module attributes {stable_mosaic.version = 11 : i64} {
  func.func @kernel(%arg0: i32, %arg1: memref<1x4x4x128xf32, #tpu.memory_space<vmem>>, %arg2: memref<3x3x128xf32, #tpu.memory_space<vmem>>, %arg3: memref<128x128xf32, #tpu.memory_space<vmem>>, %arg4: memref<1x128xf32, #tpu.memory_space<vmem>>, %arg5: memref<3x3x128xf32, #tpu.memory_space<vmem>>, %arg6: memref<128x128xf32, #tpu.memory_space<vmem>>, %arg7: memref<1x128xf32, #tpu.memory_space<vmem>>, %arg8: memref<128x128xf32, #tpu.memory_space<vmem>>, %arg9: memref<1x128xf32, #tpu.memory_space<vmem>>, %arg10: memref<1x16x128xf32, #tpu.memory_space<vmem>>, %arg11: memref<6x6x128xf32, #tpu.memory_space<vmem>>) attributes {dimension_semantics = [#tpu.dimension_semantics<parallel>], iteration_bounds = array<i64: 2>, scalar_prefetch = 0 : i64, scratch_operands = 1 : i64, tpu.core_type = #tpu.core_type<tc>, window_params = [{transform_indices = @transform_0, window_bounds = array<i64: 1, 4, 4, 128>}, {pipeline_mode = #tpu.pipeline_mode<synchronous>, transform_indices = @transform_1, window_bounds = array<i64: 3, 3, 128>}, {pipeline_mode = #tpu.pipeline_mode<synchronous>, transform_indices = @transform_2, window_bounds = array<i64: 128, 128>}, {pipeline_mode = #tpu.pipeline_mode<synchronous>, transform_indices = @transform_3, window_bounds = array<i64: 1, 128>}, {pipeline_mode = #tpu.pipeline_mode<synchronous>, transform_indices = @transform_4, window_bounds = array<i64: 3, 3, 128>}, {pipeline_mode = #tpu.pipeline_mode<synchronous>, transform_indices = @transform_5, window_bounds = array<i64: 128, 128>}, {pipeline_mode = #tpu.pipeline_mode<synchronous>, transform_indices = @transform_6, window_bounds = array<i64: 1, 128>}, {pipeline_mode = #tpu.pipeline_mode<synchronous>, transform_indices = @transform_7, window_bounds = array<i64: 128, 128>}, {pipeline_mode = #tpu.pipeline_mode<synchronous>, transform_indices = @transform_8, window_bounds = array<i64: 1, 128>}, {transform_indices = @transform_9, window_bounds = array<i64: 1, 16, 128>}]} {
    %c0 = arith.constant 0 : index
    %c0_0 = arith.constant 0 : index
    %c0_1 = arith.constant 0 : index
    %c0_2 = arith.constant 0 : index
    %0 = vector.load %arg1[%c0, %c0_0, %c0_1, %c0_2] : memref<1x4x4x128xf32, #tpu.memory_space<vmem>>, vector<1x4x4x128xf32>
    %1 = vector.shape_cast %0 : vector<1x4x4x128xf32> to vector<4x4x128xf32>
    %cst = arith.constant 0.000000e+00 : f32
    %2 = vector.broadcast %cst : f32 to vector<1x6x128xf32>
    %c0_3 = arith.constant 0 : index
    %c0_4 = arith.constant 0 : index
    %c0_5 = arith.constant 0 : index
    %3 = vector.load %arg11[%c0_3, %c0_4, %c0_5] : memref<6x6x128xf32, #tpu.memory_space<vmem>>, vector<1x6x128xf32>
    tpu.vector_store %arg11[%c0_3, %c0_4, %c0_5], %2 {strides = array<i32>} : memref<6x6x128xf32, #tpu.memory_space<vmem>>, vector<1x6x128xf32>,
    %cst_6 = arith.constant 0.000000e+00 : f32
    %4 = vector.broadcast %cst_6 : f32 to vector<1x6x128xf32>
    %c5 = arith.constant 5 : index
    %c0_7 = arith.constant 0 : index
    %c0_8 = arith.constant 0 : index
    %5 = vector.load %arg11[%c5, %c0_7, %c0_8] : memref<6x6x128xf32, #tpu.memory_space<vmem>>, vector<1x6x128xf32>
    tpu.vector_store %arg11[%c5, %c0_7, %c0_8], %4 {strides = array<i32>} : memref<6x6x128xf32, #tpu.memory_space<vmem>>, vector<1x6x128xf32>,
    %cst_9 = arith.constant 0.000000e+00 : f32
    %6 = vector.broadcast %cst_9 : f32 to vector<6x1x128xf32>
    %c0_10 = arith.constant 0 : index
    %c0_11 = arith.constant 0 : index
    %c0_12 = arith.constant 0 : index
    %7 = vector.load %arg11[%c0_10, %c0_11, %c0_12] : memref<6x6x128xf32, #tpu.memory_space<vmem>>, vector<6x1x128xf32>
    tpu.vector_store %arg11[%c0_10, %c0_11, %c0_12], %6 {strides = array<i32>} : memref<6x6x128xf32, #tpu.memory_space<vmem>>, vector<6x1x128xf32>,
    %cst_13 = arith.constant 0.000000e+00 : f32
    %8 = vector.broadcast %cst_13 : f32 to vector<6x1x128xf32>
    %c0_14 = arith.constant 0 : index
    %c5_15 = arith.constant 5 : index
    %c0_16 = arith.constant 0 : index
    %9 = vector.load %arg11[%c0_14, %c5_15, %c0_16] : memref<6x6x128xf32, #tpu.memory_space<vmem>>, vector<6x1x128xf32>
    tpu.vector_store %arg11[%c0_14, %c5_15, %c0_16], %8 {strides = array<i32>} : memref<6x6x128xf32, #tpu.memory_space<vmem>>, vector<6x1x128xf32>,
    %c1 = arith.constant 1 : index
    %c1_17 = arith.constant 1 : index
    %c0_18 = arith.constant 0 : index
    %10 = vector.load %arg11[%c1, %c1_17, %c0_18] : memref<6x6x128xf32, #tpu.memory_space<vmem>>, vector<4x4x128xf32>
    tpu.vector_store %arg11[%c1, %c1_17, %c0_18], %1 {strides = array<i32>} : memref<6x6x128xf32, #tpu.memory_space<vmem>>, vector<4x4x128xf32>,
    %c0_19 = arith.constant 0 : index
    %c0_20 = arith.constant 0 : index
    %c0_21 = arith.constant 0 : index
    %11 = vector.load %arg2[%c0_19, %c0_20, %c0_21] : memref<3x3x128xf32, #tpu.memory_space<vmem>>, vector<3x3x128xf32>
    %12 = vector.extract_strided_slice %11 {offsets = [0, 0, 0], sizes = [1, 1, 128], strides = [1, 1, 1]} : vector<3x3x128xf32> to vector<1x1x128xf32>
    %c0_22 = arith.constant 0 : index
    %c0_23 = arith.constant 0 : index
    %c0_24 = arith.constant 0 : index
    %13 = vector.load %arg11[%c0_22, %c0_23, %c0_24] : memref<6x6x128xf32, #tpu.memory_space<vmem>>, vector<4x4x128xf32>
    %14 = vector.broadcast %12 : vector<1x1x128xf32> to vector<4x4x128xf32>
    %15 = arith.mulf %13, %14 : vector<4x4x128xf32>
    %16 = vector.extract_strided_slice %11 {offsets = [0, 1, 0], sizes = [1, 1, 128], strides = [1, 1, 1]} : vector<3x3x128xf32> to vector<1x1x128xf32>
    %c0_25 = arith.constant 0 : index
    %c1_26 = arith.constant 1 : index
    %c0_27 = arith.constant 0 : index
    %17 = vector.load %arg11[%c0_25, %c1_26, %c0_27] : memref<6x6x128xf32, #tpu.memory_space<vmem>>, vector<4x4x128xf32>
    %18 = vector.broadcast %16 : vector<1x1x128xf32> to vector<4x4x128xf32>
    %19 = arith.mulf %17, %18 : vector<4x4x128xf32>
    %20 = vector.extract_strided_slice %11 {offsets = [0, 2, 0], sizes = [1, 1, 128], strides = [1, 1, 1]} : vector<3x3x128xf32> to vector<1x1x128xf32>
    %c0_28 = arith.constant 0 : index
    %c2 = arith.constant 2 : index
    %c0_29 = arith.constant 0 : index
    %21 = vector.load %arg11[%c0_28, %c2, %c0_29] : memref<6x6x128xf32, #tpu.memory_space<vmem>>, vector<4x4x128xf32>
    %22 = vector.broadcast %20 : vector<1x1x128xf32> to vector<4x4x128xf32>
    %23 = arith.mulf %21, %22 : vector<4x4x128xf32>
    %24 = vector.extract_strided_slice %11 {offsets = [1, 0, 0], sizes = [1, 1, 128], strides = [1, 1, 1]} : vector<3x3x128xf32> to vector<1x1x128xf32>
    %c1_30 = arith.constant 1 : index
    %c0_31 = arith.constant 0 : index
    %c0_32 = arith.constant 0 : index
    %25 = vector.load %arg11[%c1_30, %c0_31, %c0_32] : memref<6x6x128xf32, #tpu.memory_space<vmem>>, vector<4x4x128xf32>
    %26 = vector.broadcast %24 : vector<1x1x128xf32> to vector<4x4x128xf32>
    %27 = arith.mulf %25, %26 : vector<4x4x128xf32>
    %28 = vector.extract_strided_slice %11 {offsets = [1, 1, 0], sizes = [1, 1, 128], strides = [1, 1, 1]} : vector<3x3x128xf32> to vector<1x1x128xf32>
    %c1_33 = arith.constant 1 : index
    %c1_34 = arith.constant 1 : index
    %c0_35 = arith.constant 0 : index
    %29 = vector.load %arg11[%c1_33, %c1_34, %c0_35] : memref<6x6x128xf32, #tpu.memory_space<vmem>>, vector<4x4x128xf32>
    %30 = vector.broadcast %28 : vector<1x1x128xf32> to vector<4x4x128xf32>
    %31 = arith.mulf %29, %30 : vector<4x4x128xf32>
    %32 = vector.extract_strided_slice %11 {offsets = [1, 2, 0], sizes = [1, 1, 128], strides = [1, 1, 1]} : vector<3x3x128xf32> to vector<1x1x128xf32>
    %c1_36 = arith.constant 1 : index
    %c2_37 = arith.constant 2 : index
    %c0_38 = arith.constant 0 : index
    %33 = vector.load %arg11[%c1_36, %c2_37, %c0_38] : memref<6x6x128xf32, #tpu.memory_space<vmem>>, vector<4x4x128xf32>
    %34 = vector.broadcast %32 : vector<1x1x128xf32> to vector<4x4x128xf32>
    %35 = arith.mulf %33, %34 : vector<4x4x128xf32>
    %36 = vector.extract_strided_slice %11 {offsets = [2, 0, 0], sizes = [1, 1, 128], strides = [1, 1, 1]} : vector<3x3x128xf32> to vector<1x1x128xf32>
    %c2_39 = arith.constant 2 : index
    %c0_40 = arith.constant 0 : index
    %c0_41 = arith.constant 0 : index
    %37 = vector.load %arg11[%c2_39, %c0_40, %c0_41] : memref<6x6x128xf32, #tpu.memory_space<vmem>>, vector<4x4x128xf32>
    %38 = vector.broadcast %36 : vector<1x1x128xf32> to vector<4x4x128xf32>
    %39 = arith.mulf %37, %38 : vector<4x4x128xf32>
    %40 = vector.extract_strided_slice %11 {offsets = [2, 1, 0], sizes = [1, 1, 128], strides = [1, 1, 1]} : vector<3x3x128xf32> to vector<1x1x128xf32>
    %c2_42 = arith.constant 2 : index
    %c1_43 = arith.constant 1 : index
    %c0_44 = arith.constant 0 : index
    %41 = vector.load %arg11[%c2_42, %c1_43, %c0_44] : memref<6x6x128xf32, #tpu.memory_space<vmem>>, vector<4x4x128xf32>
    %42 = vector.broadcast %40 : vector<1x1x128xf32> to vector<4x4x128xf32>
    %43 = arith.mulf %41, %42 : vector<4x4x128xf32>
    %44 = vector.extract_strided_slice %11 {offsets = [2, 2, 0], sizes = [1, 1, 128], strides = [1, 1, 1]} : vector<3x3x128xf32> to vector<1x1x128xf32>
    %c2_45 = arith.constant 2 : index
    %c2_46 = arith.constant 2 : index
    %c0_47 = arith.constant 0 : index
    %45 = vector.load %arg11[%c2_45, %c2_46, %c0_47] : memref<6x6x128xf32, #tpu.memory_space<vmem>>, vector<4x4x128xf32>
    %46 = vector.broadcast %44 : vector<1x1x128xf32> to vector<4x4x128xf32>
    %47 = arith.mulf %45, %46 : vector<4x4x128xf32>
    %48 = arith.addf %15, %19 : vector<4x4x128xf32>
    %49 = arith.addf %23, %27 : vector<4x4x128xf32>
    %50 = arith.addf %31, %35 : vector<4x4x128xf32>
    %51 = arith.addf %39, %43 : vector<4x4x128xf32>
    %52 = arith.addf %48, %49 : vector<4x4x128xf32>
    %53 = arith.addf %50, %51 : vector<4x4x128xf32>
    %54 = arith.addf %52, %53 : vector<4x4x128xf32>
    %55 = arith.addf %54, %47 : vector<4x4x128xf32>
    %56 = vector.shape_cast %55 : vector<4x4x128xf32> to vector<16x128xf32>
    %c0_48 = arith.constant 0 : index
    %c0_49 = arith.constant 0 : index
    %57 = vector.load %arg3[%c0_48, %c0_49] : memref<128x128xf32, #tpu.memory_space<vmem>>, vector<128x128xf32>
    %cst_50 = arith.constant dense<0.000000e+00> : vector<16x128xf32>
    %58 = tpu.matmul %56, %57, %cst_50 {dimension_numbers = #tpu.dot_dimension_numbers<[1], [0], [0], [1], [0, 0, 1, 1], [], []>} : vector<16x128xf32>, vector<128x128xf32>, vector<16x128xf32> -> vector<16x128xf32>
    %c0_51 = arith.constant 0 : index
    %c0_52 = arith.constant 0 : index
    %59 = vector.load %arg4[%c0_51, %c0_52] : memref<1x128xf32, #tpu.memory_space<vmem>>, vector<1x128xf32>
    %60 = vector.broadcast %59 : vector<1x128xf32> to vector<16x128xf32>
    %61 = arith.addf %58, %60 : vector<16x128xf32>
    %cst_53 = arith.constant 0.000000e+00 : f32
    %62 = vector.broadcast %cst_53 : f32 to vector<16x128xf32>
    %63 = arith.maximumf %61, %62 : vector<16x128xf32>
    %64 = vector.shape_cast %63 : vector<16x128xf32> to vector<4x4x128xf32>
    %c1_54 = arith.constant 1 : index
    %c1_55 = arith.constant 1 : index
    %c0_56 = arith.constant 0 : index
    %65 = vector.load %arg11[%c1_54, %c1_55, %c0_56] : memref<6x6x128xf32, #tpu.memory_space<vmem>>, vector<4x4x128xf32>
    tpu.vector_store %arg11[%c1_54, %c1_55, %c0_56], %64 {strides = array<i32>} : memref<6x6x128xf32, #tpu.memory_space<vmem>>, vector<4x4x128xf32>,
    %c0_57 = arith.constant 0 : index
    %c0_58 = arith.constant 0 : index
    %c0_59 = arith.constant 0 : index
    %66 = vector.load %arg5[%c0_57, %c0_58, %c0_59] : memref<3x3x128xf32, #tpu.memory_space<vmem>>, vector<3x3x128xf32>
    %67 = vector.extract_strided_slice %66 {offsets = [0, 0, 0], sizes = [1, 1, 128], strides = [1, 1, 1]} : vector<3x3x128xf32> to vector<1x1x128xf32>
    %c0_60 = arith.constant 0 : index
    %c0_61 = arith.constant 0 : index
    %c0_62 = arith.constant 0 : index
    %68 = vector.load %arg11[%c0_60, %c0_61, %c0_62] : memref<6x6x128xf32, #tpu.memory_space<vmem>>, vector<4x4x128xf32>
    %69 = vector.broadcast %67 : vector<1x1x128xf32> to vector<4x4x128xf32>
    %70 = arith.mulf %68, %69 : vector<4x4x128xf32>
    %71 = vector.extract_strided_slice %66 {offsets = [0, 1, 0], sizes = [1, 1, 128], strides = [1, 1, 1]} : vector<3x3x128xf32> to vector<1x1x128xf32>
    %c0_63 = arith.constant 0 : index
    %c1_64 = arith.constant 1 : index
    %c0_65 = arith.constant 0 : index
    %72 = vector.load %arg11[%c0_63, %c1_64, %c0_65] : memref<6x6x128xf32, #tpu.memory_space<vmem>>, vector<4x4x128xf32>
    %73 = vector.broadcast %71 : vector<1x1x128xf32> to vector<4x4x128xf32>
    %74 = arith.mulf %72, %73 : vector<4x4x128xf32>
    %75 = vector.extract_strided_slice %66 {offsets = [0, 2, 0], sizes = [1, 1, 128], strides = [1, 1, 1]} : vector<3x3x128xf32> to vector<1x1x128xf32>
    %c0_66 = arith.constant 0 : index
    %c2_67 = arith.constant 2 : index
    %c0_68 = arith.constant 0 : index
    %76 = vector.load %arg11[%c0_66, %c2_67, %c0_68] : memref<6x6x128xf32, #tpu.memory_space<vmem>>, vector<4x4x128xf32>
    %77 = vector.broadcast %75 : vector<1x1x128xf32> to vector<4x4x128xf32>
    %78 = arith.mulf %76, %77 : vector<4x4x128xf32>
    %79 = vector.extract_strided_slice %66 {offsets = [1, 0, 0], sizes = [1, 1, 128], strides = [1, 1, 1]} : vector<3x3x128xf32> to vector<1x1x128xf32>
    %c1_69 = arith.constant 1 : index
    %c0_70 = arith.constant 0 : index
    %c0_71 = arith.constant 0 : index
    %80 = vector.load %arg11[%c1_69, %c0_70, %c0_71] : memref<6x6x128xf32, #tpu.memory_space<vmem>>, vector<4x4x128xf32>
    %81 = vector.broadcast %79 : vector<1x1x128xf32> to vector<4x4x128xf32>
    %82 = arith.mulf %80, %81 : vector<4x4x128xf32>
    %83 = vector.extract_strided_slice %66 {offsets = [1, 1, 0], sizes = [1, 1, 128], strides = [1, 1, 1]} : vector<3x3x128xf32> to vector<1x1x128xf32>
    %c1_72 = arith.constant 1 : index
    %c1_73 = arith.constant 1 : index
    %c0_74 = arith.constant 0 : index
    %84 = vector.load %arg11[%c1_72, %c1_73, %c0_74] : memref<6x6x128xf32, #tpu.memory_space<vmem>>, vector<4x4x128xf32>
    %85 = vector.broadcast %83 : vector<1x1x128xf32> to vector<4x4x128xf32>
    %86 = arith.mulf %84, %85 : vector<4x4x128xf32>
    %87 = vector.extract_strided_slice %66 {offsets = [1, 2, 0], sizes = [1, 1, 128], strides = [1, 1, 1]} : vector<3x3x128xf32> to vector<1x1x128xf32>
    %c1_75 = arith.constant 1 : index
    %c2_76 = arith.constant 2 : index
    %c0_77 = arith.constant 0 : index
    %88 = vector.load %arg11[%c1_75, %c2_76, %c0_77] : memref<6x6x128xf32, #tpu.memory_space<vmem>>, vector<4x4x128xf32>
    %89 = vector.broadcast %87 : vector<1x1x128xf32> to vector<4x4x128xf32>
    %90 = arith.mulf %88, %89 : vector<4x4x128xf32>
    %91 = vector.extract_strided_slice %66 {offsets = [2, 0, 0], sizes = [1, 1, 128], strides = [1, 1, 1]} : vector<3x3x128xf32> to vector<1x1x128xf32>
    %c2_78 = arith.constant 2 : index
    %c0_79 = arith.constant 0 : index
    %c0_80 = arith.constant 0 : index
    %92 = vector.load %arg11[%c2_78, %c0_79, %c0_80] : memref<6x6x128xf32, #tpu.memory_space<vmem>>, vector<4x4x128xf32>
    %93 = vector.broadcast %91 : vector<1x1x128xf32> to vector<4x4x128xf32>
    %94 = arith.mulf %92, %93 : vector<4x4x128xf32>
    %95 = vector.extract_strided_slice %66 {offsets = [2, 1, 0], sizes = [1, 1, 128], strides = [1, 1, 1]} : vector<3x3x128xf32> to vector<1x1x128xf32>
    %c2_81 = arith.constant 2 : index
    %c1_82 = arith.constant 1 : index
    %c0_83 = arith.constant 0 : index
    %96 = vector.load %arg11[%c2_81, %c1_82, %c0_83] : memref<6x6x128xf32, #tpu.memory_space<vmem>>, vector<4x4x128xf32>
    %97 = vector.broadcast %95 : vector<1x1x128xf32> to vector<4x4x128xf32>
    %98 = arith.mulf %96, %97 : vector<4x4x128xf32>
    %99 = vector.extract_strided_slice %66 {offsets = [2, 2, 0], sizes = [1, 1, 128], strides = [1, 1, 1]} : vector<3x3x128xf32> to vector<1x1x128xf32>
    %c2_84 = arith.constant 2 : index
    %c2_85 = arith.constant 2 : index
    %c0_86 = arith.constant 0 : index
    %100 = vector.load %arg11[%c2_84, %c2_85, %c0_86] : memref<6x6x128xf32, #tpu.memory_space<vmem>>, vector<4x4x128xf32>
    %101 = vector.broadcast %99 : vector<1x1x128xf32> to vector<4x4x128xf32>
    %102 = arith.mulf %100, %101 : vector<4x4x128xf32>
    %103 = arith.addf %70, %74 : vector<4x4x128xf32>
    %104 = arith.addf %78, %82 : vector<4x4x128xf32>
    %105 = arith.addf %86, %90 : vector<4x4x128xf32>
    %106 = arith.addf %94, %98 : vector<4x4x128xf32>
    %107 = arith.addf %103, %104 : vector<4x4x128xf32>
    %108 = arith.addf %105, %106 : vector<4x4x128xf32>
    %109 = arith.addf %107, %108 : vector<4x4x128xf32>
    %110 = arith.addf %109, %102 : vector<4x4x128xf32>
    %111 = vector.shape_cast %110 : vector<4x4x128xf32> to vector<16x128xf32>
    %c0_87 = arith.constant 0 : index
    %c0_88 = arith.constant 0 : index
    %112 = vector.load %arg6[%c0_87, %c0_88] : memref<128x128xf32, #tpu.memory_space<vmem>>, vector<128x128xf32>
    %cst_89 = arith.constant dense<0.000000e+00> : vector<16x128xf32>
    %113 = tpu.matmul %111, %112, %cst_89 {dimension_numbers = #tpu.dot_dimension_numbers<[1], [0], [0], [1], [0, 0, 1, 1], [], []>} : vector<16x128xf32>, vector<128x128xf32>, vector<16x128xf32> -> vector<16x128xf32>
    %c0_90 = arith.constant 0 : index
    %c0_91 = arith.constant 0 : index
    %114 = vector.load %arg7[%c0_90, %c0_91] : memref<1x128xf32, #tpu.memory_space<vmem>>, vector<1x128xf32>
    %115 = vector.broadcast %114 : vector<1x128xf32> to vector<16x128xf32>
    %116 = arith.addf %113, %115 : vector<16x128xf32>
    %cst_92 = arith.constant 0.000000e+00 : f32
    %117 = vector.broadcast %cst_92 : f32 to vector<16x128xf32>
    %118 = arith.maximumf %116, %117 : vector<16x128xf32>
    %119 = vector.shape_cast %1 : vector<4x4x128xf32> to vector<16x128xf32>
    %c0_93 = arith.constant 0 : index
    %c0_94 = arith.constant 0 : index
    %120 = vector.load %arg8[%c0_93, %c0_94] : memref<128x128xf32, #tpu.memory_space<vmem>>, vector<128x128xf32>
    %cst_95 = arith.constant dense<0.000000e+00> : vector<16x128xf32>
    %121 = tpu.matmul %119, %120, %cst_95 {dimension_numbers = #tpu.dot_dimension_numbers<[1], [0], [0], [1], [0, 0, 1, 1], [], []>} : vector<16x128xf32>, vector<128x128xf32>, vector<16x128xf32> -> vector<16x128xf32>
    %c0_96 = arith.constant 0 : index
    %c0_97 = arith.constant 0 : index
    %122 = vector.load %arg9[%c0_96, %c0_97] : memref<1x128xf32, #tpu.memory_space<vmem>>, vector<1x128xf32>
    %123 = vector.broadcast %122 : vector<1x128xf32> to vector<16x128xf32>
    %124 = arith.addf %121, %123 : vector<16x128xf32>
    %125 = arith.addf %118, %124 : vector<16x128xf32>
    %cst_98 = arith.constant 0.000000e+00 : f32
    %126 = vector.broadcast %cst_98 : f32 to vector<16x128xf32>
    %127 = arith.maximumf %125, %126 : vector<16x128xf32>
    %128 = vector.shape_cast %127 : vector<16x128xf32> to vector<1x16x128xf32>
    %c0_99 = arith.constant 0 : index
    %c0_100 = arith.constant 0 : index
    %c0_101 = arith.constant 0 : index
    %129 = vector.load %arg10[%c0_99, %c0_100, %c0_101] : memref<1x16x128xf32, #tpu.memory_space<vmem>>, vector<1x16x128xf32>
    tpu.vector_store %arg10[%c0_99, %c0_100, %c0_101], %128 {strides = array<i32>} : memref<1x16x128xf32, #tpu.memory_space<vmem>>, vector<1x16x128xf32>,
    return
  }
  func.func @transform_0(%arg0: i32) -> (i32, i32, i32, i32) {
    %c0_i32 = arith.constant 0 : i32
    %c0_i32_0 = arith.constant 0 : i32
    %c0_i32_1 = arith.constant 0 : i32
    %c0_i32_2 = arith.constant 0 : i32
    return %arg0, %c0_i32, %c0_i32_0, %c0_i32_1 : i32, i32, i32, i32
  }
  func.func @transform_1(%arg0: i32) -> (i32, i32, i32) {
    %c0_i32 = arith.constant 0 : i32
    %c0_i32_0 = arith.constant 0 : i32
    %c0_i32_1 = arith.constant 0 : i32
    %c0_i32_2 = arith.constant 0 : i32
    return %c0_i32, %c0_i32_0, %c0_i32_1 : i32, i32, i32
  }
  func.func @transform_2(%arg0: i32) -> (i32, i32) {
    %c0_i32 = arith.constant 0 : i32
    %c0_i32_0 = arith.constant 0 : i32
    %c0_i32_1 = arith.constant 0 : i32
    return %c0_i32, %c0_i32_0 : i32, i32
  }
  func.func @transform_3(%arg0: i32) -> (i32, i32) {
    %c0_i32 = arith.constant 0 : i32
    %c0_i32_0 = arith.constant 0 : i32
    %c0_i32_1 = arith.constant 0 : i32
    return %c0_i32, %c0_i32_0 : i32, i32
  }
  func.func @transform_4(%arg0: i32) -> (i32, i32, i32) {
    %c0_i32 = arith.constant 0 : i32
    %c0_i32_0 = arith.constant 0 : i32
    %c0_i32_1 = arith.constant 0 : i32
    %c0_i32_2 = arith.constant 0 : i32
    return %c0_i32, %c0_i32_0, %c0_i32_1 : i32, i32, i32
  }
  func.func @transform_5(%arg0: i32) -> (i32, i32) {
    %c0_i32 = arith.constant 0 : i32
    %c0_i32_0 = arith.constant 0 : i32
    %c0_i32_1 = arith.constant 0 : i32
    return %c0_i32, %c0_i32_0 : i32, i32
  }
  func.func @transform_6(%arg0: i32) -> (i32, i32) {
    %c0_i32 = arith.constant 0 : i32
    %c0_i32_0 = arith.constant 0 : i32
    %c0_i32_1 = arith.constant 0 : i32
    return %c0_i32, %c0_i32_0 : i32, i32
  }
  func.func @transform_7(%arg0: i32) -> (i32, i32) {
    %c0_i32 = arith.constant 0 : i32
    %c0_i32_0 = arith.constant 0 : i32
    %c0_i32_1 = arith.constant 0 : i32
    return %c0_i32, %c0_i32_0 : i32, i32
  }
  func.func @transform_8(%arg0: i32) -> (i32, i32) {
    %c0_i32 = arith.constant 0 : i32
    %c0_i32_0 = arith.constant 0 : i32
    %c0_i32_1 = arith.constant 0 : i32
    return %c0_i32, %c0_i32_0 : i32, i32
  }
  func.func @transform_9(%arg0: i32) -> (i32, i32, i32) {
    %c0_i32 = arith.constant 0 : i32
    %c0_i32_0 = arith.constant 0 : i32
    %c0_i32_1 = arith.constant 0 : i32
    return %arg0, %c0_i32, %c0_i32_0 : i32, i32, i32
  }
}

module attributes {stable_mosaic.version = 11 : i64} {
  func.func @kernel(%arg0: i32, %arg1: memref<1x4x4x128xf32, #tpu.memory_space<vmem>>, %arg2: memref<3x3x128xf32, #tpu.memory_space<vmem>>, %arg3: memref<128x128xf32, #tpu.memory_space<vmem>>, %arg4: memref<1x128xf32, #tpu.memory_space<vmem>>, %arg5: memref<3x3x128xf32, #tpu.memory_space<vmem>>, %arg6: memref<128x128xf32, #tpu.memory_space<vmem>>, %arg7: memref<1x128xf32, #tpu.memory_space<vmem>>, %arg8: memref<1x16x128xf32, #tpu.memory_space<vmem>>, %arg9: memref<6x6x128xf32, #tpu.memory_space<vmem>>) attributes {dimension_semantics = [#tpu.dimension_semantics<parallel>], iteration_bounds = array<i64: 2>, scalar_prefetch = 0 : i64, scratch_operands = 1 : i64, tpu.core_type = #tpu.core_type<tc>, window_params = [{transform_indices = @transform_0, window_bounds = array<i64: 1, 4, 4, 128>}, {pipeline_mode = #tpu.pipeline_mode<synchronous>, transform_indices = @transform_1, window_bounds = array<i64: 3, 3, 128>}, {pipeline_mode = #tpu.pipeline_mode<synchronous>, transform_indices = @transform_2, window_bounds = array<i64: 128, 128>}, {pipeline_mode = #tpu.pipeline_mode<synchronous>, transform_indices = @transform_3, window_bounds = array<i64: 1, 128>}, {pipeline_mode = #tpu.pipeline_mode<synchronous>, transform_indices = @transform_4, window_bounds = array<i64: 3, 3, 128>}, {pipeline_mode = #tpu.pipeline_mode<synchronous>, transform_indices = @transform_5, window_bounds = array<i64: 128, 128>}, {pipeline_mode = #tpu.pipeline_mode<synchronous>, transform_indices = @transform_6, window_bounds = array<i64: 1, 128>}, {transform_indices = @transform_7, window_bounds = array<i64: 1, 16, 128>}]} {
    %c0 = arith.constant 0 : index
    %c0_0 = arith.constant 0 : index
    %c0_1 = arith.constant 0 : index
    %c0_2 = arith.constant 0 : index
    %0 = vector.load %arg1[%c0, %c0_0, %c0_1, %c0_2] : memref<1x4x4x128xf32, #tpu.memory_space<vmem>>, vector<1x4x4x128xf32>
    %1 = vector.shape_cast %0 : vector<1x4x4x128xf32> to vector<4x4x128xf32>
    %cst = arith.constant 0.000000e+00 : f32
    %2 = vector.broadcast %cst : f32 to vector<1x6x128xf32>
    %c0_3 = arith.constant 0 : index
    %c0_4 = arith.constant 0 : index
    %c0_5 = arith.constant 0 : index
    %3 = vector.load %arg9[%c0_3, %c0_4, %c0_5] : memref<6x6x128xf32, #tpu.memory_space<vmem>>, vector<1x6x128xf32>
    tpu.vector_store %arg9[%c0_3, %c0_4, %c0_5], %2 {strides = array<i32>} : memref<6x6x128xf32, #tpu.memory_space<vmem>>, vector<1x6x128xf32>,
    %cst_6 = arith.constant 0.000000e+00 : f32
    %4 = vector.broadcast %cst_6 : f32 to vector<1x6x128xf32>
    %c5 = arith.constant 5 : index
    %c0_7 = arith.constant 0 : index
    %c0_8 = arith.constant 0 : index
    %5 = vector.load %arg9[%c5, %c0_7, %c0_8] : memref<6x6x128xf32, #tpu.memory_space<vmem>>, vector<1x6x128xf32>
    tpu.vector_store %arg9[%c5, %c0_7, %c0_8], %4 {strides = array<i32>} : memref<6x6x128xf32, #tpu.memory_space<vmem>>, vector<1x6x128xf32>,
    %cst_9 = arith.constant 0.000000e+00 : f32
    %6 = vector.broadcast %cst_9 : f32 to vector<6x1x128xf32>
    %c0_10 = arith.constant 0 : index
    %c0_11 = arith.constant 0 : index
    %c0_12 = arith.constant 0 : index
    %7 = vector.load %arg9[%c0_10, %c0_11, %c0_12] : memref<6x6x128xf32, #tpu.memory_space<vmem>>, vector<6x1x128xf32>
    tpu.vector_store %arg9[%c0_10, %c0_11, %c0_12], %6 {strides = array<i32>} : memref<6x6x128xf32, #tpu.memory_space<vmem>>, vector<6x1x128xf32>,
    %cst_13 = arith.constant 0.000000e+00 : f32
    %8 = vector.broadcast %cst_13 : f32 to vector<6x1x128xf32>
    %c0_14 = arith.constant 0 : index
    %c5_15 = arith.constant 5 : index
    %c0_16 = arith.constant 0 : index
    %9 = vector.load %arg9[%c0_14, %c5_15, %c0_16] : memref<6x6x128xf32, #tpu.memory_space<vmem>>, vector<6x1x128xf32>
    tpu.vector_store %arg9[%c0_14, %c5_15, %c0_16], %8 {strides = array<i32>} : memref<6x6x128xf32, #tpu.memory_space<vmem>>, vector<6x1x128xf32>,
    %c1 = arith.constant 1 : index
    %c1_17 = arith.constant 1 : index
    %c0_18 = arith.constant 0 : index
    %10 = vector.load %arg9[%c1, %c1_17, %c0_18] : memref<6x6x128xf32, #tpu.memory_space<vmem>>, vector<4x4x128xf32>
    tpu.vector_store %arg9[%c1, %c1_17, %c0_18], %1 {strides = array<i32>} : memref<6x6x128xf32, #tpu.memory_space<vmem>>, vector<4x4x128xf32>,
    %c0_19 = arith.constant 0 : index
    %c0_20 = arith.constant 0 : index
    %c0_21 = arith.constant 0 : index
    %11 = vector.load %arg2[%c0_19, %c0_20, %c0_21] : memref<3x3x128xf32, #tpu.memory_space<vmem>>, vector<3x3x128xf32>
    %12 = vector.extract_strided_slice %11 {offsets = [0, 0, 0], sizes = [1, 1, 128], strides = [1, 1, 1]} : vector<3x3x128xf32> to vector<1x1x128xf32>
    %c0_22 = arith.constant 0 : index
    %c0_23 = arith.constant 0 : index
    %c0_24 = arith.constant 0 : index
    %13 = vector.load %arg9[%c0_22, %c0_23, %c0_24] : memref<6x6x128xf32, #tpu.memory_space<vmem>>, vector<4x4x128xf32>
    %14 = vector.broadcast %12 : vector<1x1x128xf32> to vector<4x4x128xf32>
    %15 = arith.mulf %13, %14 : vector<4x4x128xf32>
    %16 = vector.extract_strided_slice %11 {offsets = [0, 1, 0], sizes = [1, 1, 128], strides = [1, 1, 1]} : vector<3x3x128xf32> to vector<1x1x128xf32>
    %c0_25 = arith.constant 0 : index
    %c1_26 = arith.constant 1 : index
    %c0_27 = arith.constant 0 : index
    %17 = vector.load %arg9[%c0_25, %c1_26, %c0_27] : memref<6x6x128xf32, #tpu.memory_space<vmem>>, vector<4x4x128xf32>
    %18 = vector.broadcast %16 : vector<1x1x128xf32> to vector<4x4x128xf32>
    %19 = arith.mulf %17, %18 : vector<4x4x128xf32>
    %20 = vector.extract_strided_slice %11 {offsets = [0, 2, 0], sizes = [1, 1, 128], strides = [1, 1, 1]} : vector<3x3x128xf32> to vector<1x1x128xf32>
    %c0_28 = arith.constant 0 : index
    %c2 = arith.constant 2 : index
    %c0_29 = arith.constant 0 : index
    %21 = vector.load %arg9[%c0_28, %c2, %c0_29] : memref<6x6x128xf32, #tpu.memory_space<vmem>>, vector<4x4x128xf32>
    %22 = vector.broadcast %20 : vector<1x1x128xf32> to vector<4x4x128xf32>
    %23 = arith.mulf %21, %22 : vector<4x4x128xf32>
    %24 = vector.extract_strided_slice %11 {offsets = [1, 0, 0], sizes = [1, 1, 128], strides = [1, 1, 1]} : vector<3x3x128xf32> to vector<1x1x128xf32>
    %c1_30 = arith.constant 1 : index
    %c0_31 = arith.constant 0 : index
    %c0_32 = arith.constant 0 : index
    %25 = vector.load %arg9[%c1_30, %c0_31, %c0_32] : memref<6x6x128xf32, #tpu.memory_space<vmem>>, vector<4x4x128xf32>
    %26 = vector.broadcast %24 : vector<1x1x128xf32> to vector<4x4x128xf32>
    %27 = arith.mulf %25, %26 : vector<4x4x128xf32>
    %28 = vector.extract_strided_slice %11 {offsets = [1, 1, 0], sizes = [1, 1, 128], strides = [1, 1, 1]} : vector<3x3x128xf32> to vector<1x1x128xf32>
    %c1_33 = arith.constant 1 : index
    %c1_34 = arith.constant 1 : index
    %c0_35 = arith.constant 0 : index
    %29 = vector.load %arg9[%c1_33, %c1_34, %c0_35] : memref<6x6x128xf32, #tpu.memory_space<vmem>>, vector<4x4x128xf32>
    %30 = vector.broadcast %28 : vector<1x1x128xf32> to vector<4x4x128xf32>
    %31 = arith.mulf %29, %30 : vector<4x4x128xf32>
    %32 = vector.extract_strided_slice %11 {offsets = [1, 2, 0], sizes = [1, 1, 128], strides = [1, 1, 1]} : vector<3x3x128xf32> to vector<1x1x128xf32>
    %c1_36 = arith.constant 1 : index
    %c2_37 = arith.constant 2 : index
    %c0_38 = arith.constant 0 : index
    %33 = vector.load %arg9[%c1_36, %c2_37, %c0_38] : memref<6x6x128xf32, #tpu.memory_space<vmem>>, vector<4x4x128xf32>
    %34 = vector.broadcast %32 : vector<1x1x128xf32> to vector<4x4x128xf32>
    %35 = arith.mulf %33, %34 : vector<4x4x128xf32>
    %36 = vector.extract_strided_slice %11 {offsets = [2, 0, 0], sizes = [1, 1, 128], strides = [1, 1, 1]} : vector<3x3x128xf32> to vector<1x1x128xf32>
    %c2_39 = arith.constant 2 : index
    %c0_40 = arith.constant 0 : index
    %c0_41 = arith.constant 0 : index
    %37 = vector.load %arg9[%c2_39, %c0_40, %c0_41] : memref<6x6x128xf32, #tpu.memory_space<vmem>>, vector<4x4x128xf32>
    %38 = vector.broadcast %36 : vector<1x1x128xf32> to vector<4x4x128xf32>
    %39 = arith.mulf %37, %38 : vector<4x4x128xf32>
    %40 = vector.extract_strided_slice %11 {offsets = [2, 1, 0], sizes = [1, 1, 128], strides = [1, 1, 1]} : vector<3x3x128xf32> to vector<1x1x128xf32>
    %c2_42 = arith.constant 2 : index
    %c1_43 = arith.constant 1 : index
    %c0_44 = arith.constant 0 : index
    %41 = vector.load %arg9[%c2_42, %c1_43, %c0_44] : memref<6x6x128xf32, #tpu.memory_space<vmem>>, vector<4x4x128xf32>
    %42 = vector.broadcast %40 : vector<1x1x128xf32> to vector<4x4x128xf32>
    %43 = arith.mulf %41, %42 : vector<4x4x128xf32>
    %44 = vector.extract_strided_slice %11 {offsets = [2, 2, 0], sizes = [1, 1, 128], strides = [1, 1, 1]} : vector<3x3x128xf32> to vector<1x1x128xf32>
    %c2_45 = arith.constant 2 : index
    %c2_46 = arith.constant 2 : index
    %c0_47 = arith.constant 0 : index
    %45 = vector.load %arg9[%c2_45, %c2_46, %c0_47] : memref<6x6x128xf32, #tpu.memory_space<vmem>>, vector<4x4x128xf32>
    %46 = vector.broadcast %44 : vector<1x1x128xf32> to vector<4x4x128xf32>
    %47 = arith.mulf %45, %46 : vector<4x4x128xf32>
    %48 = arith.addf %15, %19 : vector<4x4x128xf32>
    %49 = arith.addf %23, %27 : vector<4x4x128xf32>
    %50 = arith.addf %31, %35 : vector<4x4x128xf32>
    %51 = arith.addf %39, %43 : vector<4x4x128xf32>
    %52 = arith.addf %48, %49 : vector<4x4x128xf32>
    %53 = arith.addf %50, %51 : vector<4x4x128xf32>
    %54 = arith.addf %52, %53 : vector<4x4x128xf32>
    %55 = arith.addf %54, %47 : vector<4x4x128xf32>
    %56 = vector.shape_cast %55 : vector<4x4x128xf32> to vector<16x128xf32>
    %c0_48 = arith.constant 0 : index
    %c0_49 = arith.constant 0 : index
    %57 = vector.load %arg3[%c0_48, %c0_49] : memref<128x128xf32, #tpu.memory_space<vmem>>, vector<128x128xf32>
    %cst_50 = arith.constant dense<0.000000e+00> : vector<16x128xf32>
    %58 = tpu.matmul %56, %57, %cst_50 {dimension_numbers = #tpu.dot_dimension_numbers<[1], [0], [0], [1], [0, 0, 1, 1], [], []>} : vector<16x128xf32>, vector<128x128xf32>, vector<16x128xf32> -> vector<16x128xf32>
    %c0_51 = arith.constant 0 : index
    %c0_52 = arith.constant 0 : index
    %59 = vector.load %arg4[%c0_51, %c0_52] : memref<1x128xf32, #tpu.memory_space<vmem>>, vector<1x128xf32>
    %60 = vector.broadcast %59 : vector<1x128xf32> to vector<16x128xf32>
    %61 = arith.addf %58, %60 : vector<16x128xf32>
    %cst_53 = arith.constant 0.000000e+00 : f32
    %62 = vector.broadcast %cst_53 : f32 to vector<16x128xf32>
    %63 = arith.maximumf %61, %62 : vector<16x128xf32>
    %64 = vector.shape_cast %63 : vector<16x128xf32> to vector<4x4x128xf32>
    %c1_54 = arith.constant 1 : index
    %c1_55 = arith.constant 1 : index
    %c0_56 = arith.constant 0 : index
    %65 = vector.load %arg9[%c1_54, %c1_55, %c0_56] : memref<6x6x128xf32, #tpu.memory_space<vmem>>, vector<4x4x128xf32>
    tpu.vector_store %arg9[%c1_54, %c1_55, %c0_56], %64 {strides = array<i32>} : memref<6x6x128xf32, #tpu.memory_space<vmem>>, vector<4x4x128xf32>,
    %c0_57 = arith.constant 0 : index
    %c0_58 = arith.constant 0 : index
    %c0_59 = arith.constant 0 : index
    %66 = vector.load %arg5[%c0_57, %c0_58, %c0_59] : memref<3x3x128xf32, #tpu.memory_space<vmem>>, vector<3x3x128xf32>
    %67 = vector.extract_strided_slice %66 {offsets = [0, 0, 0], sizes = [1, 1, 128], strides = [1, 1, 1]} : vector<3x3x128xf32> to vector<1x1x128xf32>
    %c0_60 = arith.constant 0 : index
    %c0_61 = arith.constant 0 : index
    %c0_62 = arith.constant 0 : index
    %68 = vector.load %arg9[%c0_60, %c0_61, %c0_62] : memref<6x6x128xf32, #tpu.memory_space<vmem>>, vector<4x4x128xf32>
    %69 = vector.broadcast %67 : vector<1x1x128xf32> to vector<4x4x128xf32>
    %70 = arith.mulf %68, %69 : vector<4x4x128xf32>
    %71 = vector.extract_strided_slice %66 {offsets = [0, 1, 0], sizes = [1, 1, 128], strides = [1, 1, 1]} : vector<3x3x128xf32> to vector<1x1x128xf32>
    %c0_63 = arith.constant 0 : index
    %c1_64 = arith.constant 1 : index
    %c0_65 = arith.constant 0 : index
    %72 = vector.load %arg9[%c0_63, %c1_64, %c0_65] : memref<6x6x128xf32, #tpu.memory_space<vmem>>, vector<4x4x128xf32>
    %73 = vector.broadcast %71 : vector<1x1x128xf32> to vector<4x4x128xf32>
    %74 = arith.mulf %72, %73 : vector<4x4x128xf32>
    %75 = vector.extract_strided_slice %66 {offsets = [0, 2, 0], sizes = [1, 1, 128], strides = [1, 1, 1]} : vector<3x3x128xf32> to vector<1x1x128xf32>
    %c0_66 = arith.constant 0 : index
    %c2_67 = arith.constant 2 : index
    %c0_68 = arith.constant 0 : index
    %76 = vector.load %arg9[%c0_66, %c2_67, %c0_68] : memref<6x6x128xf32, #tpu.memory_space<vmem>>, vector<4x4x128xf32>
    %77 = vector.broadcast %75 : vector<1x1x128xf32> to vector<4x4x128xf32>
    %78 = arith.mulf %76, %77 : vector<4x4x128xf32>
    %79 = vector.extract_strided_slice %66 {offsets = [1, 0, 0], sizes = [1, 1, 128], strides = [1, 1, 1]} : vector<3x3x128xf32> to vector<1x1x128xf32>
    %c1_69 = arith.constant 1 : index
    %c0_70 = arith.constant 0 : index
    %c0_71 = arith.constant 0 : index
    %80 = vector.load %arg9[%c1_69, %c0_70, %c0_71] : memref<6x6x128xf32, #tpu.memory_space<vmem>>, vector<4x4x128xf32>
    %81 = vector.broadcast %79 : vector<1x1x128xf32> to vector<4x4x128xf32>
    %82 = arith.mulf %80, %81 : vector<4x4x128xf32>
    %83 = vector.extract_strided_slice %66 {offsets = [1, 1, 0], sizes = [1, 1, 128], strides = [1, 1, 1]} : vector<3x3x128xf32> to vector<1x1x128xf32>
    %c1_72 = arith.constant 1 : index
    %c1_73 = arith.constant 1 : index
    %c0_74 = arith.constant 0 : index
    %84 = vector.load %arg9[%c1_72, %c1_73, %c0_74] : memref<6x6x128xf32, #tpu.memory_space<vmem>>, vector<4x4x128xf32>
    %85 = vector.broadcast %83 : vector<1x1x128xf32> to vector<4x4x128xf32>
    %86 = arith.mulf %84, %85 : vector<4x4x128xf32>
    %87 = vector.extract_strided_slice %66 {offsets = [1, 2, 0], sizes = [1, 1, 128], strides = [1, 1, 1]} : vector<3x3x128xf32> to vector<1x1x128xf32>
    %c1_75 = arith.constant 1 : index
    %c2_76 = arith.constant 2 : index
    %c0_77 = arith.constant 0 : index
    %88 = vector.load %arg9[%c1_75, %c2_76, %c0_77] : memref<6x6x128xf32, #tpu.memory_space<vmem>>, vector<4x4x128xf32>
    %89 = vector.broadcast %87 : vector<1x1x128xf32> to vector<4x4x128xf32>
    %90 = arith.mulf %88, %89 : vector<4x4x128xf32>
    %91 = vector.extract_strided_slice %66 {offsets = [2, 0, 0], sizes = [1, 1, 128], strides = [1, 1, 1]} : vector<3x3x128xf32> to vector<1x1x128xf32>
    %c2_78 = arith.constant 2 : index
    %c0_79 = arith.constant 0 : index
    %c0_80 = arith.constant 0 : index
    %92 = vector.load %arg9[%c2_78, %c0_79, %c0_80] : memref<6x6x128xf32, #tpu.memory_space<vmem>>, vector<4x4x128xf32>
    %93 = vector.broadcast %91 : vector<1x1x128xf32> to vector<4x4x128xf32>
    %94 = arith.mulf %92, %93 : vector<4x4x128xf32>
    %95 = vector.extract_strided_slice %66 {offsets = [2, 1, 0], sizes = [1, 1, 128], strides = [1, 1, 1]} : vector<3x3x128xf32> to vector<1x1x128xf32>
    %c2_81 = arith.constant 2 : index
    %c1_82 = arith.constant 1 : index
    %c0_83 = arith.constant 0 : index
    %96 = vector.load %arg9[%c2_81, %c1_82, %c0_83] : memref<6x6x128xf32, #tpu.memory_space<vmem>>, vector<4x4x128xf32>
    %97 = vector.broadcast %95 : vector<1x1x128xf32> to vector<4x4x128xf32>
    %98 = arith.mulf %96, %97 : vector<4x4x128xf32>
    %99 = vector.extract_strided_slice %66 {offsets = [2, 2, 0], sizes = [1, 1, 128], strides = [1, 1, 1]} : vector<3x3x128xf32> to vector<1x1x128xf32>
    %c2_84 = arith.constant 2 : index
    %c2_85 = arith.constant 2 : index
    %c0_86 = arith.constant 0 : index
    %100 = vector.load %arg9[%c2_84, %c2_85, %c0_86] : memref<6x6x128xf32, #tpu.memory_space<vmem>>, vector<4x4x128xf32>
    %101 = vector.broadcast %99 : vector<1x1x128xf32> to vector<4x4x128xf32>
    %102 = arith.mulf %100, %101 : vector<4x4x128xf32>
    %103 = arith.addf %70, %74 : vector<4x4x128xf32>
    %104 = arith.addf %78, %82 : vector<4x4x128xf32>
    %105 = arith.addf %86, %90 : vector<4x4x128xf32>
    %106 = arith.addf %94, %98 : vector<4x4x128xf32>
    %107 = arith.addf %103, %104 : vector<4x4x128xf32>
    %108 = arith.addf %105, %106 : vector<4x4x128xf32>
    %109 = arith.addf %107, %108 : vector<4x4x128xf32>
    %110 = arith.addf %109, %102 : vector<4x4x128xf32>
    %111 = vector.shape_cast %110 : vector<4x4x128xf32> to vector<16x128xf32>
    %c0_87 = arith.constant 0 : index
    %c0_88 = arith.constant 0 : index
    %112 = vector.load %arg6[%c0_87, %c0_88] : memref<128x128xf32, #tpu.memory_space<vmem>>, vector<128x128xf32>
    %cst_89 = arith.constant dense<0.000000e+00> : vector<16x128xf32>
    %113 = tpu.matmul %111, %112, %cst_89 {dimension_numbers = #tpu.dot_dimension_numbers<[1], [0], [0], [1], [0, 0, 1, 1], [], []>} : vector<16x128xf32>, vector<128x128xf32>, vector<16x128xf32> -> vector<16x128xf32>
    %c0_90 = arith.constant 0 : index
    %c0_91 = arith.constant 0 : index
    %114 = vector.load %arg7[%c0_90, %c0_91] : memref<1x128xf32, #tpu.memory_space<vmem>>, vector<1x128xf32>
    %115 = vector.broadcast %114 : vector<1x128xf32> to vector<16x128xf32>
    %116 = arith.addf %113, %115 : vector<16x128xf32>
    %117 = vector.shape_cast %1 : vector<4x4x128xf32> to vector<16x128xf32>
    %118 = arith.addf %116, %117 : vector<16x128xf32>
    %cst_92 = arith.constant 0.000000e+00 : f32
    %119 = vector.broadcast %cst_92 : f32 to vector<16x128xf32>
    %120 = arith.maximumf %118, %119 : vector<16x128xf32>
    %121 = vector.shape_cast %120 : vector<16x128xf32> to vector<1x16x128xf32>
    %c0_93 = arith.constant 0 : index
    %c0_94 = arith.constant 0 : index
    %c0_95 = arith.constant 0 : index
    %122 = vector.load %arg8[%c0_93, %c0_94, %c0_95] : memref<1x16x128xf32, #tpu.memory_space<vmem>>, vector<1x16x128xf32>
    tpu.vector_store %arg8[%c0_93, %c0_94, %c0_95], %121 {strides = array<i32>} : memref<1x16x128xf32, #tpu.memory_space<vmem>>, vector<1x16x128xf32>,
    return
  }
  func.func @transform_0(%arg0: i32) -> (i32, i32, i32, i32) {
    %c0_i32 = arith.constant 0 : i32
    %c0_i32_0 = arith.constant 0 : i32
    %c0_i32_1 = arith.constant 0 : i32
    %c0_i32_2 = arith.constant 0 : i32
    return %arg0, %c0_i32, %c0_i32_0, %c0_i32_1 : i32, i32, i32, i32
  }
  func.func @transform_1(%arg0: i32) -> (i32, i32, i32) {
    %c0_i32 = arith.constant 0 : i32
    %c0_i32_0 = arith.constant 0 : i32
    %c0_i32_1 = arith.constant 0 : i32
    %c0_i32_2 = arith.constant 0 : i32
    return %c0_i32, %c0_i32_0, %c0_i32_1 : i32, i32, i32
  }
  func.func @transform_2(%arg0: i32) -> (i32, i32) {
    %c0_i32 = arith.constant 0 : i32
    %c0_i32_0 = arith.constant 0 : i32
    %c0_i32_1 = arith.constant 0 : i32
    return %c0_i32, %c0_i32_0 : i32, i32
  }
  func.func @transform_3(%arg0: i32) -> (i32, i32) {
    %c0_i32 = arith.constant 0 : i32
    %c0_i32_0 = arith.constant 0 : i32
    %c0_i32_1 = arith.constant 0 : i32
    return %c0_i32, %c0_i32_0 : i32, i32
  }
  func.func @transform_4(%arg0: i32) -> (i32, i32, i32) {
    %c0_i32 = arith.constant 0 : i32
    %c0_i32_0 = arith.constant 0 : i32
    %c0_i32_1 = arith.constant 0 : i32
    %c0_i32_2 = arith.constant 0 : i32
    return %c0_i32, %c0_i32_0, %c0_i32_1 : i32, i32, i32
  }
  func.func @transform_5(%arg0: i32) -> (i32, i32) {
    %c0_i32 = arith.constant 0 : i32
    %c0_i32_0 = arith.constant 0 : i32
    %c0_i32_1 = arith.constant 0 : i32
    return %c0_i32, %c0_i32_0 : i32, i32
  }
  func.func @transform_6(%arg0: i32) -> (i32, i32) {
    %c0_i32 = arith.constant 0 : i32
    %c0_i32_0 = arith.constant 0 : i32
    %c0_i32_1 = arith.constant 0 : i32
    return %c0_i32, %c0_i32_0 : i32, i32
  }
  func.func @transform_7(%arg0: i32) -> (i32, i32, i32) {
    %c0_i32 = arith.constant 0 : i32
    %c0_i32_0 = arith.constant 0 : i32
    %c0_i32_1 = arith.constant 0 : i32
    return %arg0, %c0_i32, %c0_i32_0 : i32, i32, i32
  }
}

module attributes {stable_mosaic.version = 11 : i64} {
  func.func @kernel(%arg0: i32, %arg1: memref<1x4x4x128xf32, #tpu.memory_space<vmem>>, %arg2: memref<3x3x128xf32, #tpu.memory_space<vmem>>, %arg3: memref<128x128xf32, #tpu.memory_space<vmem>>, %arg4: memref<1x128xf32, #tpu.memory_space<vmem>>, %arg5: memref<1x4x128xf32, #tpu.memory_space<vmem>>, %arg6: memref<6x6x128xf32, #tpu.memory_space<vmem>>) attributes {dimension_semantics = [#tpu.dimension_semantics<parallel>], iteration_bounds = array<i64: 2>, scalar_prefetch = 0 : i64, scratch_operands = 1 : i64, tpu.core_type = #tpu.core_type<tc>, window_params = [{transform_indices = @transform_0, window_bounds = array<i64: 1, 4, 4, 128>}, {pipeline_mode = #tpu.pipeline_mode<synchronous>, transform_indices = @transform_1, window_bounds = array<i64: 3, 3, 128>}, {pipeline_mode = #tpu.pipeline_mode<synchronous>, transform_indices = @transform_2, window_bounds = array<i64: 128, 128>}, {pipeline_mode = #tpu.pipeline_mode<synchronous>, transform_indices = @transform_3, window_bounds = array<i64: 1, 128>}, {transform_indices = @transform_4, window_bounds = array<i64: 1, 4, 128>}]} {
    %cst = arith.constant 0.000000e+00 : f32
    %0 = vector.broadcast %cst : f32 to vector<1x6x128xf32>
    %c0 = arith.constant 0 : index
    %c0_0 = arith.constant 0 : index
    %c0_1 = arith.constant 0 : index
    %1 = vector.load %arg6[%c0, %c0_0, %c0_1] : memref<6x6x128xf32, #tpu.memory_space<vmem>>, vector<1x6x128xf32>
    tpu.vector_store %arg6[%c0, %c0_0, %c0_1], %0 {strides = array<i32>} : memref<6x6x128xf32, #tpu.memory_space<vmem>>, vector<1x6x128xf32>,
    %cst_2 = arith.constant 0.000000e+00 : f32
    %2 = vector.broadcast %cst_2 : f32 to vector<1x6x128xf32>
    %c5 = arith.constant 5 : index
    %c0_3 = arith.constant 0 : index
    %c0_4 = arith.constant 0 : index
    %3 = vector.load %arg6[%c5, %c0_3, %c0_4] : memref<6x6x128xf32, #tpu.memory_space<vmem>>, vector<1x6x128xf32>
    tpu.vector_store %arg6[%c5, %c0_3, %c0_4], %2 {strides = array<i32>} : memref<6x6x128xf32, #tpu.memory_space<vmem>>, vector<1x6x128xf32>,
    %cst_5 = arith.constant 0.000000e+00 : f32
    %4 = vector.broadcast %cst_5 : f32 to vector<6x1x128xf32>
    %c0_6 = arith.constant 0 : index
    %c0_7 = arith.constant 0 : index
    %c0_8 = arith.constant 0 : index
    %5 = vector.load %arg6[%c0_6, %c0_7, %c0_8] : memref<6x6x128xf32, #tpu.memory_space<vmem>>, vector<6x1x128xf32>
    tpu.vector_store %arg6[%c0_6, %c0_7, %c0_8], %4 {strides = array<i32>} : memref<6x6x128xf32, #tpu.memory_space<vmem>>, vector<6x1x128xf32>,
    %cst_9 = arith.constant 0.000000e+00 : f32
    %6 = vector.broadcast %cst_9 : f32 to vector<6x1x128xf32>
    %c0_10 = arith.constant 0 : index
    %c5_11 = arith.constant 5 : index
    %c0_12 = arith.constant 0 : index
    %7 = vector.load %arg6[%c0_10, %c5_11, %c0_12] : memref<6x6x128xf32, #tpu.memory_space<vmem>>, vector<6x1x128xf32>
    tpu.vector_store %arg6[%c0_10, %c5_11, %c0_12], %6 {strides = array<i32>} : memref<6x6x128xf32, #tpu.memory_space<vmem>>, vector<6x1x128xf32>,
    %c0_13 = arith.constant 0 : index
    %c0_14 = arith.constant 0 : index
    %c0_15 = arith.constant 0 : index
    %c0_16 = arith.constant 0 : index
    %8 = vector.load %arg1[%c0_13, %c0_14, %c0_15, %c0_16] : memref<1x4x4x128xf32, #tpu.memory_space<vmem>>, vector<1x4x4x128xf32>
    %9 = vector.shape_cast %8 : vector<1x4x4x128xf32> to vector<4x4x128xf32>
    %c1 = arith.constant 1 : index
    %c1_17 = arith.constant 1 : index
    %c0_18 = arith.constant 0 : index
    %10 = vector.load %arg6[%c1, %c1_17, %c0_18] : memref<6x6x128xf32, #tpu.memory_space<vmem>>, vector<4x4x128xf32>
    tpu.vector_store %arg6[%c1, %c1_17, %c0_18], %9 {strides = array<i32>} : memref<6x6x128xf32, #tpu.memory_space<vmem>>, vector<4x4x128xf32>,
    %c0_19 = arith.constant 0 : index
    %c0_20 = arith.constant 0 : index
    %c0_21 = arith.constant 0 : index
    %11 = vector.load %arg2[%c0_19, %c0_20, %c0_21] : memref<3x3x128xf32, #tpu.memory_space<vmem>>, vector<3x3x128xf32>
    %12 = vector.extract_strided_slice %11 {offsets = [0, 0, 0], sizes = [1, 1, 128], strides = [1, 1, 1]} : vector<3x3x128xf32> to vector<1x1x128xf32>
    %c0_22 = arith.constant 0 : index
    %c0_23 = arith.constant 0 : index
    %c0_24 = arith.constant 0 : index
    %13 = tpu.strided_load %arg6[%c0_22, %c0_23, %c0_24] {strides = array<i32: 2, 2, 1>} : memref<6x6x128xf32, #tpu.memory_space<vmem>>, vector<2x2x128xf32>
    %14 = vector.broadcast %12 : vector<1x1x128xf32> to vector<2x2x128xf32>
    %15 = arith.mulf %13, %14 : vector<2x2x128xf32>
    %16 = vector.extract_strided_slice %11 {offsets = [0, 1, 0], sizes = [1, 1, 128], strides = [1, 1, 1]} : vector<3x3x128xf32> to vector<1x1x128xf32>
    %c0_25 = arith.constant 0 : index
    %c1_26 = arith.constant 1 : index
    %c0_27 = arith.constant 0 : index
    %17 = tpu.strided_load %arg6[%c0_25, %c1_26, %c0_27] {strides = array<i32: 2, 2, 1>} : memref<6x6x128xf32, #tpu.memory_space<vmem>>, vector<2x2x128xf32>
    %18 = vector.broadcast %16 : vector<1x1x128xf32> to vector<2x2x128xf32>
    %19 = arith.mulf %17, %18 : vector<2x2x128xf32>
    %20 = vector.extract_strided_slice %11 {offsets = [0, 2, 0], sizes = [1, 1, 128], strides = [1, 1, 1]} : vector<3x3x128xf32> to vector<1x1x128xf32>
    %c0_28 = arith.constant 0 : index
    %c2 = arith.constant 2 : index
    %c0_29 = arith.constant 0 : index
    %21 = tpu.strided_load %arg6[%c0_28, %c2, %c0_29] {strides = array<i32: 2, 2, 1>} : memref<6x6x128xf32, #tpu.memory_space<vmem>>, vector<2x2x128xf32>
    %22 = vector.broadcast %20 : vector<1x1x128xf32> to vector<2x2x128xf32>
    %23 = arith.mulf %21, %22 : vector<2x2x128xf32>
    %24 = vector.extract_strided_slice %11 {offsets = [1, 0, 0], sizes = [1, 1, 128], strides = [1, 1, 1]} : vector<3x3x128xf32> to vector<1x1x128xf32>
    %c1_30 = arith.constant 1 : index
    %c0_31 = arith.constant 0 : index
    %c0_32 = arith.constant 0 : index
    %25 = tpu.strided_load %arg6[%c1_30, %c0_31, %c0_32] {strides = array<i32: 2, 2, 1>} : memref<6x6x128xf32, #tpu.memory_space<vmem>>, vector<2x2x128xf32>
    %26 = vector.broadcast %24 : vector<1x1x128xf32> to vector<2x2x128xf32>
    %27 = arith.mulf %25, %26 : vector<2x2x128xf32>
    %28 = vector.extract_strided_slice %11 {offsets = [1, 1, 0], sizes = [1, 1, 128], strides = [1, 1, 1]} : vector<3x3x128xf32> to vector<1x1x128xf32>
    %c1_33 = arith.constant 1 : index
    %c1_34 = arith.constant 1 : index
    %c0_35 = arith.constant 0 : index
    %29 = tpu.strided_load %arg6[%c1_33, %c1_34, %c0_35] {strides = array<i32: 2, 2, 1>} : memref<6x6x128xf32, #tpu.memory_space<vmem>>, vector<2x2x128xf32>
    %30 = vector.broadcast %28 : vector<1x1x128xf32> to vector<2x2x128xf32>
    %31 = arith.mulf %29, %30 : vector<2x2x128xf32>
    %32 = vector.extract_strided_slice %11 {offsets = [1, 2, 0], sizes = [1, 1, 128], strides = [1, 1, 1]} : vector<3x3x128xf32> to vector<1x1x128xf32>
    %c1_36 = arith.constant 1 : index
    %c2_37 = arith.constant 2 : index
    %c0_38 = arith.constant 0 : index
    %33 = tpu.strided_load %arg6[%c1_36, %c2_37, %c0_38] {strides = array<i32: 2, 2, 1>} : memref<6x6x128xf32, #tpu.memory_space<vmem>>, vector<2x2x128xf32>
    %34 = vector.broadcast %32 : vector<1x1x128xf32> to vector<2x2x128xf32>
    %35 = arith.mulf %33, %34 : vector<2x2x128xf32>
    %36 = vector.extract_strided_slice %11 {offsets = [2, 0, 0], sizes = [1, 1, 128], strides = [1, 1, 1]} : vector<3x3x128xf32> to vector<1x1x128xf32>
    %c2_39 = arith.constant 2 : index
    %c0_40 = arith.constant 0 : index
    %c0_41 = arith.constant 0 : index
    %37 = tpu.strided_load %arg6[%c2_39, %c0_40, %c0_41] {strides = array<i32: 2, 2, 1>} : memref<6x6x128xf32, #tpu.memory_space<vmem>>, vector<2x2x128xf32>
    %38 = vector.broadcast %36 : vector<1x1x128xf32> to vector<2x2x128xf32>
    %39 = arith.mulf %37, %38 : vector<2x2x128xf32>
    %40 = vector.extract_strided_slice %11 {offsets = [2, 1, 0], sizes = [1, 1, 128], strides = [1, 1, 1]} : vector<3x3x128xf32> to vector<1x1x128xf32>
    %c2_42 = arith.constant 2 : index
    %c1_43 = arith.constant 1 : index
    %c0_44 = arith.constant 0 : index
    %41 = tpu.strided_load %arg6[%c2_42, %c1_43, %c0_44] {strides = array<i32: 2, 2, 1>} : memref<6x6x128xf32, #tpu.memory_space<vmem>>, vector<2x2x128xf32>
    %42 = vector.broadcast %40 : vector<1x1x128xf32> to vector<2x2x128xf32>
    %43 = arith.mulf %41, %42 : vector<2x2x128xf32>
    %44 = vector.extract_strided_slice %11 {offsets = [2, 2, 0], sizes = [1, 1, 128], strides = [1, 1, 1]} : vector<3x3x128xf32> to vector<1x1x128xf32>
    %c2_45 = arith.constant 2 : index
    %c2_46 = arith.constant 2 : index
    %c0_47 = arith.constant 0 : index
    %45 = tpu.strided_load %arg6[%c2_45, %c2_46, %c0_47] {strides = array<i32: 2, 2, 1>} : memref<6x6x128xf32, #tpu.memory_space<vmem>>, vector<2x2x128xf32>
    %46 = vector.broadcast %44 : vector<1x1x128xf32> to vector<2x2x128xf32>
    %47 = arith.mulf %45, %46 : vector<2x2x128xf32>
    %48 = arith.addf %15, %19 : vector<2x2x128xf32>
    %49 = arith.addf %23, %27 : vector<2x2x128xf32>
    %50 = arith.addf %31, %35 : vector<2x2x128xf32>
    %51 = arith.addf %39, %43 : vector<2x2x128xf32>
    %52 = arith.addf %48, %49 : vector<2x2x128xf32>
    %53 = arith.addf %50, %51 : vector<2x2x128xf32>
    %54 = arith.addf %52, %53 : vector<2x2x128xf32>
    %55 = arith.addf %54, %47 : vector<2x2x128xf32>
    %56 = vector.shape_cast %55 : vector<2x2x128xf32> to vector<4x128xf32>
    %c0_48 = arith.constant 0 : index
    %c0_49 = arith.constant 0 : index
    %57 = vector.load %arg3[%c0_48, %c0_49] : memref<128x128xf32, #tpu.memory_space<vmem>>, vector<128x128xf32>
    %cst_50 = arith.constant dense<0.000000e+00> : vector<4x128xf32>
    %58 = tpu.matmul %56, %57, %cst_50 {dimension_numbers = #tpu.dot_dimension_numbers<[1], [0], [0], [1], [0, 0, 1, 1], [], []>} : vector<4x128xf32>, vector<128x128xf32>, vector<4x128xf32> -> vector<4x128xf32>
    %c0_51 = arith.constant 0 : index
    %c0_52 = arith.constant 0 : index
    %59 = vector.load %arg4[%c0_51, %c0_52] : memref<1x128xf32, #tpu.memory_space<vmem>>, vector<1x128xf32>
    %60 = vector.broadcast %59 : vector<1x128xf32> to vector<4x128xf32>
    %61 = arith.addf %58, %60 : vector<4x128xf32>
    %cst_53 = arith.constant 0.000000e+00 : f32
    %62 = vector.broadcast %cst_53 : f32 to vector<4x128xf32>
    %63 = arith.maximumf %61, %62 : vector<4x128xf32>
    %64 = vector.shape_cast %63 : vector<4x128xf32> to vector<1x4x128xf32>
    %c0_54 = arith.constant 0 : index
    %c0_55 = arith.constant 0 : index
    %c0_56 = arith.constant 0 : index
    %65 = vector.load %arg5[%c0_54, %c0_55, %c0_56] : memref<1x4x128xf32, #tpu.memory_space<vmem>>, vector<1x4x128xf32>
    tpu.vector_store %arg5[%c0_54, %c0_55, %c0_56], %64 {strides = array<i32>} : memref<1x4x128xf32, #tpu.memory_space<vmem>>, vector<1x4x128xf32>,
    return
  }
  func.func @transform_0(%arg0: i32) -> (i32, i32, i32, i32) {
    %c0_i32 = arith.constant 0 : i32
    %c0_i32_0 = arith.constant 0 : i32
    %c0_i32_1 = arith.constant 0 : i32
    %c0_i32_2 = arith.constant 0 : i32
    return %arg0, %c0_i32, %c0_i32_0, %c0_i32_1 : i32, i32, i32, i32
  }
  func.func @transform_1(%arg0: i32) -> (i32, i32, i32) {
    %c0_i32 = arith.constant 0 : i32
    %c0_i32_0 = arith.constant 0 : i32
    %c0_i32_1 = arith.constant 0 : i32
    %c0_i32_2 = arith.constant 0 : i32
    return %c0_i32, %c0_i32_0, %c0_i32_1 : i32, i32, i32
  }
  func.func @transform_2(%arg0: i32) -> (i32, i32) {
    %c0_i32 = arith.constant 0 : i32
    %c0_i32_0 = arith.constant 0 : i32
    %c0_i32_1 = arith.constant 0 : i32
    return %c0_i32, %c0_i32_0 : i32, i32
  }
  func.func @transform_3(%arg0: i32) -> (i32, i32) {
    %c0_i32 = arith.constant 0 : i32
    %c0_i32_0 = arith.constant 0 : i32
    %c0_i32_1 = arith.constant 0 : i32
    return %c0_i32, %c0_i32_0 : i32, i32
  }
  func.func @transform_4(%arg0: i32) -> (i32, i32, i32) {
    %c0_i32 = arith.constant 0 : i32
    %c0_i32_0 = arith.constant 0 : i32
    %c0_i32_1 = arith.constant 0 : i32
    return %arg0, %c0_i32, %c0_i32_0 : i32, i32, i32
  }
}

module attributes {stable_mosaic.version = 11 : i64} {
  func.func @kernel(%arg0: i32, %arg1: memref<1x2x2x128xf32, #tpu.memory_space<vmem>>, %arg2: memref<3x3x128xf32, #tpu.memory_space<vmem>>, %arg3: memref<128x128xf32, #tpu.memory_space<vmem>>, %arg4: memref<1x128xf32, #tpu.memory_space<vmem>>, %arg5: memref<3x3x128xf32, #tpu.memory_space<vmem>>, %arg6: memref<128x128xf32, #tpu.memory_space<vmem>>, %arg7: memref<1x128xf32, #tpu.memory_space<vmem>>, %arg8: memref<128x128xf32, #tpu.memory_space<vmem>>, %arg9: memref<1x128xf32, #tpu.memory_space<vmem>>, %arg10: memref<1x4x128xf32, #tpu.memory_space<vmem>>, %arg11: memref<4x4x128xf32, #tpu.memory_space<vmem>>) attributes {dimension_semantics = [#tpu.dimension_semantics<parallel>], iteration_bounds = array<i64: 2>, scalar_prefetch = 0 : i64, scratch_operands = 1 : i64, tpu.core_type = #tpu.core_type<tc>, window_params = [{transform_indices = @transform_0, window_bounds = array<i64: 1, 2, 2, 128>}, {pipeline_mode = #tpu.pipeline_mode<synchronous>, transform_indices = @transform_1, window_bounds = array<i64: 3, 3, 128>}, {pipeline_mode = #tpu.pipeline_mode<synchronous>, transform_indices = @transform_2, window_bounds = array<i64: 128, 128>}, {pipeline_mode = #tpu.pipeline_mode<synchronous>, transform_indices = @transform_3, window_bounds = array<i64: 1, 128>}, {pipeline_mode = #tpu.pipeline_mode<synchronous>, transform_indices = @transform_4, window_bounds = array<i64: 3, 3, 128>}, {pipeline_mode = #tpu.pipeline_mode<synchronous>, transform_indices = @transform_5, window_bounds = array<i64: 128, 128>}, {pipeline_mode = #tpu.pipeline_mode<synchronous>, transform_indices = @transform_6, window_bounds = array<i64: 1, 128>}, {pipeline_mode = #tpu.pipeline_mode<synchronous>, transform_indices = @transform_7, window_bounds = array<i64: 128, 128>}, {pipeline_mode = #tpu.pipeline_mode<synchronous>, transform_indices = @transform_8, window_bounds = array<i64: 1, 128>}, {transform_indices = @transform_9, window_bounds = array<i64: 1, 4, 128>}]} {
    %c0 = arith.constant 0 : index
    %c0_0 = arith.constant 0 : index
    %c0_1 = arith.constant 0 : index
    %c0_2 = arith.constant 0 : index
    %0 = vector.load %arg1[%c0, %c0_0, %c0_1, %c0_2] : memref<1x2x2x128xf32, #tpu.memory_space<vmem>>, vector<1x2x2x128xf32>
    %1 = vector.shape_cast %0 : vector<1x2x2x128xf32> to vector<2x2x128xf32>
    %cst = arith.constant 0.000000e+00 : f32
    %2 = vector.broadcast %cst : f32 to vector<1x4x128xf32>
    %c0_3 = arith.constant 0 : index
    %c0_4 = arith.constant 0 : index
    %c0_5 = arith.constant 0 : index
    %3 = vector.load %arg11[%c0_3, %c0_4, %c0_5] : memref<4x4x128xf32, #tpu.memory_space<vmem>>, vector<1x4x128xf32>
    tpu.vector_store %arg11[%c0_3, %c0_4, %c0_5], %2 {strides = array<i32>} : memref<4x4x128xf32, #tpu.memory_space<vmem>>, vector<1x4x128xf32>,
    %cst_6 = arith.constant 0.000000e+00 : f32
    %4 = vector.broadcast %cst_6 : f32 to vector<1x4x128xf32>
    %c3 = arith.constant 3 : index
    %c0_7 = arith.constant 0 : index
    %c0_8 = arith.constant 0 : index
    %5 = vector.load %arg11[%c3, %c0_7, %c0_8] : memref<4x4x128xf32, #tpu.memory_space<vmem>>, vector<1x4x128xf32>
    tpu.vector_store %arg11[%c3, %c0_7, %c0_8], %4 {strides = array<i32>} : memref<4x4x128xf32, #tpu.memory_space<vmem>>, vector<1x4x128xf32>,
    %cst_9 = arith.constant 0.000000e+00 : f32
    %6 = vector.broadcast %cst_9 : f32 to vector<4x1x128xf32>
    %c0_10 = arith.constant 0 : index
    %c0_11 = arith.constant 0 : index
    %c0_12 = arith.constant 0 : index
    %7 = vector.load %arg11[%c0_10, %c0_11, %c0_12] : memref<4x4x128xf32, #tpu.memory_space<vmem>>, vector<4x1x128xf32>
    tpu.vector_store %arg11[%c0_10, %c0_11, %c0_12], %6 {strides = array<i32>} : memref<4x4x128xf32, #tpu.memory_space<vmem>>, vector<4x1x128xf32>,
    %cst_13 = arith.constant 0.000000e+00 : f32
    %8 = vector.broadcast %cst_13 : f32 to vector<4x1x128xf32>
    %c0_14 = arith.constant 0 : index
    %c3_15 = arith.constant 3 : index
    %c0_16 = arith.constant 0 : index
    %9 = vector.load %arg11[%c0_14, %c3_15, %c0_16] : memref<4x4x128xf32, #tpu.memory_space<vmem>>, vector<4x1x128xf32>
    tpu.vector_store %arg11[%c0_14, %c3_15, %c0_16], %8 {strides = array<i32>} : memref<4x4x128xf32, #tpu.memory_space<vmem>>, vector<4x1x128xf32>,
    %c1 = arith.constant 1 : index
    %c1_17 = arith.constant 1 : index
    %c0_18 = arith.constant 0 : index
    %10 = vector.load %arg11[%c1, %c1_17, %c0_18] : memref<4x4x128xf32, #tpu.memory_space<vmem>>, vector<2x2x128xf32>
    tpu.vector_store %arg11[%c1, %c1_17, %c0_18], %1 {strides = array<i32>} : memref<4x4x128xf32, #tpu.memory_space<vmem>>, vector<2x2x128xf32>,
    %c0_19 = arith.constant 0 : index
    %c0_20 = arith.constant 0 : index
    %c0_21 = arith.constant 0 : index
    %11 = vector.load %arg2[%c0_19, %c0_20, %c0_21] : memref<3x3x128xf32, #tpu.memory_space<vmem>>, vector<3x3x128xf32>
    %12 = vector.extract_strided_slice %11 {offsets = [0, 0, 0], sizes = [1, 1, 128], strides = [1, 1, 1]} : vector<3x3x128xf32> to vector<1x1x128xf32>
    %c0_22 = arith.constant 0 : index
    %c0_23 = arith.constant 0 : index
    %c0_24 = arith.constant 0 : index
    %13 = vector.load %arg11[%c0_22, %c0_23, %c0_24] : memref<4x4x128xf32, #tpu.memory_space<vmem>>, vector<2x2x128xf32>
    %14 = vector.broadcast %12 : vector<1x1x128xf32> to vector<2x2x128xf32>
    %15 = arith.mulf %13, %14 : vector<2x2x128xf32>
    %16 = vector.extract_strided_slice %11 {offsets = [0, 1, 0], sizes = [1, 1, 128], strides = [1, 1, 1]} : vector<3x3x128xf32> to vector<1x1x128xf32>
    %c0_25 = arith.constant 0 : index
    %c1_26 = arith.constant 1 : index
    %c0_27 = arith.constant 0 : index
    %17 = vector.load %arg11[%c0_25, %c1_26, %c0_27] : memref<4x4x128xf32, #tpu.memory_space<vmem>>, vector<2x2x128xf32>
    %18 = vector.broadcast %16 : vector<1x1x128xf32> to vector<2x2x128xf32>
    %19 = arith.mulf %17, %18 : vector<2x2x128xf32>
    %20 = vector.extract_strided_slice %11 {offsets = [0, 2, 0], sizes = [1, 1, 128], strides = [1, 1, 1]} : vector<3x3x128xf32> to vector<1x1x128xf32>
    %c0_28 = arith.constant 0 : index
    %c2 = arith.constant 2 : index
    %c0_29 = arith.constant 0 : index
    %21 = vector.load %arg11[%c0_28, %c2, %c0_29] : memref<4x4x128xf32, #tpu.memory_space<vmem>>, vector<2x2x128xf32>
    %22 = vector.broadcast %20 : vector<1x1x128xf32> to vector<2x2x128xf32>
    %23 = arith.mulf %21, %22 : vector<2x2x128xf32>
    %24 = vector.extract_strided_slice %11 {offsets = [1, 0, 0], sizes = [1, 1, 128], strides = [1, 1, 1]} : vector<3x3x128xf32> to vector<1x1x128xf32>
    %c1_30 = arith.constant 1 : index
    %c0_31 = arith.constant 0 : index
    %c0_32 = arith.constant 0 : index
    %25 = vector.load %arg11[%c1_30, %c0_31, %c0_32] : memref<4x4x128xf32, #tpu.memory_space<vmem>>, vector<2x2x128xf32>
    %26 = vector.broadcast %24 : vector<1x1x128xf32> to vector<2x2x128xf32>
    %27 = arith.mulf %25, %26 : vector<2x2x128xf32>
    %28 = vector.extract_strided_slice %11 {offsets = [1, 1, 0], sizes = [1, 1, 128], strides = [1, 1, 1]} : vector<3x3x128xf32> to vector<1x1x128xf32>
    %c1_33 = arith.constant 1 : index
    %c1_34 = arith.constant 1 : index
    %c0_35 = arith.constant 0 : index
    %29 = vector.load %arg11[%c1_33, %c1_34, %c0_35] : memref<4x4x128xf32, #tpu.memory_space<vmem>>, vector<2x2x128xf32>
    %30 = vector.broadcast %28 : vector<1x1x128xf32> to vector<2x2x128xf32>
    %31 = arith.mulf %29, %30 : vector<2x2x128xf32>
    %32 = vector.extract_strided_slice %11 {offsets = [1, 2, 0], sizes = [1, 1, 128], strides = [1, 1, 1]} : vector<3x3x128xf32> to vector<1x1x128xf32>
    %c1_36 = arith.constant 1 : index
    %c2_37 = arith.constant 2 : index
    %c0_38 = arith.constant 0 : index
    %33 = vector.load %arg11[%c1_36, %c2_37, %c0_38] : memref<4x4x128xf32, #tpu.memory_space<vmem>>, vector<2x2x128xf32>
    %34 = vector.broadcast %32 : vector<1x1x128xf32> to vector<2x2x128xf32>
    %35 = arith.mulf %33, %34 : vector<2x2x128xf32>
    %36 = vector.extract_strided_slice %11 {offsets = [2, 0, 0], sizes = [1, 1, 128], strides = [1, 1, 1]} : vector<3x3x128xf32> to vector<1x1x128xf32>
    %c2_39 = arith.constant 2 : index
    %c0_40 = arith.constant 0 : index
    %c0_41 = arith.constant 0 : index
    %37 = vector.load %arg11[%c2_39, %c0_40, %c0_41] : memref<4x4x128xf32, #tpu.memory_space<vmem>>, vector<2x2x128xf32>
    %38 = vector.broadcast %36 : vector<1x1x128xf32> to vector<2x2x128xf32>
    %39 = arith.mulf %37, %38 : vector<2x2x128xf32>
    %40 = vector.extract_strided_slice %11 {offsets = [2, 1, 0], sizes = [1, 1, 128], strides = [1, 1, 1]} : vector<3x3x128xf32> to vector<1x1x128xf32>
    %c2_42 = arith.constant 2 : index
    %c1_43 = arith.constant 1 : index
    %c0_44 = arith.constant 0 : index
    %41 = vector.load %arg11[%c2_42, %c1_43, %c0_44] : memref<4x4x128xf32, #tpu.memory_space<vmem>>, vector<2x2x128xf32>
    %42 = vector.broadcast %40 : vector<1x1x128xf32> to vector<2x2x128xf32>
    %43 = arith.mulf %41, %42 : vector<2x2x128xf32>
    %44 = vector.extract_strided_slice %11 {offsets = [2, 2, 0], sizes = [1, 1, 128], strides = [1, 1, 1]} : vector<3x3x128xf32> to vector<1x1x128xf32>
    %c2_45 = arith.constant 2 : index
    %c2_46 = arith.constant 2 : index
    %c0_47 = arith.constant 0 : index
    %45 = vector.load %arg11[%c2_45, %c2_46, %c0_47] : memref<4x4x128xf32, #tpu.memory_space<vmem>>, vector<2x2x128xf32>
    %46 = vector.broadcast %44 : vector<1x1x128xf32> to vector<2x2x128xf32>
    %47 = arith.mulf %45, %46 : vector<2x2x128xf32>
    %48 = arith.addf %15, %19 : vector<2x2x128xf32>
    %49 = arith.addf %23, %27 : vector<2x2x128xf32>
    %50 = arith.addf %31, %35 : vector<2x2x128xf32>
    %51 = arith.addf %39, %43 : vector<2x2x128xf32>
    %52 = arith.addf %48, %49 : vector<2x2x128xf32>
    %53 = arith.addf %50, %51 : vector<2x2x128xf32>
    %54 = arith.addf %52, %53 : vector<2x2x128xf32>
    %55 = arith.addf %54, %47 : vector<2x2x128xf32>
    %56 = vector.shape_cast %55 : vector<2x2x128xf32> to vector<4x128xf32>
    %c0_48 = arith.constant 0 : index
    %c0_49 = arith.constant 0 : index
    %57 = vector.load %arg3[%c0_48, %c0_49] : memref<128x128xf32, #tpu.memory_space<vmem>>, vector<128x128xf32>
    %cst_50 = arith.constant dense<0.000000e+00> : vector<4x128xf32>
    %58 = tpu.matmul %56, %57, %cst_50 {dimension_numbers = #tpu.dot_dimension_numbers<[1], [0], [0], [1], [0, 0, 1, 1], [], []>} : vector<4x128xf32>, vector<128x128xf32>, vector<4x128xf32> -> vector<4x128xf32>
    %c0_51 = arith.constant 0 : index
    %c0_52 = arith.constant 0 : index
    %59 = vector.load %arg4[%c0_51, %c0_52] : memref<1x128xf32, #tpu.memory_space<vmem>>, vector<1x128xf32>
    %60 = vector.broadcast %59 : vector<1x128xf32> to vector<4x128xf32>
    %61 = arith.addf %58, %60 : vector<4x128xf32>
    %cst_53 = arith.constant 0.000000e+00 : f32
    %62 = vector.broadcast %cst_53 : f32 to vector<4x128xf32>
    %63 = arith.maximumf %61, %62 : vector<4x128xf32>
    %64 = vector.shape_cast %63 : vector<4x128xf32> to vector<2x2x128xf32>
    %c1_54 = arith.constant 1 : index
    %c1_55 = arith.constant 1 : index
    %c0_56 = arith.constant 0 : index
    %65 = vector.load %arg11[%c1_54, %c1_55, %c0_56] : memref<4x4x128xf32, #tpu.memory_space<vmem>>, vector<2x2x128xf32>
    tpu.vector_store %arg11[%c1_54, %c1_55, %c0_56], %64 {strides = array<i32>} : memref<4x4x128xf32, #tpu.memory_space<vmem>>, vector<2x2x128xf32>,
    %c0_57 = arith.constant 0 : index
    %c0_58 = arith.constant 0 : index
    %c0_59 = arith.constant 0 : index
    %66 = vector.load %arg5[%c0_57, %c0_58, %c0_59] : memref<3x3x128xf32, #tpu.memory_space<vmem>>, vector<3x3x128xf32>
    %67 = vector.extract_strided_slice %66 {offsets = [0, 0, 0], sizes = [1, 1, 128], strides = [1, 1, 1]} : vector<3x3x128xf32> to vector<1x1x128xf32>
    %c0_60 = arith.constant 0 : index
    %c0_61 = arith.constant 0 : index
    %c0_62 = arith.constant 0 : index
    %68 = vector.load %arg11[%c0_60, %c0_61, %c0_62] : memref<4x4x128xf32, #tpu.memory_space<vmem>>, vector<2x2x128xf32>
    %69 = vector.broadcast %67 : vector<1x1x128xf32> to vector<2x2x128xf32>
    %70 = arith.mulf %68, %69 : vector<2x2x128xf32>
    %71 = vector.extract_strided_slice %66 {offsets = [0, 1, 0], sizes = [1, 1, 128], strides = [1, 1, 1]} : vector<3x3x128xf32> to vector<1x1x128xf32>
    %c0_63 = arith.constant 0 : index
    %c1_64 = arith.constant 1 : index
    %c0_65 = arith.constant 0 : index
    %72 = vector.load %arg11[%c0_63, %c1_64, %c0_65] : memref<4x4x128xf32, #tpu.memory_space<vmem>>, vector<2x2x128xf32>
    %73 = vector.broadcast %71 : vector<1x1x128xf32> to vector<2x2x128xf32>
    %74 = arith.mulf %72, %73 : vector<2x2x128xf32>
    %75 = vector.extract_strided_slice %66 {offsets = [0, 2, 0], sizes = [1, 1, 128], strides = [1, 1, 1]} : vector<3x3x128xf32> to vector<1x1x128xf32>
    %c0_66 = arith.constant 0 : index
    %c2_67 = arith.constant 2 : index
    %c0_68 = arith.constant 0 : index
    %76 = vector.load %arg11[%c0_66, %c2_67, %c0_68] : memref<4x4x128xf32, #tpu.memory_space<vmem>>, vector<2x2x128xf32>
    %77 = vector.broadcast %75 : vector<1x1x128xf32> to vector<2x2x128xf32>
    %78 = arith.mulf %76, %77 : vector<2x2x128xf32>
    %79 = vector.extract_strided_slice %66 {offsets = [1, 0, 0], sizes = [1, 1, 128], strides = [1, 1, 1]} : vector<3x3x128xf32> to vector<1x1x128xf32>
    %c1_69 = arith.constant 1 : index
    %c0_70 = arith.constant 0 : index
    %c0_71 = arith.constant 0 : index
    %80 = vector.load %arg11[%c1_69, %c0_70, %c0_71] : memref<4x4x128xf32, #tpu.memory_space<vmem>>, vector<2x2x128xf32>
    %81 = vector.broadcast %79 : vector<1x1x128xf32> to vector<2x2x128xf32>
    %82 = arith.mulf %80, %81 : vector<2x2x128xf32>
    %83 = vector.extract_strided_slice %66 {offsets = [1, 1, 0], sizes = [1, 1, 128], strides = [1, 1, 1]} : vector<3x3x128xf32> to vector<1x1x128xf32>
    %c1_72 = arith.constant 1 : index
    %c1_73 = arith.constant 1 : index
    %c0_74 = arith.constant 0 : index
    %84 = vector.load %arg11[%c1_72, %c1_73, %c0_74] : memref<4x4x128xf32, #tpu.memory_space<vmem>>, vector<2x2x128xf32>
    %85 = vector.broadcast %83 : vector<1x1x128xf32> to vector<2x2x128xf32>
    %86 = arith.mulf %84, %85 : vector<2x2x128xf32>
    %87 = vector.extract_strided_slice %66 {offsets = [1, 2, 0], sizes = [1, 1, 128], strides = [1, 1, 1]} : vector<3x3x128xf32> to vector<1x1x128xf32>
    %c1_75 = arith.constant 1 : index
    %c2_76 = arith.constant 2 : index
    %c0_77 = arith.constant 0 : index
    %88 = vector.load %arg11[%c1_75, %c2_76, %c0_77] : memref<4x4x128xf32, #tpu.memory_space<vmem>>, vector<2x2x128xf32>
    %89 = vector.broadcast %87 : vector<1x1x128xf32> to vector<2x2x128xf32>
    %90 = arith.mulf %88, %89 : vector<2x2x128xf32>
    %91 = vector.extract_strided_slice %66 {offsets = [2, 0, 0], sizes = [1, 1, 128], strides = [1, 1, 1]} : vector<3x3x128xf32> to vector<1x1x128xf32>
    %c2_78 = arith.constant 2 : index
    %c0_79 = arith.constant 0 : index
    %c0_80 = arith.constant 0 : index
    %92 = vector.load %arg11[%c2_78, %c0_79, %c0_80] : memref<4x4x128xf32, #tpu.memory_space<vmem>>, vector<2x2x128xf32>
    %93 = vector.broadcast %91 : vector<1x1x128xf32> to vector<2x2x128xf32>
    %94 = arith.mulf %92, %93 : vector<2x2x128xf32>
    %95 = vector.extract_strided_slice %66 {offsets = [2, 1, 0], sizes = [1, 1, 128], strides = [1, 1, 1]} : vector<3x3x128xf32> to vector<1x1x128xf32>
    %c2_81 = arith.constant 2 : index
    %c1_82 = arith.constant 1 : index
    %c0_83 = arith.constant 0 : index
    %96 = vector.load %arg11[%c2_81, %c1_82, %c0_83] : memref<4x4x128xf32, #tpu.memory_space<vmem>>, vector<2x2x128xf32>
    %97 = vector.broadcast %95 : vector<1x1x128xf32> to vector<2x2x128xf32>
    %98 = arith.mulf %96, %97 : vector<2x2x128xf32>
    %99 = vector.extract_strided_slice %66 {offsets = [2, 2, 0], sizes = [1, 1, 128], strides = [1, 1, 1]} : vector<3x3x128xf32> to vector<1x1x128xf32>
    %c2_84 = arith.constant 2 : index
    %c2_85 = arith.constant 2 : index
    %c0_86 = arith.constant 0 : index
    %100 = vector.load %arg11[%c2_84, %c2_85, %c0_86] : memref<4x4x128xf32, #tpu.memory_space<vmem>>, vector<2x2x128xf32>
    %101 = vector.broadcast %99 : vector<1x1x128xf32> to vector<2x2x128xf32>
    %102 = arith.mulf %100, %101 : vector<2x2x128xf32>
    %103 = arith.addf %70, %74 : vector<2x2x128xf32>
    %104 = arith.addf %78, %82 : vector<2x2x128xf32>
    %105 = arith.addf %86, %90 : vector<2x2x128xf32>
    %106 = arith.addf %94, %98 : vector<2x2x128xf32>
    %107 = arith.addf %103, %104 : vector<2x2x128xf32>
    %108 = arith.addf %105, %106 : vector<2x2x128xf32>
    %109 = arith.addf %107, %108 : vector<2x2x128xf32>
    %110 = arith.addf %109, %102 : vector<2x2x128xf32>
    %111 = vector.shape_cast %110 : vector<2x2x128xf32> to vector<4x128xf32>
    %c0_87 = arith.constant 0 : index
    %c0_88 = arith.constant 0 : index
    %112 = vector.load %arg6[%c0_87, %c0_88] : memref<128x128xf32, #tpu.memory_space<vmem>>, vector<128x128xf32>
    %cst_89 = arith.constant dense<0.000000e+00> : vector<4x128xf32>
    %113 = tpu.matmul %111, %112, %cst_89 {dimension_numbers = #tpu.dot_dimension_numbers<[1], [0], [0], [1], [0, 0, 1, 1], [], []>} : vector<4x128xf32>, vector<128x128xf32>, vector<4x128xf32> -> vector<4x128xf32>
    %c0_90 = arith.constant 0 : index
    %c0_91 = arith.constant 0 : index
    %114 = vector.load %arg7[%c0_90, %c0_91] : memref<1x128xf32, #tpu.memory_space<vmem>>, vector<1x128xf32>
    %115 = vector.broadcast %114 : vector<1x128xf32> to vector<4x128xf32>
    %116 = arith.addf %113, %115 : vector<4x128xf32>
    %117 = vector.shape_cast %1 : vector<2x2x128xf32> to vector<4x128xf32>
    %c0_92 = arith.constant 0 : index
    %c0_93 = arith.constant 0 : index
    %118 = vector.load %arg8[%c0_92, %c0_93] : memref<128x128xf32, #tpu.memory_space<vmem>>, vector<128x128xf32>
    %cst_94 = arith.constant dense<0.000000e+00> : vector<4x128xf32>
    %119 = tpu.matmul %117, %118, %cst_94 {dimension_numbers = #tpu.dot_dimension_numbers<[1], [0], [0], [1], [0, 0, 1, 1], [], []>} : vector<4x128xf32>, vector<128x128xf32>, vector<4x128xf32> -> vector<4x128xf32>
    %c0_95 = arith.constant 0 : index
    %c0_96 = arith.constant 0 : index
    %120 = vector.load %arg9[%c0_95, %c0_96] : memref<1x128xf32, #tpu.memory_space<vmem>>, vector<1x128xf32>
    %121 = vector.broadcast %120 : vector<1x128xf32> to vector<4x128xf32>
    %122 = arith.addf %119, %121 : vector<4x128xf32>
    %123 = arith.addf %116, %122 : vector<4x128xf32>
    %cst_97 = arith.constant 0.000000e+00 : f32
    %124 = vector.broadcast %cst_97 : f32 to vector<4x128xf32>
    %125 = arith.maximumf %123, %124 : vector<4x128xf32>
    %126 = vector.shape_cast %125 : vector<4x128xf32> to vector<1x4x128xf32>
    %c0_98 = arith.constant 0 : index
    %c0_99 = arith.constant 0 : index
    %c0_100 = arith.constant 0 : index
    %127 = vector.load %arg10[%c0_98, %c0_99, %c0_100] : memref<1x4x128xf32, #tpu.memory_space<vmem>>, vector<1x4x128xf32>
    tpu.vector_store %arg10[%c0_98, %c0_99, %c0_100], %126 {strides = array<i32>} : memref<1x4x128xf32, #tpu.memory_space<vmem>>, vector<1x4x128xf32>,
    return
  }
  func.func @transform_0(%arg0: i32) -> (i32, i32, i32, i32) {
    %c0_i32 = arith.constant 0 : i32
    %c0_i32_0 = arith.constant 0 : i32
    %c0_i32_1 = arith.constant 0 : i32
    %c0_i32_2 = arith.constant 0 : i32
    return %arg0, %c0_i32, %c0_i32_0, %c0_i32_1 : i32, i32, i32, i32
  }
  func.func @transform_1(%arg0: i32) -> (i32, i32, i32) {
    %c0_i32 = arith.constant 0 : i32
    %c0_i32_0 = arith.constant 0 : i32
    %c0_i32_1 = arith.constant 0 : i32
    %c0_i32_2 = arith.constant 0 : i32
    return %c0_i32, %c0_i32_0, %c0_i32_1 : i32, i32, i32
  }
  func.func @transform_2(%arg0: i32) -> (i32, i32) {
    %c0_i32 = arith.constant 0 : i32
    %c0_i32_0 = arith.constant 0 : i32
    %c0_i32_1 = arith.constant 0 : i32
    return %c0_i32, %c0_i32_0 : i32, i32
  }
  func.func @transform_3(%arg0: i32) -> (i32, i32) {
    %c0_i32 = arith.constant 0 : i32
    %c0_i32_0 = arith.constant 0 : i32
    %c0_i32_1 = arith.constant 0 : i32
    return %c0_i32, %c0_i32_0 : i32, i32
  }
  func.func @transform_4(%arg0: i32) -> (i32, i32, i32) {
    %c0_i32 = arith.constant 0 : i32
    %c0_i32_0 = arith.constant 0 : i32
    %c0_i32_1 = arith.constant 0 : i32
    %c0_i32_2 = arith.constant 0 : i32
    return %c0_i32, %c0_i32_0, %c0_i32_1 : i32, i32, i32
  }
  func.func @transform_5(%arg0: i32) -> (i32, i32) {
    %c0_i32 = arith.constant 0 : i32
    %c0_i32_0 = arith.constant 0 : i32
    %c0_i32_1 = arith.constant 0 : i32
    return %c0_i32, %c0_i32_0 : i32, i32
  }
  func.func @transform_6(%arg0: i32) -> (i32, i32) {
    %c0_i32 = arith.constant 0 : i32
    %c0_i32_0 = arith.constant 0 : i32
    %c0_i32_1 = arith.constant 0 : i32
    return %c0_i32, %c0_i32_0 : i32, i32
  }
  func.func @transform_7(%arg0: i32) -> (i32, i32) {
    %c0_i32 = arith.constant 0 : i32
    %c0_i32_0 = arith.constant 0 : i32
    %c0_i32_1 = arith.constant 0 : i32
    return %c0_i32, %c0_i32_0 : i32, i32
  }
  func.func @transform_8(%arg0: i32) -> (i32, i32) {
    %c0_i32 = arith.constant 0 : i32
    %c0_i32_0 = arith.constant 0 : i32
    %c0_i32_1 = arith.constant 0 : i32
    return %c0_i32, %c0_i32_0 : i32, i32
  }
  func.func @transform_9(%arg0: i32) -> (i32, i32, i32) {
    %c0_i32 = arith.constant 0 : i32
    %c0_i32_0 = arith.constant 0 : i32
    %c0_i32_1 = arith.constant 0 : i32
    return %arg0, %c0_i32, %c0_i32_0 : i32, i32, i32
  }
}

module attributes {stable_mosaic.version = 11 : i64} {
  func.func @kernel(%arg0: i32, %arg1: memref<1x2x2x128xf32, #tpu.memory_space<vmem>>, %arg2: memref<3x3x128xf32, #tpu.memory_space<vmem>>, %arg3: memref<128x128xf32, #tpu.memory_space<vmem>>, %arg4: memref<1x128xf32, #tpu.memory_space<vmem>>, %arg5: memref<1x4x128xf32, #tpu.memory_space<vmem>>, %arg6: memref<4x4x128xf32, #tpu.memory_space<vmem>>) attributes {dimension_semantics = [#tpu.dimension_semantics<parallel>], iteration_bounds = array<i64: 2>, scalar_prefetch = 0 : i64, scratch_operands = 1 : i64, tpu.core_type = #tpu.core_type<tc>, window_params = [{transform_indices = @transform_0, window_bounds = array<i64: 1, 2, 2, 128>}, {pipeline_mode = #tpu.pipeline_mode<synchronous>, transform_indices = @transform_1, window_bounds = array<i64: 3, 3, 128>}, {pipeline_mode = #tpu.pipeline_mode<synchronous>, transform_indices = @transform_2, window_bounds = array<i64: 128, 128>}, {pipeline_mode = #tpu.pipeline_mode<synchronous>, transform_indices = @transform_3, window_bounds = array<i64: 1, 128>}, {transform_indices = @transform_4, window_bounds = array<i64: 1, 4, 128>}]} {
    %cst = arith.constant 0.000000e+00 : f32
    %0 = vector.broadcast %cst : f32 to vector<1x4x128xf32>
    %c0 = arith.constant 0 : index
    %c0_0 = arith.constant 0 : index
    %c0_1 = arith.constant 0 : index
    %1 = vector.load %arg6[%c0, %c0_0, %c0_1] : memref<4x4x128xf32, #tpu.memory_space<vmem>>, vector<1x4x128xf32>
    tpu.vector_store %arg6[%c0, %c0_0, %c0_1], %0 {strides = array<i32>} : memref<4x4x128xf32, #tpu.memory_space<vmem>>, vector<1x4x128xf32>,
    %cst_2 = arith.constant 0.000000e+00 : f32
    %2 = vector.broadcast %cst_2 : f32 to vector<1x4x128xf32>
    %c3 = arith.constant 3 : index
    %c0_3 = arith.constant 0 : index
    %c0_4 = arith.constant 0 : index
    %3 = vector.load %arg6[%c3, %c0_3, %c0_4] : memref<4x4x128xf32, #tpu.memory_space<vmem>>, vector<1x4x128xf32>
    tpu.vector_store %arg6[%c3, %c0_3, %c0_4], %2 {strides = array<i32>} : memref<4x4x128xf32, #tpu.memory_space<vmem>>, vector<1x4x128xf32>,
    %cst_5 = arith.constant 0.000000e+00 : f32
    %4 = vector.broadcast %cst_5 : f32 to vector<4x1x128xf32>
    %c0_6 = arith.constant 0 : index
    %c0_7 = arith.constant 0 : index
    %c0_8 = arith.constant 0 : index
    %5 = vector.load %arg6[%c0_6, %c0_7, %c0_8] : memref<4x4x128xf32, #tpu.memory_space<vmem>>, vector<4x1x128xf32>
    tpu.vector_store %arg6[%c0_6, %c0_7, %c0_8], %4 {strides = array<i32>} : memref<4x4x128xf32, #tpu.memory_space<vmem>>, vector<4x1x128xf32>,
    %cst_9 = arith.constant 0.000000e+00 : f32
    %6 = vector.broadcast %cst_9 : f32 to vector<4x1x128xf32>
    %c0_10 = arith.constant 0 : index
    %c3_11 = arith.constant 3 : index
    %c0_12 = arith.constant 0 : index
    %7 = vector.load %arg6[%c0_10, %c3_11, %c0_12] : memref<4x4x128xf32, #tpu.memory_space<vmem>>, vector<4x1x128xf32>
    tpu.vector_store %arg6[%c0_10, %c3_11, %c0_12], %6 {strides = array<i32>} : memref<4x4x128xf32, #tpu.memory_space<vmem>>, vector<4x1x128xf32>,
    %c0_13 = arith.constant 0 : index
    %c0_14 = arith.constant 0 : index
    %c0_15 = arith.constant 0 : index
    %c0_16 = arith.constant 0 : index
    %8 = vector.load %arg1[%c0_13, %c0_14, %c0_15, %c0_16] : memref<1x2x2x128xf32, #tpu.memory_space<vmem>>, vector<1x2x2x128xf32>
    %9 = vector.shape_cast %8 : vector<1x2x2x128xf32> to vector<2x2x128xf32>
    %c1 = arith.constant 1 : index
    %c1_17 = arith.constant 1 : index
    %c0_18 = arith.constant 0 : index
    %10 = vector.load %arg6[%c1, %c1_17, %c0_18] : memref<4x4x128xf32, #tpu.memory_space<vmem>>, vector<2x2x128xf32>
    tpu.vector_store %arg6[%c1, %c1_17, %c0_18], %9 {strides = array<i32>} : memref<4x4x128xf32, #tpu.memory_space<vmem>>, vector<2x2x128xf32>,
    %c0_19 = arith.constant 0 : index
    %c0_20 = arith.constant 0 : index
    %c0_21 = arith.constant 0 : index
    %11 = vector.load %arg2[%c0_19, %c0_20, %c0_21] : memref<3x3x128xf32, #tpu.memory_space<vmem>>, vector<3x3x128xf32>
    %12 = vector.extract_strided_slice %11 {offsets = [0, 0, 0], sizes = [1, 1, 128], strides = [1, 1, 1]} : vector<3x3x128xf32> to vector<1x1x128xf32>
    %c0_22 = arith.constant 0 : index
    %c0_23 = arith.constant 0 : index
    %c0_24 = arith.constant 0 : index
    %13 = vector.load %arg6[%c0_22, %c0_23, %c0_24] : memref<4x4x128xf32, #tpu.memory_space<vmem>>, vector<2x2x128xf32>
    %14 = vector.broadcast %12 : vector<1x1x128xf32> to vector<2x2x128xf32>
    %15 = arith.mulf %13, %14 : vector<2x2x128xf32>
    %16 = vector.extract_strided_slice %11 {offsets = [0, 1, 0], sizes = [1, 1, 128], strides = [1, 1, 1]} : vector<3x3x128xf32> to vector<1x1x128xf32>
    %c0_25 = arith.constant 0 : index
    %c1_26 = arith.constant 1 : index
    %c0_27 = arith.constant 0 : index
    %17 = vector.load %arg6[%c0_25, %c1_26, %c0_27] : memref<4x4x128xf32, #tpu.memory_space<vmem>>, vector<2x2x128xf32>
    %18 = vector.broadcast %16 : vector<1x1x128xf32> to vector<2x2x128xf32>
    %19 = arith.mulf %17, %18 : vector<2x2x128xf32>
    %20 = vector.extract_strided_slice %11 {offsets = [0, 2, 0], sizes = [1, 1, 128], strides = [1, 1, 1]} : vector<3x3x128xf32> to vector<1x1x128xf32>
    %c0_28 = arith.constant 0 : index
    %c2 = arith.constant 2 : index
    %c0_29 = arith.constant 0 : index
    %21 = vector.load %arg6[%c0_28, %c2, %c0_29] : memref<4x4x128xf32, #tpu.memory_space<vmem>>, vector<2x2x128xf32>
    %22 = vector.broadcast %20 : vector<1x1x128xf32> to vector<2x2x128xf32>
    %23 = arith.mulf %21, %22 : vector<2x2x128xf32>
    %24 = vector.extract_strided_slice %11 {offsets = [1, 0, 0], sizes = [1, 1, 128], strides = [1, 1, 1]} : vector<3x3x128xf32> to vector<1x1x128xf32>
    %c1_30 = arith.constant 1 : index
    %c0_31 = arith.constant 0 : index
    %c0_32 = arith.constant 0 : index
    %25 = vector.load %arg6[%c1_30, %c0_31, %c0_32] : memref<4x4x128xf32, #tpu.memory_space<vmem>>, vector<2x2x128xf32>
    %26 = vector.broadcast %24 : vector<1x1x128xf32> to vector<2x2x128xf32>
    %27 = arith.mulf %25, %26 : vector<2x2x128xf32>
    %28 = vector.extract_strided_slice %11 {offsets = [1, 1, 0], sizes = [1, 1, 128], strides = [1, 1, 1]} : vector<3x3x128xf32> to vector<1x1x128xf32>
    %c1_33 = arith.constant 1 : index
    %c1_34 = arith.constant 1 : index
    %c0_35 = arith.constant 0 : index
    %29 = vector.load %arg6[%c1_33, %c1_34, %c0_35] : memref<4x4x128xf32, #tpu.memory_space<vmem>>, vector<2x2x128xf32>
    %30 = vector.broadcast %28 : vector<1x1x128xf32> to vector<2x2x128xf32>
    %31 = arith.mulf %29, %30 : vector<2x2x128xf32>
    %32 = vector.extract_strided_slice %11 {offsets = [1, 2, 0], sizes = [1, 1, 128], strides = [1, 1, 1]} : vector<3x3x128xf32> to vector<1x1x128xf32>
    %c1_36 = arith.constant 1 : index
    %c2_37 = arith.constant 2 : index
    %c0_38 = arith.constant 0 : index
    %33 = vector.load %arg6[%c1_36, %c2_37, %c0_38] : memref<4x4x128xf32, #tpu.memory_space<vmem>>, vector<2x2x128xf32>
    %34 = vector.broadcast %32 : vector<1x1x128xf32> to vector<2x2x128xf32>
    %35 = arith.mulf %33, %34 : vector<2x2x128xf32>
    %36 = vector.extract_strided_slice %11 {offsets = [2, 0, 0], sizes = [1, 1, 128], strides = [1, 1, 1]} : vector<3x3x128xf32> to vector<1x1x128xf32>
    %c2_39 = arith.constant 2 : index
    %c0_40 = arith.constant 0 : index
    %c0_41 = arith.constant 0 : index
    %37 = vector.load %arg6[%c2_39, %c0_40, %c0_41] : memref<4x4x128xf32, #tpu.memory_space<vmem>>, vector<2x2x128xf32>
    %38 = vector.broadcast %36 : vector<1x1x128xf32> to vector<2x2x128xf32>
    %39 = arith.mulf %37, %38 : vector<2x2x128xf32>
    %40 = vector.extract_strided_slice %11 {offsets = [2, 1, 0], sizes = [1, 1, 128], strides = [1, 1, 1]} : vector<3x3x128xf32> to vector<1x1x128xf32>
    %c2_42 = arith.constant 2 : index
    %c1_43 = arith.constant 1 : index
    %c0_44 = arith.constant 0 : index
    %41 = vector.load %arg6[%c2_42, %c1_43, %c0_44] : memref<4x4x128xf32, #tpu.memory_space<vmem>>, vector<2x2x128xf32>
    %42 = vector.broadcast %40 : vector<1x1x128xf32> to vector<2x2x128xf32>
    %43 = arith.mulf %41, %42 : vector<2x2x128xf32>
    %44 = vector.extract_strided_slice %11 {offsets = [2, 2, 0], sizes = [1, 1, 128], strides = [1, 1, 1]} : vector<3x3x128xf32> to vector<1x1x128xf32>
    %c2_45 = arith.constant 2 : index
    %c2_46 = arith.constant 2 : index
    %c0_47 = arith.constant 0 : index
    %45 = vector.load %arg6[%c2_45, %c2_46, %c0_47] : memref<4x4x128xf32, #tpu.memory_space<vmem>>, vector<2x2x128xf32>
    %46 = vector.broadcast %44 : vector<1x1x128xf32> to vector<2x2x128xf32>
    %47 = arith.mulf %45, %46 : vector<2x2x128xf32>
    %48 = arith.addf %15, %19 : vector<2x2x128xf32>
    %49 = arith.addf %23, %27 : vector<2x2x128xf32>
    %50 = arith.addf %31, %35 : vector<2x2x128xf32>
    %51 = arith.addf %39, %43 : vector<2x2x128xf32>
    %52 = arith.addf %48, %49 : vector<2x2x128xf32>
    %53 = arith.addf %50, %51 : vector<2x2x128xf32>
    %54 = arith.addf %52, %53 : vector<2x2x128xf32>
    %55 = arith.addf %54, %47 : vector<2x2x128xf32>
    %56 = vector.shape_cast %55 : vector<2x2x128xf32> to vector<4x128xf32>
    %c0_48 = arith.constant 0 : index
    %c0_49 = arith.constant 0 : index
    %57 = vector.load %arg3[%c0_48, %c0_49] : memref<128x128xf32, #tpu.memory_space<vmem>>, vector<128x128xf32>
    %cst_50 = arith.constant dense<0.000000e+00> : vector<4x128xf32>
    %58 = tpu.matmul %56, %57, %cst_50 {dimension_numbers = #tpu.dot_dimension_numbers<[1], [0], [0], [1], [0, 0, 1, 1], [], []>} : vector<4x128xf32>, vector<128x128xf32>, vector<4x128xf32> -> vector<4x128xf32>
    %c0_51 = arith.constant 0 : index
    %c0_52 = arith.constant 0 : index
    %59 = vector.load %arg4[%c0_51, %c0_52] : memref<1x128xf32, #tpu.memory_space<vmem>>, vector<1x128xf32>
    %60 = vector.broadcast %59 : vector<1x128xf32> to vector<4x128xf32>
    %61 = arith.addf %58, %60 : vector<4x128xf32>
    %cst_53 = arith.constant 0.000000e+00 : f32
    %62 = vector.broadcast %cst_53 : f32 to vector<4x128xf32>
    %63 = arith.maximumf %61, %62 : vector<4x128xf32>
    %64 = vector.shape_cast %63 : vector<4x128xf32> to vector<1x4x128xf32>
    %c0_54 = arith.constant 0 : index
    %c0_55 = arith.constant 0 : index
    %c0_56 = arith.constant 0 : index
    %65 = vector.load %arg5[%c0_54, %c0_55, %c0_56] : memref<1x4x128xf32, #tpu.memory_space<vmem>>, vector<1x4x128xf32>
    tpu.vector_store %arg5[%c0_54, %c0_55, %c0_56], %64 {strides = array<i32>} : memref<1x4x128xf32, #tpu.memory_space<vmem>>, vector<1x4x128xf32>,
    return
  }
  func.func @transform_0(%arg0: i32) -> (i32, i32, i32, i32) {
    %c0_i32 = arith.constant 0 : i32
    %c0_i32_0 = arith.constant 0 : i32
    %c0_i32_1 = arith.constant 0 : i32
    %c0_i32_2 = arith.constant 0 : i32
    return %arg0, %c0_i32, %c0_i32_0, %c0_i32_1 : i32, i32, i32, i32
  }
  func.func @transform_1(%arg0: i32) -> (i32, i32, i32) {
    %c0_i32 = arith.constant 0 : i32
    %c0_i32_0 = arith.constant 0 : i32
    %c0_i32_1 = arith.constant 0 : i32
    %c0_i32_2 = arith.constant 0 : i32
    return %c0_i32, %c0_i32_0, %c0_i32_1 : i32, i32, i32
  }
  func.func @transform_2(%arg0: i32) -> (i32, i32) {
    %c0_i32 = arith.constant 0 : i32
    %c0_i32_0 = arith.constant 0 : i32
    %c0_i32_1 = arith.constant 0 : i32
    return %c0_i32, %c0_i32_0 : i32, i32
  }
  func.func @transform_3(%arg0: i32) -> (i32, i32) {
    %c0_i32 = arith.constant 0 : i32
    %c0_i32_0 = arith.constant 0 : i32
    %c0_i32_1 = arith.constant 0 : i32
    return %c0_i32, %c0_i32_0 : i32, i32
  }
  func.func @transform_4(%arg0: i32) -> (i32, i32, i32) {
    %c0_i32 = arith.constant 0 : i32
    %c0_i32_0 = arith.constant 0 : i32
    %c0_i32_1 = arith.constant 0 : i32
    return %arg0, %c0_i32, %c0_i32_0 : i32, i32, i32
  }
}

module attributes {stable_mosaic.version = 11 : i64} {
  func.func @kernel(%arg0: i32, %arg1: memref<1x2x2x128xf32, #tpu.memory_space<vmem>>, %arg2: memref<3x3x128xf32, #tpu.memory_space<vmem>>, %arg3: memref<128x128xf32, #tpu.memory_space<vmem>>, %arg4: memref<1x128xf32, #tpu.memory_space<vmem>>, %arg5: memref<3x3x128xf32, #tpu.memory_space<vmem>>, %arg6: memref<128x128xf32, #tpu.memory_space<vmem>>, %arg7: memref<1x128xf32, #tpu.memory_space<vmem>>, %arg8: memref<1x4x128xf32, #tpu.memory_space<vmem>>, %arg9: memref<4x4x128xf32, #tpu.memory_space<vmem>>) attributes {dimension_semantics = [#tpu.dimension_semantics<parallel>], iteration_bounds = array<i64: 2>, scalar_prefetch = 0 : i64, scratch_operands = 1 : i64, tpu.core_type = #tpu.core_type<tc>, window_params = [{transform_indices = @transform_0, window_bounds = array<i64: 1, 2, 2, 128>}, {pipeline_mode = #tpu.pipeline_mode<synchronous>, transform_indices = @transform_1, window_bounds = array<i64: 3, 3, 128>}, {pipeline_mode = #tpu.pipeline_mode<synchronous>, transform_indices = @transform_2, window_bounds = array<i64: 128, 128>}, {pipeline_mode = #tpu.pipeline_mode<synchronous>, transform_indices = @transform_3, window_bounds = array<i64: 1, 128>}, {pipeline_mode = #tpu.pipeline_mode<synchronous>, transform_indices = @transform_4, window_bounds = array<i64: 3, 3, 128>}, {pipeline_mode = #tpu.pipeline_mode<synchronous>, transform_indices = @transform_5, window_bounds = array<i64: 128, 128>}, {pipeline_mode = #tpu.pipeline_mode<synchronous>, transform_indices = @transform_6, window_bounds = array<i64: 1, 128>}, {transform_indices = @transform_7, window_bounds = array<i64: 1, 4, 128>}]} {
    %c0 = arith.constant 0 : index
    %c0_0 = arith.constant 0 : index
    %c0_1 = arith.constant 0 : index
    %c0_2 = arith.constant 0 : index
    %0 = vector.load %arg1[%c0, %c0_0, %c0_1, %c0_2] : memref<1x2x2x128xf32, #tpu.memory_space<vmem>>, vector<1x2x2x128xf32>
    %1 = vector.shape_cast %0 : vector<1x2x2x128xf32> to vector<2x2x128xf32>
    %cst = arith.constant 0.000000e+00 : f32
    %2 = vector.broadcast %cst : f32 to vector<1x4x128xf32>
    %c0_3 = arith.constant 0 : index
    %c0_4 = arith.constant 0 : index
    %c0_5 = arith.constant 0 : index
    %3 = vector.load %arg9[%c0_3, %c0_4, %c0_5] : memref<4x4x128xf32, #tpu.memory_space<vmem>>, vector<1x4x128xf32>
    tpu.vector_store %arg9[%c0_3, %c0_4, %c0_5], %2 {strides = array<i32>} : memref<4x4x128xf32, #tpu.memory_space<vmem>>, vector<1x4x128xf32>,
    %cst_6 = arith.constant 0.000000e+00 : f32
    %4 = vector.broadcast %cst_6 : f32 to vector<1x4x128xf32>
    %c3 = arith.constant 3 : index
    %c0_7 = arith.constant 0 : index
    %c0_8 = arith.constant 0 : index
    %5 = vector.load %arg9[%c3, %c0_7, %c0_8] : memref<4x4x128xf32, #tpu.memory_space<vmem>>, vector<1x4x128xf32>
    tpu.vector_store %arg9[%c3, %c0_7, %c0_8], %4 {strides = array<i32>} : memref<4x4x128xf32, #tpu.memory_space<vmem>>, vector<1x4x128xf32>,
    %cst_9 = arith.constant 0.000000e+00 : f32
    %6 = vector.broadcast %cst_9 : f32 to vector<4x1x128xf32>
    %c0_10 = arith.constant 0 : index
    %c0_11 = arith.constant 0 : index
    %c0_12 = arith.constant 0 : index
    %7 = vector.load %arg9[%c0_10, %c0_11, %c0_12] : memref<4x4x128xf32, #tpu.memory_space<vmem>>, vector<4x1x128xf32>
    tpu.vector_store %arg9[%c0_10, %c0_11, %c0_12], %6 {strides = array<i32>} : memref<4x4x128xf32, #tpu.memory_space<vmem>>, vector<4x1x128xf32>,
    %cst_13 = arith.constant 0.000000e+00 : f32
    %8 = vector.broadcast %cst_13 : f32 to vector<4x1x128xf32>
    %c0_14 = arith.constant 0 : index
    %c3_15 = arith.constant 3 : index
    %c0_16 = arith.constant 0 : index
    %9 = vector.load %arg9[%c0_14, %c3_15, %c0_16] : memref<4x4x128xf32, #tpu.memory_space<vmem>>, vector<4x1x128xf32>
    tpu.vector_store %arg9[%c0_14, %c3_15, %c0_16], %8 {strides = array<i32>} : memref<4x4x128xf32, #tpu.memory_space<vmem>>, vector<4x1x128xf32>,
    %c1 = arith.constant 1 : index
    %c1_17 = arith.constant 1 : index
    %c0_18 = arith.constant 0 : index
    %10 = vector.load %arg9[%c1, %c1_17, %c0_18] : memref<4x4x128xf32, #tpu.memory_space<vmem>>, vector<2x2x128xf32>
    tpu.vector_store %arg9[%c1, %c1_17, %c0_18], %1 {strides = array<i32>} : memref<4x4x128xf32, #tpu.memory_space<vmem>>, vector<2x2x128xf32>,
    %c0_19 = arith.constant 0 : index
    %c0_20 = arith.constant 0 : index
    %c0_21 = arith.constant 0 : index
    %11 = vector.load %arg2[%c0_19, %c0_20, %c0_21] : memref<3x3x128xf32, #tpu.memory_space<vmem>>, vector<3x3x128xf32>
    %12 = vector.extract_strided_slice %11 {offsets = [0, 0, 0], sizes = [1, 1, 128], strides = [1, 1, 1]} : vector<3x3x128xf32> to vector<1x1x128xf32>
    %c0_22 = arith.constant 0 : index
    %c0_23 = arith.constant 0 : index
    %c0_24 = arith.constant 0 : index
    %13 = vector.load %arg9[%c0_22, %c0_23, %c0_24] : memref<4x4x128xf32, #tpu.memory_space<vmem>>, vector<2x2x128xf32>
    %14 = vector.broadcast %12 : vector<1x1x128xf32> to vector<2x2x128xf32>
    %15 = arith.mulf %13, %14 : vector<2x2x128xf32>
    %16 = vector.extract_strided_slice %11 {offsets = [0, 1, 0], sizes = [1, 1, 128], strides = [1, 1, 1]} : vector<3x3x128xf32> to vector<1x1x128xf32>
    %c0_25 = arith.constant 0 : index
    %c1_26 = arith.constant 1 : index
    %c0_27 = arith.constant 0 : index
    %17 = vector.load %arg9[%c0_25, %c1_26, %c0_27] : memref<4x4x128xf32, #tpu.memory_space<vmem>>, vector<2x2x128xf32>
    %18 = vector.broadcast %16 : vector<1x1x128xf32> to vector<2x2x128xf32>
    %19 = arith.mulf %17, %18 : vector<2x2x128xf32>
    %20 = vector.extract_strided_slice %11 {offsets = [0, 2, 0], sizes = [1, 1, 128], strides = [1, 1, 1]} : vector<3x3x128xf32> to vector<1x1x128xf32>
    %c0_28 = arith.constant 0 : index
    %c2 = arith.constant 2 : index
    %c0_29 = arith.constant 0 : index
    %21 = vector.load %arg9[%c0_28, %c2, %c0_29] : memref<4x4x128xf32, #tpu.memory_space<vmem>>, vector<2x2x128xf32>
    %22 = vector.broadcast %20 : vector<1x1x128xf32> to vector<2x2x128xf32>
    %23 = arith.mulf %21, %22 : vector<2x2x128xf32>
    %24 = vector.extract_strided_slice %11 {offsets = [1, 0, 0], sizes = [1, 1, 128], strides = [1, 1, 1]} : vector<3x3x128xf32> to vector<1x1x128xf32>
    %c1_30 = arith.constant 1 : index
    %c0_31 = arith.constant 0 : index
    %c0_32 = arith.constant 0 : index
    %25 = vector.load %arg9[%c1_30, %c0_31, %c0_32] : memref<4x4x128xf32, #tpu.memory_space<vmem>>, vector<2x2x128xf32>
    %26 = vector.broadcast %24 : vector<1x1x128xf32> to vector<2x2x128xf32>
    %27 = arith.mulf %25, %26 : vector<2x2x128xf32>
    %28 = vector.extract_strided_slice %11 {offsets = [1, 1, 0], sizes = [1, 1, 128], strides = [1, 1, 1]} : vector<3x3x128xf32> to vector<1x1x128xf32>
    %c1_33 = arith.constant 1 : index
    %c1_34 = arith.constant 1 : index
    %c0_35 = arith.constant 0 : index
    %29 = vector.load %arg9[%c1_33, %c1_34, %c0_35] : memref<4x4x128xf32, #tpu.memory_space<vmem>>, vector<2x2x128xf32>
    %30 = vector.broadcast %28 : vector<1x1x128xf32> to vector<2x2x128xf32>
    %31 = arith.mulf %29, %30 : vector<2x2x128xf32>
    %32 = vector.extract_strided_slice %11 {offsets = [1, 2, 0], sizes = [1, 1, 128], strides = [1, 1, 1]} : vector<3x3x128xf32> to vector<1x1x128xf32>
    %c1_36 = arith.constant 1 : index
    %c2_37 = arith.constant 2 : index
    %c0_38 = arith.constant 0 : index
    %33 = vector.load %arg9[%c1_36, %c2_37, %c0_38] : memref<4x4x128xf32, #tpu.memory_space<vmem>>, vector<2x2x128xf32>
    %34 = vector.broadcast %32 : vector<1x1x128xf32> to vector<2x2x128xf32>
    %35 = arith.mulf %33, %34 : vector<2x2x128xf32>
    %36 = vector.extract_strided_slice %11 {offsets = [2, 0, 0], sizes = [1, 1, 128], strides = [1, 1, 1]} : vector<3x3x128xf32> to vector<1x1x128xf32>
    %c2_39 = arith.constant 2 : index
    %c0_40 = arith.constant 0 : index
    %c0_41 = arith.constant 0 : index
    %37 = vector.load %arg9[%c2_39, %c0_40, %c0_41] : memref<4x4x128xf32, #tpu.memory_space<vmem>>, vector<2x2x128xf32>
    %38 = vector.broadcast %36 : vector<1x1x128xf32> to vector<2x2x128xf32>
    %39 = arith.mulf %37, %38 : vector<2x2x128xf32>
    %40 = vector.extract_strided_slice %11 {offsets = [2, 1, 0], sizes = [1, 1, 128], strides = [1, 1, 1]} : vector<3x3x128xf32> to vector<1x1x128xf32>
    %c2_42 = arith.constant 2 : index
    %c1_43 = arith.constant 1 : index
    %c0_44 = arith.constant 0 : index
    %41 = vector.load %arg9[%c2_42, %c1_43, %c0_44] : memref<4x4x128xf32, #tpu.memory_space<vmem>>, vector<2x2x128xf32>
    %42 = vector.broadcast %40 : vector<1x1x128xf32> to vector<2x2x128xf32>
    %43 = arith.mulf %41, %42 : vector<2x2x128xf32>
    %44 = vector.extract_strided_slice %11 {offsets = [2, 2, 0], sizes = [1, 1, 128], strides = [1, 1, 1]} : vector<3x3x128xf32> to vector<1x1x128xf32>
    %c2_45 = arith.constant 2 : index
    %c2_46 = arith.constant 2 : index
    %c0_47 = arith.constant 0 : index
    %45 = vector.load %arg9[%c2_45, %c2_46, %c0_47] : memref<4x4x128xf32, #tpu.memory_space<vmem>>, vector<2x2x128xf32>
    %46 = vector.broadcast %44 : vector<1x1x128xf32> to vector<2x2x128xf32>
    %47 = arith.mulf %45, %46 : vector<2x2x128xf32>
    %48 = arith.addf %15, %19 : vector<2x2x128xf32>
    %49 = arith.addf %23, %27 : vector<2x2x128xf32>
    %50 = arith.addf %31, %35 : vector<2x2x128xf32>
    %51 = arith.addf %39, %43 : vector<2x2x128xf32>
    %52 = arith.addf %48, %49 : vector<2x2x128xf32>
    %53 = arith.addf %50, %51 : vector<2x2x128xf32>
    %54 = arith.addf %52, %53 : vector<2x2x128xf32>
    %55 = arith.addf %54, %47 : vector<2x2x128xf32>
    %56 = vector.shape_cast %55 : vector<2x2x128xf32> to vector<4x128xf32>
    %c0_48 = arith.constant 0 : index
    %c0_49 = arith.constant 0 : index
    %57 = vector.load %arg3[%c0_48, %c0_49] : memref<128x128xf32, #tpu.memory_space<vmem>>, vector<128x128xf32>
    %cst_50 = arith.constant dense<0.000000e+00> : vector<4x128xf32>
    %58 = tpu.matmul %56, %57, %cst_50 {dimension_numbers = #tpu.dot_dimension_numbers<[1], [0], [0], [1], [0, 0, 1, 1], [], []>} : vector<4x128xf32>, vector<128x128xf32>, vector<4x128xf32> -> vector<4x128xf32>
    %c0_51 = arith.constant 0 : index
    %c0_52 = arith.constant 0 : index
    %59 = vector.load %arg4[%c0_51, %c0_52] : memref<1x128xf32, #tpu.memory_space<vmem>>, vector<1x128xf32>
    %60 = vector.broadcast %59 : vector<1x128xf32> to vector<4x128xf32>
    %61 = arith.addf %58, %60 : vector<4x128xf32>
    %cst_53 = arith.constant 0.000000e+00 : f32
    %62 = vector.broadcast %cst_53 : f32 to vector<4x128xf32>
    %63 = arith.maximumf %61, %62 : vector<4x128xf32>
    %64 = vector.shape_cast %63 : vector<4x128xf32> to vector<2x2x128xf32>
    %c1_54 = arith.constant 1 : index
    %c1_55 = arith.constant 1 : index
    %c0_56 = arith.constant 0 : index
    %65 = vector.load %arg9[%c1_54, %c1_55, %c0_56] : memref<4x4x128xf32, #tpu.memory_space<vmem>>, vector<2x2x128xf32>
    tpu.vector_store %arg9[%c1_54, %c1_55, %c0_56], %64 {strides = array<i32>} : memref<4x4x128xf32, #tpu.memory_space<vmem>>, vector<2x2x128xf32>,
    %c0_57 = arith.constant 0 : index
    %c0_58 = arith.constant 0 : index
    %c0_59 = arith.constant 0 : index
    %66 = vector.load %arg5[%c0_57, %c0_58, %c0_59] : memref<3x3x128xf32, #tpu.memory_space<vmem>>, vector<3x3x128xf32>
    %67 = vector.extract_strided_slice %66 {offsets = [0, 0, 0], sizes = [1, 1, 128], strides = [1, 1, 1]} : vector<3x3x128xf32> to vector<1x1x128xf32>
    %c0_60 = arith.constant 0 : index
    %c0_61 = arith.constant 0 : index
    %c0_62 = arith.constant 0 : index
    %68 = vector.load %arg9[%c0_60, %c0_61, %c0_62] : memref<4x4x128xf32, #tpu.memory_space<vmem>>, vector<2x2x128xf32>
    %69 = vector.broadcast %67 : vector<1x1x128xf32> to vector<2x2x128xf32>
    %70 = arith.mulf %68, %69 : vector<2x2x128xf32>
    %71 = vector.extract_strided_slice %66 {offsets = [0, 1, 0], sizes = [1, 1, 128], strides = [1, 1, 1]} : vector<3x3x128xf32> to vector<1x1x128xf32>
    %c0_63 = arith.constant 0 : index
    %c1_64 = arith.constant 1 : index
    %c0_65 = arith.constant 0 : index
    %72 = vector.load %arg9[%c0_63, %c1_64, %c0_65] : memref<4x4x128xf32, #tpu.memory_space<vmem>>, vector<2x2x128xf32>
    %73 = vector.broadcast %71 : vector<1x1x128xf32> to vector<2x2x128xf32>
    %74 = arith.mulf %72, %73 : vector<2x2x128xf32>
    %75 = vector.extract_strided_slice %66 {offsets = [0, 2, 0], sizes = [1, 1, 128], strides = [1, 1, 1]} : vector<3x3x128xf32> to vector<1x1x128xf32>
    %c0_66 = arith.constant 0 : index
    %c2_67 = arith.constant 2 : index
    %c0_68 = arith.constant 0 : index
    %76 = vector.load %arg9[%c0_66, %c2_67, %c0_68] : memref<4x4x128xf32, #tpu.memory_space<vmem>>, vector<2x2x128xf32>
    %77 = vector.broadcast %75 : vector<1x1x128xf32> to vector<2x2x128xf32>
    %78 = arith.mulf %76, %77 : vector<2x2x128xf32>
    %79 = vector.extract_strided_slice %66 {offsets = [1, 0, 0], sizes = [1, 1, 128], strides = [1, 1, 1]} : vector<3x3x128xf32> to vector<1x1x128xf32>
    %c1_69 = arith.constant 1 : index
    %c0_70 = arith.constant 0 : index
    %c0_71 = arith.constant 0 : index
    %80 = vector.load %arg9[%c1_69, %c0_70, %c0_71] : memref<4x4x128xf32, #tpu.memory_space<vmem>>, vector<2x2x128xf32>
    %81 = vector.broadcast %79 : vector<1x1x128xf32> to vector<2x2x128xf32>
    %82 = arith.mulf %80, %81 : vector<2x2x128xf32>
    %83 = vector.extract_strided_slice %66 {offsets = [1, 1, 0], sizes = [1, 1, 128], strides = [1, 1, 1]} : vector<3x3x128xf32> to vector<1x1x128xf32>
    %c1_72 = arith.constant 1 : index
    %c1_73 = arith.constant 1 : index
    %c0_74 = arith.constant 0 : index
    %84 = vector.load %arg9[%c1_72, %c1_73, %c0_74] : memref<4x4x128xf32, #tpu.memory_space<vmem>>, vector<2x2x128xf32>
    %85 = vector.broadcast %83 : vector<1x1x128xf32> to vector<2x2x128xf32>
    %86 = arith.mulf %84, %85 : vector<2x2x128xf32>
    %87 = vector.extract_strided_slice %66 {offsets = [1, 2, 0], sizes = [1, 1, 128], strides = [1, 1, 1]} : vector<3x3x128xf32> to vector<1x1x128xf32>
    %c1_75 = arith.constant 1 : index
    %c2_76 = arith.constant 2 : index
    %c0_77 = arith.constant 0 : index
    %88 = vector.load %arg9[%c1_75, %c2_76, %c0_77] : memref<4x4x128xf32, #tpu.memory_space<vmem>>, vector<2x2x128xf32>
    %89 = vector.broadcast %87 : vector<1x1x128xf32> to vector<2x2x128xf32>
    %90 = arith.mulf %88, %89 : vector<2x2x128xf32>
    %91 = vector.extract_strided_slice %66 {offsets = [2, 0, 0], sizes = [1, 1, 128], strides = [1, 1, 1]} : vector<3x3x128xf32> to vector<1x1x128xf32>
    %c2_78 = arith.constant 2 : index
    %c0_79 = arith.constant 0 : index
    %c0_80 = arith.constant 0 : index
    %92 = vector.load %arg9[%c2_78, %c0_79, %c0_80] : memref<4x4x128xf32, #tpu.memory_space<vmem>>, vector<2x2x128xf32>
    %93 = vector.broadcast %91 : vector<1x1x128xf32> to vector<2x2x128xf32>
    %94 = arith.mulf %92, %93 : vector<2x2x128xf32>
    %95 = vector.extract_strided_slice %66 {offsets = [2, 1, 0], sizes = [1, 1, 128], strides = [1, 1, 1]} : vector<3x3x128xf32> to vector<1x1x128xf32>
    %c2_81 = arith.constant 2 : index
    %c1_82 = arith.constant 1 : index
    %c0_83 = arith.constant 0 : index
    %96 = vector.load %arg9[%c2_81, %c1_82, %c0_83] : memref<4x4x128xf32, #tpu.memory_space<vmem>>, vector<2x2x128xf32>
    %97 = vector.broadcast %95 : vector<1x1x128xf32> to vector<2x2x128xf32>
    %98 = arith.mulf %96, %97 : vector<2x2x128xf32>
    %99 = vector.extract_strided_slice %66 {offsets = [2, 2, 0], sizes = [1, 1, 128], strides = [1, 1, 1]} : vector<3x3x128xf32> to vector<1x1x128xf32>
    %c2_84 = arith.constant 2 : index
    %c2_85 = arith.constant 2 : index
    %c0_86 = arith.constant 0 : index
    %100 = vector.load %arg9[%c2_84, %c2_85, %c0_86] : memref<4x4x128xf32, #tpu.memory_space<vmem>>, vector<2x2x128xf32>
    %101 = vector.broadcast %99 : vector<1x1x128xf32> to vector<2x2x128xf32>
    %102 = arith.mulf %100, %101 : vector<2x2x128xf32>
    %103 = arith.addf %70, %74 : vector<2x2x128xf32>
    %104 = arith.addf %78, %82 : vector<2x2x128xf32>
    %105 = arith.addf %86, %90 : vector<2x2x128xf32>
    %106 = arith.addf %94, %98 : vector<2x2x128xf32>
    %107 = arith.addf %103, %104 : vector<2x2x128xf32>
    %108 = arith.addf %105, %106 : vector<2x2x128xf32>
    %109 = arith.addf %107, %108 : vector<2x2x128xf32>
    %110 = arith.addf %109, %102 : vector<2x2x128xf32>
    %111 = vector.shape_cast %110 : vector<2x2x128xf32> to vector<4x128xf32>
    %c0_87 = arith.constant 0 : index
    %c0_88 = arith.constant 0 : index
    %112 = vector.load %arg6[%c0_87, %c0_88] : memref<128x128xf32, #tpu.memory_space<vmem>>, vector<128x128xf32>
    %cst_89 = arith.constant dense<0.000000e+00> : vector<4x128xf32>
    %113 = tpu.matmul %111, %112, %cst_89 {dimension_numbers = #tpu.dot_dimension_numbers<[1], [0], [0], [1], [0, 0, 1, 1], [], []>} : vector<4x128xf32>, vector<128x128xf32>, vector<4x128xf32> -> vector<4x128xf32>
    %c0_90 = arith.constant 0 : index
    %c0_91 = arith.constant 0 : index
    %114 = vector.load %arg7[%c0_90, %c0_91] : memref<1x128xf32, #tpu.memory_space<vmem>>, vector<1x128xf32>
    %115 = vector.broadcast %114 : vector<1x128xf32> to vector<4x128xf32>
    %116 = arith.addf %113, %115 : vector<4x128xf32>
    %117 = vector.shape_cast %1 : vector<2x2x128xf32> to vector<4x128xf32>
    %118 = arith.addf %116, %117 : vector<4x128xf32>
    %cst_92 = arith.constant 0.000000e+00 : f32
    %119 = vector.broadcast %cst_92 : f32 to vector<4x128xf32>
    %120 = arith.maximumf %118, %119 : vector<4x128xf32>
    %121 = vector.shape_cast %120 : vector<4x128xf32> to vector<1x4x128xf32>
    %c0_93 = arith.constant 0 : index
    %c0_94 = arith.constant 0 : index
    %c0_95 = arith.constant 0 : index
    %122 = vector.load %arg8[%c0_93, %c0_94, %c0_95] : memref<1x4x128xf32, #tpu.memory_space<vmem>>, vector<1x4x128xf32>
    tpu.vector_store %arg8[%c0_93, %c0_94, %c0_95], %121 {strides = array<i32>} : memref<1x4x128xf32, #tpu.memory_space<vmem>>, vector<1x4x128xf32>,
    return
  }
  func.func @transform_0(%arg0: i32) -> (i32, i32, i32, i32) {
    %c0_i32 = arith.constant 0 : i32
    %c0_i32_0 = arith.constant 0 : i32
    %c0_i32_1 = arith.constant 0 : i32
    %c0_i32_2 = arith.constant 0 : i32
    return %arg0, %c0_i32, %c0_i32_0, %c0_i32_1 : i32, i32, i32, i32
  }
  func.func @transform_1(%arg0: i32) -> (i32, i32, i32) {
    %c0_i32 = arith.constant 0 : i32
    %c0_i32_0 = arith.constant 0 : i32
    %c0_i32_1 = arith.constant 0 : i32
    %c0_i32_2 = arith.constant 0 : i32
    return %c0_i32, %c0_i32_0, %c0_i32_1 : i32, i32, i32
  }
  func.func @transform_2(%arg0: i32) -> (i32, i32) {
    %c0_i32 = arith.constant 0 : i32
    %c0_i32_0 = arith.constant 0 : i32
    %c0_i32_1 = arith.constant 0 : i32
    return %c0_i32, %c0_i32_0 : i32, i32
  }
  func.func @transform_3(%arg0: i32) -> (i32, i32) {
    %c0_i32 = arith.constant 0 : i32
    %c0_i32_0 = arith.constant 0 : i32
    %c0_i32_1 = arith.constant 0 : i32
    return %c0_i32, %c0_i32_0 : i32, i32
  }
  func.func @transform_4(%arg0: i32) -> (i32, i32, i32) {
    %c0_i32 = arith.constant 0 : i32
    %c0_i32_0 = arith.constant 0 : i32
    %c0_i32_1 = arith.constant 0 : i32
    %c0_i32_2 = arith.constant 0 : i32
    return %c0_i32, %c0_i32_0, %c0_i32_1 : i32, i32, i32
  }
  func.func @transform_5(%arg0: i32) -> (i32, i32) {
    %c0_i32 = arith.constant 0 : i32
    %c0_i32_0 = arith.constant 0 : i32
    %c0_i32_1 = arith.constant 0 : i32
    return %c0_i32, %c0_i32_0 : i32, i32
  }
  func.func @transform_6(%arg0: i32) -> (i32, i32) {
    %c0_i32 = arith.constant 0 : i32
    %c0_i32_0 = arith.constant 0 : i32
    %c0_i32_1 = arith.constant 0 : i32
    return %c0_i32, %c0_i32_0 : i32, i32
  }
  func.func @transform_7(%arg0: i32) -> (i32, i32, i32) {
    %c0_i32 = arith.constant 0 : i32
    %c0_i32_0 = arith.constant 0 : i32
    %c0_i32_1 = arith.constant 0 : i32
    return %arg0, %c0_i32, %c0_i32_0 : i32, i32, i32
  }
}

module attributes {stable_mosaic.version = 11 : i64} {
  func.func @kernel(%arg0: i32, %arg1: memref<1x2x2x128xf32, #tpu.memory_space<vmem>>, %arg2: memref<3x3x128xf32, #tpu.memory_space<vmem>>, %arg3: memref<128x128xf32, #tpu.memory_space<vmem>>, %arg4: memref<1x128xf32, #tpu.memory_space<vmem>>, %arg5: memref<1x1x128xf32, #tpu.memory_space<vmem>>, %arg6: memref<4x4x128xf32, #tpu.memory_space<vmem>>) attributes {dimension_semantics = [#tpu.dimension_semantics<parallel>], iteration_bounds = array<i64: 2>, scalar_prefetch = 0 : i64, scratch_operands = 1 : i64, tpu.core_type = #tpu.core_type<tc>, window_params = [{transform_indices = @transform_0, window_bounds = array<i64: 1, 2, 2, 128>}, {pipeline_mode = #tpu.pipeline_mode<synchronous>, transform_indices = @transform_1, window_bounds = array<i64: 3, 3, 128>}, {pipeline_mode = #tpu.pipeline_mode<synchronous>, transform_indices = @transform_2, window_bounds = array<i64: 128, 128>}, {pipeline_mode = #tpu.pipeline_mode<synchronous>, transform_indices = @transform_3, window_bounds = array<i64: 1, 128>}, {transform_indices = @transform_4, window_bounds = array<i64: 1, 1, 128>}]} {
    %cst = arith.constant 0.000000e+00 : f32
    %0 = vector.broadcast %cst : f32 to vector<1x4x128xf32>
    %c0 = arith.constant 0 : index
    %c0_0 = arith.constant 0 : index
    %c0_1 = arith.constant 0 : index
    %1 = vector.load %arg6[%c0, %c0_0, %c0_1] : memref<4x4x128xf32, #tpu.memory_space<vmem>>, vector<1x4x128xf32>
    tpu.vector_store %arg6[%c0, %c0_0, %c0_1], %0 {strides = array<i32>} : memref<4x4x128xf32, #tpu.memory_space<vmem>>, vector<1x4x128xf32>,
    %cst_2 = arith.constant 0.000000e+00 : f32
    %2 = vector.broadcast %cst_2 : f32 to vector<1x4x128xf32>
    %c3 = arith.constant 3 : index
    %c0_3 = arith.constant 0 : index
    %c0_4 = arith.constant 0 : index
    %3 = vector.load %arg6[%c3, %c0_3, %c0_4] : memref<4x4x128xf32, #tpu.memory_space<vmem>>, vector<1x4x128xf32>
    tpu.vector_store %arg6[%c3, %c0_3, %c0_4], %2 {strides = array<i32>} : memref<4x4x128xf32, #tpu.memory_space<vmem>>, vector<1x4x128xf32>,
    %cst_5 = arith.constant 0.000000e+00 : f32
    %4 = vector.broadcast %cst_5 : f32 to vector<4x1x128xf32>
    %c0_6 = arith.constant 0 : index
    %c0_7 = arith.constant 0 : index
    %c0_8 = arith.constant 0 : index
    %5 = vector.load %arg6[%c0_6, %c0_7, %c0_8] : memref<4x4x128xf32, #tpu.memory_space<vmem>>, vector<4x1x128xf32>
    tpu.vector_store %arg6[%c0_6, %c0_7, %c0_8], %4 {strides = array<i32>} : memref<4x4x128xf32, #tpu.memory_space<vmem>>, vector<4x1x128xf32>,
    %cst_9 = arith.constant 0.000000e+00 : f32
    %6 = vector.broadcast %cst_9 : f32 to vector<4x1x128xf32>
    %c0_10 = arith.constant 0 : index
    %c3_11 = arith.constant 3 : index
    %c0_12 = arith.constant 0 : index
    %7 = vector.load %arg6[%c0_10, %c3_11, %c0_12] : memref<4x4x128xf32, #tpu.memory_space<vmem>>, vector<4x1x128xf32>
    tpu.vector_store %arg6[%c0_10, %c3_11, %c0_12], %6 {strides = array<i32>} : memref<4x4x128xf32, #tpu.memory_space<vmem>>, vector<4x1x128xf32>,
    %c0_13 = arith.constant 0 : index
    %c0_14 = arith.constant 0 : index
    %c0_15 = arith.constant 0 : index
    %c0_16 = arith.constant 0 : index
    %8 = vector.load %arg1[%c0_13, %c0_14, %c0_15, %c0_16] : memref<1x2x2x128xf32, #tpu.memory_space<vmem>>, vector<1x2x2x128xf32>
    %9 = vector.shape_cast %8 : vector<1x2x2x128xf32> to vector<2x2x128xf32>
    %c1 = arith.constant 1 : index
    %c1_17 = arith.constant 1 : index
    %c0_18 = arith.constant 0 : index
    %10 = vector.load %arg6[%c1, %c1_17, %c0_18] : memref<4x4x128xf32, #tpu.memory_space<vmem>>, vector<2x2x128xf32>
    tpu.vector_store %arg6[%c1, %c1_17, %c0_18], %9 {strides = array<i32>} : memref<4x4x128xf32, #tpu.memory_space<vmem>>, vector<2x2x128xf32>,
    %c0_19 = arith.constant 0 : index
    %c0_20 = arith.constant 0 : index
    %c0_21 = arith.constant 0 : index
    %11 = vector.load %arg2[%c0_19, %c0_20, %c0_21] : memref<3x3x128xf32, #tpu.memory_space<vmem>>, vector<3x3x128xf32>
    %12 = vector.extract_strided_slice %11 {offsets = [0, 0, 0], sizes = [1, 1, 128], strides = [1, 1, 1]} : vector<3x3x128xf32> to vector<1x1x128xf32>
    %c0_22 = arith.constant 0 : index
    %c0_23 = arith.constant 0 : index
    %c0_24 = arith.constant 0 : index
    %13 = tpu.strided_load %arg6[%c0_22, %c0_23, %c0_24] {strides = array<i32: 2, 2, 1>} : memref<4x4x128xf32, #tpu.memory_space<vmem>>, vector<1x1x128xf32>
    %14 = arith.mulf %13, %12 : vector<1x1x128xf32>
    %15 = vector.extract_strided_slice %11 {offsets = [0, 1, 0], sizes = [1, 1, 128], strides = [1, 1, 1]} : vector<3x3x128xf32> to vector<1x1x128xf32>
    %c0_25 = arith.constant 0 : index
    %c1_26 = arith.constant 1 : index
    %c0_27 = arith.constant 0 : index
    %16 = tpu.strided_load %arg6[%c0_25, %c1_26, %c0_27] {strides = array<i32: 2, 2, 1>} : memref<4x4x128xf32, #tpu.memory_space<vmem>>, vector<1x1x128xf32>
    %17 = arith.mulf %16, %15 : vector<1x1x128xf32>
    %18 = vector.extract_strided_slice %11 {offsets = [0, 2, 0], sizes = [1, 1, 128], strides = [1, 1, 1]} : vector<3x3x128xf32> to vector<1x1x128xf32>
    %c0_28 = arith.constant 0 : index
    %c2 = arith.constant 2 : index
    %c0_29 = arith.constant 0 : index
    %19 = tpu.strided_load %arg6[%c0_28, %c2, %c0_29] {strides = array<i32: 2, 2, 1>} : memref<4x4x128xf32, #tpu.memory_space<vmem>>, vector<1x1x128xf32>
    %20 = arith.mulf %19, %18 : vector<1x1x128xf32>
    %21 = vector.extract_strided_slice %11 {offsets = [1, 0, 0], sizes = [1, 1, 128], strides = [1, 1, 1]} : vector<3x3x128xf32> to vector<1x1x128xf32>
    %c1_30 = arith.constant 1 : index
    %c0_31 = arith.constant 0 : index
    %c0_32 = arith.constant 0 : index
    %22 = tpu.strided_load %arg6[%c1_30, %c0_31, %c0_32] {strides = array<i32: 2, 2, 1>} : memref<4x4x128xf32, #tpu.memory_space<vmem>>, vector<1x1x128xf32>
    %23 = arith.mulf %22, %21 : vector<1x1x128xf32>
    %24 = vector.extract_strided_slice %11 {offsets = [1, 1, 0], sizes = [1, 1, 128], strides = [1, 1, 1]} : vector<3x3x128xf32> to vector<1x1x128xf32>
    %c1_33 = arith.constant 1 : index
    %c1_34 = arith.constant 1 : index
    %c0_35 = arith.constant 0 : index
    %25 = tpu.strided_load %arg6[%c1_33, %c1_34, %c0_35] {strides = array<i32: 2, 2, 1>} : memref<4x4x128xf32, #tpu.memory_space<vmem>>, vector<1x1x128xf32>
    %26 = arith.mulf %25, %24 : vector<1x1x128xf32>
    %27 = vector.extract_strided_slice %11 {offsets = [1, 2, 0], sizes = [1, 1, 128], strides = [1, 1, 1]} : vector<3x3x128xf32> to vector<1x1x128xf32>
    %c1_36 = arith.constant 1 : index
    %c2_37 = arith.constant 2 : index
    %c0_38 = arith.constant 0 : index
    %28 = tpu.strided_load %arg6[%c1_36, %c2_37, %c0_38] {strides = array<i32: 2, 2, 1>} : memref<4x4x128xf32, #tpu.memory_space<vmem>>, vector<1x1x128xf32>
    %29 = arith.mulf %28, %27 : vector<1x1x128xf32>
    %30 = vector.extract_strided_slice %11 {offsets = [2, 0, 0], sizes = [1, 1, 128], strides = [1, 1, 1]} : vector<3x3x128xf32> to vector<1x1x128xf32>
    %c2_39 = arith.constant 2 : index
    %c0_40 = arith.constant 0 : index
    %c0_41 = arith.constant 0 : index
    %31 = tpu.strided_load %arg6[%c2_39, %c0_40, %c0_41] {strides = array<i32: 2, 2, 1>} : memref<4x4x128xf32, #tpu.memory_space<vmem>>, vector<1x1x128xf32>
    %32 = arith.mulf %31, %30 : vector<1x1x128xf32>
    %33 = vector.extract_strided_slice %11 {offsets = [2, 1, 0], sizes = [1, 1, 128], strides = [1, 1, 1]} : vector<3x3x128xf32> to vector<1x1x128xf32>
    %c2_42 = arith.constant 2 : index
    %c1_43 = arith.constant 1 : index
    %c0_44 = arith.constant 0 : index
    %34 = tpu.strided_load %arg6[%c2_42, %c1_43, %c0_44] {strides = array<i32: 2, 2, 1>} : memref<4x4x128xf32, #tpu.memory_space<vmem>>, vector<1x1x128xf32>
    %35 = arith.mulf %34, %33 : vector<1x1x128xf32>
    %36 = vector.extract_strided_slice %11 {offsets = [2, 2, 0], sizes = [1, 1, 128], strides = [1, 1, 1]} : vector<3x3x128xf32> to vector<1x1x128xf32>
    %c2_45 = arith.constant 2 : index
    %c2_46 = arith.constant 2 : index
    %c0_47 = arith.constant 0 : index
    %37 = tpu.strided_load %arg6[%c2_45, %c2_46, %c0_47] {strides = array<i32: 2, 2, 1>} : memref<4x4x128xf32, #tpu.memory_space<vmem>>, vector<1x1x128xf32>
    %38 = arith.mulf %37, %36 : vector<1x1x128xf32>
    %39 = arith.addf %14, %17 : vector<1x1x128xf32>
    %40 = arith.addf %20, %23 : vector<1x1x128xf32>
    %41 = arith.addf %26, %29 : vector<1x1x128xf32>
    %42 = arith.addf %32, %35 : vector<1x1x128xf32>
    %43 = arith.addf %39, %40 : vector<1x1x128xf32>
    %44 = arith.addf %41, %42 : vector<1x1x128xf32>
    %45 = arith.addf %43, %44 : vector<1x1x128xf32>
    %46 = arith.addf %45, %38 : vector<1x1x128xf32>
    %47 = vector.shape_cast %46 : vector<1x1x128xf32> to vector<1x128xf32>
    %c0_48 = arith.constant 0 : index
    %c0_49 = arith.constant 0 : index
    %48 = vector.load %arg3[%c0_48, %c0_49] : memref<128x128xf32, #tpu.memory_space<vmem>>, vector<128x128xf32>
    %cst_50 = arith.constant dense<0.000000e+00> : vector<1x128xf32>
    %49 = tpu.matmul %47, %48, %cst_50 {dimension_numbers = #tpu.dot_dimension_numbers<[1], [0], [0], [1], [0, 0, 1, 1], [], []>} : vector<1x128xf32>, vector<128x128xf32>, vector<1x128xf32> -> vector<1x128xf32>
    %c0_51 = arith.constant 0 : index
    %c0_52 = arith.constant 0 : index
    %50 = vector.load %arg4[%c0_51, %c0_52] : memref<1x128xf32, #tpu.memory_space<vmem>>, vector<1x128xf32>
    %51 = arith.addf %49, %50 : vector<1x128xf32>
    %cst_53 = arith.constant 0.000000e+00 : f32
    %52 = vector.broadcast %cst_53 : f32 to vector<1x128xf32>
    %53 = arith.maximumf %51, %52 : vector<1x128xf32>
    %54 = vector.shape_cast %53 : vector<1x128xf32> to vector<1x1x128xf32>
    %c0_54 = arith.constant 0 : index
    %c0_55 = arith.constant 0 : index
    %c0_56 = arith.constant 0 : index
    %55 = vector.load %arg5[%c0_54, %c0_55, %c0_56] : memref<1x1x128xf32, #tpu.memory_space<vmem>>, vector<1x1x128xf32>
    tpu.vector_store %arg5[%c0_54, %c0_55, %c0_56], %54 {strides = array<i32>} : memref<1x1x128xf32, #tpu.memory_space<vmem>>, vector<1x1x128xf32>,
    return
  }
  func.func @transform_0(%arg0: i32) -> (i32, i32, i32, i32) {
    %c0_i32 = arith.constant 0 : i32
    %c0_i32_0 = arith.constant 0 : i32
    %c0_i32_1 = arith.constant 0 : i32
    %c0_i32_2 = arith.constant 0 : i32
    return %arg0, %c0_i32, %c0_i32_0, %c0_i32_1 : i32, i32, i32, i32
  }
  func.func @transform_1(%arg0: i32) -> (i32, i32, i32) {
    %c0_i32 = arith.constant 0 : i32
    %c0_i32_0 = arith.constant 0 : i32
    %c0_i32_1 = arith.constant 0 : i32
    %c0_i32_2 = arith.constant 0 : i32
    return %c0_i32, %c0_i32_0, %c0_i32_1 : i32, i32, i32
  }
  func.func @transform_2(%arg0: i32) -> (i32, i32) {
    %c0_i32 = arith.constant 0 : i32
    %c0_i32_0 = arith.constant 0 : i32
    %c0_i32_1 = arith.constant 0 : i32
    return %c0_i32, %c0_i32_0 : i32, i32
  }
  func.func @transform_3(%arg0: i32) -> (i32, i32) {
    %c0_i32 = arith.constant 0 : i32
    %c0_i32_0 = arith.constant 0 : i32
    %c0_i32_1 = arith.constant 0 : i32
    return %c0_i32, %c0_i32_0 : i32, i32
  }
  func.func @transform_4(%arg0: i32) -> (i32, i32, i32) {
    %c0_i32 = arith.constant 0 : i32
    %c0_i32_0 = arith.constant 0 : i32
    %c0_i32_1 = arith.constant 0 : i32
    return %arg0, %c0_i32, %c0_i32_0 : i32, i32, i32
  }
}

module attributes {stable_mosaic.version = 11 : i64} {
  func.func @kernel(%arg0: i32, %arg1: memref<1x1x1x128xf32, #tpu.memory_space<vmem>>, %arg2: memref<3x3x128xf32, #tpu.memory_space<vmem>>, %arg3: memref<128x128xf32, #tpu.memory_space<vmem>>, %arg4: memref<1x128xf32, #tpu.memory_space<vmem>>, %arg5: memref<1x1x128xf32, #tpu.memory_space<vmem>>, %arg6: memref<3x3x128xf32, #tpu.memory_space<vmem>>) attributes {dimension_semantics = [#tpu.dimension_semantics<parallel>], iteration_bounds = array<i64: 2>, scalar_prefetch = 0 : i64, scratch_operands = 1 : i64, tpu.core_type = #tpu.core_type<tc>, window_params = [{transform_indices = @transform_0, window_bounds = array<i64: 1, 1, 1, 128>}, {pipeline_mode = #tpu.pipeline_mode<synchronous>, transform_indices = @transform_1, window_bounds = array<i64: 3, 3, 128>}, {pipeline_mode = #tpu.pipeline_mode<synchronous>, transform_indices = @transform_2, window_bounds = array<i64: 128, 128>}, {pipeline_mode = #tpu.pipeline_mode<synchronous>, transform_indices = @transform_3, window_bounds = array<i64: 1, 128>}, {transform_indices = @transform_4, window_bounds = array<i64: 1, 1, 128>}]} {
    %cst = arith.constant 0.000000e+00 : f32
    %0 = vector.broadcast %cst : f32 to vector<1x3x128xf32>
    %c0 = arith.constant 0 : index
    %c0_0 = arith.constant 0 : index
    %c0_1 = arith.constant 0 : index
    %1 = vector.load %arg6[%c0, %c0_0, %c0_1] : memref<3x3x128xf32, #tpu.memory_space<vmem>>, vector<1x3x128xf32>
    tpu.vector_store %arg6[%c0, %c0_0, %c0_1], %0 {strides = array<i32>} : memref<3x3x128xf32, #tpu.memory_space<vmem>>, vector<1x3x128xf32>,
    %cst_2 = arith.constant 0.000000e+00 : f32
    %2 = vector.broadcast %cst_2 : f32 to vector<1x3x128xf32>
    %c2 = arith.constant 2 : index
    %c0_3 = arith.constant 0 : index
    %c0_4 = arith.constant 0 : index
    %3 = vector.load %arg6[%c2, %c0_3, %c0_4] : memref<3x3x128xf32, #tpu.memory_space<vmem>>, vector<1x3x128xf32>
    tpu.vector_store %arg6[%c2, %c0_3, %c0_4], %2 {strides = array<i32>} : memref<3x3x128xf32, #tpu.memory_space<vmem>>, vector<1x3x128xf32>,
    %cst_5 = arith.constant 0.000000e+00 : f32
    %4 = vector.broadcast %cst_5 : f32 to vector<3x1x128xf32>
    %c0_6 = arith.constant 0 : index
    %c0_7 = arith.constant 0 : index
    %c0_8 = arith.constant 0 : index
    %5 = vector.load %arg6[%c0_6, %c0_7, %c0_8] : memref<3x3x128xf32, #tpu.memory_space<vmem>>, vector<3x1x128xf32>
    tpu.vector_store %arg6[%c0_6, %c0_7, %c0_8], %4 {strides = array<i32>} : memref<3x3x128xf32, #tpu.memory_space<vmem>>, vector<3x1x128xf32>,
    %cst_9 = arith.constant 0.000000e+00 : f32
    %6 = vector.broadcast %cst_9 : f32 to vector<3x1x128xf32>
    %c0_10 = arith.constant 0 : index
    %c2_11 = arith.constant 2 : index
    %c0_12 = arith.constant 0 : index
    %7 = vector.load %arg6[%c0_10, %c2_11, %c0_12] : memref<3x3x128xf32, #tpu.memory_space<vmem>>, vector<3x1x128xf32>
    tpu.vector_store %arg6[%c0_10, %c2_11, %c0_12], %6 {strides = array<i32>} : memref<3x3x128xf32, #tpu.memory_space<vmem>>, vector<3x1x128xf32>,
    %c0_13 = arith.constant 0 : index
    %c0_14 = arith.constant 0 : index
    %c0_15 = arith.constant 0 : index
    %c0_16 = arith.constant 0 : index
    %8 = vector.load %arg1[%c0_13, %c0_14, %c0_15, %c0_16] : memref<1x1x1x128xf32, #tpu.memory_space<vmem>>, vector<1x1x1x128xf32>
    %9 = vector.shape_cast %8 : vector<1x1x1x128xf32> to vector<1x1x128xf32>
    %c1 = arith.constant 1 : index
    %c1_17 = arith.constant 1 : index
    %c0_18 = arith.constant 0 : index
    %10 = vector.load %arg6[%c1, %c1_17, %c0_18] : memref<3x3x128xf32, #tpu.memory_space<vmem>>, vector<1x1x128xf32>
    tpu.vector_store %arg6[%c1, %c1_17, %c0_18], %9 {strides = array<i32>} : memref<3x3x128xf32, #tpu.memory_space<vmem>>, vector<1x1x128xf32>,
    %c0_19 = arith.constant 0 : index
    %c0_20 = arith.constant 0 : index
    %c0_21 = arith.constant 0 : index
    %11 = vector.load %arg2[%c0_19, %c0_20, %c0_21] : memref<3x3x128xf32, #tpu.memory_space<vmem>>, vector<3x3x128xf32>
    %12 = vector.extract_strided_slice %11 {offsets = [0, 0, 0], sizes = [1, 1, 128], strides = [1, 1, 1]} : vector<3x3x128xf32> to vector<1x1x128xf32>
    %c0_22 = arith.constant 0 : index
    %c0_23 = arith.constant 0 : index
    %c0_24 = arith.constant 0 : index
    %13 = vector.load %arg6[%c0_22, %c0_23, %c0_24] : memref<3x3x128xf32, #tpu.memory_space<vmem>>, vector<1x1x128xf32>
    %14 = arith.mulf %13, %12 : vector<1x1x128xf32>
    %15 = vector.extract_strided_slice %11 {offsets = [0, 1, 0], sizes = [1, 1, 128], strides = [1, 1, 1]} : vector<3x3x128xf32> to vector<1x1x128xf32>
    %c0_25 = arith.constant 0 : index
    %c1_26 = arith.constant 1 : index
    %c0_27 = arith.constant 0 : index
    %16 = vector.load %arg6[%c0_25, %c1_26, %c0_27] : memref<3x3x128xf32, #tpu.memory_space<vmem>>, vector<1x1x128xf32>
    %17 = arith.mulf %16, %15 : vector<1x1x128xf32>
    %18 = vector.extract_strided_slice %11 {offsets = [0, 2, 0], sizes = [1, 1, 128], strides = [1, 1, 1]} : vector<3x3x128xf32> to vector<1x1x128xf32>
    %c0_28 = arith.constant 0 : index
    %c2_29 = arith.constant 2 : index
    %c0_30 = arith.constant 0 : index
    %19 = vector.load %arg6[%c0_28, %c2_29, %c0_30] : memref<3x3x128xf32, #tpu.memory_space<vmem>>, vector<1x1x128xf32>
    %20 = arith.mulf %19, %18 : vector<1x1x128xf32>
    %21 = vector.extract_strided_slice %11 {offsets = [1, 0, 0], sizes = [1, 1, 128], strides = [1, 1, 1]} : vector<3x3x128xf32> to vector<1x1x128xf32>
    %c1_31 = arith.constant 1 : index
    %c0_32 = arith.constant 0 : index
    %c0_33 = arith.constant 0 : index
    %22 = vector.load %arg6[%c1_31, %c0_32, %c0_33] : memref<3x3x128xf32, #tpu.memory_space<vmem>>, vector<1x1x128xf32>
    %23 = arith.mulf %22, %21 : vector<1x1x128xf32>
    %24 = vector.extract_strided_slice %11 {offsets = [1, 1, 0], sizes = [1, 1, 128], strides = [1, 1, 1]} : vector<3x3x128xf32> to vector<1x1x128xf32>
    %c1_34 = arith.constant 1 : index
    %c1_35 = arith.constant 1 : index
    %c0_36 = arith.constant 0 : index
    %25 = vector.load %arg6[%c1_34, %c1_35, %c0_36] : memref<3x3x128xf32, #tpu.memory_space<vmem>>, vector<1x1x128xf32>
    %26 = arith.mulf %25, %24 : vector<1x1x128xf32>
    %27 = vector.extract_strided_slice %11 {offsets = [1, 2, 0], sizes = [1, 1, 128], strides = [1, 1, 1]} : vector<3x3x128xf32> to vector<1x1x128xf32>
    %c1_37 = arith.constant 1 : index
    %c2_38 = arith.constant 2 : index
    %c0_39 = arith.constant 0 : index
    %28 = vector.load %arg6[%c1_37, %c2_38, %c0_39] : memref<3x3x128xf32, #tpu.memory_space<vmem>>, vector<1x1x128xf32>
    %29 = arith.mulf %28, %27 : vector<1x1x128xf32>
    %30 = vector.extract_strided_slice %11 {offsets = [2, 0, 0], sizes = [1, 1, 128], strides = [1, 1, 1]} : vector<3x3x128xf32> to vector<1x1x128xf32>
    %c2_40 = arith.constant 2 : index
    %c0_41 = arith.constant 0 : index
    %c0_42 = arith.constant 0 : index
    %31 = vector.load %arg6[%c2_40, %c0_41, %c0_42] : memref<3x3x128xf32, #tpu.memory_space<vmem>>, vector<1x1x128xf32>
    %32 = arith.mulf %31, %30 : vector<1x1x128xf32>
    %33 = vector.extract_strided_slice %11 {offsets = [2, 1, 0], sizes = [1, 1, 128], strides = [1, 1, 1]} : vector<3x3x128xf32> to vector<1x1x128xf32>
    %c2_43 = arith.constant 2 : index
    %c1_44 = arith.constant 1 : index
    %c0_45 = arith.constant 0 : index
    %34 = vector.load %arg6[%c2_43, %c1_44, %c0_45] : memref<3x3x128xf32, #tpu.memory_space<vmem>>, vector<1x1x128xf32>
    %35 = arith.mulf %34, %33 : vector<1x1x128xf32>
    %36 = vector.extract_strided_slice %11 {offsets = [2, 2, 0], sizes = [1, 1, 128], strides = [1, 1, 1]} : vector<3x3x128xf32> to vector<1x1x128xf32>
    %c2_46 = arith.constant 2 : index
    %c2_47 = arith.constant 2 : index
    %c0_48 = arith.constant 0 : index
    %37 = vector.load %arg6[%c2_46, %c2_47, %c0_48] : memref<3x3x128xf32, #tpu.memory_space<vmem>>, vector<1x1x128xf32>
    %38 = arith.mulf %37, %36 : vector<1x1x128xf32>
    %39 = arith.addf %14, %17 : vector<1x1x128xf32>
    %40 = arith.addf %20, %23 : vector<1x1x128xf32>
    %41 = arith.addf %26, %29 : vector<1x1x128xf32>
    %42 = arith.addf %32, %35 : vector<1x1x128xf32>
    %43 = arith.addf %39, %40 : vector<1x1x128xf32>
    %44 = arith.addf %41, %42 : vector<1x1x128xf32>
    %45 = arith.addf %43, %44 : vector<1x1x128xf32>
    %46 = arith.addf %45, %38 : vector<1x1x128xf32>
    %47 = vector.shape_cast %46 : vector<1x1x128xf32> to vector<1x128xf32>
    %c0_49 = arith.constant 0 : index
    %c0_50 = arith.constant 0 : index
    %48 = vector.load %arg3[%c0_49, %c0_50] : memref<128x128xf32, #tpu.memory_space<vmem>>, vector<128x128xf32>
    %cst_51 = arith.constant dense<0.000000e+00> : vector<1x128xf32>
    %49 = tpu.matmul %47, %48, %cst_51 {dimension_numbers = #tpu.dot_dimension_numbers<[1], [0], [0], [1], [0, 0, 1, 1], [], []>} : vector<1x128xf32>, vector<128x128xf32>, vector<1x128xf32> -> vector<1x128xf32>
    %c0_52 = arith.constant 0 : index
    %c0_53 = arith.constant 0 : index
    %50 = vector.load %arg4[%c0_52, %c0_53] : memref<1x128xf32, #tpu.memory_space<vmem>>, vector<1x128xf32>
    %51 = arith.addf %49, %50 : vector<1x128xf32>
    %cst_54 = arith.constant 0.000000e+00 : f32
    %52 = vector.broadcast %cst_54 : f32 to vector<1x128xf32>
    %53 = arith.maximumf %51, %52 : vector<1x128xf32>
    %54 = vector.shape_cast %53 : vector<1x128xf32> to vector<1x1x128xf32>
    %c0_55 = arith.constant 0 : index
    %c0_56 = arith.constant 0 : index
    %c0_57 = arith.constant 0 : index
    %55 = vector.load %arg5[%c0_55, %c0_56, %c0_57] : memref<1x1x128xf32, #tpu.memory_space<vmem>>, vector<1x1x128xf32>
    tpu.vector_store %arg5[%c0_55, %c0_56, %c0_57], %54 {strides = array<i32>} : memref<1x1x128xf32, #tpu.memory_space<vmem>>, vector<1x1x128xf32>,
    return
  }
  func.func @transform_0(%arg0: i32) -> (i32, i32, i32, i32) {
    %c0_i32 = arith.constant 0 : i32
    %c0_i32_0 = arith.constant 0 : i32
    %c0_i32_1 = arith.constant 0 : i32
    %c0_i32_2 = arith.constant 0 : i32
    return %arg0, %c0_i32, %c0_i32_0, %c0_i32_1 : i32, i32, i32, i32
  }
  func.func @transform_1(%arg0: i32) -> (i32, i32, i32) {
    %c0_i32 = arith.constant 0 : i32
    %c0_i32_0 = arith.constant 0 : i32
    %c0_i32_1 = arith.constant 0 : i32
    %c0_i32_2 = arith.constant 0 : i32
    return %c0_i32, %c0_i32_0, %c0_i32_1 : i32, i32, i32
  }
  func.func @transform_2(%arg0: i32) -> (i32, i32) {
    %c0_i32 = arith.constant 0 : i32
    %c0_i32_0 = arith.constant 0 : i32
    %c0_i32_1 = arith.constant 0 : i32
    return %c0_i32, %c0_i32_0 : i32, i32
  }
  func.func @transform_3(%arg0: i32) -> (i32, i32) {
    %c0_i32 = arith.constant 0 : i32
    %c0_i32_0 = arith.constant 0 : i32
    %c0_i32_1 = arith.constant 0 : i32
    return %c0_i32, %c0_i32_0 : i32, i32
  }
  func.func @transform_4(%arg0: i32) -> (i32, i32, i32) {
    %c0_i32 = arith.constant 0 : i32
    %c0_i32_0 = arith.constant 0 : i32
    %c0_i32_1 = arith.constant 0 : i32
    return %arg0, %c0_i32, %c0_i32_0 : i32, i32, i32
  }
}

module attributes {stable_mosaic.version = 11 : i64} {
  func.func @kernel(%arg0: i32, %arg1: memref<1x1x1x128xf32, #tpu.memory_space<vmem>>, %arg2: memref<3x3x128xf32, #tpu.memory_space<vmem>>, %arg3: memref<128x128xf32, #tpu.memory_space<vmem>>, %arg4: memref<1x128xf32, #tpu.memory_space<vmem>>, %arg5: memref<3x3x128xf32, #tpu.memory_space<vmem>>, %arg6: memref<128x128xf32, #tpu.memory_space<vmem>>, %arg7: memref<1x128xf32, #tpu.memory_space<vmem>>, %arg8: memref<128x128xf32, #tpu.memory_space<vmem>>, %arg9: memref<1x128xf32, #tpu.memory_space<vmem>>, %arg10: memref<1x1x128xf32, #tpu.memory_space<vmem>>, %arg11: memref<3x3x128xf32, #tpu.memory_space<vmem>>) attributes {dimension_semantics = [#tpu.dimension_semantics<parallel>], iteration_bounds = array<i64: 2>, scalar_prefetch = 0 : i64, scratch_operands = 1 : i64, tpu.core_type = #tpu.core_type<tc>, window_params = [{transform_indices = @transform_0, window_bounds = array<i64: 1, 1, 1, 128>}, {pipeline_mode = #tpu.pipeline_mode<synchronous>, transform_indices = @transform_1, window_bounds = array<i64: 3, 3, 128>}, {pipeline_mode = #tpu.pipeline_mode<synchronous>, transform_indices = @transform_2, window_bounds = array<i64: 128, 128>}, {pipeline_mode = #tpu.pipeline_mode<synchronous>, transform_indices = @transform_3, window_bounds = array<i64: 1, 128>}, {pipeline_mode = #tpu.pipeline_mode<synchronous>, transform_indices = @transform_4, window_bounds = array<i64: 3, 3, 128>}, {pipeline_mode = #tpu.pipeline_mode<synchronous>, transform_indices = @transform_5, window_bounds = array<i64: 128, 128>}, {pipeline_mode = #tpu.pipeline_mode<synchronous>, transform_indices = @transform_6, window_bounds = array<i64: 1, 128>}, {pipeline_mode = #tpu.pipeline_mode<synchronous>, transform_indices = @transform_7, window_bounds = array<i64: 128, 128>}, {pipeline_mode = #tpu.pipeline_mode<synchronous>, transform_indices = @transform_8, window_bounds = array<i64: 1, 128>}, {transform_indices = @transform_9, window_bounds = array<i64: 1, 1, 128>}]} {
    %c0 = arith.constant 0 : index
    %c0_0 = arith.constant 0 : index
    %c0_1 = arith.constant 0 : index
    %c0_2 = arith.constant 0 : index
    %0 = vector.load %arg1[%c0, %c0_0, %c0_1, %c0_2] : memref<1x1x1x128xf32, #tpu.memory_space<vmem>>, vector<1x1x1x128xf32>
    %1 = vector.shape_cast %0 : vector<1x1x1x128xf32> to vector<1x1x128xf32>
    %cst = arith.constant 0.000000e+00 : f32
    %2 = vector.broadcast %cst : f32 to vector<1x3x128xf32>
    %c0_3 = arith.constant 0 : index
    %c0_4 = arith.constant 0 : index
    %c0_5 = arith.constant 0 : index
    %3 = vector.load %arg11[%c0_3, %c0_4, %c0_5] : memref<3x3x128xf32, #tpu.memory_space<vmem>>, vector<1x3x128xf32>
    tpu.vector_store %arg11[%c0_3, %c0_4, %c0_5], %2 {strides = array<i32>} : memref<3x3x128xf32, #tpu.memory_space<vmem>>, vector<1x3x128xf32>,
    %cst_6 = arith.constant 0.000000e+00 : f32
    %4 = vector.broadcast %cst_6 : f32 to vector<1x3x128xf32>
    %c2 = arith.constant 2 : index
    %c0_7 = arith.constant 0 : index
    %c0_8 = arith.constant 0 : index
    %5 = vector.load %arg11[%c2, %c0_7, %c0_8] : memref<3x3x128xf32, #tpu.memory_space<vmem>>, vector<1x3x128xf32>
    tpu.vector_store %arg11[%c2, %c0_7, %c0_8], %4 {strides = array<i32>} : memref<3x3x128xf32, #tpu.memory_space<vmem>>, vector<1x3x128xf32>,
    %cst_9 = arith.constant 0.000000e+00 : f32
    %6 = vector.broadcast %cst_9 : f32 to vector<3x1x128xf32>
    %c0_10 = arith.constant 0 : index
    %c0_11 = arith.constant 0 : index
    %c0_12 = arith.constant 0 : index
    %7 = vector.load %arg11[%c0_10, %c0_11, %c0_12] : memref<3x3x128xf32, #tpu.memory_space<vmem>>, vector<3x1x128xf32>
    tpu.vector_store %arg11[%c0_10, %c0_11, %c0_12], %6 {strides = array<i32>} : memref<3x3x128xf32, #tpu.memory_space<vmem>>, vector<3x1x128xf32>,
    %cst_13 = arith.constant 0.000000e+00 : f32
    %8 = vector.broadcast %cst_13 : f32 to vector<3x1x128xf32>
    %c0_14 = arith.constant 0 : index
    %c2_15 = arith.constant 2 : index
    %c0_16 = arith.constant 0 : index
    %9 = vector.load %arg11[%c0_14, %c2_15, %c0_16] : memref<3x3x128xf32, #tpu.memory_space<vmem>>, vector<3x1x128xf32>
    tpu.vector_store %arg11[%c0_14, %c2_15, %c0_16], %8 {strides = array<i32>} : memref<3x3x128xf32, #tpu.memory_space<vmem>>, vector<3x1x128xf32>,
    %c1 = arith.constant 1 : index
    %c1_17 = arith.constant 1 : index
    %c0_18 = arith.constant 0 : index
    %10 = vector.load %arg11[%c1, %c1_17, %c0_18] : memref<3x3x128xf32, #tpu.memory_space<vmem>>, vector<1x1x128xf32>
    tpu.vector_store %arg11[%c1, %c1_17, %c0_18], %1 {strides = array<i32>} : memref<3x3x128xf32, #tpu.memory_space<vmem>>, vector<1x1x128xf32>,
    %c0_19 = arith.constant 0 : index
    %c0_20 = arith.constant 0 : index
    %c0_21 = arith.constant 0 : index
    %11 = vector.load %arg2[%c0_19, %c0_20, %c0_21] : memref<3x3x128xf32, #tpu.memory_space<vmem>>, vector<3x3x128xf32>
    %12 = vector.extract_strided_slice %11 {offsets = [0, 0, 0], sizes = [1, 1, 128], strides = [1, 1, 1]} : vector<3x3x128xf32> to vector<1x1x128xf32>
    %c0_22 = arith.constant 0 : index
    %c0_23 = arith.constant 0 : index
    %c0_24 = arith.constant 0 : index
    %13 = vector.load %arg11[%c0_22, %c0_23, %c0_24] : memref<3x3x128xf32, #tpu.memory_space<vmem>>, vector<1x1x128xf32>
    %14 = arith.mulf %13, %12 : vector<1x1x128xf32>
    %15 = vector.extract_strided_slice %11 {offsets = [0, 1, 0], sizes = [1, 1, 128], strides = [1, 1, 1]} : vector<3x3x128xf32> to vector<1x1x128xf32>
    %c0_25 = arith.constant 0 : index
    %c1_26 = arith.constant 1 : index
    %c0_27 = arith.constant 0 : index
    %16 = vector.load %arg11[%c0_25, %c1_26, %c0_27] : memref<3x3x128xf32, #tpu.memory_space<vmem>>, vector<1x1x128xf32>
    %17 = arith.mulf %16, %15 : vector<1x1x128xf32>
    %18 = vector.extract_strided_slice %11 {offsets = [0, 2, 0], sizes = [1, 1, 128], strides = [1, 1, 1]} : vector<3x3x128xf32> to vector<1x1x128xf32>
    %c0_28 = arith.constant 0 : index
    %c2_29 = arith.constant 2 : index
    %c0_30 = arith.constant 0 : index
    %19 = vector.load %arg11[%c0_28, %c2_29, %c0_30] : memref<3x3x128xf32, #tpu.memory_space<vmem>>, vector<1x1x128xf32>
    %20 = arith.mulf %19, %18 : vector<1x1x128xf32>
    %21 = vector.extract_strided_slice %11 {offsets = [1, 0, 0], sizes = [1, 1, 128], strides = [1, 1, 1]} : vector<3x3x128xf32> to vector<1x1x128xf32>
    %c1_31 = arith.constant 1 : index
    %c0_32 = arith.constant 0 : index
    %c0_33 = arith.constant 0 : index
    %22 = vector.load %arg11[%c1_31, %c0_32, %c0_33] : memref<3x3x128xf32, #tpu.memory_space<vmem>>, vector<1x1x128xf32>
    %23 = arith.mulf %22, %21 : vector<1x1x128xf32>
    %24 = vector.extract_strided_slice %11 {offsets = [1, 1, 0], sizes = [1, 1, 128], strides = [1, 1, 1]} : vector<3x3x128xf32> to vector<1x1x128xf32>
    %c1_34 = arith.constant 1 : index
    %c1_35 = arith.constant 1 : index
    %c0_36 = arith.constant 0 : index
    %25 = vector.load %arg11[%c1_34, %c1_35, %c0_36] : memref<3x3x128xf32, #tpu.memory_space<vmem>>, vector<1x1x128xf32>
    %26 = arith.mulf %25, %24 : vector<1x1x128xf32>
    %27 = vector.extract_strided_slice %11 {offsets = [1, 2, 0], sizes = [1, 1, 128], strides = [1, 1, 1]} : vector<3x3x128xf32> to vector<1x1x128xf32>
    %c1_37 = arith.constant 1 : index
    %c2_38 = arith.constant 2 : index
    %c0_39 = arith.constant 0 : index
    %28 = vector.load %arg11[%c1_37, %c2_38, %c0_39] : memref<3x3x128xf32, #tpu.memory_space<vmem>>, vector<1x1x128xf32>
    %29 = arith.mulf %28, %27 : vector<1x1x128xf32>
    %30 = vector.extract_strided_slice %11 {offsets = [2, 0, 0], sizes = [1, 1, 128], strides = [1, 1, 1]} : vector<3x3x128xf32> to vector<1x1x128xf32>
    %c2_40 = arith.constant 2 : index
    %c0_41 = arith.constant 0 : index
    %c0_42 = arith.constant 0 : index
    %31 = vector.load %arg11[%c2_40, %c0_41, %c0_42] : memref<3x3x128xf32, #tpu.memory_space<vmem>>, vector<1x1x128xf32>
    %32 = arith.mulf %31, %30 : vector<1x1x128xf32>
    %33 = vector.extract_strided_slice %11 {offsets = [2, 1, 0], sizes = [1, 1, 128], strides = [1, 1, 1]} : vector<3x3x128xf32> to vector<1x1x128xf32>
    %c2_43 = arith.constant 2 : index
    %c1_44 = arith.constant 1 : index
    %c0_45 = arith.constant 0 : index
    %34 = vector.load %arg11[%c2_43, %c1_44, %c0_45] : memref<3x3x128xf32, #tpu.memory_space<vmem>>, vector<1x1x128xf32>
    %35 = arith.mulf %34, %33 : vector<1x1x128xf32>
    %36 = vector.extract_strided_slice %11 {offsets = [2, 2, 0], sizes = [1, 1, 128], strides = [1, 1, 1]} : vector<3x3x128xf32> to vector<1x1x128xf32>
    %c2_46 = arith.constant 2 : index
    %c2_47 = arith.constant 2 : index
    %c0_48 = arith.constant 0 : index
    %37 = vector.load %arg11[%c2_46, %c2_47, %c0_48] : memref<3x3x128xf32, #tpu.memory_space<vmem>>, vector<1x1x128xf32>
    %38 = arith.mulf %37, %36 : vector<1x1x128xf32>
    %39 = arith.addf %14, %17 : vector<1x1x128xf32>
    %40 = arith.addf %20, %23 : vector<1x1x128xf32>
    %41 = arith.addf %26, %29 : vector<1x1x128xf32>
    %42 = arith.addf %32, %35 : vector<1x1x128xf32>
    %43 = arith.addf %39, %40 : vector<1x1x128xf32>
    %44 = arith.addf %41, %42 : vector<1x1x128xf32>
    %45 = arith.addf %43, %44 : vector<1x1x128xf32>
    %46 = arith.addf %45, %38 : vector<1x1x128xf32>
    %47 = vector.shape_cast %46 : vector<1x1x128xf32> to vector<1x128xf32>
    %c0_49 = arith.constant 0 : index
    %c0_50 = arith.constant 0 : index
    %48 = vector.load %arg3[%c0_49, %c0_50] : memref<128x128xf32, #tpu.memory_space<vmem>>, vector<128x128xf32>
    %cst_51 = arith.constant dense<0.000000e+00> : vector<1x128xf32>
    %49 = tpu.matmul %47, %48, %cst_51 {dimension_numbers = #tpu.dot_dimension_numbers<[1], [0], [0], [1], [0, 0, 1, 1], [], []>} : vector<1x128xf32>, vector<128x128xf32>, vector<1x128xf32> -> vector<1x128xf32>
    %c0_52 = arith.constant 0 : index
    %c0_53 = arith.constant 0 : index
    %50 = vector.load %arg4[%c0_52, %c0_53] : memref<1x128xf32, #tpu.memory_space<vmem>>, vector<1x128xf32>
    %51 = arith.addf %49, %50 : vector<1x128xf32>
    %cst_54 = arith.constant 0.000000e+00 : f32
    %52 = vector.broadcast %cst_54 : f32 to vector<1x128xf32>
    %53 = arith.maximumf %51, %52 : vector<1x128xf32>
    %54 = vector.shape_cast %53 : vector<1x128xf32> to vector<1x1x128xf32>
    %c1_55 = arith.constant 1 : index
    %c1_56 = arith.constant 1 : index
    %c0_57 = arith.constant 0 : index
    %55 = vector.load %arg11[%c1_55, %c1_56, %c0_57] : memref<3x3x128xf32, #tpu.memory_space<vmem>>, vector<1x1x128xf32>
    tpu.vector_store %arg11[%c1_55, %c1_56, %c0_57], %54 {strides = array<i32>} : memref<3x3x128xf32, #tpu.memory_space<vmem>>, vector<1x1x128xf32>,
    %c0_58 = arith.constant 0 : index
    %c0_59 = arith.constant 0 : index
    %c0_60 = arith.constant 0 : index
    %56 = vector.load %arg5[%c0_58, %c0_59, %c0_60] : memref<3x3x128xf32, #tpu.memory_space<vmem>>, vector<3x3x128xf32>
    %57 = vector.extract_strided_slice %56 {offsets = [0, 0, 0], sizes = [1, 1, 128], strides = [1, 1, 1]} : vector<3x3x128xf32> to vector<1x1x128xf32>
    %c0_61 = arith.constant 0 : index
    %c0_62 = arith.constant 0 : index
    %c0_63 = arith.constant 0 : index
    %58 = vector.load %arg11[%c0_61, %c0_62, %c0_63] : memref<3x3x128xf32, #tpu.memory_space<vmem>>, vector<1x1x128xf32>
    %59 = arith.mulf %58, %57 : vector<1x1x128xf32>
    %60 = vector.extract_strided_slice %56 {offsets = [0, 1, 0], sizes = [1, 1, 128], strides = [1, 1, 1]} : vector<3x3x128xf32> to vector<1x1x128xf32>
    %c0_64 = arith.constant 0 : index
    %c1_65 = arith.constant 1 : index
    %c0_66 = arith.constant 0 : index
    %61 = vector.load %arg11[%c0_64, %c1_65, %c0_66] : memref<3x3x128xf32, #tpu.memory_space<vmem>>, vector<1x1x128xf32>
    %62 = arith.mulf %61, %60 : vector<1x1x128xf32>
    %63 = vector.extract_strided_slice %56 {offsets = [0, 2, 0], sizes = [1, 1, 128], strides = [1, 1, 1]} : vector<3x3x128xf32> to vector<1x1x128xf32>
    %c0_67 = arith.constant 0 : index
    %c2_68 = arith.constant 2 : index
    %c0_69 = arith.constant 0 : index
    %64 = vector.load %arg11[%c0_67, %c2_68, %c0_69] : memref<3x3x128xf32, #tpu.memory_space<vmem>>, vector<1x1x128xf32>
    %65 = arith.mulf %64, %63 : vector<1x1x128xf32>
    %66 = vector.extract_strided_slice %56 {offsets = [1, 0, 0], sizes = [1, 1, 128], strides = [1, 1, 1]} : vector<3x3x128xf32> to vector<1x1x128xf32>
    %c1_70 = arith.constant 1 : index
    %c0_71 = arith.constant 0 : index
    %c0_72 = arith.constant 0 : index
    %67 = vector.load %arg11[%c1_70, %c0_71, %c0_72] : memref<3x3x128xf32, #tpu.memory_space<vmem>>, vector<1x1x128xf32>
    %68 = arith.mulf %67, %66 : vector<1x1x128xf32>
    %69 = vector.extract_strided_slice %56 {offsets = [1, 1, 0], sizes = [1, 1, 128], strides = [1, 1, 1]} : vector<3x3x128xf32> to vector<1x1x128xf32>
    %c1_73 = arith.constant 1 : index
    %c1_74 = arith.constant 1 : index
    %c0_75 = arith.constant 0 : index
    %70 = vector.load %arg11[%c1_73, %c1_74, %c0_75] : memref<3x3x128xf32, #tpu.memory_space<vmem>>, vector<1x1x128xf32>
    %71 = arith.mulf %70, %69 : vector<1x1x128xf32>
    %72 = vector.extract_strided_slice %56 {offsets = [1, 2, 0], sizes = [1, 1, 128], strides = [1, 1, 1]} : vector<3x3x128xf32> to vector<1x1x128xf32>
    %c1_76 = arith.constant 1 : index
    %c2_77 = arith.constant 2 : index
    %c0_78 = arith.constant 0 : index
    %73 = vector.load %arg11[%c1_76, %c2_77, %c0_78] : memref<3x3x128xf32, #tpu.memory_space<vmem>>, vector<1x1x128xf32>
    %74 = arith.mulf %73, %72 : vector<1x1x128xf32>
    %75 = vector.extract_strided_slice %56 {offsets = [2, 0, 0], sizes = [1, 1, 128], strides = [1, 1, 1]} : vector<3x3x128xf32> to vector<1x1x128xf32>
    %c2_79 = arith.constant 2 : index
    %c0_80 = arith.constant 0 : index
    %c0_81 = arith.constant 0 : index
    %76 = vector.load %arg11[%c2_79, %c0_80, %c0_81] : memref<3x3x128xf32, #tpu.memory_space<vmem>>, vector<1x1x128xf32>
    %77 = arith.mulf %76, %75 : vector<1x1x128xf32>
    %78 = vector.extract_strided_slice %56 {offsets = [2, 1, 0], sizes = [1, 1, 128], strides = [1, 1, 1]} : vector<3x3x128xf32> to vector<1x1x128xf32>
    %c2_82 = arith.constant 2 : index
    %c1_83 = arith.constant 1 : index
    %c0_84 = arith.constant 0 : index
    %79 = vector.load %arg11[%c2_82, %c1_83, %c0_84] : memref<3x3x128xf32, #tpu.memory_space<vmem>>, vector<1x1x128xf32>
    %80 = arith.mulf %79, %78 : vector<1x1x128xf32>
    %81 = vector.extract_strided_slice %56 {offsets = [2, 2, 0], sizes = [1, 1, 128], strides = [1, 1, 1]} : vector<3x3x128xf32> to vector<1x1x128xf32>
    %c2_85 = arith.constant 2 : index
    %c2_86 = arith.constant 2 : index
    %c0_87 = arith.constant 0 : index
    %82 = vector.load %arg11[%c2_85, %c2_86, %c0_87] : memref<3x3x128xf32, #tpu.memory_space<vmem>>, vector<1x1x128xf32>
    %83 = arith.mulf %82, %81 : vector<1x1x128xf32>
    %84 = arith.addf %59, %62 : vector<1x1x128xf32>
    %85 = arith.addf %65, %68 : vector<1x1x128xf32>
    %86 = arith.addf %71, %74 : vector<1x1x128xf32>
    %87 = arith.addf %77, %80 : vector<1x1x128xf32>
    %88 = arith.addf %84, %85 : vector<1x1x128xf32>
    %89 = arith.addf %86, %87 : vector<1x1x128xf32>
    %90 = arith.addf %88, %89 : vector<1x1x128xf32>
    %91 = arith.addf %90, %83 : vector<1x1x128xf32>
    %92 = vector.shape_cast %91 : vector<1x1x128xf32> to vector<1x128xf32>
    %c0_88 = arith.constant 0 : index
    %c0_89 = arith.constant 0 : index
    %93 = vector.load %arg6[%c0_88, %c0_89] : memref<128x128xf32, #tpu.memory_space<vmem>>, vector<128x128xf32>
    %cst_90 = arith.constant dense<0.000000e+00> : vector<1x128xf32>
    %94 = tpu.matmul %92, %93, %cst_90 {dimension_numbers = #tpu.dot_dimension_numbers<[1], [0], [0], [1], [0, 0, 1, 1], [], []>} : vector<1x128xf32>, vector<128x128xf32>, vector<1x128xf32> -> vector<1x128xf32>
    %c0_91 = arith.constant 0 : index
    %c0_92 = arith.constant 0 : index
    %95 = vector.load %arg7[%c0_91, %c0_92] : memref<1x128xf32, #tpu.memory_space<vmem>>, vector<1x128xf32>
    %96 = arith.addf %94, %95 : vector<1x128xf32>
    %97 = vector.shape_cast %1 : vector<1x1x128xf32> to vector<1x128xf32>
    %c0_93 = arith.constant 0 : index
    %c0_94 = arith.constant 0 : index
    %98 = vector.load %arg8[%c0_93, %c0_94] : memref<128x128xf32, #tpu.memory_space<vmem>>, vector<128x128xf32>
    %cst_95 = arith.constant dense<0.000000e+00> : vector<1x128xf32>
    %99 = tpu.matmul %97, %98, %cst_95 {dimension_numbers = #tpu.dot_dimension_numbers<[1], [0], [0], [1], [0, 0, 1, 1], [], []>} : vector<1x128xf32>, vector<128x128xf32>, vector<1x128xf32> -> vector<1x128xf32>
    %c0_96 = arith.constant 0 : index
    %c0_97 = arith.constant 0 : index
    %100 = vector.load %arg9[%c0_96, %c0_97] : memref<1x128xf32, #tpu.memory_space<vmem>>, vector<1x128xf32>
    %101 = arith.addf %99, %100 : vector<1x128xf32>
    %102 = arith.addf %96, %101 : vector<1x128xf32>
    %cst_98 = arith.constant 0.000000e+00 : f32
    %103 = vector.broadcast %cst_98 : f32 to vector<1x128xf32>
    %104 = arith.maximumf %102, %103 : vector<1x128xf32>
    %105 = vector.shape_cast %104 : vector<1x128xf32> to vector<1x1x128xf32>
    %c0_99 = arith.constant 0 : index
    %c0_100 = arith.constant 0 : index
    %c0_101 = arith.constant 0 : index
    %106 = vector.load %arg10[%c0_99, %c0_100, %c0_101] : memref<1x1x128xf32, #tpu.memory_space<vmem>>, vector<1x1x128xf32>
    tpu.vector_store %arg10[%c0_99, %c0_100, %c0_101], %105 {strides = array<i32>} : memref<1x1x128xf32, #tpu.memory_space<vmem>>, vector<1x1x128xf32>,
    return
  }
  func.func @transform_0(%arg0: i32) -> (i32, i32, i32, i32) {
    %c0_i32 = arith.constant 0 : i32
    %c0_i32_0 = arith.constant 0 : i32
    %c0_i32_1 = arith.constant 0 : i32
    %c0_i32_2 = arith.constant 0 : i32
    return %arg0, %c0_i32, %c0_i32_0, %c0_i32_1 : i32, i32, i32, i32
  }
  func.func @transform_1(%arg0: i32) -> (i32, i32, i32) {
    %c0_i32 = arith.constant 0 : i32
    %c0_i32_0 = arith.constant 0 : i32
    %c0_i32_1 = arith.constant 0 : i32
    %c0_i32_2 = arith.constant 0 : i32
    return %c0_i32, %c0_i32_0, %c0_i32_1 : i32, i32, i32
  }
  func.func @transform_2(%arg0: i32) -> (i32, i32) {
    %c0_i32 = arith.constant 0 : i32
    %c0_i32_0 = arith.constant 0 : i32
    %c0_i32_1 = arith.constant 0 : i32
    return %c0_i32, %c0_i32_0 : i32, i32
  }
  func.func @transform_3(%arg0: i32) -> (i32, i32) {
    %c0_i32 = arith.constant 0 : i32
    %c0_i32_0 = arith.constant 0 : i32
    %c0_i32_1 = arith.constant 0 : i32
    return %c0_i32, %c0_i32_0 : i32, i32
  }
  func.func @transform_4(%arg0: i32) -> (i32, i32, i32) {
    %c0_i32 = arith.constant 0 : i32
    %c0_i32_0 = arith.constant 0 : i32
    %c0_i32_1 = arith.constant 0 : i32
    %c0_i32_2 = arith.constant 0 : i32
    return %c0_i32, %c0_i32_0, %c0_i32_1 : i32, i32, i32
  }
  func.func @transform_5(%arg0: i32) -> (i32, i32) {
    %c0_i32 = arith.constant 0 : i32
    %c0_i32_0 = arith.constant 0 : i32
    %c0_i32_1 = arith.constant 0 : i32
    return %c0_i32, %c0_i32_0 : i32, i32
  }
  func.func @transform_6(%arg0: i32) -> (i32, i32) {
    %c0_i32 = arith.constant 0 : i32
    %c0_i32_0 = arith.constant 0 : i32
    %c0_i32_1 = arith.constant 0 : i32
    return %c0_i32, %c0_i32_0 : i32, i32
  }
  func.func @transform_7(%arg0: i32) -> (i32, i32) {
    %c0_i32 = arith.constant 0 : i32
    %c0_i32_0 = arith.constant 0 : i32
    %c0_i32_1 = arith.constant 0 : i32
    return %c0_i32, %c0_i32_0 : i32, i32
  }
  func.func @transform_8(%arg0: i32) -> (i32, i32) {
    %c0_i32 = arith.constant 0 : i32
    %c0_i32_0 = arith.constant 0 : i32
    %c0_i32_1 = arith.constant 0 : i32
    return %c0_i32, %c0_i32_0 : i32, i32
  }
  func.func @transform_9(%arg0: i32) -> (i32, i32, i32) {
    %c0_i32 = arith.constant 0 : i32
    %c0_i32_0 = arith.constant 0 : i32
    %c0_i32_1 = arith.constant 0 : i32
    return %arg0, %c0_i32, %c0_i32_0 : i32, i32, i32
  }
}

module attributes {stable_mosaic.version = 11 : i64} {
  func.func @kernel(%arg0: i32, %arg1: memref<1x1x1x128xf32, #tpu.memory_space<vmem>>, %arg2: memref<3x3x128xf32, #tpu.memory_space<vmem>>, %arg3: memref<128x128xf32, #tpu.memory_space<vmem>>, %arg4: memref<1x128xf32, #tpu.memory_space<vmem>>, %arg5: memref<3x3x128xf32, #tpu.memory_space<vmem>>, %arg6: memref<128x128xf32, #tpu.memory_space<vmem>>, %arg7: memref<1x128xf32, #tpu.memory_space<vmem>>, %arg8: memref<1x1x128xf32, #tpu.memory_space<vmem>>, %arg9: memref<3x3x128xf32, #tpu.memory_space<vmem>>) attributes {dimension_semantics = [#tpu.dimension_semantics<parallel>], iteration_bounds = array<i64: 2>, scalar_prefetch = 0 : i64, scratch_operands = 1 : i64, tpu.core_type = #tpu.core_type<tc>, window_params = [{transform_indices = @transform_0, window_bounds = array<i64: 1, 1, 1, 128>}, {pipeline_mode = #tpu.pipeline_mode<synchronous>, transform_indices = @transform_1, window_bounds = array<i64: 3, 3, 128>}, {pipeline_mode = #tpu.pipeline_mode<synchronous>, transform_indices = @transform_2, window_bounds = array<i64: 128, 128>}, {pipeline_mode = #tpu.pipeline_mode<synchronous>, transform_indices = @transform_3, window_bounds = array<i64: 1, 128>}, {pipeline_mode = #tpu.pipeline_mode<synchronous>, transform_indices = @transform_4, window_bounds = array<i64: 3, 3, 128>}, {pipeline_mode = #tpu.pipeline_mode<synchronous>, transform_indices = @transform_5, window_bounds = array<i64: 128, 128>}, {pipeline_mode = #tpu.pipeline_mode<synchronous>, transform_indices = @transform_6, window_bounds = array<i64: 1, 128>}, {transform_indices = @transform_7, window_bounds = array<i64: 1, 1, 128>}]} {
    %c0 = arith.constant 0 : index
    %c0_0 = arith.constant 0 : index
    %c0_1 = arith.constant 0 : index
    %c0_2 = arith.constant 0 : index
    %0 = vector.load %arg1[%c0, %c0_0, %c0_1, %c0_2] : memref<1x1x1x128xf32, #tpu.memory_space<vmem>>, vector<1x1x1x128xf32>
    %1 = vector.shape_cast %0 : vector<1x1x1x128xf32> to vector<1x1x128xf32>
    %cst = arith.constant 0.000000e+00 : f32
    %2 = vector.broadcast %cst : f32 to vector<1x3x128xf32>
    %c0_3 = arith.constant 0 : index
    %c0_4 = arith.constant 0 : index
    %c0_5 = arith.constant 0 : index
    %3 = vector.load %arg9[%c0_3, %c0_4, %c0_5] : memref<3x3x128xf32, #tpu.memory_space<vmem>>, vector<1x3x128xf32>
    tpu.vector_store %arg9[%c0_3, %c0_4, %c0_5], %2 {strides = array<i32>} : memref<3x3x128xf32, #tpu.memory_space<vmem>>, vector<1x3x128xf32>,
    %cst_6 = arith.constant 0.000000e+00 : f32
    %4 = vector.broadcast %cst_6 : f32 to vector<1x3x128xf32>
    %c2 = arith.constant 2 : index
    %c0_7 = arith.constant 0 : index
    %c0_8 = arith.constant 0 : index
    %5 = vector.load %arg9[%c2, %c0_7, %c0_8] : memref<3x3x128xf32, #tpu.memory_space<vmem>>, vector<1x3x128xf32>
    tpu.vector_store %arg9[%c2, %c0_7, %c0_8], %4 {strides = array<i32>} : memref<3x3x128xf32, #tpu.memory_space<vmem>>, vector<1x3x128xf32>,
    %cst_9 = arith.constant 0.000000e+00 : f32
    %6 = vector.broadcast %cst_9 : f32 to vector<3x1x128xf32>
    %c0_10 = arith.constant 0 : index
    %c0_11 = arith.constant 0 : index
    %c0_12 = arith.constant 0 : index
    %7 = vector.load %arg9[%c0_10, %c0_11, %c0_12] : memref<3x3x128xf32, #tpu.memory_space<vmem>>, vector<3x1x128xf32>
    tpu.vector_store %arg9[%c0_10, %c0_11, %c0_12], %6 {strides = array<i32>} : memref<3x3x128xf32, #tpu.memory_space<vmem>>, vector<3x1x128xf32>,
    %cst_13 = arith.constant 0.000000e+00 : f32
    %8 = vector.broadcast %cst_13 : f32 to vector<3x1x128xf32>
    %c0_14 = arith.constant 0 : index
    %c2_15 = arith.constant 2 : index
    %c0_16 = arith.constant 0 : index
    %9 = vector.load %arg9[%c0_14, %c2_15, %c0_16] : memref<3x3x128xf32, #tpu.memory_space<vmem>>, vector<3x1x128xf32>
    tpu.vector_store %arg9[%c0_14, %c2_15, %c0_16], %8 {strides = array<i32>} : memref<3x3x128xf32, #tpu.memory_space<vmem>>, vector<3x1x128xf32>,
    %c1 = arith.constant 1 : index
    %c1_17 = arith.constant 1 : index
    %c0_18 = arith.constant 0 : index
    %10 = vector.load %arg9[%c1, %c1_17, %c0_18] : memref<3x3x128xf32, #tpu.memory_space<vmem>>, vector<1x1x128xf32>
    tpu.vector_store %arg9[%c1, %c1_17, %c0_18], %1 {strides = array<i32>} : memref<3x3x128xf32, #tpu.memory_space<vmem>>, vector<1x1x128xf32>,
    %c0_19 = arith.constant 0 : index
    %c0_20 = arith.constant 0 : index
    %c0_21 = arith.constant 0 : index
    %11 = vector.load %arg2[%c0_19, %c0_20, %c0_21] : memref<3x3x128xf32, #tpu.memory_space<vmem>>, vector<3x3x128xf32>
    %12 = vector.extract_strided_slice %11 {offsets = [0, 0, 0], sizes = [1, 1, 128], strides = [1, 1, 1]} : vector<3x3x128xf32> to vector<1x1x128xf32>
    %c0_22 = arith.constant 0 : index
    %c0_23 = arith.constant 0 : index
    %c0_24 = arith.constant 0 : index
    %13 = vector.load %arg9[%c0_22, %c0_23, %c0_24] : memref<3x3x128xf32, #tpu.memory_space<vmem>>, vector<1x1x128xf32>
    %14 = arith.mulf %13, %12 : vector<1x1x128xf32>
    %15 = vector.extract_strided_slice %11 {offsets = [0, 1, 0], sizes = [1, 1, 128], strides = [1, 1, 1]} : vector<3x3x128xf32> to vector<1x1x128xf32>
    %c0_25 = arith.constant 0 : index
    %c1_26 = arith.constant 1 : index
    %c0_27 = arith.constant 0 : index
    %16 = vector.load %arg9[%c0_25, %c1_26, %c0_27] : memref<3x3x128xf32, #tpu.memory_space<vmem>>, vector<1x1x128xf32>
    %17 = arith.mulf %16, %15 : vector<1x1x128xf32>
    %18 = vector.extract_strided_slice %11 {offsets = [0, 2, 0], sizes = [1, 1, 128], strides = [1, 1, 1]} : vector<3x3x128xf32> to vector<1x1x128xf32>
    %c0_28 = arith.constant 0 : index
    %c2_29 = arith.constant 2 : index
    %c0_30 = arith.constant 0 : index
    %19 = vector.load %arg9[%c0_28, %c2_29, %c0_30] : memref<3x3x128xf32, #tpu.memory_space<vmem>>, vector<1x1x128xf32>
    %20 = arith.mulf %19, %18 : vector<1x1x128xf32>
    %21 = vector.extract_strided_slice %11 {offsets = [1, 0, 0], sizes = [1, 1, 128], strides = [1, 1, 1]} : vector<3x3x128xf32> to vector<1x1x128xf32>
    %c1_31 = arith.constant 1 : index
    %c0_32 = arith.constant 0 : index
    %c0_33 = arith.constant 0 : index
    %22 = vector.load %arg9[%c1_31, %c0_32, %c0_33] : memref<3x3x128xf32, #tpu.memory_space<vmem>>, vector<1x1x128xf32>
    %23 = arith.mulf %22, %21 : vector<1x1x128xf32>
    %24 = vector.extract_strided_slice %11 {offsets = [1, 1, 0], sizes = [1, 1, 128], strides = [1, 1, 1]} : vector<3x3x128xf32> to vector<1x1x128xf32>
    %c1_34 = arith.constant 1 : index
    %c1_35 = arith.constant 1 : index
    %c0_36 = arith.constant 0 : index
    %25 = vector.load %arg9[%c1_34, %c1_35, %c0_36] : memref<3x3x128xf32, #tpu.memory_space<vmem>>, vector<1x1x128xf32>
    %26 = arith.mulf %25, %24 : vector<1x1x128xf32>
    %27 = vector.extract_strided_slice %11 {offsets = [1, 2, 0], sizes = [1, 1, 128], strides = [1, 1, 1]} : vector<3x3x128xf32> to vector<1x1x128xf32>
    %c1_37 = arith.constant 1 : index
    %c2_38 = arith.constant 2 : index
    %c0_39 = arith.constant 0 : index
    %28 = vector.load %arg9[%c1_37, %c2_38, %c0_39] : memref<3x3x128xf32, #tpu.memory_space<vmem>>, vector<1x1x128xf32>
    %29 = arith.mulf %28, %27 : vector<1x1x128xf32>
    %30 = vector.extract_strided_slice %11 {offsets = [2, 0, 0], sizes = [1, 1, 128], strides = [1, 1, 1]} : vector<3x3x128xf32> to vector<1x1x128xf32>
    %c2_40 = arith.constant 2 : index
    %c0_41 = arith.constant 0 : index
    %c0_42 = arith.constant 0 : index
    %31 = vector.load %arg9[%c2_40, %c0_41, %c0_42] : memref<3x3x128xf32, #tpu.memory_space<vmem>>, vector<1x1x128xf32>
    %32 = arith.mulf %31, %30 : vector<1x1x128xf32>
    %33 = vector.extract_strided_slice %11 {offsets = [2, 1, 0], sizes = [1, 1, 128], strides = [1, 1, 1]} : vector<3x3x128xf32> to vector<1x1x128xf32>
    %c2_43 = arith.constant 2 : index
    %c1_44 = arith.constant 1 : index
    %c0_45 = arith.constant 0 : index
    %34 = vector.load %arg9[%c2_43, %c1_44, %c0_45] : memref<3x3x128xf32, #tpu.memory_space<vmem>>, vector<1x1x128xf32>
    %35 = arith.mulf %34, %33 : vector<1x1x128xf32>
    %36 = vector.extract_strided_slice %11 {offsets = [2, 2, 0], sizes = [1, 1, 128], strides = [1, 1, 1]} : vector<3x3x128xf32> to vector<1x1x128xf32>
    %c2_46 = arith.constant 2 : index
    %c2_47 = arith.constant 2 : index
    %c0_48 = arith.constant 0 : index
    %37 = vector.load %arg9[%c2_46, %c2_47, %c0_48] : memref<3x3x128xf32, #tpu.memory_space<vmem>>, vector<1x1x128xf32>
    %38 = arith.mulf %37, %36 : vector<1x1x128xf32>
    %39 = arith.addf %14, %17 : vector<1x1x128xf32>
    %40 = arith.addf %20, %23 : vector<1x1x128xf32>
    %41 = arith.addf %26, %29 : vector<1x1x128xf32>
    %42 = arith.addf %32, %35 : vector<1x1x128xf32>
    %43 = arith.addf %39, %40 : vector<1x1x128xf32>
    %44 = arith.addf %41, %42 : vector<1x1x128xf32>
    %45 = arith.addf %43, %44 : vector<1x1x128xf32>
    %46 = arith.addf %45, %38 : vector<1x1x128xf32>
    %47 = vector.shape_cast %46 : vector<1x1x128xf32> to vector<1x128xf32>
    %c0_49 = arith.constant 0 : index
    %c0_50 = arith.constant 0 : index
    %48 = vector.load %arg3[%c0_49, %c0_50] : memref<128x128xf32, #tpu.memory_space<vmem>>, vector<128x128xf32>
    %cst_51 = arith.constant dense<0.000000e+00> : vector<1x128xf32>
    %49 = tpu.matmul %47, %48, %cst_51 {dimension_numbers = #tpu.dot_dimension_numbers<[1], [0], [0], [1], [0, 0, 1, 1], [], []>} : vector<1x128xf32>, vector<128x128xf32>, vector<1x128xf32> -> vector<1x128xf32>
    %c0_52 = arith.constant 0 : index
    %c0_53 = arith.constant 0 : index
    %50 = vector.load %arg4[%c0_52, %c0_53] : memref<1x128xf32, #tpu.memory_space<vmem>>, vector<1x128xf32>
    %51 = arith.addf %49, %50 : vector<1x128xf32>
    %cst_54 = arith.constant 0.000000e+00 : f32
    %52 = vector.broadcast %cst_54 : f32 to vector<1x128xf32>
    %53 = arith.maximumf %51, %52 : vector<1x128xf32>
    %54 = vector.shape_cast %53 : vector<1x128xf32> to vector<1x1x128xf32>
    %c1_55 = arith.constant 1 : index
    %c1_56 = arith.constant 1 : index
    %c0_57 = arith.constant 0 : index
    %55 = vector.load %arg9[%c1_55, %c1_56, %c0_57] : memref<3x3x128xf32, #tpu.memory_space<vmem>>, vector<1x1x128xf32>
    tpu.vector_store %arg9[%c1_55, %c1_56, %c0_57], %54 {strides = array<i32>} : memref<3x3x128xf32, #tpu.memory_space<vmem>>, vector<1x1x128xf32>,
    %c0_58 = arith.constant 0 : index
    %c0_59 = arith.constant 0 : index
    %c0_60 = arith.constant 0 : index
    %56 = vector.load %arg5[%c0_58, %c0_59, %c0_60] : memref<3x3x128xf32, #tpu.memory_space<vmem>>, vector<3x3x128xf32>
    %57 = vector.extract_strided_slice %56 {offsets = [0, 0, 0], sizes = [1, 1, 128], strides = [1, 1, 1]} : vector<3x3x128xf32> to vector<1x1x128xf32>
    %c0_61 = arith.constant 0 : index
    %c0_62 = arith.constant 0 : index
    %c0_63 = arith.constant 0 : index
    %58 = vector.load %arg9[%c0_61, %c0_62, %c0_63] : memref<3x3x128xf32, #tpu.memory_space<vmem>>, vector<1x1x128xf32>
    %59 = arith.mulf %58, %57 : vector<1x1x128xf32>
    %60 = vector.extract_strided_slice %56 {offsets = [0, 1, 0], sizes = [1, 1, 128], strides = [1, 1, 1]} : vector<3x3x128xf32> to vector<1x1x128xf32>
    %c0_64 = arith.constant 0 : index
    %c1_65 = arith.constant 1 : index
    %c0_66 = arith.constant 0 : index
    %61 = vector.load %arg9[%c0_64, %c1_65, %c0_66] : memref<3x3x128xf32, #tpu.memory_space<vmem>>, vector<1x1x128xf32>
    %62 = arith.mulf %61, %60 : vector<1x1x128xf32>
    %63 = vector.extract_strided_slice %56 {offsets = [0, 2, 0], sizes = [1, 1, 128], strides = [1, 1, 1]} : vector<3x3x128xf32> to vector<1x1x128xf32>
    %c0_67 = arith.constant 0 : index
    %c2_68 = arith.constant 2 : index
    %c0_69 = arith.constant 0 : index
    %64 = vector.load %arg9[%c0_67, %c2_68, %c0_69] : memref<3x3x128xf32, #tpu.memory_space<vmem>>, vector<1x1x128xf32>
    %65 = arith.mulf %64, %63 : vector<1x1x128xf32>
    %66 = vector.extract_strided_slice %56 {offsets = [1, 0, 0], sizes = [1, 1, 128], strides = [1, 1, 1]} : vector<3x3x128xf32> to vector<1x1x128xf32>
    %c1_70 = arith.constant 1 : index
    %c0_71 = arith.constant 0 : index
    %c0_72 = arith.constant 0 : index
    %67 = vector.load %arg9[%c1_70, %c0_71, %c0_72] : memref<3x3x128xf32, #tpu.memory_space<vmem>>, vector<1x1x128xf32>
    %68 = arith.mulf %67, %66 : vector<1x1x128xf32>
    %69 = vector.extract_strided_slice %56 {offsets = [1, 1, 0], sizes = [1, 1, 128], strides = [1, 1, 1]} : vector<3x3x128xf32> to vector<1x1x128xf32>
    %c1_73 = arith.constant 1 : index
    %c1_74 = arith.constant 1 : index
    %c0_75 = arith.constant 0 : index
    %70 = vector.load %arg9[%c1_73, %c1_74, %c0_75] : memref<3x3x128xf32, #tpu.memory_space<vmem>>, vector<1x1x128xf32>
    %71 = arith.mulf %70, %69 : vector<1x1x128xf32>
    %72 = vector.extract_strided_slice %56 {offsets = [1, 2, 0], sizes = [1, 1, 128], strides = [1, 1, 1]} : vector<3x3x128xf32> to vector<1x1x128xf32>
    %c1_76 = arith.constant 1 : index
    %c2_77 = arith.constant 2 : index
    %c0_78 = arith.constant 0 : index
    %73 = vector.load %arg9[%c1_76, %c2_77, %c0_78] : memref<3x3x128xf32, #tpu.memory_space<vmem>>, vector<1x1x128xf32>
    %74 = arith.mulf %73, %72 : vector<1x1x128xf32>
    %75 = vector.extract_strided_slice %56 {offsets = [2, 0, 0], sizes = [1, 1, 128], strides = [1, 1, 1]} : vector<3x3x128xf32> to vector<1x1x128xf32>
    %c2_79 = arith.constant 2 : index
    %c0_80 = arith.constant 0 : index
    %c0_81 = arith.constant 0 : index
    %76 = vector.load %arg9[%c2_79, %c0_80, %c0_81] : memref<3x3x128xf32, #tpu.memory_space<vmem>>, vector<1x1x128xf32>
    %77 = arith.mulf %76, %75 : vector<1x1x128xf32>
    %78 = vector.extract_strided_slice %56 {offsets = [2, 1, 0], sizes = [1, 1, 128], strides = [1, 1, 1]} : vector<3x3x128xf32> to vector<1x1x128xf32>
    %c2_82 = arith.constant 2 : index
    %c1_83 = arith.constant 1 : index
    %c0_84 = arith.constant 0 : index
    %79 = vector.load %arg9[%c2_82, %c1_83, %c0_84] : memref<3x3x128xf32, #tpu.memory_space<vmem>>, vector<1x1x128xf32>
    %80 = arith.mulf %79, %78 : vector<1x1x128xf32>
    %81 = vector.extract_strided_slice %56 {offsets = [2, 2, 0], sizes = [1, 1, 128], strides = [1, 1, 1]} : vector<3x3x128xf32> to vector<1x1x128xf32>
    %c2_85 = arith.constant 2 : index
    %c2_86 = arith.constant 2 : index
    %c0_87 = arith.constant 0 : index
    %82 = vector.load %arg9[%c2_85, %c2_86, %c0_87] : memref<3x3x128xf32, #tpu.memory_space<vmem>>, vector<1x1x128xf32>
    %83 = arith.mulf %82, %81 : vector<1x1x128xf32>
    %84 = arith.addf %59, %62 : vector<1x1x128xf32>
    %85 = arith.addf %65, %68 : vector<1x1x128xf32>
    %86 = arith.addf %71, %74 : vector<1x1x128xf32>
    %87 = arith.addf %77, %80 : vector<1x1x128xf32>
    %88 = arith.addf %84, %85 : vector<1x1x128xf32>
    %89 = arith.addf %86, %87 : vector<1x1x128xf32>
    %90 = arith.addf %88, %89 : vector<1x1x128xf32>
    %91 = arith.addf %90, %83 : vector<1x1x128xf32>
    %92 = vector.shape_cast %91 : vector<1x1x128xf32> to vector<1x128xf32>
    %c0_88 = arith.constant 0 : index
    %c0_89 = arith.constant 0 : index
    %93 = vector.load %arg6[%c0_88, %c0_89] : memref<128x128xf32, #tpu.memory_space<vmem>>, vector<128x128xf32>
    %cst_90 = arith.constant dense<0.000000e+00> : vector<1x128xf32>
    %94 = tpu.matmul %92, %93, %cst_90 {dimension_numbers = #tpu.dot_dimension_numbers<[1], [0], [0], [1], [0, 0, 1, 1], [], []>} : vector<1x128xf32>, vector<128x128xf32>, vector<1x128xf32> -> vector<1x128xf32>
    %c0_91 = arith.constant 0 : index
    %c0_92 = arith.constant 0 : index
    %95 = vector.load %arg7[%c0_91, %c0_92] : memref<1x128xf32, #tpu.memory_space<vmem>>, vector<1x128xf32>
    %96 = arith.addf %94, %95 : vector<1x128xf32>
    %97 = vector.shape_cast %1 : vector<1x1x128xf32> to vector<1x128xf32>
    %98 = arith.addf %96, %97 : vector<1x128xf32>
    %cst_93 = arith.constant 0.000000e+00 : f32
    %99 = vector.broadcast %cst_93 : f32 to vector<1x128xf32>
    %100 = arith.maximumf %98, %99 : vector<1x128xf32>
    %101 = vector.shape_cast %100 : vector<1x128xf32> to vector<1x1x128xf32>
    %c0_94 = arith.constant 0 : index
    %c0_95 = arith.constant 0 : index
    %c0_96 = arith.constant 0 : index
    %102 = vector.load %arg8[%c0_94, %c0_95, %c0_96] : memref<1x1x128xf32, #tpu.memory_space<vmem>>, vector<1x1x128xf32>
    tpu.vector_store %arg8[%c0_94, %c0_95, %c0_96], %101 {strides = array<i32>} : memref<1x1x128xf32, #tpu.memory_space<vmem>>, vector<1x1x128xf32>,
    return
  }
  func.func @transform_0(%arg0: i32) -> (i32, i32, i32, i32) {
    %c0_i32 = arith.constant 0 : i32
    %c0_i32_0 = arith.constant 0 : i32
    %c0_i32_1 = arith.constant 0 : i32
    %c0_i32_2 = arith.constant 0 : i32
    return %arg0, %c0_i32, %c0_i32_0, %c0_i32_1 : i32, i32, i32, i32
  }
  func.func @transform_1(%arg0: i32) -> (i32, i32, i32) {
    %c0_i32 = arith.constant 0 : i32
    %c0_i32_0 = arith.constant 0 : i32
    %c0_i32_1 = arith.constant 0 : i32
    %c0_i32_2 = arith.constant 0 : i32
    return %c0_i32, %c0_i32_0, %c0_i32_1 : i32, i32, i32
  }
  func.func @transform_2(%arg0: i32) -> (i32, i32) {
    %c0_i32 = arith.constant 0 : i32
    %c0_i32_0 = arith.constant 0 : i32
    %c0_i32_1 = arith.constant 0 : i32
    return %c0_i32, %c0_i32_0 : i32, i32
  }
  func.func @transform_3(%arg0: i32) -> (i32, i32) {
    %c0_i32 = arith.constant 0 : i32
    %c0_i32_0 = arith.constant 0 : i32
    %c0_i32_1 = arith.constant 0 : i32
    return %c0_i32, %c0_i32_0 : i32, i32
  }
  func.func @transform_4(%arg0: i32) -> (i32, i32, i32) {
    %c0_i32 = arith.constant 0 : i32
    %c0_i32_0 = arith.constant 0 : i32
    %c0_i32_1 = arith.constant 0 : i32
    %c0_i32_2 = arith.constant 0 : i32
    return %c0_i32, %c0_i32_0, %c0_i32_1 : i32, i32, i32
  }
  func.func @transform_5(%arg0: i32) -> (i32, i32) {
    %c0_i32 = arith.constant 0 : i32
    %c0_i32_0 = arith.constant 0 : i32
    %c0_i32_1 = arith.constant 0 : i32
    return %c0_i32, %c0_i32_0 : i32, i32
  }
  func.func @transform_6(%arg0: i32) -> (i32, i32) {
    %c0_i32 = arith.constant 0 : i32
    %c0_i32_0 = arith.constant 0 : i32
    %c0_i32_1 = arith.constant 0 : i32
    return %c0_i32, %c0_i32_0 : i32, i32
  }
  func.func @transform_7(%arg0: i32) -> (i32, i32, i32) {
    %c0_i32 = arith.constant 0 : i32
    %c0_i32_0 = arith.constant 0 : i32
    %c0_i32_1 = arith.constant 0 : i32
    return %arg0, %c0_i32, %c0_i32_0 : i32, i32, i32
  }
}

module attributes {stable_mosaic.version = 11 : i64} {
  func.func @kernel(%arg0: i32, %arg1: memref<1x1x1x128xf32, #tpu.memory_space<vmem>>, %arg2: memref<3x3x128xf32, #tpu.memory_space<vmem>>, %arg3: memref<128x128xf32, #tpu.memory_space<vmem>>, %arg4: memref<1x128xf32, #tpu.memory_space<vmem>>, %arg5: memref<3x3x128xf32, #tpu.memory_space<vmem>>, %arg6: memref<128x128xf32, #tpu.memory_space<vmem>>, %arg7: memref<1x128xf32, #tpu.memory_space<vmem>>, %arg8: memref<1x1x128xf32, #tpu.memory_space<vmem>>, %arg9: memref<3x3x128xf32, #tpu.memory_space<vmem>>) attributes {dimension_semantics = [#tpu.dimension_semantics<parallel>], iteration_bounds = array<i64: 2>, scalar_prefetch = 0 : i64, scratch_operands = 1 : i64, tpu.core_type = #tpu.core_type<tc>, window_params = [{transform_indices = @transform_0, window_bounds = array<i64: 1, 1, 1, 128>}, {pipeline_mode = #tpu.pipeline_mode<synchronous>, transform_indices = @transform_1, window_bounds = array<i64: 3, 3, 128>}, {pipeline_mode = #tpu.pipeline_mode<synchronous>, transform_indices = @transform_2, window_bounds = array<i64: 128, 128>}, {pipeline_mode = #tpu.pipeline_mode<synchronous>, transform_indices = @transform_3, window_bounds = array<i64: 1, 128>}, {pipeline_mode = #tpu.pipeline_mode<synchronous>, transform_indices = @transform_4, window_bounds = array<i64: 3, 3, 128>}, {pipeline_mode = #tpu.pipeline_mode<synchronous>, transform_indices = @transform_5, window_bounds = array<i64: 128, 128>}, {pipeline_mode = #tpu.pipeline_mode<synchronous>, transform_indices = @transform_6, window_bounds = array<i64: 1, 128>}, {transform_indices = @transform_7, window_bounds = array<i64: 1, 1, 128>}]} {
    %c0 = arith.constant 0 : index
    %c0_0 = arith.constant 0 : index
    %c0_1 = arith.constant 0 : index
    %c0_2 = arith.constant 0 : index
    %0 = vector.load %arg1[%c0, %c0_0, %c0_1, %c0_2] : memref<1x1x1x128xf32, #tpu.memory_space<vmem>>, vector<1x1x1x128xf32>
    %1 = vector.shape_cast %0 : vector<1x1x1x128xf32> to vector<1x1x128xf32>
    %cst = arith.constant 0.000000e+00 : f32
    %2 = vector.broadcast %cst : f32 to vector<1x3x128xf32>
    %c0_3 = arith.constant 0 : index
    %c0_4 = arith.constant 0 : index
    %c0_5 = arith.constant 0 : index
    %3 = vector.load %arg9[%c0_3, %c0_4, %c0_5] : memref<3x3x128xf32, #tpu.memory_space<vmem>>, vector<1x3x128xf32>
    tpu.vector_store %arg9[%c0_3, %c0_4, %c0_5], %2 {strides = array<i32>} : memref<3x3x128xf32, #tpu.memory_space<vmem>>, vector<1x3x128xf32>,
    %cst_6 = arith.constant 0.000000e+00 : f32
    %4 = vector.broadcast %cst_6 : f32 to vector<1x3x128xf32>
    %c2 = arith.constant 2 : index
    %c0_7 = arith.constant 0 : index
    %c0_8 = arith.constant 0 : index
    %5 = vector.load %arg9[%c2, %c0_7, %c0_8] : memref<3x3x128xf32, #tpu.memory_space<vmem>>, vector<1x3x128xf32>
    tpu.vector_store %arg9[%c2, %c0_7, %c0_8], %4 {strides = array<i32>} : memref<3x3x128xf32, #tpu.memory_space<vmem>>, vector<1x3x128xf32>,
    %cst_9 = arith.constant 0.000000e+00 : f32
    %6 = vector.broadcast %cst_9 : f32 to vector<3x1x128xf32>
    %c0_10 = arith.constant 0 : index
    %c0_11 = arith.constant 0 : index
    %c0_12 = arith.constant 0 : index
    %7 = vector.load %arg9[%c0_10, %c0_11, %c0_12] : memref<3x3x128xf32, #tpu.memory_space<vmem>>, vector<3x1x128xf32>
    tpu.vector_store %arg9[%c0_10, %c0_11, %c0_12], %6 {strides = array<i32>} : memref<3x3x128xf32, #tpu.memory_space<vmem>>, vector<3x1x128xf32>,
    %cst_13 = arith.constant 0.000000e+00 : f32
    %8 = vector.broadcast %cst_13 : f32 to vector<3x1x128xf32>
    %c0_14 = arith.constant 0 : index
    %c2_15 = arith.constant 2 : index
    %c0_16 = arith.constant 0 : index
    %9 = vector.load %arg9[%c0_14, %c2_15, %c0_16] : memref<3x3x128xf32, #tpu.memory_space<vmem>>, vector<3x1x128xf32>
    tpu.vector_store %arg9[%c0_14, %c2_15, %c0_16], %8 {strides = array<i32>} : memref<3x3x128xf32, #tpu.memory_space<vmem>>, vector<3x1x128xf32>,
    %c1 = arith.constant 1 : index
    %c1_17 = arith.constant 1 : index
    %c0_18 = arith.constant 0 : index
    %10 = vector.load %arg9[%c1, %c1_17, %c0_18] : memref<3x3x128xf32, #tpu.memory_space<vmem>>, vector<1x1x128xf32>
    tpu.vector_store %arg9[%c1, %c1_17, %c0_18], %1 {strides = array<i32>} : memref<3x3x128xf32, #tpu.memory_space<vmem>>, vector<1x1x128xf32>,
    %c0_19 = arith.constant 0 : index
    %c0_20 = arith.constant 0 : index
    %c0_21 = arith.constant 0 : index
    %11 = vector.load %arg2[%c0_19, %c0_20, %c0_21] : memref<3x3x128xf32, #tpu.memory_space<vmem>>, vector<3x3x128xf32>
    %12 = vector.extract_strided_slice %11 {offsets = [0, 0, 0], sizes = [1, 1, 128], strides = [1, 1, 1]} : vector<3x3x128xf32> to vector<1x1x128xf32>
    %c0_22 = arith.constant 0 : index
    %c0_23 = arith.constant 0 : index
    %c0_24 = arith.constant 0 : index
    %13 = vector.load %arg9[%c0_22, %c0_23, %c0_24] : memref<3x3x128xf32, #tpu.memory_space<vmem>>, vector<1x1x128xf32>
    %14 = arith.mulf %13, %12 : vector<1x1x128xf32>
    %15 = vector.extract_strided_slice %11 {offsets = [0, 1, 0], sizes = [1, 1, 128], strides = [1, 1, 1]} : vector<3x3x128xf32> to vector<1x1x128xf32>
    %c0_25 = arith.constant 0 : index
    %c1_26 = arith.constant 1 : index
    %c0_27 = arith.constant 0 : index
    %16 = vector.load %arg9[%c0_25, %c1_26, %c0_27] : memref<3x3x128xf32, #tpu.memory_space<vmem>>, vector<1x1x128xf32>
    %17 = arith.mulf %16, %15 : vector<1x1x128xf32>
    %18 = vector.extract_strided_slice %11 {offsets = [0, 2, 0], sizes = [1, 1, 128], strides = [1, 1, 1]} : vector<3x3x128xf32> to vector<1x1x128xf32>
    %c0_28 = arith.constant 0 : index
    %c2_29 = arith.constant 2 : index
    %c0_30 = arith.constant 0 : index
    %19 = vector.load %arg9[%c0_28, %c2_29, %c0_30] : memref<3x3x128xf32, #tpu.memory_space<vmem>>, vector<1x1x128xf32>
    %20 = arith.mulf %19, %18 : vector<1x1x128xf32>
    %21 = vector.extract_strided_slice %11 {offsets = [1, 0, 0], sizes = [1, 1, 128], strides = [1, 1, 1]} : vector<3x3x128xf32> to vector<1x1x128xf32>
    %c1_31 = arith.constant 1 : index
    %c0_32 = arith.constant 0 : index
    %c0_33 = arith.constant 0 : index
    %22 = vector.load %arg9[%c1_31, %c0_32, %c0_33] : memref<3x3x128xf32, #tpu.memory_space<vmem>>, vector<1x1x128xf32>
    %23 = arith.mulf %22, %21 : vector<1x1x128xf32>
    %24 = vector.extract_strided_slice %11 {offsets = [1, 1, 0], sizes = [1, 1, 128], strides = [1, 1, 1]} : vector<3x3x128xf32> to vector<1x1x128xf32>
    %c1_34 = arith.constant 1 : index
    %c1_35 = arith.constant 1 : index
    %c0_36 = arith.constant 0 : index
    %25 = vector.load %arg9[%c1_34, %c1_35, %c0_36] : memref<3x3x128xf32, #tpu.memory_space<vmem>>, vector<1x1x128xf32>
    %26 = arith.mulf %25, %24 : vector<1x1x128xf32>
    %27 = vector.extract_strided_slice %11 {offsets = [1, 2, 0], sizes = [1, 1, 128], strides = [1, 1, 1]} : vector<3x3x128xf32> to vector<1x1x128xf32>
    %c1_37 = arith.constant 1 : index
    %c2_38 = arith.constant 2 : index
    %c0_39 = arith.constant 0 : index
    %28 = vector.load %arg9[%c1_37, %c2_38, %c0_39] : memref<3x3x128xf32, #tpu.memory_space<vmem>>, vector<1x1x128xf32>
    %29 = arith.mulf %28, %27 : vector<1x1x128xf32>
    %30 = vector.extract_strided_slice %11 {offsets = [2, 0, 0], sizes = [1, 1, 128], strides = [1, 1, 1]} : vector<3x3x128xf32> to vector<1x1x128xf32>
    %c2_40 = arith.constant 2 : index
    %c0_41 = arith.constant 0 : index
    %c0_42 = arith.constant 0 : index
    %31 = vector.load %arg9[%c2_40, %c0_41, %c0_42] : memref<3x3x128xf32, #tpu.memory_space<vmem>>, vector<1x1x128xf32>
    %32 = arith.mulf %31, %30 : vector<1x1x128xf32>
    %33 = vector.extract_strided_slice %11 {offsets = [2, 1, 0], sizes = [1, 1, 128], strides = [1, 1, 1]} : vector<3x3x128xf32> to vector<1x1x128xf32>
    %c2_43 = arith.constant 2 : index
    %c1_44 = arith.constant 1 : index
    %c0_45 = arith.constant 0 : index
    %34 = vector.load %arg9[%c2_43, %c1_44, %c0_45] : memref<3x3x128xf32, #tpu.memory_space<vmem>>, vector<1x1x128xf32>
    %35 = arith.mulf %34, %33 : vector<1x1x128xf32>
    %36 = vector.extract_strided_slice %11 {offsets = [2, 2, 0], sizes = [1, 1, 128], strides = [1, 1, 1]} : vector<3x3x128xf32> to vector<1x1x128xf32>
    %c2_46 = arith.constant 2 : index
    %c2_47 = arith.constant 2 : index
    %c0_48 = arith.constant 0 : index
    %37 = vector.load %arg9[%c2_46, %c2_47, %c0_48] : memref<3x3x128xf32, #tpu.memory_space<vmem>>, vector<1x1x128xf32>
    %38 = arith.mulf %37, %36 : vector<1x1x128xf32>
    %39 = arith.addf %14, %17 : vector<1x1x128xf32>
    %40 = arith.addf %20, %23 : vector<1x1x128xf32>
    %41 = arith.addf %26, %29 : vector<1x1x128xf32>
    %42 = arith.addf %32, %35 : vector<1x1x128xf32>
    %43 = arith.addf %39, %40 : vector<1x1x128xf32>
    %44 = arith.addf %41, %42 : vector<1x1x128xf32>
    %45 = arith.addf %43, %44 : vector<1x1x128xf32>
    %46 = arith.addf %45, %38 : vector<1x1x128xf32>
    %47 = vector.shape_cast %46 : vector<1x1x128xf32> to vector<1x128xf32>
    %c0_49 = arith.constant 0 : index
    %c0_50 = arith.constant 0 : index
    %48 = vector.load %arg3[%c0_49, %c0_50] : memref<128x128xf32, #tpu.memory_space<vmem>>, vector<128x128xf32>
    %cst_51 = arith.constant dense<0.000000e+00> : vector<1x128xf32>
    %49 = tpu.matmul %47, %48, %cst_51 {dimension_numbers = #tpu.dot_dimension_numbers<[1], [0], [0], [1], [0, 0, 1, 1], [], []>} : vector<1x128xf32>, vector<128x128xf32>, vector<1x128xf32> -> vector<1x128xf32>
    %c0_52 = arith.constant 0 : index
    %c0_53 = arith.constant 0 : index
    %50 = vector.load %arg4[%c0_52, %c0_53] : memref<1x128xf32, #tpu.memory_space<vmem>>, vector<1x128xf32>
    %51 = arith.addf %49, %50 : vector<1x128xf32>
    %cst_54 = arith.constant 0.000000e+00 : f32
    %52 = vector.broadcast %cst_54 : f32 to vector<1x128xf32>
    %53 = arith.maximumf %51, %52 : vector<1x128xf32>
    %54 = vector.shape_cast %53 : vector<1x128xf32> to vector<1x1x128xf32>
    %c1_55 = arith.constant 1 : index
    %c1_56 = arith.constant 1 : index
    %c0_57 = arith.constant 0 : index
    %55 = vector.load %arg9[%c1_55, %c1_56, %c0_57] : memref<3x3x128xf32, #tpu.memory_space<vmem>>, vector<1x1x128xf32>
    tpu.vector_store %arg9[%c1_55, %c1_56, %c0_57], %54 {strides = array<i32>} : memref<3x3x128xf32, #tpu.memory_space<vmem>>, vector<1x1x128xf32>,
    %c0_58 = arith.constant 0 : index
    %c0_59 = arith.constant 0 : index
    %c0_60 = arith.constant 0 : index
    %56 = vector.load %arg5[%c0_58, %c0_59, %c0_60] : memref<3x3x128xf32, #tpu.memory_space<vmem>>, vector<3x3x128xf32>
    %57 = vector.extract_strided_slice %56 {offsets = [0, 0, 0], sizes = [1, 1, 128], strides = [1, 1, 1]} : vector<3x3x128xf32> to vector<1x1x128xf32>
    %c0_61 = arith.constant 0 : index
    %c0_62 = arith.constant 0 : index
    %c0_63 = arith.constant 0 : index
    %58 = vector.load %arg9[%c0_61, %c0_62, %c0_63] : memref<3x3x128xf32, #tpu.memory_space<vmem>>, vector<1x1x128xf32>
    %59 = arith.mulf %58, %57 : vector<1x1x128xf32>
    %60 = vector.extract_strided_slice %56 {offsets = [0, 1, 0], sizes = [1, 1, 128], strides = [1, 1, 1]} : vector<3x3x128xf32> to vector<1x1x128xf32>
    %c0_64 = arith.constant 0 : index
    %c1_65 = arith.constant 1 : index
    %c0_66 = arith.constant 0 : index
    %61 = vector.load %arg9[%c0_64, %c1_65, %c0_66] : memref<3x3x128xf32, #tpu.memory_space<vmem>>, vector<1x1x128xf32>
    %62 = arith.mulf %61, %60 : vector<1x1x128xf32>
    %63 = vector.extract_strided_slice %56 {offsets = [0, 2, 0], sizes = [1, 1, 128], strides = [1, 1, 1]} : vector<3x3x128xf32> to vector<1x1x128xf32>
    %c0_67 = arith.constant 0 : index
    %c2_68 = arith.constant 2 : index
    %c0_69 = arith.constant 0 : index
    %64 = vector.load %arg9[%c0_67, %c2_68, %c0_69] : memref<3x3x128xf32, #tpu.memory_space<vmem>>, vector<1x1x128xf32>
    %65 = arith.mulf %64, %63 : vector<1x1x128xf32>
    %66 = vector.extract_strided_slice %56 {offsets = [1, 0, 0], sizes = [1, 1, 128], strides = [1, 1, 1]} : vector<3x3x128xf32> to vector<1x1x128xf32>
    %c1_70 = arith.constant 1 : index
    %c0_71 = arith.constant 0 : index
    %c0_72 = arith.constant 0 : index
    %67 = vector.load %arg9[%c1_70, %c0_71, %c0_72] : memref<3x3x128xf32, #tpu.memory_space<vmem>>, vector<1x1x128xf32>
    %68 = arith.mulf %67, %66 : vector<1x1x128xf32>
    %69 = vector.extract_strided_slice %56 {offsets = [1, 1, 0], sizes = [1, 1, 128], strides = [1, 1, 1]} : vector<3x3x128xf32> to vector<1x1x128xf32>
    %c1_73 = arith.constant 1 : index
    %c1_74 = arith.constant 1 : index
    %c0_75 = arith.constant 0 : index
    %70 = vector.load %arg9[%c1_73, %c1_74, %c0_75] : memref<3x3x128xf32, #tpu.memory_space<vmem>>, vector<1x1x128xf32>
    %71 = arith.mulf %70, %69 : vector<1x1x128xf32>
    %72 = vector.extract_strided_slice %56 {offsets = [1, 2, 0], sizes = [1, 1, 128], strides = [1, 1, 1]} : vector<3x3x128xf32> to vector<1x1x128xf32>
    %c1_76 = arith.constant 1 : index
    %c2_77 = arith.constant 2 : index
    %c0_78 = arith.constant 0 : index
    %73 = vector.load %arg9[%c1_76, %c2_77, %c0_78] : memref<3x3x128xf32, #tpu.memory_space<vmem>>, vector<1x1x128xf32>
    %74 = arith.mulf %73, %72 : vector<1x1x128xf32>
    %75 = vector.extract_strided_slice %56 {offsets = [2, 0, 0], sizes = [1, 1, 128], strides = [1, 1, 1]} : vector<3x3x128xf32> to vector<1x1x128xf32>
    %c2_79 = arith.constant 2 : index
    %c0_80 = arith.constant 0 : index
    %c0_81 = arith.constant 0 : index
    %76 = vector.load %arg9[%c2_79, %c0_80, %c0_81] : memref<3x3x128xf32, #tpu.memory_space<vmem>>, vector<1x1x128xf32>
    %77 = arith.mulf %76, %75 : vector<1x1x128xf32>
    %78 = vector.extract_strided_slice %56 {offsets = [2, 1, 0], sizes = [1, 1, 128], strides = [1, 1, 1]} : vector<3x3x128xf32> to vector<1x1x128xf32>
    %c2_82 = arith.constant 2 : index
    %c1_83 = arith.constant 1 : index
    %c0_84 = arith.constant 0 : index
    %79 = vector.load %arg9[%c2_82, %c1_83, %c0_84] : memref<3x3x128xf32, #tpu.memory_space<vmem>>, vector<1x1x128xf32>
    %80 = arith.mulf %79, %78 : vector<1x1x128xf32>
    %81 = vector.extract_strided_slice %56 {offsets = [2, 2, 0], sizes = [1, 1, 128], strides = [1, 1, 1]} : vector<3x3x128xf32> to vector<1x1x128xf32>
    %c2_85 = arith.constant 2 : index
    %c2_86 = arith.constant 2 : index
    %c0_87 = arith.constant 0 : index
    %82 = vector.load %arg9[%c2_85, %c2_86, %c0_87] : memref<3x3x128xf32, #tpu.memory_space<vmem>>, vector<1x1x128xf32>
    %83 = arith.mulf %82, %81 : vector<1x1x128xf32>
    %84 = arith.addf %59, %62 : vector<1x1x128xf32>
    %85 = arith.addf %65, %68 : vector<1x1x128xf32>
    %86 = arith.addf %71, %74 : vector<1x1x128xf32>
    %87 = arith.addf %77, %80 : vector<1x1x128xf32>
    %88 = arith.addf %84, %85 : vector<1x1x128xf32>
    %89 = arith.addf %86, %87 : vector<1x1x128xf32>
    %90 = arith.addf %88, %89 : vector<1x1x128xf32>
    %91 = arith.addf %90, %83 : vector<1x1x128xf32>
    %92 = vector.shape_cast %91 : vector<1x1x128xf32> to vector<1x128xf32>
    %c0_88 = arith.constant 0 : index
    %c0_89 = arith.constant 0 : index
    %93 = vector.load %arg6[%c0_88, %c0_89] : memref<128x128xf32, #tpu.memory_space<vmem>>, vector<128x128xf32>
    %cst_90 = arith.constant dense<0.000000e+00> : vector<1x128xf32>
    %94 = tpu.matmul %92, %93, %cst_90 {dimension_numbers = #tpu.dot_dimension_numbers<[1], [0], [0], [1], [0, 0, 1, 1], [], []>} : vector<1x128xf32>, vector<128x128xf32>, vector<1x128xf32> -> vector<1x128xf32>
    %c0_91 = arith.constant 0 : index
    %c0_92 = arith.constant 0 : index
    %95 = vector.load %arg7[%c0_91, %c0_92] : memref<1x128xf32, #tpu.memory_space<vmem>>, vector<1x128xf32>
    %96 = arith.addf %94, %95 : vector<1x128xf32>
    %97 = vector.shape_cast %1 : vector<1x1x128xf32> to vector<1x128xf32>
    %98 = arith.addf %96, %97 : vector<1x128xf32>
    %cst_93 = arith.constant 0.000000e+00 : f32
    %99 = vector.broadcast %cst_93 : f32 to vector<1x128xf32>
    %100 = arith.maximumf %98, %99 : vector<1x128xf32>
    %101 = vector.shape_cast %100 : vector<1x128xf32> to vector<1x1x128xf32>
    %c0_94 = arith.constant 0 : index
    %c0_95 = arith.constant 0 : index
    %c0_96 = arith.constant 0 : index
    %102 = vector.load %arg8[%c0_94, %c0_95, %c0_96] : memref<1x1x128xf32, #tpu.memory_space<vmem>>, vector<1x1x128xf32>
    tpu.vector_store %arg8[%c0_94, %c0_95, %c0_96], %101 {strides = array<i32>} : memref<1x1x128xf32, #tpu.memory_space<vmem>>, vector<1x1x128xf32>,
    return
  }
  func.func @transform_0(%arg0: i32) -> (i32, i32, i32, i32) {
    %c0_i32 = arith.constant 0 : i32
    %c0_i32_0 = arith.constant 0 : i32
    %c0_i32_1 = arith.constant 0 : i32
    %c0_i32_2 = arith.constant 0 : i32
    return %arg0, %c0_i32, %c0_i32_0, %c0_i32_1 : i32, i32, i32, i32
  }
  func.func @transform_1(%arg0: i32) -> (i32, i32, i32) {
    %c0_i32 = arith.constant 0 : i32
    %c0_i32_0 = arith.constant 0 : i32
    %c0_i32_1 = arith.constant 0 : i32
    %c0_i32_2 = arith.constant 0 : i32
    return %c0_i32, %c0_i32_0, %c0_i32_1 : i32, i32, i32
  }
  func.func @transform_2(%arg0: i32) -> (i32, i32) {
    %c0_i32 = arith.constant 0 : i32
    %c0_i32_0 = arith.constant 0 : i32
    %c0_i32_1 = arith.constant 0 : i32
    return %c0_i32, %c0_i32_0 : i32, i32
  }
  func.func @transform_3(%arg0: i32) -> (i32, i32) {
    %c0_i32 = arith.constant 0 : i32
    %c0_i32_0 = arith.constant 0 : i32
    %c0_i32_1 = arith.constant 0 : i32
    return %c0_i32, %c0_i32_0 : i32, i32
  }
  func.func @transform_4(%arg0: i32) -> (i32, i32, i32) {
    %c0_i32 = arith.constant 0 : i32
    %c0_i32_0 = arith.constant 0 : i32
    %c0_i32_1 = arith.constant 0 : i32
    %c0_i32_2 = arith.constant 0 : i32
    return %c0_i32, %c0_i32_0, %c0_i32_1 : i32, i32, i32
  }
  func.func @transform_5(%arg0: i32) -> (i32, i32) {
    %c0_i32 = arith.constant 0 : i32
    %c0_i32_0 = arith.constant 0 : i32
    %c0_i32_1 = arith.constant 0 : i32
    return %c0_i32, %c0_i32_0 : i32, i32
  }
  func.func @transform_6(%arg0: i32) -> (i32, i32) {
    %c0_i32 = arith.constant 0 : i32
    %c0_i32_0 = arith.constant 0 : i32
    %c0_i32_1 = arith.constant 0 : i32
    return %c0_i32, %c0_i32_0 : i32, i32
  }
  func.func @transform_7(%arg0: i32) -> (i32, i32, i32) {
    %c0_i32 = arith.constant 0 : i32
    %c0_i32_0 = arith.constant 0 : i32
    %c0_i32_1 = arith.constant 0 : i32
    return %arg0, %c0_i32, %c0_i32_0 : i32, i32, i32
  }
}

</mosaic_0001>

<bundles_post_ra>
// kernel: densebox_forward.20
= control target key start
LH: loop header
LB: loop body
LE: loop exit
PB: predicated region body
PF: predicated region fallthrough
CT: control target
= control target key end

     0   :  { %s746_s15 = smov 0   ;;  %s891_s0 = inlined_call_operand.vmem [shape: f32[2,8,8,128], index: 0, kind: input, shape index: {}]   ;;  %s892_s1 = inlined_call_operand.vmem [shape: f32[3,3,128], index: 1, kind: input, shape index: {}]   ;;  %s893_s2 = inlined_call_operand.vmem [shape: f32[128,128], index: 2, kind: input, shape index: {}]   ;;  %s894_s3 = inlined_call_operand.vmem [shape: f32[1,128], index: 3, kind: input, shape index: {}]   ;;  %s895_s4 = inlined_call_operand.vmem [shape: f32[2,16,128], index: 4, kind: output, shape index: {}]  }
   0x1 LB: > { %s604_s16 = sadd.s32 4294967295, %s718_s15   ;;  %p608_p0 = scmp.ge.s32.totalorder %s718_s15, 1  ;;  %s718_s15 = sphi %s746_s15, %s14_s15  }
   0x2   : > { %p162_p1 = scmp.lt.s32.totalorder %s718_s15, 3 }
   0x4   : > { %p163_p2 = pnand %p608_p0, %p162_p1 }
   0x5   : > { %v417_v0 = vld [vmem:[%s893_s2] sm:$0xff] (!%p163_p2)  ;;  %v418_v1 = vld [vmem:[%s893_s2 + $0x8] sm:$0xff] (!%p163_p2)  ;;  %v419_v2 = vld [vmem:[%s893_s2 + $0x10] sm:$0xff] (!%p163_p2)  ;;  %p763_p3 = scmp.lt.s32.totalorder (!%p163_p2), %s604_s16, 1  ;;  %v250_v3 = vlaneseq (!%p163_p2)  ;;  %v720_v6 = vmov (!%p163_p2), 0.0  }
   0x6   : > { %166 = sbr.rel (%p163_p2) target bundleno = 270 (0x10e), region = 36  ;;  %v671_v4 = vpack.c.bf16 (!%p163_p2), %v418_v1, %v417_v0  ;;  %v420_v5 = vld [vmem:[%s893_s2 + $0x18] sm:$0xff] (!%p163_p2)  ;;  %198 = vst [vmem:[#allocation2] sm:$0xff] (!%p163_p2), %v720_v6  ;;  %199 = vst [vmem:[#allocation2 + $0x8] sm:$0x3] (!%p163_p2), %v720_v6  ;;  %v421_v8 = vld [vmem:[%s893_s2 + $0x20] sm:$0xff] (!%p163_p2) }
   0x7   : > { %204 = vst [vmem:[#allocation2 + $0x10] sm:$0x1] (!%p163_p2), %v720_v6  ;;  %205 = vst [vmem:[#allocation2 + $0x20] sm:$0x1] (!%p163_p2), %v720_v6  ;;  %v675_v7 = vpack.c.bf16 (!%p163_p2), %v420_v5, %v419_v2  ;;  %v422_v9 = vld [vmem:[%s893_s2 + $0x28] sm:$0xff] (!%p163_p2)  ;;  %v251_v10 = vshrl.u32 (!%p163_p2), %v250_v3, 7 }
   0x8   : > { %206 = vst [vmem:[#allocation2 + $0x30] sm:$0x1] (!%p163_p2), %v720_v6  ;;  %207 = vst [vmem:[#allocation2 + $0x40] sm:$0x1] (!%p163_p2), %v720_v6  ;;  %672 = vmatprep.subr.bf16.mxu0 (!%p163_p2), %v671_v4  ;;  %v679_v11 = vpack.c.bf16 (!%p163_p2), %v422_v9, %v421_v8  ;;  %v423_v12 = vld [vmem:[%s893_s2 + $0x30] sm:$0xff] (!%p163_p2)  ;;  %v424_v13 = vld [vmem:[%s893_s2 + $0x38] sm:$0xff] (!%p163_p2) }
   0x9   : > { %208 = vst [vmem:[#allocation2 + $0x50] sm:$0x1] (!%p163_p2), %v720_v6  ;;  %209 = vst [vmem:[#allocation2 + $0x60] sm:$0x1] (!%p163_p2), %v720_v6  ;;  %674 = vmatpush3.bf16.msra.mxu0 (!%p163_p2), %v671_v4  ;;  %v252_v17 = vsub.s32 (!%p163_p2), 0, %v251_v10  ;;  %v268_v18 = vsub.s32 (!%p163_p2), 1, %v251_v10  ;;  %v683_v24 = vpack.c.bf16 (!%p163_p2), %v424_v13, %v423_v12 }
   0xa   : > { %210 = vst [vmem:[#allocation2 + $0x70] sm:$0x1] (!%p163_p2), %v720_v6  ;;  %211 = vst [vmem:[#allocation2 + $0x80] sm:$0x1] (!%p163_p2), %v720_v6  ;;  %676 = vmatprep.subr.bf16.mxu0 (!%p163_p2), %v675_v7  ;;  %v284_v19 = vsub.s32 (!%p163_p2), 2, %v251_v10  ;;  %v425_v23 = vld [vmem:[%s893_s2 + $0x40] sm:$0xff] (!%p163_p2) }
   0xb   : > { %203 = vst [vmem:[#allocation2] sm:$0x1] (!%p163_p2), %v720_v6  ;;  %v240_v21 = vld [vmem:[%s892_s1] sm:$0x7] (!%p163_p2)  ;;  %v241_v25 = vld [vmem:[%s892_s1 + $0x4] sm:$0x7] (!%p163_p2) }
   0xc   : > { %v426_v28 = vld [vmem:[%s893_s2 + $0x48] sm:$0xff] (!%p163_p2)  ;;  %v802_v29 = vrot.slane (!%p163_p2), %v240_v21, %v252_v17  ;;  %v804_v31 = vrot.slane (!%p163_p2), %v240_v21, %v268_v18  ;;  %v806_v32 = vrot.slane (!%p163_p2), %v240_v21, %v284_v19  ;;  %v811_v37 = vrot.slane (!%p163_p2), %v241_v25, %v252_v17  ;;  %v427_v39 = vld [vmem:[%s893_s2 + $0x50] sm:$0xff] (!%p163_p2)  ;;  %v428_v40 = vld [vmem:[%s893_s2 + $0x58] sm:$0xff] (!%p163_p2) }
   0xd   : > { %s898_s16 = smov (!%p763_p3, %s604_s16), 1  ;;  %678 = vmatpush3.bf16.msra.mxu0 %v675_v7  ;;  %v259_v30 = vld [vmem:[#allocation2 + $0x1] ss:$2 sm:$0xf]  ;;  %v242_v36 = vld [vmem:[%s892_s1 + $0x8] sm:$0x7]  ;;  %v687_v38 = vpack.c.bf16 %v426_v28, %v425_v23  ;;  %v819_v41 = vrot.slane %v241_v25, %v268_v18  ;;  %v824_v47 = vrot.slane %v241_v25, %v284_v19  ;;  %v691_v62 = vpack.c.bf16 %v428_v40, %v427_v39 }
   0xe   : > { %s616_s30 = sshll.u32 %s898_s16, 6  ;;  %680 = vmatprep.subr.bf16.mxu0 %v679_v11  ;;  %v275_v35 = vld [vmem:[#allocation2 + $0x2] ss:$2 sm:$0xf]  ;;  %v270_v45 = vmul.f32 %v804_v31, %v259_v30  ;;  %v828_v52 = vrot.slane %v242_v36, %v252_v17  ;;  %v431_v55 = vld [vmem:[%s893_s2 + $0x70] sm:$0xff]  ;;  %v432_v56 = vld [vmem:[%s893_s2 + $0x78] sm:$0xff]  ;;  %v844_v61 = vrot.slane %v242_v36, %v268_v18  ;;  %v848_v3 = vrot.slane %v242_v36, %v284_v19 }
   0xf   : > { %s192_s11 = scalar_lea.vmem %s891_s0, %s616_s30  ;;  %v286_v46 = vmul.f32 %v806_v32, %v275_v35  ;;  %v429_v53 = vld [vmem:[%s893_s2 + $0x60] sm:$0xff]  ;;  %v430_v54 = vld [vmem:[%s893_s2 + $0x68] sm:$0xff]  ;;  %s617_s12 = sshll.u32 %s898_s16, 4 }
  0x10   : > { %v223_v14 = vld [vmem:[%s192_s11] sm:$0xff]  ;;  %v224_v15 = vld [vmem:[%s192_s11 + $0x8] sm:$0xff]  ;;  %v225_v16 = vld [vmem:[%s192_s11 + $0x10] sm:$0xff]  ;;  %v695_v21 = vpack.c.bf16 %v430_v54, %v429_v53  ;;  %s197_s17 = scalar_lea.vmem %s895_s4, %s617_s12 }
  0x11   : > { %v226_v20 = vld [vmem:[%s192_s11 + $0x18] sm:$0xff]  ;;  %232 = vst [vmem:[#allocation2 + $0x11] sm:$0xff] %v223_v14  ;;  %233 = vst [vmem:[#allocation2 + $0x21] sm:$0xff] %v224_v15  ;;  %v227_v22 = vld [vmem:[%s192_s11 + $0x20] sm:$0xff]  ;;  %682 = vmatpush3.bf16.msra.mxu0 %v679_v11 }
  0x12   : > { %234 = vst [vmem:[#allocation2 + $0x31] sm:$0xff] %v225_v16  ;;  %235 = vst [vmem:[#allocation2 + $0x41] sm:$0xff] %v226_v20  ;;  %v228_v26 = vld [vmem:[%s192_s11 + $0x28] sm:$0xff]  ;;  %v229_v27 = vld [vmem:[%s192_s11 + $0x30] sm:$0xff]  ;;  %684 = vmatprep.subr.bf16.mxu0 %v683_v24 }
  0x13   : > { %236 = vst [vmem:[#allocation2 + $0x51] sm:$0xff] %v227_v22  ;;  %v230_v33 = vld [vmem:[%s192_s11 + $0x38] sm:$0xff]  ;;  %237 = vst [vmem:[#allocation2 + $0x61] sm:$0xff] %v228_v26  ;;  %v243_v34 = vld [vmem:[#allocation2] ss:$2 sm:$0xf]  ;;  %v856_v22 = vpack.c.bf16 %v432_v56, %v431_v55 }
  0x14   : > { %238 = vst [vmem:[#allocation2 + $0x71] sm:$0xff] %v229_v27  ;;  %239 = vst [vmem:[#allocation2 + $0x81] sm:$0xff] %v230_v33  ;;  %v254_v43 = vmul.f32 %v802_v29, %v243_v34 }
  0x15   : > { %686 = vmatpush3.bf16.msra.mxu0 %v683_v24 }
  0x16   : > { %688 = vmatprep.subr.bf16.mxu0 %v687_v38  ;;  %v385_v8 = vadd.f32 %v270_v45, %v254_v43 }
  0x18   : > { %v245_v42 = vld [vmem:[#allocation2 + $0x20] ss:$2 sm:$0xf]  ;;  %v261_v44 = vld [vmem:[#allocation2 + $0x21] ss:$2 sm:$0xf] }
  0x19   : > { %v255_v48 = vmul.f32 %v802_v29, %v245_v42  ;;  %v271_v49 = vmul.f32 %v804_v31, %v261_v44  ;;  %v277_v50 = vld [vmem:[#allocation2 + $0x22] ss:$2 sm:$0xf]  ;;  %v290_v51 = vld [vmem:[#allocation2 + $0x10] ss:$2 sm:$0xf]  ;;  %690 = vmatpush3.bf16.msra.mxu0 %v687_v38 }
  0x1a   : > { %v287_v57 = vmul.f32 %v806_v32, %v277_v50  ;;  %v292_v58 = vld [vmem:[#allocation2 + $0x30] ss:$2 sm:$0xf]  ;;  %v301_v59 = vmul.f32 %v811_v37, %v290_v51  ;;  %v306_v60 = vld [vmem:[#allocation2 + $0x11] ss:$2 sm:$0xf]  ;;  %692 = vmatprep.subr.bf16.mxu0 %v691_v62 }
  0x1b   : > { %v302_v63 = vmul.f32 %v811_v37, %v292_v58  ;;  %v308_v0 = vld [vmem:[#allocation2 + $0x31] ss:$2 sm:$0xf]  ;;  %v317_v1 = vmul.f32 %v819_v41, %v306_v60  ;;  %v322_v2 = vld [vmem:[#allocation2 + $0x12] ss:$2 sm:$0xf]  ;;  %v386_v14 = vadd.f32 %v271_v49, %v255_v48 }
  0x1c   : > { %v318_v4 = vmul.f32 %v819_v41, %v308_v0  ;;  %v324_v5 = vld [vmem:[#allocation2 + $0x32] ss:$2 sm:$0xf]  ;;  %v333_v6 = vmul.f32 %v824_v47, %v322_v2  ;;  %v338_v7 = vld [vmem:[#allocation2 + $0x20] ss:$2 sm:$0xf]  ;;  %v389_v9 = vadd.f32 %v301_v59, %v286_v46 }
  0x1d   : > { %v334_v10 = vmul.f32 %v824_v47, %v324_v5  ;;  %v340_v11 = vld [vmem:[#allocation2 + $0x40] ss:$2 sm:$0xf]  ;;  %v349_v12 = vmul.f32 %v828_v52, %v338_v7  ;;  %v354_v13 = vld [vmem:[#allocation2 + $0x21] ss:$2 sm:$0xf]  ;;  %v390_v15 = vadd.f32 %v302_v63, %v287_v57  ;;  %694 = vmatpush3.bf16.msra.mxu0 %v691_v62 }
  0x1e   : > { %v350_v16 = vmul.f32 %v828_v52, %v340_v11  ;;  %v356_v17 = vld [vmem:[#allocation2 + $0x41] ss:$2 sm:$0xf]  ;;  %v365_v18 = vmul.f32 %v844_v61, %v354_v13  ;;  %v370_v19 = vld [vmem:[#allocation2 + $0x22] ss:$2 sm:$0xf]  ;;  %v393_v20 = vadd.f32 %v333_v6, %v317_v1  ;;  %v401_v30 = vadd.f32 %v389_v9, %v385_v8  ;;  %696 = vmatprep.subr.bf16.mxu0 %v695_v21 }
  0x1f   : > { %v366_v23 = vmul.f32 %v844_v61, %v356_v17  ;;  %v372_v24 = vld [vmem:[#allocation2 + $0x42] ss:$2 sm:$0xf]  ;;  %v394_v25 = vadd.f32 %v334_v10, %v318_v4  ;;  %v381_v27 = vmul.f32 %v848_v3, %v370_v19  ;;  %v263_v35 = vld [vmem:[#allocation2 + $0x41] ss:$2 sm:$0xf]  ;;  %v402_v38 = vadd.f32 %v390_v15, %v386_v14 }
  0x20   : > { %v247_v26 = vld [vmem:[#allocation2 + $0x40] ss:$2 sm:$0xf]  ;;  %v397_v28 = vadd.f32 %v365_v18, %v349_v12  ;;  %v265_v40 = vld [vmem:[#allocation2 + $0x61] ss:$2 sm:$0xf]  ;;  %v272_v42 = vmul.f32 %v804_v31, %v263_v35  ;;  %v382_v44 = vmul.f32 %v848_v3, %v372_v24 }
  0x21   : > { %v249_v33 = vld [vmem:[#allocation2 + $0x60] ss:$2 sm:$0xf]  ;;  %v256_v34 = vmul.f32 %v802_v29, %v247_v26  ;;  %v398_v36 = vadd.f32 %v366_v23, %v350_v16  ;;  %v273_v46 = vmul.f32 %v804_v31, %v265_v40  ;;  %v294_v50 = vld [vmem:[#allocation2 + $0x50] ss:$2 sm:$0xf]  ;;  %698 = vmatpush3.bf16.msra.mxu0 %v695_v21 }
  0x22   : > { %v257_v39 = vmul.f32 %v802_v29, %v249_v33  ;;  %v279_v43 = vld [vmem:[#allocation2 + $0x42] ss:$2 sm:$0xf]  ;;  %v405_v45 = vadd.f32 %v397_v28, %v393_v20  ;;  %v296_v54 = vld [vmem:[#allocation2 + $0x70] ss:$2 sm:$0xf]  ;;  %v303_v29 = vmul.f32 %v811_v37, %v294_v50  ;;  %700 = vmatprep.subr.bf16.mxu0 %v856_v22 }
  0x23   : > { %v281_v48 = vld [vmem:[#allocation2 + $0x62] ss:$2 sm:$0xf]  ;;  %v288_v49 = vmul.f32 %v806_v32, %v279_v43  ;;  %v406_v51 = vadd.f32 %v398_v36, %v394_v25  ;;  %v310_v55 = vld [vmem:[#allocation2 + $0x51] ss:$2 sm:$0xf]  ;;  %v387_v56 = vadd.f32 %v272_v42, %v256_v34  ;;  %v304_v58 = vmul.f32 %v811_v37, %v296_v54 }
  0x24   : > { %v289_v53 = vmul.f32 %v806_v32, %v281_v48  ;;  %v409_v57 = vadd.f32 %v405_v45, %v401_v30  ;;  %v312_v59 = vld [vmem:[#allocation2 + $0x71] ss:$2 sm:$0xf]  ;;  %v319_v60 = vmul.f32 %v819_v41, %v310_v55  ;;  %v326_v31 = vld [vmem:[#allocation2 + $0x52] ss:$2 sm:$0xf]  ;;  %v388_v62 = vadd.f32 %v273_v46, %v257_v39 }
  0x25   : > { %v410_v63 = vadd.f32 %v406_v51, %v402_v38  ;;  %v320_v0 = vmul.f32 %v819_v41, %v312_v59  ;;  %v328_v1 = vld [vmem:[#allocation2 + $0x72] ss:$2 sm:$0xf]  ;;  %v335_v2 = vmul.f32 %v824_v47, %v326_v31  ;;  %v342_v32 = vld [vmem:[#allocation2 + $0x60] ss:$2 sm:$0xf]  ;;  %v391_v4 = vadd.f32 %v303_v29, %v288_v49  ;;  %702 = vmatpush3.bf16.msra.mxu0 %v856_v22 }
  0x26   : > { %v413_v5 = vadd.f32 %v409_v57, %v381_v27  ;;  %v336_v6 = vmul.f32 %v824_v47, %v328_v1  ;;  %v344_v7 = vld [vmem:[#allocation2 + $0x80] ss:$2 sm:$0xf]  ;;  %v351_v37 = vmul.f32 %v828_v52, %v342_v32  ;;  %v358_v8 = vld [vmem:[#allocation2 + $0x61] ss:$2 sm:$0xf]  ;;  %v392_v9 = vadd.f32 %v304_v58, %v289_v53 }
  0x27   : > { %v414_v10 = vadd.f32 %v410_v63, %v382_v44  ;;  %v352_v11 = vmul.f32 %v828_v52, %v344_v7  ;;  %v360_v41 = vld [vmem:[#allocation2 + $0x81] ss:$2 sm:$0xf]  ;;  %v367_v12 = vmul.f32 %v844_v61, %v358_v8  ;;  %v395_v13 = vadd.f32 %v335_v2, %v319_v60  ;;  %v374_v15 = vld [vmem:[#allocation2 + $0x62] ss:$2 sm:$0xf] }
  0x28   : > { %v368_v14 = vmul.f32 %v844_v61, %v360_v41  ;;  %v396_v16 = vadd.f32 %v336_v6, %v320_v0  ;;  %v376_v47 = vld [vmem:[#allocation2 + $0x82] ss:$2 sm:$0xf]  ;;  %v403_v19 = vadd.f32 %v391_v4, %v387_v56  ;;  %v404_v21 = vadd.f32 %v392_v9, %v388_v62  ;;  %v613_v33 = vld [vmem:[%s894_s3] ss:$0 sm:$0xff] }
  0x29   : > { %v444_v17 = vcombine.low %v413_v5, %v414_v10  ;;  %v399_v18 = vadd.f32 %v367_v12, %v351_v37  ;;  %v383_v52 = vmul.f32 %v848_v3, %v374_v15  ;;  %v384_v24 = vmul.f32 %v848_v3, %v376_v47 }
  0x2a   : > { %v400_v20 = vadd.f32 %v368_v14, %v352_v11 }
  0x2b   : > { %668 = vmatprep.mubr.f32.mxu0 %v444_v17  ;;  %v407_v23 = vadd.f32 %v399_v18, %v395_v13 }
  0x2c   : > { %v408_v25 = vadd.f32 %v400_v20, %v396_v16 }
  0x2d   : > { %v411_v26 = vadd.f32 %v407_v23, %v403_v19 }
  0x2e   : > { %v412_v61 = vadd.f32 %v408_v25, %v404_v21 }
  0x2f   : > { %v415_v27 = vadd.f32 %v411_v26, %v383_v52 }
  0x30   : > { %v416_v28 = vadd.f32 %v412_v61, %v384_v24 }
  0x32   : > { %v445_v30 = vcombine.low %v415_v27, %v416_v28 }
  0x34   : > { %669 = vmatmul.mubr.f32.vlgmr.msra.gmra.mrb[0].mxu0 %v445_v30 }
 0x107   : > { %v670_v22 = vpop.f32.mrb[0].mxu0 }
 0x108   : > { %v520_v34 = vadd.f32 %v670_v22, %v613_v33  ;;  %v514_v35 = vpop.f32.mrb[1].mxu0 }
 0x109   : > { %v515_v3 = vadd.f32 %v613_v33, %v514_v35 }
 0x10a   : > { %v524_v36 = vmax.f32 %v520_v34, 0.0 }
 0x10b   : > { %v523_v38 = vmax.f32 %v515_v3, 0.0 }
 0x10c   : > { %526 = vst [vmem:[%s197_s17 + $0x8] sm:$0xff] %v524_v36 }
 0x10d   : > { %525 = vst [vmem:[%s197_s17] sm:$0xff] %v523_v38 }
 0x10e PF: > { %s14_s15 = sadd.s32 1, %s718_s15  }
 0x10f   : > { %p11_p4 = scmp.ge.s32.totalorder %s14_s15, 4  }
 0x111   :  { %13 = sbr.rel (!%p11_p4) target bundleno = 1 (0x1), region = 102 }

// kernel: densebox_forward.21
= control target key start
LH: loop header
LB: loop body
LE: loop exit
PB: predicated region body
PF: predicated region fallthrough
CT: control target
= control target key end

     0   :  { %s673_s15 = smov 0   ;;  %s835_s0 = inlined_call_operand.vmem [shape: f32[2,4,4,128], index: 0, kind: input, shape index: {}]   ;;  %s836_s1 = inlined_call_operand.vmem [shape: f32[3,3,128], index: 1, kind: input, shape index: {}]   ;;  %s837_s2 = inlined_call_operand.vmem [shape: f32[128,128], index: 2, kind: input, shape index: {}]   ;;  %s838_s3 = inlined_call_operand.vmem [shape: f32[1,128], index: 3, kind: input, shape index: {}]   ;;  %s839_s4 = inlined_call_operand.vmem [shape: f32[2,16,128], index: 4, kind: output, shape index: {}]  }
   0x1 LB: > { %s531_s16 = sadd.s32 4294967295, %s645_s15   ;;  %p535_p0 = scmp.ge.s32.totalorder %s645_s15, 1  ;;  %s645_s15 = sphi %s673_s15, %s14_s15  }
   0x2   : > { %p162_p1 = scmp.lt.s32.totalorder %s645_s15, 3 }
   0x4   : > { %p163_p2 = pnand %p535_p0, %p162_p1 }
   0x5   : > { %v366_v0 = vld [vmem:[%s837_s2] sm:$0xff] (!%p163_p2)  ;;  %v367_v1 = vld [vmem:[%s837_s2 + $0x8] sm:$0xff] (!%p163_p2)  ;;  %v368_v2 = vld [vmem:[%s837_s2 + $0x10] sm:$0xff] (!%p163_p2)  ;;  %p690_p3 = scmp.lt.s32.totalorder (!%p163_p2), %s531_s16, 1  ;;  %v229_v3 = vlaneseq (!%p163_p2)  ;;  %v647_v6 = vmov (!%p163_p2), 0.0  }
   0x6   : > { %166 = sbr.rel (%p163_p2) target bundleno = 266 (0x10a), region = 36  ;;  %v598_v4 = vpack.c.bf16 (!%p163_p2), %v367_v1, %v366_v0  ;;  %v369_v5 = vld [vmem:[%s837_s2 + $0x18] sm:$0xff] (!%p163_p2)  ;;  %198 = vst [vmem:[#allocation2] sm:$0x3f] (!%p163_p2), %v647_v6  ;;  %202 = vst [vmem:[#allocation2 + $0x8] sm:$0x1] (!%p163_p2), %v647_v6 }
   0x7   : > { %203 = vst [vmem:[#allocation2 + $0x10] sm:$0x1] (!%p163_p2), %v647_v6  ;;  %204 = vst [vmem:[#allocation2 + $0x18] sm:$0x1] (!%p163_p2), %v647_v6  ;;  %v602_v7 = vpack.c.bf16 (!%p163_p2), %v369_v5, %v368_v2  ;;  %v370_v8 = vld [vmem:[%s837_s2 + $0x20] sm:$0xff] (!%p163_p2)  ;;  %v371_v9 = vld [vmem:[%s837_s2 + $0x28] sm:$0xff] (!%p163_p2) }
   0x8   : > { %208 = vst [vmem:[#allocation2 + $0xd] sm:$0x1] (!%p163_p2), %v647_v6  ;;  %209 = vst [vmem:[#allocation2 + $0x15] sm:$0x1] (!%p163_p2), %v647_v6  ;;  %v230_v10 = vshrl.u32 (!%p163_p2), %v229_v3, 7  ;;  %599 = vmatprep.subr.bf16.mxu0 (!%p163_p2), %v598_v4  ;;  %v606_v13 = vpack.c.bf16 (!%p163_p2), %v371_v9, %v370_v8  ;;  %v372_v14 = vld [vmem:[%s837_s2 + $0x30] sm:$0xff] (!%p163_p2) }
   0x9   : > { %210 = vst [vmem:[#allocation2 + $0x1d] sm:$0x1] (!%p163_p2), %v647_v6  ;;  %200 = vst [vmem:[#allocation2 + $0x28] sm:$0x3f] (!%p163_p2), %v647_v6  ;;  %601 = vmatpush3.bf16.msra.mxu0 (!%p163_p2), %v598_v4  ;;  %v373_v15 = vld [vmem:[%s837_s2 + $0x38] sm:$0xff] (!%p163_p2)  ;;  %v374_v23 = vld [vmem:[%s837_s2 + $0x40] sm:$0xff] (!%p163_p2) }
   0xa   : > { %205 = vst [vmem:[#allocation2 + $0x20] sm:$0x1] (!%p163_p2), %v647_v6  ;;  %211 = vst [vmem:[#allocation2 + $0x25] sm:$0x1] (!%p163_p2), %v647_v6  ;;  %v231_v11 = vsub.s32 (!%p163_p2), 0, %v230_v10  ;;  %v243_v12 = vsub.s32 (!%p163_p2), 1, %v230_v10  ;;  %603 = vmatprep.subr.bf16.mxu0 (!%p163_p2), %v602_v7  ;;  %v610_v29 = vpack.c.bf16 (!%p163_p2), %v373_v15, %v372_v14 }
   0xb   : > { %201 = vst [vmem:[#allocation2] sm:$0x1] (!%p163_p2), %v647_v6  ;;  %207 = vst [vmem:[#allocation2 + $0x5] sm:$0x1] (!%p163_p2), %v647_v6  ;;  %v222_v16 = vld [vmem:[%s836_s1] sm:$0x7] (!%p163_p2) }
   0xc   : > { %206 = vst [vmem:[#allocation2 + $0x28] sm:$0x1] (!%p163_p2), %v647_v6  ;;  %212 = vst [vmem:[#allocation2 + $0x2d] sm:$0x1] (!%p163_p2), %v647_v6  ;;  %v255_v17 = vsub.s32 (!%p163_p2), 2, %v230_v10  ;;  %v375_v24 = vld [vmem:[%s837_s2 + $0x48] sm:$0xff] (!%p163_p2)  ;;  %v737_v27 = vrot.slane (!%p163_p2), %v222_v16, %v231_v11  ;;  %v739_v28 = vrot.slane (!%p163_p2), %v222_v16, %v243_v12 }
   0xd   : > { %s842_s16 = smov (!%p690_p3, %s531_s16), 1  ;;  %v224_v21 = vld [vmem:[%s836_s1 + $0x8] sm:$0x7]  ;;  %605 = vmatpush3.bf16.msra.mxu0 %v602_v7  ;;  %v376_v25 = vld [vmem:[%s837_s2 + $0x50] sm:$0xff]  ;;  %v377_v26 = vld [vmem:[%s837_s2 + $0x58] sm:$0xff]  ;;  %v614_v47 = vpack.c.bf16 %v375_v24, %v374_v23 }
   0xe   : > { %s543_s30 = sshll.u32 %s842_s16, 4  ;;  %607 = vmatprep.subr.bf16.mxu0 %v606_v13  ;;  %v223_v30 = vld [vmem:[%s836_s1 + $0x4] sm:$0x7]  ;;  %v379_v34 = vld [vmem:[%s837_s2 + $0x68] sm:$0xff]  ;;  %v380_v35 = vld [vmem:[%s837_s2 + $0x70] sm:$0xff]  ;;  %v753_v36 = vrot.slane %v222_v16, %v255_v17  ;;  %v755_v37 = vrot.slane %v224_v21, %v231_v11  ;;  %v760_v40 = vrot.slane %v224_v21, %v243_v12  ;;  %v768_v48 = vpack.c.bf16 %v377_v26, %v376_v25 }
   0xf   : > { %s192_s11 = scalar_lea.vmem %s835_s0, %s543_s30  ;;  %v237_v32 = vld [vmem:[#allocation2 + $0x1] sm:$0xf]  ;;  %v381_v38 = vld [vmem:[%s837_s2 + $0x78] sm:$0xff]  ;;  %v764_v44 = vrot.slane %v223_v30, %v231_v11  ;;  %v766_v45 = vrot.slane %v223_v30, %v243_v12  ;;  %v772_v50 = vrot.slane %v223_v30, %v255_v17  ;;  %v777_v56 = vrot.slane %v224_v21, %v255_v17  ;;  %s197_s17 = scalar_lea.vmem %s839_s4, %s543_s30 }
  0x10   : > { %v213_v18 = vld [vmem:[%s192_s11] sm:$0xf]  ;;  %v214_v19 = vld [vmem:[%s192_s11 + $0x4] sm:$0xf]  ;;  %v215_v20 = vld [vmem:[%s192_s11 + $0x8] sm:$0xf]  ;;  %v245_v43 = vmul.f32 %v739_v28, %v237_v32  ;;  %v774_v51 = vpack.c.bf16 %v381_v38, %v380_v35 }
  0x11   : > { %218 = vst [vmem:[#allocation2 + $0x9] sm:$0xf] %v213_v18  ;;  %219 = vst [vmem:[#allocation2 + $0x11] sm:$0xf] %v214_v19  ;;  %v216_v22 = vld [vmem:[%s192_s11 + $0xc] sm:$0xf]  ;;  %609 = vmatpush3.bf16.msra.mxu0 %v606_v13 }
  0x12   : > { %220 = vst [vmem:[#allocation2 + $0x19] sm:$0xf] %v215_v20  ;;  %221 = vst [vmem:[#allocation2 + $0x21] sm:$0xf] %v216_v22  ;;  %v225_v31 = vld [vmem:[#allocation2] sm:$0xf]  ;;  %611 = vmatprep.subr.bf16.mxu0 %v610_v29 }
  0x13   : > { %v378_v33 = vld [vmem:[%s837_s2 + $0x60] sm:$0xff]  ;;  %v301_v41 = vld [vmem:[#allocation2 + $0x28] sm:$0xf]  ;;  %v233_v42 = vmul.f32 %v737_v27, %v225_v31 }
  0x14   : > { %v249_v39 = vld [vmem:[#allocation2 + $0x2] sm:$0xf]  ;;  %v313_v46 = vld [vmem:[#allocation2 + $0x29] sm:$0xf]  ;;  %v770_v49 = vpack.c.bf16 %v379_v34, %v378_v33  ;;  %v780_v57 = vmul.f32 %v755_v37, %v301_v41 }
  0x15   : > { %v257_v55 = vmul.f32 %v753_v36, %v249_v39  ;;  %v786_v0 = vmul.f32 %v760_v40, %v313_v46  ;;  %613 = vmatpush3.bf16.msra.mxu0 %v610_v29  ;;  %v334_v7 = vadd.f32 %v245_v43, %v233_v42 }
  0x16   : > { %615 = vmatprep.subr.bf16.mxu0 %v614_v47 }
  0x18   : > { %v226_v52 = vld [vmem:[#allocation2 + $0x8] sm:$0xf]  ;;  %v262_v62 = vld [vmem:[#allocation2 + $0x10] sm:$0xf] }
  0x19   : > { %v238_v53 = vld [vmem:[#allocation2 + $0x9] sm:$0xf]  ;;  %v234_v58 = vmul.f32 %v737_v27, %v226_v52  ;;  %v270_v2 = vmul.f32 %v764_v44, %v262_v62  ;;  %v274_v3 = vld [vmem:[#allocation2 + $0x11] sm:$0xf]  ;;  %v299_v12 = vld [vmem:[#allocation2 + $0x18] sm:$0xf]  ;;  %617 = vmatpush3.bf16.msra.mxu0 %v614_v47 }
  0x1a   : > { %v250_v54 = vld [vmem:[#allocation2 + $0xa] sm:$0xf]  ;;  %v246_v59 = vmul.f32 %v739_v28, %v238_v53  ;;  %v286_v6 = vld [vmem:[#allocation2 + $0x12] sm:$0xf]  ;;  %v282_v8 = vmul.f32 %v766_v45, %v274_v3  ;;  %v307_v16 = vmul.f32 %v755_v37, %v299_v12  ;;  %v311_v17 = vld [vmem:[#allocation2 + $0x19] sm:$0xf]  ;;  %619 = vmatprep.subr.bf16.mxu0 %v768_v48 }
  0x1b   : > { %v258_v60 = vmul.f32 %v753_v36, %v250_v54  ;;  %v261_v61 = vld [vmem:[#allocation2 + $0x8] sm:$0xf]  ;;  %v294_v10 = vmul.f32 %v772_v50, %v286_v6  ;;  %v298_v11 = vld [vmem:[#allocation2 + $0x10] sm:$0xf]  ;;  %v323_v20 = vld [vmem:[#allocation2 + $0x1a] sm:$0xf]  ;;  %v319_v22 = vmul.f32 %v760_v40, %v311_v17 }
  0x1c   : > { %v273_v63 = vld [vmem:[#allocation2 + $0x9] sm:$0xf]  ;;  %v269_v1 = vmul.f32 %v764_v44, %v261_v61  ;;  %v310_v13 = vld [vmem:[#allocation2 + $0x11] sm:$0xf]  ;;  %v335_v14 = vadd.f32 %v246_v59, %v234_v58  ;;  %v306_v15 = vmul.f32 %v755_v37, %v298_v11  ;;  %v331_v24 = vmul.f32 %v777_v56, %v323_v20  ;;  %v228_v29 = vld [vmem:[#allocation2 + $0x18] sm:$0xf] }
  0x1d   : > { %v281_v4 = vmul.f32 %v766_v45, %v273_v63  ;;  %v285_v5 = vld [vmem:[#allocation2 + $0xa] sm:$0xf]  ;;  %v318_v18 = vmul.f32 %v760_v40, %v310_v13  ;;  %v322_v19 = vld [vmem:[#allocation2 + $0x12] sm:$0xf]  ;;  %v339_v25 = vadd.f32 %v270_v2, %v258_v60  ;;  %v343_v32 = vadd.f32 %v294_v10, %v282_v8  ;;  %v240_v35 = vld [vmem:[#allocation2 + $0x19] sm:$0xf]  ;;  %621 = vmatpush3.bf16.msra.mxu0 %v768_v48 }
  0x1e   : > { %v293_v9 = vmul.f32 %v772_v50, %v285_v5  ;;  %v338_v21 = vadd.f32 %v269_v1, %v257_v55  ;;  %v330_v23 = vmul.f32 %v777_v56, %v322_v19  ;;  %v227_v26 = vld [vmem:[#allocation2 + $0x10] sm:$0xf]  ;;  %v252_v39 = vld [vmem:[#allocation2 + $0x1a] sm:$0xf]  ;;  %v347_v41 = vadd.f32 %v319_v22, %v307_v16  ;;  %v264_v53 = vld [vmem:[#allocation2 + $0x20] sm:$0xf]  ;;  %623 = vmatprep.subr.bf16.mxu0 %v770_v49 }
  0x1f   : > { %v239_v30 = vld [vmem:[#allocation2 + $0x11] sm:$0xf]  ;;  %v346_v33 = vadd.f32 %v318_v18, %v306_v15  ;;  %v351_v42 = vadd.f32 %v339_v25, %v335_v14  ;;  %v235_v43 = vmul.f32 %v737_v27, %v227_v26  ;;  %v236_v46 = vmul.f32 %v737_v27, %v228_v29  ;;  %v263_v52 = vld [vmem:[#allocation2 + $0x18] sm:$0xf]  ;;  %v276_v60 = vld [vmem:[#allocation2 + $0x21] sm:$0xf] }
  0x20   : > { %v342_v31 = vadd.f32 %v293_v9, %v281_v4  ;;  %v350_v34 = vadd.f32 %v338_v21, %v334_v7  ;;  %v251_v38 = vld [vmem:[#allocation2 + $0x12] sm:$0xf]  ;;  %v275_v54 = vld [vmem:[#allocation2 + $0x19] sm:$0xf]  ;;  %v247_v47 = vmul.f32 %v739_v28, %v239_v30  ;;  %v248_v58 = vmul.f32 %v739_v28, %v240_v35  ;;  %v288_v62 = vld [vmem:[#allocation2 + $0x22] sm:$0xf] }
  0x21   : > { %v259_v59 = vmul.f32 %v753_v36, %v251_v38  ;;  %v287_v61 = vld [vmem:[#allocation2 + $0x1a] sm:$0xf]  ;;  %v355_v63 = vadd.f32 %v347_v41, %v343_v32  ;;  %v260_v1 = vmul.f32 %v753_v36, %v252_v39  ;;  %v271_v2 = vmul.f32 %v764_v44, %v263_v52  ;;  %v300_v3 = vld [vmem:[#allocation2 + $0x20] sm:$0xf]  ;;  %625 = vmatpush3.bf16.msra.mxu0 %v770_v49 }
  0x22   : > { %v354_v55 = vadd.f32 %v346_v33, %v342_v31  ;;  %v272_v27 = vmul.f32 %v764_v44, %v264_v53  ;;  %v312_v4 = vld [vmem:[#allocation2 + $0x21] sm:$0xf]  ;;  %v283_v6 = vmul.f32 %v766_v45, %v275_v54  ;;  %v284_v28 = vmul.f32 %v766_v45, %v276_v60  ;;  %v325_v45 = vld [vmem:[#allocation2 + $0x2a] sm:$0xf]  ;;  %627 = vmatprep.subr.bf16.mxu0 %v774_v51  ;;  %v540_v26 = vld [vmem:[%s838_s3] ss:$0 sm:$0xff] }
  0x23   : > { %v295_v7 = vmul.f32 %v772_v50, %v287_v61  ;;  %v359_v8 = vadd.f32 %v355_v63, %v351_v42  ;;  %v296_v36 = vmul.f32 %v772_v50, %v288_v62  ;;  %v308_v9 = vmul.f32 %v755_v37, %v300_v3  ;;  %v324_v14 = vld [vmem:[#allocation2 + $0x22] sm:$0xf] }
  0x24   : > { %v358_v5 = vadd.f32 %v354_v55, %v350_v34  ;;  %v320_v44 = vmul.f32 %v760_v40, %v312_v4  ;;  %v336_v11 = vadd.f32 %v247_v47, %v235_v43  ;;  %v337_v12 = vadd.f32 %v248_v58, %v236_v46 }
  0x25   : > { %v349_v48 = vadd.f32 %v786_v0, %v780_v57  ;;  %v363_v13 = vadd.f32 %v359_v8, %v331_v24  ;;  %v340_v15 = vadd.f32 %v271_v2, %v259_v59  ;;  %v341_v16 = vadd.f32 %v272_v27, %v260_v1  ;;  %629 = vmatpush3.bf16.msra.mxu0 %v774_v51 }
  0x26   : > { %v362_v10 = vadd.f32 %v358_v5, %v330_v23  ;;  %v344_v17 = vadd.f32 %v295_v7, %v283_v6  ;;  %v345_v18 = vadd.f32 %v296_v36, %v284_v28  ;;  %v348_v50 = vadd.f32 %v320_v44, %v308_v9 }
  0x27   : > { %v352_v40 = vadd.f32 %v340_v15, %v336_v11  ;;  %v353_v19 = vadd.f32 %v341_v16, %v337_v12  ;;  %v332_v20 = vmul.f32 %v777_v56, %v324_v14  ;;  %v333_v57 = vmul.f32 %v777_v56, %v325_v45 }
  0x28   : > { %v393_v37 = vcombine.low %v362_v10, %v363_v13  ;;  %v356_v0 = vadd.f32 %v348_v50, %v344_v17  ;;  %v357_v21 = vadd.f32 %v349_v48, %v345_v18 }
  0x2a   : > { %595 = vmatprep.mubr.f32.mxu0 %v393_v37  ;;  %v360_v22 = vadd.f32 %v356_v0, %v352_v40  ;;  %v361_v23 = vadd.f32 %v357_v21, %v353_v19 }
  0x2c   : > { %v364_v49 = vadd.f32 %v360_v22, %v332_v20  ;;  %v365_v24 = vadd.f32 %v361_v23, %v333_v57 }
  0x2e   : > { %v394_v25 = vcombine.low %v364_v49, %v365_v24 }
  0x30   : > { %596 = vmatmul.mubr.f32.vlgmr.msra.gmra.mrb[0].mxu0 %v394_v25 }
 0x103   : > { %v597_v29 = vpop.f32.mrb[0].mxu0 }
 0x104   : > { %v469_v30 = vadd.f32 %v597_v29, %v540_v26  ;;  %v463_v31 = vpop.f32.mrb[1].mxu0 }
 0x105   : > { %v464_v56 = vadd.f32 %v540_v26, %v463_v31 }
 0x106   : > { %v473_v51 = vmax.f32 %v469_v30, 0.0 }
 0x107   : > { %v472_v32 = vmax.f32 %v464_v56, 0.0 }
 0x108   : > { %475 = vst [vmem:[%s197_s17 + $0x8] sm:$0xff] %v473_v51 }
 0x109   : > { %474 = vst [vmem:[%s197_s17] sm:$0xff] %v472_v32 }
 0x10a PF: > { %s14_s15 = sadd.s32 1, %s645_s15  }
 0x10b   : > { %p11_p4 = scmp.ge.s32.totalorder %s14_s15, 4  }
 0x10d   :  { %13 = sbr.rel (!%p11_p4) target bundleno = 1 (0x1), region = 69 }

// kernel: densebox_forward.19
= control target key start
LH: loop header
LB: loop body
LE: loop exit
PB: predicated region body
PF: predicated region fallthrough
CT: control target
= control target key end

     0   :  { %s2195_s12 = smov 0   ;;  %s2432_s0 = inlined_call_operand.vmem [shape: f32[2,16,16,8], index: 0, kind: input, shape index: {}]   ;;  %s2433_s1 = inlined_call_operand.vmem [shape: f32[9,8,128], index: 1, kind: input, shape index: {}]   ;;  %s2434_s2 = inlined_call_operand.vmem [shape: f32[1,128], index: 2, kind: input, shape index: {}]   ;;  %s2435_s3 = inlined_call_operand.vmem [shape: f32[2,64,128], index: 3, kind: output, shape index: {}]  }
   0x1 LB: > { %s1790_s13 = sadd.s32 4294967295, %s2172_s12   ;;  %p1794_p0 = scmp.ge.s32.totalorder %s2172_s12, 1  ;;  %s2172_s12 = sphi %s2195_s12, %s13_s12  }
   0x2   : > { %p137_p1 = scmp.lt.s32.totalorder %s2172_s12, 3 }
   0x4   : > { %p138_p2 = pnand %p1794_p0, %p137_p1 }
   0x5   : > { %v1799_v0 = vld [vmem:[%s2433_s1 + $0x8] sm:$0xff] (!%p138_p2)  ;;  %v2209_v1 = vld [vmem:[%s2433_s1 + $0x20] sm:$0xff] (!%p138_p2)  ;;  %vm171_vm0 = vcmask (!%p138_p2), 64512   ;;  %p161_p3 = scmp.lt.s32.totalorder (!%p138_p2), %s1790_s13, 1  ;;  %v2174_v3 = vmov (!%p138_p2), 0.0   ;;  %vm180_vm1 = vcmask (!%p138_p2), 57344  }
   0x6   : > { %141 = sbr.rel (%p138_p2) target bundleno = 318 (0x13e), region = 32  ;;  %v2214_v2 = vld [vmem:[%s2433_s1] sm:$0xff] (!%p138_p2)  ;;  %1965 = vmatprep.subr.mxu1 (!%p138_p2), %v1799_v0  ;;  %2021 = vmatprep.subr.mxu0 (!%p138_p2), %v2209_v1  ;;  %172 = vst.msk [vmem:[#allocation2] sm:$0xff] (!%p138_p2), %vm171_vm0, %v2174_v3  ;;  %173 = vst.msk [vmem:[#allocation2 + $0x8] sm:$0xff] (!%p138_p2), %vm171_vm0, %v2174_v3  ;;  %v2222_v4 = vld [vmem:[%s2433_s1 + $0x28] sm:$0xff] (!%p138_p2)  ;;  %vm174_vm2 = vcmask (!%p138_p2), 58368  }
   0x7   : > { %1966 = vmatpush3.msra.mxu1 (!%p138_p2), %v1799_v0  ;;  %2022 = vmatpush3.msra.mxu0 (!%p138_p2), %v2209_v1  ;;  %181 = vst.msk [vmem:[#allocation2] sm:$0x1] (!%p138_p2), %vm180_vm1, %v2174_v3  ;;  %182 = vst.msk [vmem:[#allocation2 + $0x18] sm:$0x1] (!%p138_p2), %vm180_vm1, %v2174_v3  ;;  %v2303_v32 = vld [vmem:[%s2433_s1 + $0x10] sm:$0xff] (!%p138_p2)  ;;  %v1861_v52 = vld [vmem:[%s2433_s1 + $0x38] sm:$0xff] (!%p138_p2) }
   0x8   : > { %183 = vst.msk [vmem:[#allocation2 + $0x30] sm:$0x1] (!%p138_p2), %vm180_vm1, %v2174_v3  ;;  %184 = vst.msk [vmem:[#allocation2 + $0x48] sm:$0x1] (!%p138_p2), %vm180_vm1, %v2174_v3  ;;  %1979 = vmatprep.subr.mxu1 (!%p138_p2), %v2214_v2  ;;  %2035 = vmatprep.subr.mxu0 (!%p138_p2), %v2222_v4  ;;  %v1852_v34 = vld [vmem:[%s2433_s1 + $0x30] sm:$0xff] (!%p138_p2)  ;;  %v1825_v61 = vld [vmem:[%s2433_s1 + $0x18] sm:$0xff] (!%p138_p2) }
   0x9   : > { %185 = vst.msk [vmem:[#allocation2 + $0x60] sm:$0x1] (!%p138_p2), %vm180_vm1, %v2174_v3  ;;  %186 = vst.msk [vmem:[#allocation2 + $0x78] sm:$0x1] (!%p138_p2), %vm180_vm1, %v2174_v3 }
   0xa   : > { %187 = vst.msk [vmem:[#allocation2 + $0x90] sm:$0x1] (!%p138_p2), %vm180_vm1, %v2174_v3  ;;  %188 = vst.msk [vmem:[#allocation2 + $0xa8] sm:$0x1] (!%p138_p2), %vm180_vm1, %v2174_v3 }
   0xb   : > { %189 = vst.msk [vmem:[#allocation2 + $0xc0] sm:$0x1] (!%p138_p2), %vm180_vm1, %v2174_v3  ;;  %190 = vst.msk [vmem:[#allocation2 + $0xd8] sm:$0x1] (!%p138_p2), %vm180_vm1, %v2174_v3 }
   0xc   : > { %191 = vst.msk [vmem:[#allocation2 + $0xf0] sm:$0x1] (!%p138_p2), %vm180_vm1, %v2174_v3  ;;  %192 = vst.msk [vmem:[#allocation2 + $0x108] sm:$0x1] (!%p138_p2), %vm180_vm1, %v2174_v3 }
   0xd   : > { %s2437_s13 = smov (!%p161_p3, %s1790_s13), 1  ;;  %193 = vst.msk [vmem:[#allocation2 + $0x120] sm:$0x1] %vm180_vm1, %v2174_v3  ;;  %194 = vst.msk [vmem:[#allocation2 + $0x138] sm:$0x1] %vm180_vm1, %v2174_v3 }
   0xe   : > { %195 = vst.msk [vmem:[#allocation2 + $0x150] sm:$0x1] %vm180_vm1, %v2174_v3  ;;  %196 = vst.msk [vmem:[#allocation2 + $0x168] sm:$0x1] %vm180_vm1, %v2174_v3  ;;  %s1882_s22 = sshll.u32 %s2437_s13, 8  ;;  %s1883_s11 = sshll.u32 %s2437_s13, 6 }
   0xf   : > { %197 = vst.msk [vmem:[#allocation2 + $0x180] sm:$0x1] %vm180_vm1, %v2174_v3  ;;  %s2251_s25 = scalar_lea.vmem %s2432_s0, %s1882_s22  ;;  %v299_v11 = vld [vmem:[#allocation2 + $0x1] ss:$2 sm:$0xff]  ;;  %v282_v53 = vld [vmem:[#allocation2] ss:$2 sm:$0xff]  ;;  %s2419_s16 = scalar_lea.vmem %s2435_s3, %s1883_s11 }
  0x10   : > { %175 = vst.msk [vmem:[#allocation2 + $0x10] sm:$0x3] %vm174_vm2, %v2174_v3  ;;  %v219_v5 = vld [vmem:[%s2251_s25 + $0x10] sm:$0xff]  ;;  %v220_v6 = vld [vmem:[%s2251_s25 + $0x18] sm:$0xff]  ;;  %v217_v7 = vld [vmem:[%s2251_s25] sm:$0xff]  ;;  %1967 = vmatprep.mubr.msk.f32.mxu1 %vm171_vm0, %v299_v11 }
  0x11   : > { %252 = vst.msk [vmem:[#allocation2 + $0x31] sm:$0xff] %vm171_vm0, %v219_v5  ;;  %253 = vst.msk [vmem:[#allocation2 + $0x39] sm:$0xff] %vm171_vm0, %v220_v6  ;;  %v218_v8 = vld [vmem:[%s2251_s25 + $0x8] sm:$0xff]  ;;  %v221_v9 = vld [vmem:[%s2251_s25 + $0x20] sm:$0xff] }
  0x12   : > { %250 = vst.msk [vmem:[#allocation2 + $0x19] sm:$0xff] %vm171_vm0, %v217_v7  ;;  %v222_v10 = vld [vmem:[%s2251_s25 + $0x28] sm:$0xff]  ;;  %251 = vst.msk [vmem:[#allocation2 + $0x21] sm:$0xff] %vm171_vm0, %v218_v8  ;;  %v223_v12 = vld [vmem:[%s2251_s25 + $0x30] sm:$0xff] }
  0x13   : > { %254 = vst.msk [vmem:[#allocation2 + $0x49] sm:$0xff] %vm171_vm0, %v221_v9  ;;  %255 = vst.msk [vmem:[#allocation2 + $0x51] sm:$0xff] %vm171_vm0, %v222_v10  ;;  %v224_v13 = vld [vmem:[%s2251_s25 + $0x38] sm:$0xff]  ;;  %v227_v14 = vld [vmem:[%s2251_s25 + $0x50] sm:$0xff] }
  0x14   : > { %256 = vst.msk [vmem:[#allocation2 + $0x61] sm:$0xff] %vm171_vm0, %v223_v12  ;;  %257 = vst.msk [vmem:[#allocation2 + $0x69] sm:$0xff] %vm171_vm0, %v224_v13  ;;  %v228_v15 = vld [vmem:[%s2251_s25 + $0x58] sm:$0xff]  ;;  %v225_v16 = vld [vmem:[%s2251_s25 + $0x40] sm:$0xff] }
  0x15   : > { %260 = vst.msk [vmem:[#allocation2 + $0x91] sm:$0xff] %vm171_vm0, %v227_v14  ;;  %261 = vst.msk [vmem:[#allocation2 + $0x99] sm:$0xff] %vm171_vm0, %v228_v15  ;;  %v226_v17 = vld [vmem:[%s2251_s25 + $0x48] sm:$0xff]  ;;  %v229_v18 = vld [vmem:[%s2251_s25 + $0x60] sm:$0xff] }
  0x16   : > { %258 = vst.msk [vmem:[#allocation2 + $0x79] sm:$0xff] %vm171_vm0, %v225_v16  ;;  %v230_v19 = vld [vmem:[%s2251_s25 + $0x68] sm:$0xff]  ;;  %259 = vst.msk [vmem:[#allocation2 + $0x81] sm:$0xff] %vm171_vm0, %v226_v17  ;;  %v231_v20 = vld [vmem:[%s2251_s25 + $0x70] sm:$0xff] }
  0x17   : > { %262 = vst.msk [vmem:[#allocation2 + $0xa9] sm:$0xff] %vm171_vm0, %v229_v18  ;;  %263 = vst.msk [vmem:[#allocation2 + $0xb1] sm:$0xff] %vm171_vm0, %v230_v19  ;;  %v232_v21 = vld [vmem:[%s2251_s25 + $0x78] sm:$0xff]  ;;  %v235_v22 = vld [vmem:[%s2251_s25 + $0x90] sm:$0xff] }
  0x18   : > { %264 = vst.msk [vmem:[#allocation2 + $0xc1] sm:$0xff] %vm171_vm0, %v231_v20  ;;  %265 = vst.msk [vmem:[#allocation2 + $0xc9] sm:$0xff] %vm171_vm0, %v232_v21  ;;  %v236_v23 = vld [vmem:[%s2251_s25 + $0x98] sm:$0xff]  ;;  %v239_v24 = vld [vmem:[%s2251_s25 + $0xb0] sm:$0xff] }
  0x19   : > { %268 = vst.msk [vmem:[#allocation2 + $0xf1] sm:$0xff] %vm171_vm0, %v235_v22  ;;  %v240_v25 = vld [vmem:[%s2251_s25 + $0xb8] sm:$0xff]  ;;  %269 = vst.msk [vmem:[#allocation2 + $0xf9] sm:$0xff] %vm171_vm0, %v236_v23  ;;  %v243_v26 = vld [vmem:[%s2251_s25 + $0xd0] sm:$0xff] }
  0x1a   : > { %272 = vst.msk [vmem:[#allocation2 + $0x121] sm:$0xff] %vm171_vm0, %v239_v24  ;;  %273 = vst.msk [vmem:[#allocation2 + $0x129] sm:$0xff] %vm171_vm0, %v240_v25  ;;  %v244_v27 = vld [vmem:[%s2251_s25 + $0xd8] sm:$0xff]  ;;  %v233_v29 = vld [vmem:[%s2251_s25 + $0x80] sm:$0xff] }
  0x1b   : > { %v301_v28 = vld [vmem:[#allocation2 + $0x31] ss:$2 sm:$0xff]  ;;  %276 = vst.msk [vmem:[#allocation2 + $0x151] sm:$0xff] %vm171_vm0, %v243_v26  ;;  %277 = vst.msk [vmem:[#allocation2 + $0x159] sm:$0xff] %vm171_vm0, %v244_v27  ;;  %v303_v33 = vld [vmem:[#allocation2 + $0x61] ss:$2 sm:$0xff] }
  0x1c   : > { %1968 = vmatmul.mubr.msk.f32.vlgmr.msra.gmra.mrb[0].mxu1 %vm171_vm0, %v301_v28  ;;  %v884_v30 = vld [vmem:[#allocation2 + $0x19] ss:$2 sm:$0xff]  ;;  %v886_v31 = vld [vmem:[#allocation2 + $0x49] ss:$2 sm:$0xff]  ;;  %266 = vst.msk [vmem:[#allocation2 + $0xd9] sm:$0xff] %vm171_vm0, %v233_v29 }
  0x1d   : > { %2023 = vmatprep.mubr.msk.f32.mxu0 %vm171_vm0, %v884_v30  ;;  %1980 = vmatpush3.msra.mxu1 %v2214_v2  ;;  %v234_v35 = vld [vmem:[%s2251_s25 + $0x88] sm:$0xff]  ;;  %v305_v36 = vld [vmem:[#allocation2 + $0x91] ss:$2 sm:$0xff]  ;;  %v237_v37 = vld [vmem:[%s2251_s25 + $0xa0] sm:$0xff] }
  0x1e   : > { %2024 = vmatmul.mubr.msk.f32.vlgmr.msra.gmra.mrb[0].mxu0 %vm171_vm0, %v886_v31  ;;  %1970 = vmatprep.mubr.msk.f32.mxu1 %vm171_vm0, %v303_v33  ;;  %267 = vst.msk [vmem:[#allocation2 + $0xe1] sm:$0xff] %vm171_vm0, %v234_v35  ;;  %v238_v38 = vld [vmem:[%s2251_s25 + $0xa8] sm:$0xff]  ;;  %v888_v39 = vld [vmem:[#allocation2 + $0x79] ss:$2 sm:$0xff]  ;;  %270 = vst.msk [vmem:[#allocation2 + $0x109] sm:$0xff] %vm171_vm0, %v237_v37 }
  0x1f   : > { %2036 = vmatpush3.msra.mxu0 %v2222_v4  ;;  %v890_v40 = vld [vmem:[#allocation2 + $0xa9] ss:$2 sm:$0xff]  ;;  %1993 = vmatprep.subr.mxu1 %v2303_v32  ;;  %271 = vst.msk [vmem:[#allocation2 + $0x111] sm:$0xff] %vm171_vm0, %v238_v38  ;;  %v1039_v42 = vld [vmem:[#allocation2 + $0x1a] ss:$2 sm:$0xff] }
  0x20   : > { %1971 = vmatmul.mubr.msk.f32.gmra.mrb[2].mxu1 %vm171_vm0, %v305_v36  ;;  %2026 = vmatprep.mubr.msk.f32.mxu0 %vm171_vm0, %v888_v39  ;;  %v307_v41 = vld [vmem:[#allocation2 + $0xc1] ss:$2 sm:$0xff]  ;;  %v309_v43 = vld [vmem:[#allocation2 + $0xf1] ss:$2 sm:$0xff]  ;;  %v1041_v47 = vld [vmem:[#allocation2 + $0x4a] ss:$2 sm:$0xff] }
  0x21   : > { %1973 = vmatprep.mubr.msk.f32.mxu1 %vm171_vm0, %v307_v41  ;;  %2049 = vmatprep.subr.mxu0 %v1852_v34  ;;  %v311_v44 = vld [vmem:[#allocation2 + $0x121] ss:$2 sm:$0xff]  ;;  %v1043_v50 = vld [vmem:[#allocation2 + $0x7a] ss:$2 sm:$0xff]  ;;  %v1045_v54 = vld [vmem:[#allocation2 + $0xaa] ss:$2 sm:$0xff] }
  0x22   : > { %2027 = vmatmul.mubr.msk.f32.gmra.mrb[2].mxu0 %vm171_vm0, %v890_v40  ;;  %v241_v45 = vld [vmem:[%s2251_s25 + $0xc0] sm:$0xff]  ;;  %v242_v46 = vld [vmem:[%s2251_s25 + $0xc8] sm:$0xff]  ;;  %v313_v51 = vld [vmem:[#allocation2 + $0x151] ss:$2 sm:$0xff] }
  0x23   : > { %2037 = vmatprep.mubr.msk.f32.mxu0 %vm171_vm0, %v1039_v42  ;;  %274 = vst.msk [vmem:[#allocation2 + $0x139] sm:$0xff] %vm171_vm0, %v241_v45  ;;  %275 = vst.msk [vmem:[#allocation2 + $0x141] sm:$0xff] %vm171_vm0, %v242_v46  ;;  %v245_v48 = vld [vmem:[%s2251_s25 + $0xe0] sm:$0xff]  ;;  %v246_v49 = vld [vmem:[%s2251_s25 + $0xe8] sm:$0xff] }
  0x24   : > { %1974 = vmatmul.mubr.msk.f32.gmra.mrb[4].mxu1 %vm171_vm0, %v309_v43  ;;  %278 = vst.msk [vmem:[#allocation2 + $0x169] sm:$0xff] %vm171_vm0, %v245_v48  ;;  %279 = vst.msk [vmem:[#allocation2 + $0x171] sm:$0xff] %vm171_vm0, %v246_v49  ;;  %v284_v56 = vld [vmem:[#allocation2 + $0x30] ss:$2 sm:$0xff]  ;;  %v286_v59 = vld [vmem:[#allocation2 + $0x60] ss:$2 sm:$0xff] }
  0x25   : > { %1976 = vmatprep.mubr.msk.f32.mxu1 %vm171_vm0, %v311_v44  ;;  %v1047_v55 = vld [vmem:[#allocation2 + $0xda] ss:$2 sm:$0xff]  ;;  %v247_v57 = vld [vmem:[%s2251_s25 + $0xf0] sm:$0xff]  ;;  %v1351_v23 = vld [vmem:[#allocation2 + $0x61] ss:$2 sm:$0xff] }
  0x26   : > { %2038 = vmatmul.mubr.msk.f32.vlgmr.msra.gmra.mrb[0].mxu0 %vm171_vm0, %v1041_v47  ;;  %v248_v58 = vld [vmem:[%s2251_s25 + $0xf8] sm:$0xff]  ;;  %280 = vst.msk [vmem:[#allocation2 + $0x181] sm:$0xff] %vm171_vm0, %v247_v57  ;;  %v290_v0 = vld [vmem:[#allocation2 + $0xc0] ss:$2 sm:$0xff]  ;;  %v1355_v27 = vld [vmem:[#allocation2 + $0xc1] ss:$2 sm:$0xff] }
  0x27   : > { %2050 = vmatpush3.msra.mxu0 %v1852_v34  ;;  %2040 = vmatprep.mubr.msk.f32.mxu0 %vm171_vm0, %v1043_v50  ;;  %281 = vst.msk [vmem:[#allocation2 + $0x189] sm:$0xff] %vm171_vm0, %v248_v58  ;;  %v1049_v60 = vld [vmem:[#allocation2 + $0x10a] ss:$2 sm:$0xff]  ;;  %v1870_v9 = vld [vmem:[%s2433_s1 + $0x40] sm:$0xff]  ;;  %v1349_v20 = vld [vmem:[#allocation2 + $0x31] ss:$2 sm:$0xff] }
  0x28   : > { %1977 = vmatmul.mubr.msk.f32.gmra.mrb[6].mxu1 %vm171_vm0, %v313_v51  ;;  %2063 = vmatprep.subr.mxu0 %v1861_v52  ;;  %v288_v63 = vld [vmem:[#allocation2 + $0x90] ss:$2 sm:$0xff]  ;;  %v294_v5 = vld [vmem:[#allocation2 + $0x120] ss:$2 sm:$0xff]  ;;  %v1353_v24 = vld [vmem:[#allocation2 + $0x91] ss:$2 sm:$0xff] }
  0x29   : > { %1981 = vmatprep.mubr.msk.f32.mxu1 %vm171_vm0, %v282_v53  ;;  %v1194_v3 = vld [vmem:[#allocation2 + $0x30] ss:$2 sm:$0xff]  ;;  %v1196_v6 = vld [vmem:[#allocation2 + $0x60] ss:$2 sm:$0xff]  ;;  %v1357_v28 = vld [vmem:[#allocation2 + $0xf1] ss:$2 sm:$0xff] }
  0x2a   : > { %2041 = vmatmul.mubr.msk.f32.gmra.mrb[2].mxu0 %vm171_vm0, %v1045_v54  ;;  %v1051_v62 = vld [vmem:[#allocation2 + $0x13a] ss:$2 sm:$0xff]  ;;  %v1359_v31 = vld [vmem:[#allocation2 + $0x121] ss:$2 sm:$0xff] }
  0x2b   : > { %2043 = vmatprep.mubr.msk.f32.mxu0 %vm171_vm0, %v1047_v55  ;;  %v1053_v2 = vld [vmem:[#allocation2 + $0x16a] ss:$2 sm:$0xff]  ;;  %v892_v41 = vld [vmem:[#allocation2 + $0xd9] ss:$2 sm:$0xff]  ;;  %v894_v44 = vld [vmem:[#allocation2 + $0x109] ss:$2 sm:$0xff] }
  0x2c   : > { %1982 = vmatmul.mubr.msk.f32.vlgmr.msra.gmra.mrb[0].mxu1 %vm171_vm0, %v284_v56  ;;  %v292_v4 = vld [vmem:[#allocation2 + $0xf0] ss:$2 sm:$0xff]  ;;  %v1200_v11 = vld [vmem:[#allocation2 + $0xc0] ss:$2 sm:$0xff]  ;;  %v896_v45 = vld [vmem:[#allocation2 + $0x139] ss:$2 sm:$0xff] }
  0x2d   : > { %1994 = vmatpush3.msra.mxu1 %v2303_v32  ;;  %1984 = vmatprep.mubr.msk.f32.mxu1 %vm171_vm0, %v286_v59  ;;  %v1198_v7 = vld [vmem:[#allocation2 + $0x90] ss:$2 sm:$0xff]  ;;  %v1204_v15 = vld [vmem:[#allocation2 + $0x120] ss:$2 sm:$0xff]  ;;  %v1361_v32 = vld [vmem:[#allocation2 + $0x151] ss:$2 sm:$0xff] }
  0x2e   : > { %2044 = vmatmul.mubr.msk.f32.gmra.mrb[4].mxu0 %vm171_vm0, %v1049_v60  ;;  %2007 = vmatprep.subr.mxu1 %v1825_v61  ;;  %v296_v8 = vld [vmem:[#allocation2 + $0x150] ss:$2 sm:$0xff]  ;;  %v1208_v19 = vld [vmem:[#allocation2 + $0x180] ss:$2 sm:$0xff]  ;;  %v1363_v35 = vld [vmem:[#allocation2 + $0x181] ss:$2 sm:$0xff] }
  0x2f   : > { %2046 = vmatprep.mubr.msk.f32.mxu0 %vm171_vm0, %v1051_v62  ;;  %v575_v10 = vld [vmem:[#allocation2 + $0x2] ss:$2 sm:$0xff]  ;;  %v577_v13 = vld [vmem:[#allocation2 + $0x32] ss:$2 sm:$0xff]  ;;  %v898_v48 = vld [vmem:[#allocation2 + $0x169] ss:$2 sm:$0xff] }
  0x30   : > { %1985 = vmatmul.mubr.msk.f32.gmra.mrb[2].mxu1 %vm171_vm0, %v288_v63  ;;  %v1202_v12 = vld [vmem:[#allocation2 + $0xf0] ss:$2 sm:$0xff]  ;;  %v1879_v55 = vld [vmem:[%s2434_s2] ss:$0 sm:$0xff] }
  0x31   : > { %1987 = vmatprep.mubr.msk.f32.mxu1 %vm171_vm0, %v290_v0  ;;  %v579_v14 = vld [vmem:[#allocation2 + $0x62] ss:$2 sm:$0xff]  ;;  %v581_v17 = vld [vmem:[#allocation2 + $0x92] ss:$2 sm:$0xff] }
  0x32   : > { %2047 = vmatmul.mubr.msk.f32.gmra.mrb[6].mxu0 %vm171_vm0, %v1053_v2  ;;  %v1206_v16 = vld [vmem:[#allocation2 + $0x150] ss:$2 sm:$0xff] }
  0x33   : > { %2051 = vmatprep.mubr.msk.f32.mxu0 %vm171_vm0, %v1194_v3  ;;  %v583_v18 = vld [vmem:[#allocation2 + $0xc2] ss:$2 sm:$0xff]  ;;  %v585_v21 = vld [vmem:[#allocation2 + $0xf2] ss:$2 sm:$0xff] }
  0x34   : > { %1988 = vmatmul.mubr.msk.f32.gmra.mrb[4].mxu1 %vm171_vm0, %v292_v4  ;;  %v587_v22 = vld [vmem:[#allocation2 + $0x122] ss:$2 sm:$0xff]  ;;  %v589_v25 = vld [vmem:[#allocation2 + $0x152] ss:$2 sm:$0xff] }
  0x35   : > { %1990 = vmatprep.mubr.msk.f32.mxu1 %vm171_vm0, %v294_v5  ;;  %v729_v26 = vld [vmem:[#allocation2 + $0x18] ss:$2 sm:$0xff]  ;;  %v731_v29 = vld [vmem:[#allocation2 + $0x48] ss:$2 sm:$0xff] }
  0x36   : > { %2052 = vmatmul.mubr.msk.f32.vlgmr.msra.gmra.mrb[0].mxu0 %vm171_vm0, %v1196_v6  ;;  %v733_v30 = vld [vmem:[#allocation2 + $0x78] ss:$2 sm:$0xff]  ;;  %v735_v33 = vld [vmem:[#allocation2 + $0xa8] ss:$2 sm:$0xff] }
  0x37   : > { %2064 = vmatpush3.msra.mxu0 %v1861_v52  ;;  %2054 = vmatprep.mubr.msk.f32.mxu0 %vm171_vm0, %v1198_v7  ;;  %v737_v34 = vld [vmem:[#allocation2 + $0xd8] ss:$2 sm:$0xff]  ;;  %v739_v37 = vld [vmem:[#allocation2 + $0x108] ss:$2 sm:$0xff] }
  0x38   : > { %1991 = vmatmul.mubr.msk.f32.gmra.mrb[6].mxu1 %vm171_vm0, %v296_v8  ;;  %2077 = vmatprep.subr.mxu0 %v1870_v9  ;;  %v1504_v36 = vld [vmem:[#allocation2 + $0x32] ss:$2 sm:$0xff]  ;;  %v1510_v42 = vld [vmem:[#allocation2 + $0xc2] ss:$2 sm:$0xff] }
  0x39   : > { %1995 = vmatprep.mubr.msk.f32.mxu1 %vm171_vm0, %v575_v10  ;;  %v741_v38 = vld [vmem:[#allocation2 + $0x138] ss:$2 sm:$0xff]  ;;  %v743_v40 = vld [vmem:[#allocation2 + $0x168] ss:$2 sm:$0xff] }
  0x3a   : > { %2055 = vmatmul.mubr.msk.f32.gmra.mrb[2].mxu0 %vm171_vm0, %v1200_v11  ;;  %v1508_v39 = vld [vmem:[#allocation2 + $0x92] ss:$2 sm:$0xff]  ;;  %v1514_v46 = vld [vmem:[#allocation2 + $0x122] ss:$2 sm:$0xff] }
  0x3b   : > { %2057 = vmatprep.mubr.msk.f32.mxu0 %vm171_vm0, %v1202_v12  ;;  %v1512_v43 = vld [vmem:[#allocation2 + $0xf2] ss:$2 sm:$0xff]  ;;  %v1518_v49 = vld [vmem:[#allocation2 + $0x182] ss:$2 sm:$0xff] }
  0x3c   : > { %1996 = vmatmul.mubr.msk.f32.vlgmr.msra.gmra.mrb[0].mxu1 %vm171_vm0, %v577_v13  ;;  %v1516_v47 = vld [vmem:[#allocation2 + $0x152] ss:$2 sm:$0xff] }
  0x3d   : > { %2008 = vmatpush3.msra.mxu1 %v1825_v61  ;;  %1998 = vmatprep.mubr.msk.f32.mxu1 %vm171_vm0, %v579_v14 }
  0x3e   : > { %2058 = vmatmul.mubr.msk.f32.gmra.mrb[4].mxu0 %vm171_vm0, %v1204_v15  ;;  %2091 = vmatprep.subr.mxu1 %v2209_v1 }
  0x3f   : > { %2060 = vmatprep.mubr.msk.f32.mxu0 %vm171_vm0, %v1206_v16 }
  0x40   : > { %1999 = vmatmul.mubr.msk.f32.gmra.mrb[2].mxu1 %vm171_vm0, %v581_v17 }
  0x41   : > { %2001 = vmatprep.mubr.msk.f32.mxu1 %vm171_vm0, %v583_v18 }
  0x42   : > { %2061 = vmatmul.mubr.msk.f32.gmra.mrb[6].mxu0 %vm171_vm0, %v1208_v19 }
  0x43   : > { %2065 = vmatprep.mubr.msk.f32.mxu0 %vm171_vm0, %v1349_v20 }
  0x44   : > { %2002 = vmatmul.mubr.msk.f32.gmra.mrb[4].mxu1 %vm171_vm0, %v585_v21 }
  0x45   : > { %2004 = vmatprep.mubr.msk.f32.mxu1 %vm171_vm0, %v587_v22 }
  0x46   : > { %2066 = vmatmul.mubr.msk.f32.vlgmr.msra.gmra.mrb[0].mxu0 %vm171_vm0, %v1351_v23 }
  0x47   : > { %2078 = vmatpush3.msra.mxu0 %v1870_v9  ;;  %2068 = vmatprep.mubr.msk.f32.mxu0 %vm171_vm0, %v1353_v24 }
  0x48   : > { %2005 = vmatmul.mubr.msk.f32.gmra.mrb[6].mxu1 %vm171_vm0, %v589_v25 }
  0x49   : > { %2009 = vmatprep.mubr.msk.f32.mxu1 %vm171_vm0, %v729_v26 }
  0x4a   : > { %2069 = vmatmul.mubr.msk.f32.gmra.mrb[2].mxu0 %vm171_vm0, %v1355_v27 }
  0x4b   : > { %2071 = vmatprep.mubr.msk.f32.mxu0 %vm171_vm0, %v1357_v28 }
  0x4c   : > { %2010 = vmatmul.mubr.msk.f32.vlgmr.msra.gmra.mrb[0].mxu1 %vm171_vm0, %v731_v29 }
  0x4d   : > { %2092 = vmatpush3.msra.mxu1 %v2209_v1  ;;  %2012 = vmatprep.mubr.msk.f32.mxu1 %vm171_vm0, %v733_v30  ;;  %v1506_v1 = vld [vmem:[#allocation2 + $0x62] ss:$2 sm:$0xff] }
  0x4e   : > { %2072 = vmatmul.mubr.msk.f32.gmra.mrb[4].mxu0 %vm171_vm0, %v1359_v31 }
  0x4f   : > { %2074 = vmatprep.mubr.msk.f32.mxu0 %vm171_vm0, %v1361_v32 }
  0x50   : > { %2013 = vmatmul.mubr.msk.f32.gmra.mrb[2].mxu1 %vm171_vm0, %v735_v33 }
  0x51   : > { %2015 = vmatprep.mubr.msk.f32.mxu1 %vm171_vm0, %v737_v34 }
  0x52   : > { %2075 = vmatmul.mubr.msk.f32.gmra.mrb[6].mxu0 %vm171_vm0, %v1363_v35 }
  0x53   : > { %2079 = vmatprep.mubr.msk.f32.mxu0 %vm171_vm0, %v1504_v36 }
  0x54   : > { %2016 = vmatmul.mubr.msk.f32.gmra.mrb[4].mxu1 %vm171_vm0, %v739_v37 }
  0x55   : > { %2018 = vmatprep.mubr.msk.f32.mxu1 %vm171_vm0, %v741_v38 }
  0x56   : > { %2080 = vmatmul.mubr.msk.f32.vlgmr.msra.gmra.mrb[0].mxu0 %vm171_vm0, %v1506_v1 }
  0x57   : > { %2082 = vmatprep.mubr.msk.f32.mxu0 %vm171_vm0, %v1508_v39 }
  0x58   : > { %2019 = vmatmul.mubr.msk.f32.gmra.mrb[6].mxu1 %vm171_vm0, %v743_v40 }
  0x59   : > { %2029 = vmatprep.mubr.msk.f32.mxu1 %vm171_vm0, %v892_v41 }
  0x5a   : > { %2083 = vmatmul.mubr.msk.f32.gmra.mrb[2].mxu0 %vm171_vm0, %v1510_v42 }
  0x5b   : > { %2085 = vmatprep.mubr.msk.f32.mxu0 %vm171_vm0, %v1512_v43 }
  0x5c   : > { %2030 = vmatmul.mubr.msk.f32.vlgmr.msra.gmra.mrb[4].mxu1 %vm171_vm0, %v894_v44 }
  0x5d   : > { %2032 = vmatprep.mubr.msk.f32.mxu1 %vm171_vm0, %v896_v45 }
  0x5e   : > { %2086 = vmatmul.mubr.msk.f32.gmra.mrb[4].mxu0 %vm171_vm0, %v1514_v46 }
  0x5f   : > { %2088 = vmatprep.mubr.msk.f32.mxu0 %vm171_vm0, %v1516_v47 }
  0x60   : > { %2033 = vmatmul.mubr.msk.f32.gmra.mrb[6].mxu1 %vm171_vm0, %v898_v48 }
  0x62   : > { %2089 = vmatmul.mubr.msk.f32.gmra.mrb[6].mxu0 %vm171_vm0, %v1518_v49 }
 0x11f   : > { %v2011_v50 = vpop.f32.mrb[0].mxu1 }
 0x120   : > { %v836_v51 = vpop.f32.mrb[1].mxu1 }
 0x123   : > { %v2014_v52 = vpop.f32.mrb[2].mxu1 }
 0x124   : > { %v846_v53 = vpop.f32.mrb[3].mxu1 }
 0x129   : > { %v2081_v54 = vpop.f32.mrb[0].mxu0 }
 0x12a   : > { %v2093_v56 = vadd.f32 %v2081_v54, %v2011_v50  ;;  %v1611_v57 = vpop.f32.mrb[1].mxu0 }
 0x12b   : > { %v2094_v58 = vadd.f32 %v1611_v57, %v836_v51 }
 0x12c   : > { %v1666_v59 = vadd.f32 %v2093_v56, %v1879_v55 }
 0x12d   : > { %v1665_v60 = vadd.f32 %v2094_v58, %v1879_v55  ;;  %v2084_v61 = vpop.f32.mrb[2].mxu0 }
 0x12e   : > { %v1674_v62 = vmax.f32 %v1666_v59, 0.0  ;;  %v2095_v63 = vadd.f32 %v2084_v61, %v2014_v52  ;;  %v1621_v0 = vpop.f32.mrb[3].mxu0 }
 0x12f   : > { %v1673_v2 = vmax.f32 %v1665_v60, 0.0  ;;  %v2096_v3 = vadd.f32 %v1621_v0, %v846_v53  ;;  %v2031_v4 = vpop.f32.mrb[4].mxu1 }
 0x130   : > { %1682 = vst [vmem:[%s2419_s16 + $0x8] sm:$0xff] %v1674_v62  ;;  %v1668_v5 = vadd.f32 %v2095_v63, %v1879_v55  ;;  %v1011_v6 = vpop.f32.mrb[5].mxu1 }
 0x131   : > { %1681 = vst [vmem:[%s2419_s16] sm:$0xff] %v1673_v2  ;;  %v1667_v7 = vadd.f32 %v2096_v3, %v1879_v55  ;;  %v2087_v8 = vpop.f32.mrb[4].mxu0 }
 0x132   : > { %v1676_v9 = vmax.f32 %v1668_v5, 0.0  ;;  %v2097_v10 = vadd.f32 %v2087_v8, %v2031_v4  ;;  %v1631_v11 = vpop.f32.mrb[5].mxu0 }
 0x133   : > { %v1675_v12 = vmax.f32 %v1667_v7, 0.0  ;;  %v2098_v13 = vadd.f32 %v1631_v11, %v1011_v6  ;;  %v2034_v14 = vpop.f32.mrb[6].mxu1 }
 0x134   : > { %1684 = vst [vmem:[%s2419_s16 + $0x18] sm:$0xff] %v1676_v9  ;;  %v1670_v15 = vadd.f32 %v2097_v10, %v1879_v55  ;;  %v1021_v16 = vpop.f32.mrb[7].mxu1 }
 0x135   : > { %1683 = vst [vmem:[%s2419_s16 + $0x10] sm:$0xff] %v1675_v12  ;;  %v1669_v17 = vadd.f32 %v2098_v13, %v1879_v55  ;;  %v2090_v18 = vpop.f32.mrb[6].mxu0 }
 0x136   : > { %v1678_v19 = vmax.f32 %v1670_v15, 0.0  ;;  %v2099_v20 = vadd.f32 %v2090_v18, %v2034_v14  ;;  %v1641_v21 = vpop.f32.mrb[7].mxu0 }
 0x137   : > { %v1677_v22 = vmax.f32 %v1669_v17, 0.0  ;;  %v2100_v23 = vadd.f32 %v1641_v21, %v1021_v16 }
 0x138   : > { %1686 = vst [vmem:[%s2419_s16 + $0x28] sm:$0xff] %v1678_v19  ;;  %v1672_v24 = vadd.f32 %v2099_v20, %v1879_v55 }
 0x139   : > { %1685 = vst [vmem:[%s2419_s16 + $0x20] sm:$0xff] %v1677_v22  ;;  %v1671_v25 = vadd.f32 %v2100_v23, %v1879_v55 }
 0x13a   : > { %v1680_v26 = vmax.f32 %v1672_v24, 0.0 }
 0x13b   : > { %v1679_v27 = vmax.f32 %v1671_v25, 0.0 }
 0x13c   : > { %1688 = vst [vmem:[%s2419_s16 + $0x38] sm:$0xff] %v1680_v26 }
 0x13d   : > { %1687 = vst [vmem:[%s2419_s16 + $0x30] sm:$0xff] %v1679_v27 }
 0x13e PF: > { %s13_s12 = sadd.s32 1, %s2172_s12  }
 0x13f   : > { %p10_p4 = scmp.ge.s32.totalorder %s13_s12, 4  }
 0x141   :  { %12 = sbr.rel (!%p10_p4) target bundleno = 1 (0x1), region = 142 }

// kernel: densebox_forward.23
= control target key start
LH: loop header
LB: loop body
LE: loop exit
PB: predicated region body
PF: predicated region fallthrough
CT: control target
= control target key end

     0   :  { %s1378_s30 = smov 0   ;;  %s1751_s0 = inlined_call_operand.vmem [shape: f32[2,4,4,128], index: 0, kind: input, shape index: {}]   ;;  %s1752_s1 = inlined_call_operand.vmem [shape: f32[3,3,128], index: 1, kind: input, shape index: {}]   ;;  %s1753_s2 = inlined_call_operand.vmem [shape: f32[128,128], index: 2, kind: input, shape index: {}]   ;;  %s1754_s3 = inlined_call_operand.vmem [shape: f32[1,128], index: 3, kind: input, shape index: {}]   ;;  %s1755_s4 = inlined_call_operand.vmem [shape: f32[3,3,128], index: 4, kind: input, shape index: {}]   ;;  %s1756_s5 = inlined_call_operand.vmem [shape: f32[128,128], index: 5, kind: input, shape index: {}]   ;;  %s1757_s6 = inlined_call_operand.vmem [shape: f32[1,128], index: 6, kind: input, shape index: {}]   ;;  %s1758_s7 = inlined_call_operand.vmem [shape: f32[128,128], index: 7, kind: input, shape index: {}]   ;;  %s1759_s8 = inlined_call_operand.vmem [shape: f32[1,128], index: 8, kind: input, shape index: {}]   ;;  %s1760_s9 = inlined_call_operand.vmem [shape: f32[2,16,128], index: 9, kind: output, shape index: {}]  }
   0x1 LB: > { %s1037_s10 = sadd.s32 4294967295, %s1325_s30   ;;  %p1041_p0 = scmp.ge.s32.totalorder %s1325_s30, 1  ;;  %s1325_s30 = sphi %s1378_s30, %s19_s30  }
   0x2   : > { %p287_p1 = scmp.lt.s32.totalorder %s1325_s30, 3 }
   0x4   : > { %p288_p2 = pnand %p1041_p0, %p287_p1 }
   0x5   : > { %v501_v0 = vld [vmem:[%s1753_s2] sm:$0xff] (!%p288_p2)  ;;  %v502_v1 = vld [vmem:[%s1753_s2 + $0x8] sm:$0xff] (!%p288_p2)  ;;  %v503_v2 = vld [vmem:[%s1753_s2 + $0x10] sm:$0xff] (!%p288_p2)  ;;  %p1395_p3 = scmp.lt.s32.totalorder (!%p288_p2), %s1037_s10, 1  ;;  %v364_v3 = vlaneseq (!%p288_p2)  ;;  %v1327_v6 = vmov (!%p288_p2), 0.0  }
   0x6   : > { %291 = sbr.rel (%p288_p2) target bundleno = 518 (0x206), region = 56  ;;  %v1212_v4 = vpack.c.bf16 (!%p288_p2), %v502_v1, %v501_v0  ;;  %v504_v5 = vld [vmem:[%s1753_s2 + $0x18] sm:$0xff] (!%p288_p2)  ;;  %337 = vst [vmem:[#allocation2] sm:$0x3f] (!%p288_p2), %v1327_v6  ;;  %341 = vst [vmem:[#allocation2 + $0x8] sm:$0x1] (!%p288_p2), %v1327_v6 }
   0x7   : > { %342 = vst [vmem:[#allocation2 + $0x10] sm:$0x1] (!%p288_p2), %v1327_v6  ;;  %343 = vst [vmem:[#allocation2 + $0x18] sm:$0x1] (!%p288_p2), %v1327_v6  ;;  %v1216_v7 = vpack.c.bf16 (!%p288_p2), %v504_v5, %v503_v2  ;;  %v505_v8 = vld [vmem:[%s1753_s2 + $0x20] sm:$0xff] (!%p288_p2)  ;;  %v506_v9 = vld [vmem:[%s1753_s2 + $0x28] sm:$0xff] (!%p288_p2) }
   0x8   : > { %347 = vst [vmem:[#allocation2 + $0xd] sm:$0x1] (!%p288_p2), %v1327_v6  ;;  %348 = vst [vmem:[#allocation2 + $0x15] sm:$0x1] (!%p288_p2), %v1327_v6  ;;  %v365_v10 = vshrl.u32 (!%p288_p2), %v364_v3, 7  ;;  %1213 = vmatprep.subr.bf16.mxu0 (!%p288_p2), %v1212_v4  ;;  %v1220_v13 = vpack.c.bf16 (!%p288_p2), %v506_v9, %v505_v8  ;;  %v507_v14 = vld [vmem:[%s1753_s2 + $0x30] sm:$0xff] (!%p288_p2) }
   0x9   : > { %349 = vst [vmem:[#allocation2 + $0x1d] sm:$0x1] (!%p288_p2), %v1327_v6  ;;  %339 = vst [vmem:[#allocation2 + $0x28] sm:$0x3f] (!%p288_p2), %v1327_v6  ;;  %1215 = vmatpush3.bf16.msra.mxu0 (!%p288_p2), %v1212_v4  ;;  %v508_v15 = vld [vmem:[%s1753_s2 + $0x38] sm:$0xff] (!%p288_p2)  ;;  %v762_v23 = vld [vmem:[%s1756_s5] sm:$0xff] (!%p288_p2) }
   0xa   : > { %344 = vst [vmem:[#allocation2 + $0x20] sm:$0x1] (!%p288_p2), %v1327_v6  ;;  %350 = vst [vmem:[#allocation2 + $0x25] sm:$0x1] (!%p288_p2), %v1327_v6  ;;  %v1413_v11 = vsub.s32 (!%p288_p2), 0, %v365_v10  ;;  %v1415_v12 = vsub.s32 (!%p288_p2), 1, %v365_v10  ;;  %1217 = vmatprep.subr.bf16.mxu0 (!%p288_p2), %v1216_v7  ;;  %v1224_v31 = vpack.c.bf16 (!%p288_p2), %v508_v15, %v507_v14 }
   0xb   : > { %340 = vst [vmem:[#allocation2] sm:$0x1] (!%p288_p2), %v1327_v6  ;;  %346 = vst [vmem:[#allocation2 + $0x5] sm:$0x1] (!%p288_p2), %v1327_v6  ;;  %v357_v16 = vld [vmem:[%s1752_s1] sm:$0x7] (!%p288_p2) }
   0xc   : > { %345 = vst [vmem:[#allocation2 + $0x28] sm:$0x1] (!%p288_p2), %v1327_v6  ;;  %351 = vst [vmem:[#allocation2 + $0x2d] sm:$0x1] (!%p288_p2), %v1327_v6  ;;  %v1431_v17 = vsub.s32 (!%p288_p2), 2, %v365_v10  ;;  %v509_v24 = vld [vmem:[%s1753_s2 + $0x40] sm:$0xff] (!%p288_p2)  ;;  %v1463_v28 = vrot.slane (!%p288_p2), %v357_v16, %v1413_v11  ;;  %v1466_v29 = vrot.slane (!%p288_p2), %v357_v16, %v1415_v12 }
   0xd   : > { %s1763_s10 = smov (!%p1395_p3, %s1037_s10), 1  ;;  %v359_v21 = vld [vmem:[%s1752_s1 + $0x8] sm:$0x7]  ;;  %1219 = vmatpush3.bf16.msra.mxu0 %v1216_v7  ;;  %v511_v26 = vld [vmem:[%s1753_s2 + $0x50] sm:$0xff]  ;;  %v358_v27 = vld [vmem:[%s1752_s1 + $0x4] sm:$0x7] }
   0xe   : > { %s1051_s24 = sshll.u32 %s1763_s10, 4  ;;  %v510_v25 = vld [vmem:[%s1753_s2 + $0x48] sm:$0xff]  ;;  %1221 = vmatprep.subr.bf16.mxu0 %v1220_v13  ;;  %v512_v32 = vld [vmem:[%s1753_s2 + $0x58] sm:$0xff]  ;;  %v372_v34 = vld [vmem:[#allocation2 + $0x1] sm:$0xf]  ;;  %v1485_v39 = vrot.slane %v357_v16, %v1431_v17  ;;  %v1488_v40 = vrot.slane %v359_v21, %v1413_v11  ;;  %v1494_v43 = vrot.slane %v358_v27, %v1413_v11  ;;  %v1497_v44 = vrot.slane %v359_v21, %v1415_v12 }
   0xf   : > { %s327_s12 = scalar_lea.vmem %s1751_s0, %s1051_s24  ;;  %v763_v30 = vld [vmem:[%s1756_s5 + $0x8] sm:$0xff]  ;;  %v513_v36 = vld [vmem:[%s1753_s2 + $0x60] sm:$0xff]  ;;  %v515_v38 = vld [vmem:[%s1753_s2 + $0x70] sm:$0xff]  ;;  %v380_v47 = vmul.f32 %v1466_v29, %v372_v34  ;;  %v1502_v48 = vrot.slane %v358_v27, %v1415_v12  ;;  %v1228_v50 = vpack.c.bf16 %v510_v25, %v509_v24  ;;  %v1504_v51 = vpack.c.bf16 %v512_v32, %v511_v26  ;;  %s332_s23 = scalar_lea.vmem %s1760_s9, %s1051_s24 }
  0x10   : > { %v1433_v18 = vld [vmem:[%s327_s12] sm:$0xf]  ;;  %v1435_v19 = vld [vmem:[%s327_s12 + $0x4] sm:$0xf]  ;;  %v1437_v20 = vld [vmem:[%s327_s12 + $0x8] sm:$0xf]  ;;  %v1244_v35 = vpack.c.bf16 %v763_v30, %v762_v23  ;;  %v1509_v53 = vrot.slane %v358_v27, %v1431_v17  ;;  %v1515_v59 = vrot.slane %v359_v21, %v1431_v17 }
  0x11   : > { %353 = vst [vmem:[#allocation2 + $0x9] sm:$0xf] %v1433_v18  ;;  %354 = vst [vmem:[#allocation2 + $0x11] sm:$0xf] %v1435_v19  ;;  %v1445_v22 = vld [vmem:[%s327_s12 + $0xc] sm:$0xf]  ;;  %1223 = vmatpush3.bf16.msra.mxu0 %v1220_v13 }
  0x12   : > { %355 = vst [vmem:[#allocation2 + $0x19] sm:$0xf] %v1437_v20  ;;  %356 = vst [vmem:[#allocation2 + $0x21] sm:$0xf] %v1445_v22  ;;  %v360_v33 = vld [vmem:[#allocation2] sm:$0xf]  ;;  %1245 = vmatprep.subr.bf16.mxu1 %v1244_v35  ;;  %1225 = vmatprep.subr.bf16.mxu0 %v1224_v31 }
  0x13   : > { %v514_v37 = vld [vmem:[%s1753_s2 + $0x68] sm:$0xff]  ;;  %v516_v41 = vld [vmem:[%s1753_s2 + $0x78] sm:$0xff]  ;;  %v384_v42 = vld [vmem:[#allocation2 + $0x2] sm:$0xf]  ;;  %v368_v46 = vmul.f32 %v1463_v28, %v360_v33  ;;  %1247 = vmatpush3.bf16.msra.mxu1 %v1244_v35 }
  0x14   : > { %v436_v45 = vld [vmem:[#allocation2 + $0x28] sm:$0xf]  ;;  %v1506_v52 = vpack.c.bf16 %v514_v37, %v513_v36  ;;  %v1511_v54 = vpack.c.bf16 %v516_v41, %v515_v38  ;;  %v392_v58 = vmul.f32 %v1485_v39, %v384_v42 }
  0x15   : > { %v448_v49 = vld [vmem:[#allocation2 + $0x29] sm:$0xf]  ;;  %v1518_v60 = vmul.f32 %v1488_v40, %v436_v45  ;;  %1227 = vmatpush3.bf16.msra.mxu0 %v1224_v31  ;;  %v469_v10 = vadd.f32 %v380_v47, %v368_v46 }
  0x16   : > { %v1524_v3 = vmul.f32 %v1497_v44, %v448_v49  ;;  %1229 = vmatprep.subr.bf16.mxu0 %v1228_v50 }
  0x18   : > { %v361_v55 = vld [vmem:[#allocation2 + $0x8] sm:$0xf]  ;;  %v397_v1 = vld [vmem:[#allocation2 + $0x10] sm:$0xf] }
  0x19   : > { %v373_v56 = vld [vmem:[#allocation2 + $0x9] sm:$0xf]  ;;  %v369_v61 = vmul.f32 %v1463_v28, %v361_v55  ;;  %v405_v5 = vmul.f32 %v1494_v43, %v397_v1  ;;  %v409_v6 = vld [vmem:[#allocation2 + $0x11] sm:$0xf]  ;;  %v434_v21 = vld [vmem:[#allocation2 + $0x18] sm:$0xf]  ;;  %1231 = vmatpush3.bf16.msra.mxu0 %v1228_v50 }
  0x1a   : > { %v385_v57 = vld [vmem:[#allocation2 + $0xa] sm:$0xf]  ;;  %v381_v62 = vmul.f32 %v1466_v29, %v373_v56  ;;  %v421_v9 = vld [vmem:[#allocation2 + $0x12] sm:$0xf]  ;;  %v417_v13 = vmul.f32 %v1502_v48, %v409_v6  ;;  %v442_v26 = vmul.f32 %v1488_v40, %v434_v21  ;;  %v446_v27 = vld [vmem:[#allocation2 + $0x19] sm:$0xf]  ;;  %1233 = vmatprep.subr.bf16.mxu0 %v1504_v51 }
  0x1b   : > { %v393_v63 = vmul.f32 %v1485_v39, %v385_v57  ;;  %v396_v0 = vld [vmem:[#allocation2 + $0x8] sm:$0xf]  ;;  %v429_v15 = vmul.f32 %v1509_v53, %v421_v9  ;;  %v433_v16 = vld [vmem:[#allocation2 + $0x10] sm:$0xf]  ;;  %v458_v32 = vld [vmem:[#allocation2 + $0x1a] sm:$0xf]  ;;  %v454_v34 = vmul.f32 %v1497_v44, %v446_v27 }
  0x1c   : > { %v408_v2 = vld [vmem:[#allocation2 + $0x9] sm:$0xf]  ;;  %v404_v4 = vmul.f32 %v1494_v43, %v396_v0  ;;  %v445_v23 = vld [vmem:[#allocation2 + $0x11] sm:$0xf]  ;;  %v470_v24 = vadd.f32 %v381_v62, %v369_v61  ;;  %v441_v25 = vmul.f32 %v1488_v40, %v433_v16  ;;  %v466_v36 = vmul.f32 %v1515_v59, %v458_v32  ;;  %v363_v41 = vld [vmem:[#allocation2 + $0x18] sm:$0xf] }
  0x1d   : > { %v416_v7 = vmul.f32 %v1502_v48, %v408_v2  ;;  %v420_v8 = vld [vmem:[#allocation2 + $0xa] sm:$0xf]  ;;  %v453_v30 = vmul.f32 %v1497_v44, %v445_v23  ;;  %v457_v31 = vld [vmem:[#allocation2 + $0x12] sm:$0xf]  ;;  %v474_v37 = vadd.f32 %v405_v5, %v393_v63  ;;  %v478_v46 = vadd.f32 %v429_v15, %v417_v13  ;;  %v375_v55 = vld [vmem:[#allocation2 + $0x19] sm:$0xf]  ;;  %1235 = vmatpush3.bf16.msra.mxu0 %v1504_v51 }
  0x1e   : > { %v428_v14 = vmul.f32 %v1509_v53, %v420_v8  ;;  %v473_v33 = vadd.f32 %v404_v4, %v392_v58  ;;  %v465_v35 = vmul.f32 %v1515_v59, %v457_v31  ;;  %v362_v38 = vld [vmem:[#allocation2 + $0x10] sm:$0xf]  ;;  %v387_v57 = vld [vmem:[#allocation2 + $0x1a] sm:$0xf]  ;;  %v482_v58 = vadd.f32 %v454_v34, %v442_v26  ;;  %v399_v1 = vld [vmem:[#allocation2 + $0x20] sm:$0xf]  ;;  %1237 = vmatprep.subr.bf16.mxu0 %v1506_v52 }
  0x1f   : > { %v374_v42 = vld [vmem:[#allocation2 + $0x11] sm:$0xf]  ;;  %v481_v47 = vadd.f32 %v453_v30, %v441_v25  ;;  %v486_v61 = vadd.f32 %v474_v37, %v470_v24  ;;  %v370_v62 = vmul.f32 %v1463_v28, %v362_v38  ;;  %v371_v0 = vmul.f32 %v1463_v28, %v363_v41  ;;  %v398_v63 = vld [vmem:[#allocation2 + $0x18] sm:$0xf]  ;;  %v423_v9 = vld [vmem:[#allocation2 + $0x22] sm:$0xf] }
  0x20   : > { %v477_v45 = vadd.f32 %v428_v14, %v416_v7  ;;  %v485_v49 = vadd.f32 %v473_v33, %v469_v10  ;;  %v386_v56 = vld [vmem:[#allocation2 + $0x12] sm:$0xf]  ;;  %v410_v2 = vld [vmem:[#allocation2 + $0x19] sm:$0xf]  ;;  %v382_v50 = vmul.f32 %v1466_v29, %v374_v42  ;;  %v383_v5 = vmul.f32 %v1466_v29, %v375_v55  ;;  %v411_v7 = vld [vmem:[#allocation2 + $0x21] sm:$0xf] }
  0x21   : > { %v394_v6 = vmul.f32 %v1485_v39, %v386_v56  ;;  %v422_v8 = vld [vmem:[#allocation2 + $0x1a] sm:$0xf]  ;;  %v490_v10 = vadd.f32 %v482_v58, %v478_v46  ;;  %v395_v13 = vmul.f32 %v1485_v39, %v387_v57  ;;  %v406_v14 = vmul.f32 %v1494_v43, %v398_v63  ;;  %v435_v15 = vld [vmem:[#allocation2 + $0x20] sm:$0xf]  ;;  %v871_v32 = vld [vmem:[%s1758_s7 + $0x8] sm:$0xff]  ;;  %1239 = vmatpush3.bf16.msra.mxu0 %v1506_v52 }
  0x22   : > { %v489_v4 = vadd.f32 %v481_v47, %v477_v45  ;;  %v407_v28 = vmul.f32 %v1494_v43, %v399_v1  ;;  %v447_v16 = vld [vmem:[#allocation2 + $0x21] sm:$0xf]  ;;  %v418_v23 = vmul.f32 %v1502_v48, %v410_v2  ;;  %v419_v29 = vmul.f32 %v1502_v48, %v411_v7  ;;  %v460_v34 = vld [vmem:[#allocation2 + $0x2a] sm:$0xf]  ;;  %1241 = vmatprep.subr.bf16.mxu0 %v1511_v54  ;;  %v764_v58 = vld [vmem:[%s1756_s5 + $0x10] sm:$0xff] }
  0x23   : > { %v430_v24 = vmul.f32 %v1509_v53, %v422_v8  ;;  %v494_v25 = vadd.f32 %v490_v10, %v486_v61  ;;  %v431_v39 = vmul.f32 %v1509_v53, %v423_v9  ;;  %v443_v26 = vmul.f32 %v1488_v40, %v435_v15  ;;  %v870_v48 = vld [vmem:[%s1758_s7] sm:$0xff]  ;;  %v767_v1 = vld [vmem:[%s1756_s5 + $0x28] sm:$0xff]  ;;  %v769_v7 = vld [vmem:[%s1756_s5 + $0x38] sm:$0xff] }
  0x24   : > { %v493_v21 = vadd.f32 %v489_v4, %v485_v49  ;;  %v455_v43 = vmul.f32 %v1497_v44, %v447_v16  ;;  %v471_v30 = vadd.f32 %v382_v50, %v370_v62  ;;  %v472_v31 = vadd.f32 %v383_v5, %v371_v0  ;;  %v459_v53 = vld [vmem:[#allocation2 + $0x22] sm:$0xf]  ;;  %v873_v62 = vld [vmem:[%s1758_s7 + $0x18] sm:$0xff]  ;;  %v875_v50 = vld [vmem:[%s1758_s7 + $0x28] sm:$0xff] }
  0x25   : > { %v484_v51 = vadd.f32 %v1524_v3, %v1518_v60  ;;  %v498_v33 = vadd.f32 %v494_v25, %v466_v36  ;;  %v475_v40 = vadd.f32 %v406_v14, %v394_v6  ;;  %v476_v37 = vadd.f32 %v407_v28, %v395_v13  ;;  %1243 = vmatpush3.bf16.msra.mxu0 %v1511_v54  ;;  %v872_v54 = vld [vmem:[%s1758_s7 + $0x10] sm:$0xff]  ;;  %v766_v63 = vld [vmem:[%s1756_s5 + $0x20] sm:$0xff]  ;;  %v877_v10 = vld [vmem:[%s1758_s7 + $0x38] sm:$0xff] }
  0x26   : > { %v497_v27 = vadd.f32 %v493_v21, %v465_v35  ;;  %v479_v44 = vadd.f32 %v430_v24, %v418_v23  ;;  %v480_v35 = vadd.f32 %v431_v39, %v419_v29  ;;  %v483_v38 = vadd.f32 %v455_v43, %v443_v26  ;;  %v874_v4 = vld [vmem:[%s1758_s7 + $0x20] sm:$0xff]  ;;  %v768_v6 = vld [vmem:[%s1756_s5 + $0x30] sm:$0xff]  ;;  %v771_v28 = vld [vmem:[%s1756_s5 + $0x48] sm:$0xff] }
  0x27   : > { %v487_v3 = vadd.f32 %v475_v40, %v471_v30  ;;  %v488_v41 = vadd.f32 %v476_v37, %v472_v31  ;;  %v1276_v42 = vpack.c.bf16 %v871_v32, %v870_v48  ;;  %v467_v45 = vmul.f32 %v1515_v59, %v459_v53  ;;  %v876_v9 = vld [vmem:[%s1758_s7 + $0x30] sm:$0xff]  ;;  %v770_v14 = vld [vmem:[%s1756_s5 + $0x40] sm:$0xff]  ;;  %v879_v21 = vld [vmem:[%s1758_s7 + $0x48] sm:$0xff] }
  0x28   : > { %v528_v60 = vcombine.low %v497_v27, %v498_v33  ;;  %v468_v46 = vmul.f32 %v1515_v59, %v460_v34  ;;  %v491_v36 = vadd.f32 %v483_v38, %v479_v44  ;;  %v492_v47 = vadd.f32 %v484_v51, %v480_v35  ;;  %v765_v59 = vld [vmem:[%s1756_s5 + $0x18] sm:$0xff]  ;;  %v878_v15 = vld [vmem:[%s1758_s7 + $0x40] sm:$0xff]  ;;  %v772_v23 = vld [vmem:[%s1756_s5 + $0x50] sm:$0xff] }
  0x29   : > { %1277 = vmatprep.subr.bf16.mxu0 %v1276_v42  ;;  %v1248_v61 = vpack.c.bf16 %v765_v59, %v764_v58  ;;  %v1280_v0 = vpack.c.bf16 %v873_v62, %v872_v54  ;;  %v1252_v2 = vpack.c.bf16 %v767_v1, %v766_v63  ;;  %v1284_v5 = vpack.c.bf16 %v875_v50, %v874_v4  ;;  %v773_v29 = vld [vmem:[%s1756_s5 + $0x58] sm:$0xff]  ;;  %v880_v25 = vld [vmem:[%s1758_s7 + $0x50] sm:$0xff]  ;;  %v774_v27 = vld [vmem:[%s1756_s5 + $0x60] sm:$0xff] }
  0x2a   : > { %1139 = vmatprep.mubr.f32.mxu0 %v528_v60  ;;  %v495_v49 = vadd.f32 %v491_v36, %v487_v3  ;;  %v496_v55 = vadd.f32 %v492_v47, %v488_v41  ;;  %v1256_v8 = vpack.c.bf16 %v769_v7, %v768_v6  ;;  %v1288_v13 = vpack.c.bf16 %v877_v10, %v876_v9  ;;  %v881_v39 = vld [vmem:[%s1758_s7 + $0x58] sm:$0xff]  ;;  %v775_v30 = vld [vmem:[%s1756_s5 + $0x68] sm:$0xff]  ;;  %v882_v31 = vld [vmem:[%s1758_s7 + $0x60] sm:$0xff] }
  0x2b   : > { %1249 = vmatprep.subr.bf16.mxu1 %v1248_v61  ;;  %v1260_v16 = vpack.c.bf16 %v771_v28, %v770_v14  ;;  %v1292_v24 = vpack.c.bf16 %v879_v21, %v878_v15  ;;  %v1264_v26 = vpack.c.bf16 %v773_v29, %v772_v23  ;;  %v1296_v43 = vpack.c.bf16 %v881_v39, %v880_v25  ;;  %v883_v51 = vld [vmem:[%s1758_s7 + $0x68] sm:$0xff]  ;;  %v776_v33 = vld [vmem:[%s1756_s5 + $0x70] sm:$0xff]  ;;  %v777_v53 = vld [vmem:[%s1756_s5 + $0x78] sm:$0xff] }
  0x2c   : > { %v499_v52 = vadd.f32 %v495_v49, %v467_v45  ;;  %v500_v56 = vadd.f32 %v496_v55, %v468_v46  ;;  %1251 = vmatpush3.bf16.msra.mxu1 %v1248_v61  ;;  %v1268_v48 = vpack.c.bf16 %v775_v30, %v774_v27  ;;  %v1300_v32 = vpack.c.bf16 %v883_v51, %v882_v31  ;;  %v884_v34 = vld [vmem:[%s1758_s7 + $0x70] sm:$0xff]  ;;  %v885_v40 = vld [vmem:[%s1758_s7 + $0x78] sm:$0xff]  ;;  %v1046_v60 = vld [vmem:[%s1754_s3] ss:$0 sm:$0xff] }
  0x2d   : > { %1253 = vmatprep.subr.bf16.mxu1 %v1252_v2  ;;  %v1272_v37 = vpack.c.bf16 %v777_v53, %v776_v33  ;;  %v1304_v44 = vpack.c.bf16 %v885_v40, %v884_v34  ;;  %v897_v35 = vcombine.low %v1433_v18, %v1435_v19  ;;  %v898_v38 = vcombine.low %v1437_v20, %v1445_v22  ;;  %v619_v45 = vld [vmem:[%s1755_s4] sm:$0x7]  ;;  %v697_v63 = vld [vmem:[#allocation2 + $0x28] sm:$0xf] }
  0x2e   : > { %v529_v57 = vcombine.low %v499_v52, %v500_v56  ;;  %v1663_v18 = vrot.slane %v619_v45, %v1413_v11  ;;  %v1666_v19 = vrot.slane %v619_v45, %v1415_v12  ;;  %v622_v22 = vld [vmem:[#allocation2] sm:$0xf]  ;;  %v621_v52 = vld [vmem:[%s1755_s4 + $0x8] sm:$0x7]  ;;  %v620_v56 = vld [vmem:[%s1755_s4 + $0x4] sm:$0x7]  ;;  %v1677_v59 = vrot.slane %v619_v45, %v1431_v17 }
  0x2f   : > { %v634_v49 = vld [vmem:[#allocation2 + $0x1] sm:$0xf]  ;;  %v1680_v54 = vrot.slane %v621_v52, %v1413_v11  ;;  %v1683_v62 = vrot.slane %v621_v52, %v1415_v12  ;;  %v709_v1 = vld [vmem:[#allocation2 + $0x29] sm:$0xf]  ;;  %v1692_v4 = vrot.slane %v620_v56, %v1415_v12  ;;  %v1695_v50 = vrot.slane %v620_v56, %v1431_v17 }
  0x30   : > { %1140 = vmatmul.mubr.f32.vlgmr.msra.gmra.mrb[0].mxu0 %v529_v57  ;;  %1255 = vmatpush3.bf16.msra.mxu1 %v1252_v2  ;;  %v630_v57 = vmul.f32 %v1663_v18, %v622_v22  ;;  %v642_v58 = vmul.f32 %v1666_v19, %v634_v49  ;;  %v646_v61 = vld [vmem:[#allocation2 + $0x2] sm:$0xf]  ;;  %v1689_v2 = vrot.slane %v620_v56, %v1413_v11 }
  0x31   : > { %1279 = vmatpush3.bf16.msra.mxu0 %v1276_v42  ;;  %1257 = vmatprep.subr.bf16.mxu1 %v1256_v8  ;;  %v1701_v15 = vmul.f32 %v1680_v54, %v697_v63  ;;  %v1704_v12 = vmul.f32 %v1683_v62, %v709_v1 }
  0x32   : > { %1281 = vmatprep.subr.bf16.mxu0 %v1280_v0  ;;  %1209 = vmatprep.mubr.f32.mxu0 %v897_v35  ;;  %v730_v9 = vadd.f32 %v642_v58, %v630_v57 }
  0x34   : > { %1259 = vmatpush3.bf16.msra.mxu1 %v1256_v8 }
  0x35   : > { %1283 = vmatpush3.bf16.msra.mxu0 %v1280_v0  ;;  %1261 = vmatprep.subr.bf16.mxu1 %v1260_v16  ;;  %v1686_v0 = vrot.slane %v621_v52, %v1431_v17 }
  0x36   : > { %1285 = vmatprep.subr.bf16.mxu0 %v1284_v5 }
  0x38   : > { %1263 = vmatpush3.bf16.msra.mxu1 %v1260_v16 }
  0x39   : > { %1287 = vmatpush3.bf16.msra.mxu0 %v1284_v5  ;;  %1265 = vmatprep.subr.bf16.mxu1 %v1264_v26  ;;  %v654_v5 = vmul.f32 %v1677_v59, %v646_v61 }
  0x3a   : > { %1289 = vmatprep.subr.bf16.mxu0 %v1288_v13 }
  0x3c   : > { %1267 = vmatpush3.bf16.msra.mxu1 %v1264_v26 }
  0x3d   : > { %1291 = vmatpush3.bf16.msra.mxu0 %v1288_v13  ;;  %1269 = vmatprep.subr.bf16.mxu1 %v1268_v48 }
  0x3e   : > { %1293 = vmatprep.subr.bf16.mxu0 %v1292_v24 }
  0x40   : > { %1271 = vmatpush3.bf16.msra.mxu1 %v1268_v48 }
  0x41   : > { %1295 = vmatpush3.bf16.msra.mxu0 %v1292_v24  ;;  %1273 = vmatprep.subr.bf16.mxu1 %v1272_v37 }
  0x42   : > { %1297 = vmatprep.subr.bf16.mxu0 %v1296_v43 }
  0x44   : > { %1275 = vmatpush3.bf16.msra.mxu1 %v1272_v37 }
  0x45   : > { %1299 = vmatpush3.bf16.msra.mxu0 %v1296_v43 }
  0x46   : > { %1301 = vmatprep.subr.bf16.mxu0 %v1300_v32 }
  0x49   : > { %1303 = vmatpush3.bf16.msra.mxu0 %v1300_v32 }
  0x4a   : > { %1305 = vmatprep.subr.bf16.mxu0 %v1304_v44 }
  0x4d   : > { %1307 = vmatpush3.bf16.msra.mxu0 %v1304_v44 }
  0x50   : > { %1210 = vmatmul.mubr.f32.vlgmr.msra.gmra.mrb[2].mxu0 %v898_v38 }
 0x103   : > { %v1141_v3 = vpop.f32.mrb[0].mxu0 }
 0x104   : > { %v604_v41 = vadd.f32 %v1141_v3, %v1046_v60  ;;  %v598_v42 = vpop.f32.mrb[1].mxu0 }
 0x105   : > { %v599_v46 = vadd.f32 %v1046_v60, %v598_v42 }
 0x106   : > { %v608_v36 = vmax.f32 %v604_v41, 0.0 }
 0x107   : > { %v607_v47 = vmax.f32 %v599_v46, 0.0 }
 0x108   : > { %v612_v20 = vcombine.high %v608_v36, %v608_v36  ;;  %617 = vst [vmem:[#allocation2 + $0x19] sm:$0xf] %v608_v36 }
 0x109   : > { %v611_v55 = vcombine.high %v607_v47, %v607_v47  ;;  %615 = vst [vmem:[#allocation2 + $0x9] sm:$0xf] %v607_v47 }
 0x10a   : > { %618 = vst [vmem:[#allocation2 + $0x21] sm:$0xf] %v612_v20 }
 0x10b   : > { %616 = vst [vmem:[#allocation2 + $0x11] sm:$0xf] %v611_v55 }
 0x10f   : > { %v695_v6 = vld [vmem:[#allocation2 + $0x18] sm:$0xf] }
 0x110   : > { %v707_v7 = vld [vmem:[#allocation2 + $0x19] sm:$0xf]  ;;  %v623_v10 = vld [vmem:[#allocation2 + $0x8] sm:$0xf]  ;;  %v703_v28 = vmul.f32 %v1680_v54, %v695_v6 }
 0x111   : > { %v719_v8 = vld [vmem:[#allocation2 + $0x1a] sm:$0xf]  ;;  %v635_v13 = vld [vmem:[#allocation2 + $0x9] sm:$0xf]  ;;  %v715_v11 = vmul.f32 %v1683_v62, %v707_v7  ;;  %v631_v17 = vmul.f32 %v1663_v18, %v623_v10  ;;  %v661_v61 = vld [vmem:[#allocation2 + $0x20] sm:$0xf] }
 0x112   : > { %v647_v14 = vld [vmem:[#allocation2 + $0xa] sm:$0xf]  ;;  %v643_v16 = vmul.f32 %v1666_v19, %v635_v13  ;;  %v727_v25 = vmul.f32 %v1686_v0, %v719_v8  ;;  %v659_v39 = vld [vmem:[#allocation2 + $0x10] sm:$0xf]  ;;  %v625_v41 = vld [vmem:[#allocation2 + $0x18] sm:$0xf] }
 0x113   : > { %v655_v21 = vmul.f32 %v1677_v59, %v647_v14  ;;  %v658_v23 = vld [vmem:[#allocation2 + $0x8] sm:$0xf]  ;;  %v671_v43 = vld [vmem:[#allocation2 + $0x11] sm:$0xf]  ;;  %v743_v51 = vadd.f32 %v715_v11, %v703_v28  ;;  %v667_v48 = vmul.f32 %v1689_v2, %v659_v39  ;;  %v637_v20 = vld [vmem:[#allocation2 + $0x19] sm:$0xf]  ;;  %v633_v56 = vmul.f32 %v1663_v18, %v625_v41 }
 0x114   : > { %v670_v29 = vld [vmem:[#allocation2 + $0x9] sm:$0xf]  ;;  %v666_v26 = vmul.f32 %v1689_v2, %v658_v23  ;;  %v683_v30 = vld [vmem:[#allocation2 + $0x12] sm:$0xf]  ;;  %v679_v32 = vmul.f32 %v1692_v4, %v671_v43  ;;  %v731_v37 = vadd.f32 %v643_v16, %v631_v17  ;;  %v649_v49 = vld [vmem:[#allocation2 + $0x1a] sm:$0xf]  ;;  %v645_v6 = vmul.f32 %v1666_v19, %v637_v20 }
 0x115   : > { %v682_v24 = vld [vmem:[#allocation2 + $0xa] sm:$0xf]  ;;  %v678_v27 = vmul.f32 %v1692_v4, %v670_v29  ;;  %v691_v33 = vmul.f32 %v1695_v50, %v683_v30  ;;  %v694_v53 = vld [vmem:[#allocation2 + $0x10] sm:$0xf]  ;;  %v735_v45 = vadd.f32 %v667_v48, %v655_v21  ;;  %v660_v58 = vld [vmem:[#allocation2 + $0x18] sm:$0xf]  ;;  %v657_v28 = vmul.f32 %v1677_v59, %v649_v49 }
 0x116   : > { %v690_v31 = vmul.f32 %v1695_v50, %v682_v24  ;;  %v706_v34 = vld [vmem:[#allocation2 + $0x11] sm:$0xf]  ;;  %v702_v44 = vmul.f32 %v1680_v54, %v694_v53  ;;  %v734_v60 = vadd.f32 %v666_v26, %v654_v5  ;;  %v672_v63 = vld [vmem:[#allocation2 + $0x19] sm:$0xf]  ;;  %v673_v8 = vld [vmem:[#allocation2 + $0x21] sm:$0xf] }
 0x117   : > { %v718_v40 = vld [vmem:[#allocation2 + $0x12] sm:$0xf]  ;;  %v714_v35 = vmul.f32 %v1683_v62, %v706_v34  ;;  %v739_v36 = vadd.f32 %v691_v33, %v679_v32  ;;  %v747_v1 = vadd.f32 %v735_v45, %v731_v37  ;;  %v684_v10 = vld [vmem:[#allocation2 + $0x1a] sm:$0xf]  ;;  %v685_v13 = vld [vmem:[#allocation2 + $0x22] sm:$0xf]  ;;  %v680_v21 = vmul.f32 %v1692_v4, %v672_v63 }
 0x118   : > { %v726_v38 = vmul.f32 %v1686_v0, %v718_v40  ;;  %v624_v3 = vld [vmem:[#allocation2 + $0x10] sm:$0xf]  ;;  %v738_v46 = vadd.f32 %v690_v31, %v678_v27  ;;  %v746_v52 = vadd.f32 %v734_v60, %v730_v9  ;;  %v668_v9 = vmul.f32 %v1689_v2, %v660_v58  ;;  %v696_v11 = vld [vmem:[#allocation2 + $0x20] sm:$0xf]  ;;  %v721_v30 = vld [vmem:[#allocation2 + $0x2a] sm:$0xf] }
 0x119   : > { %v636_v42 = vld [vmem:[#allocation2 + $0x11] sm:$0xf]  ;;  %v632_v47 = vmul.f32 %v1663_v18, %v624_v3  ;;  %v742_v55 = vadd.f32 %v714_v35, %v702_v44  ;;  %v751_v5 = vadd.f32 %v743_v51, %v739_v36  ;;  %v669_v18 = vmul.f32 %v1689_v2, %v661_v61  ;;  %v708_v17 = vld [vmem:[#allocation2 + $0x21] sm:$0xf]  ;;  %v1047_v41 = vld [vmem:[%s1757_s6] ss:$0 sm:$0xff] }
 0x11a   : > { %v648_v22 = vld [vmem:[#allocation2 + $0x12] sm:$0xf]  ;;  %v644_v57 = vmul.f32 %v1666_v19, %v636_v42  ;;  %v681_v23 = vmul.f32 %v1692_v4, %v673_v8  ;;  %v692_v19 = vmul.f32 %v1695_v50, %v684_v10  ;;  %v693_v24 = vmul.f32 %v1695_v50, %v685_v13  ;;  %v720_v34 = vld [vmem:[#allocation2 + $0x22] sm:$0xf]  ;;  %v1048_v42 = vld [vmem:[%s1759_s8] ss:$0 sm:$0xff] }
 0x11b   : > { %v656_v7 = vmul.f32 %v1677_v59, %v648_v22  ;;  %v750_v14 = vadd.f32 %v742_v55, %v738_v46  ;;  %v755_v16 = vadd.f32 %v751_v5, %v747_v1  ;;  %v704_v39 = vmul.f32 %v1680_v54, %v696_v11 }
 0x11c   : > { %v716_v59 = vmul.f32 %v1683_v62, %v708_v17  ;;  %v732_v43 = vadd.f32 %v644_v57, %v632_v47  ;;  %v745_v2 = vadd.f32 %v1704_v12, %v1701_v15  ;;  %v733_v31 = vadd.f32 %v645_v6, %v633_v56 }
 0x11d   : > { %v754_v29 = vadd.f32 %v750_v14, %v746_v52  ;;  %v759_v26 = vadd.f32 %v755_v16, %v727_v25  ;;  %v736_v51 = vadd.f32 %v668_v9, %v656_v7  ;;  %v737_v48 = vadd.f32 %v669_v18, %v657_v28 }
 0x11e   : > { %v740_v4 = vadd.f32 %v692_v19, %v680_v21  ;;  %v741_v32 = vadd.f32 %v693_v24, %v681_v23  ;;  %v744_v33 = vadd.f32 %v716_v59, %v704_v39  ;;  %v729_v54 = vmul.f32 %v1686_v0, %v721_v30 }
 0x11f   : > { %v758_v27 = vadd.f32 %v754_v29, %v726_v38  ;;  %v748_v50 = vadd.f32 %v736_v51, %v732_v43  ;;  %v749_v40 = vadd.f32 %v737_v48, %v733_v31  ;;  %v728_v37 = vmul.f32 %v1686_v0, %v720_v34 }
 0x120   : > { %v752_v62 = vadd.f32 %v744_v33, %v740_v4  ;;  %v753_v25 = vadd.f32 %v745_v2, %v741_v32 }
 0x121   : > { %v789_v53 = vcombine.low %v758_v27, %v759_v26 }
 0x122   : > { %v756_v15 = vadd.f32 %v752_v62, %v748_v50  ;;  %v757_v12 = vadd.f32 %v753_v25, %v749_v40 }
 0x123   : > { %1174 = vmatprep.mubr.f32.mxu1 %v789_v53  ;;  %v1211_v60 = vpop.f32.mrb[2].mxu0 }
 0x124   : > { %v760_v44 = vadd.f32 %v756_v15, %v728_v37  ;;  %v761_v35 = vadd.f32 %v757_v12, %v729_v54  ;;  %v967_v3 = vpop.f32.mrb[3].mxu0  ;;  %v973_v36 = vadd.f32 %v1211_v60, %v1048_v42 }
 0x125   : > { %v968_v20 = vadd.f32 %v1048_v42, %v967_v3 }
 0x126   : > { %v790_v38 = vcombine.low %v760_v44, %v761_v35 }
 0x128   : > { %1175 = vmatmul.mubr.f32.vlgmr.msra.gmra.mrb[0].mxu1 %v790_v38 }
 0x1fb   : > { %v1176_v45 = vpop.f32.mrb[0].mxu1 }
 0x1fc   : > { %v865_v46 = vadd.f32 %v1176_v45, %v1047_v41  ;;  %v859_v0 = vpop.f32.mrb[1].mxu1 }
 0x1fd   : > { %v860_v47 = vadd.f32 %v1047_v41, %v859_v0 }
 0x1fe   : > { %v869_v22 = vmax.f32 %v865_v46, 0.0 }
 0x1ff   : > { %v868_v49 = vmax.f32 %v860_v47, 0.0 }
 0x200   : > { %v977_v55 = vadd.f32 %v973_v36, %v869_v22 }
 0x201   : > { %v976_v52 = vadd.f32 %v968_v20, %v868_v49 }
 0x202   : > { %v979_v56 = vmax.f32 %v977_v55, 0.0 }
 0x203   : > { %v978_v57 = vmax.f32 %v976_v52, 0.0 }
 0x204   : > { %981 = vst [vmem:[%s332_s23 + $0x8] sm:$0xff] %v979_v56 }
 0x205   : > { %980 = vst [vmem:[%s332_s23] sm:$0xff] %v978_v57 }
 0x206 PF: > { %s19_s30 = sadd.s32 1, %s1325_s30  }
 0x207   : > { %p16_p4 = scmp.ge.s32.totalorder %s19_s30, 4  }
 0x209   :  { %18 = sbr.rel (!%p16_p4) target bundleno = 1 (0x1), region = 89 }

// kernel: densebox_forward.25
= control target key start
LH: loop header
LB: loop body
LE: loop exit
PB: predicated region body
PF: predicated region fallthrough
CT: control target
= control target key end

     0   :  { %s633_s15 = smov 0   ;;  %s733_s0 = inlined_call_operand.vmem [shape: f32[2,4,4,128], index: 0, kind: input, shape index: {}]   ;;  %s734_s1 = inlined_call_operand.vmem [shape: f32[3,3,128], index: 1, kind: input, shape index: {}]   ;;  %s735_s2 = inlined_call_operand.vmem [shape: f32[128,128], index: 2, kind: input, shape index: {}]   ;;  %s736_s3 = inlined_call_operand.vmem [shape: f32[1,128], index: 3, kind: input, shape index: {}]   ;;  %s737_s4 = inlined_call_operand.vmem [shape: f32[2,4,128], index: 4, kind: output, shape index: {}]  }
   0x1 LB: > { %s496_s16 = sadd.s32 4294967295, %s602_s15   ;;  %p500_p0 = scmp.ge.s32.totalorder %s602_s15, 1  ;;  %s602_s15 = sphi %s633_s15, %s14_s15  }
   0x2   : > { %p162_p1 = scmp.lt.s32.totalorder %s602_s15, 3 }
   0x4   : > { %p163_p2 = pnand %p500_p0, %p162_p1 }
   0x5   : > { %v327_v0 = vld [vmem:[%s735_s2] sm:$0xff] (!%p163_p2)  ;;  %v328_v1 = vld [vmem:[%s735_s2 + $0x8] sm:$0xff] (!%p163_p2)  ;;  %v329_v2 = vld [vmem:[%s735_s2 + $0x10] sm:$0xff] (!%p163_p2)  ;;  %v226_v3 = vlaneseq (!%p163_p2)  ;;  %v604_v4 = vmov (!%p163_p2), 0.0|0.0   ;;  %vm605_vm0 = vmmov (!%p163_p2), 0   ;;  %v606_v7 = vmov (!%p163_p2), 0.0  }
   0x6   : > { %166 = sbr.rel (%p163_p2) target bundleno = 262 (0x106), region = 36  ;;  %560 = vmatprep.subr.bf16.mxu0 (!%p163_p2), %v604_v4  ;;  %v561_v5 = vpack.c.bf16 (!%p163_p2), %v328_v1, %v327_v0  ;;  %v330_v6 = vld [vmem:[%s735_s2 + $0x18] sm:$0xff] (!%p163_p2)  ;;  %557 = vmatprep.mubr.msk.f32.mxu0 (!%p163_p2), %vm605_vm0, %v606_v7  ;;  %196 = vst [vmem:[#allocation2] sm:$0x3f] (!%p163_p2), %v606_v7  ;;  %200 = vst [vmem:[#allocation2 + $0x8] sm:$0x1] (!%p163_p2), %v606_v7 }
   0x7   : > { %201 = vst [vmem:[#allocation2 + $0x10] sm:$0x1] (!%p163_p2), %v606_v7  ;;  %202 = vst [vmem:[#allocation2 + $0x18] sm:$0x1] (!%p163_p2), %v606_v7  ;;  %p187_p3 = scmp.lt.s32.totalorder (!%p163_p2), %s496_s16, 1  ;;  %v654_v8 = vshrl.u32 (!%p163_p2), %v226_v3, 7  ;;  %v564_v9 = vpack.c.bf16 (!%p163_p2), %v330_v6, %v329_v2 }
   0x8   : > { %203 = vst [vmem:[#allocation2 + $0x20] sm:$0x1] (!%p163_p2), %v606_v7  ;;  %199 = vst [vmem:[#allocation2] sm:$0x1] (!%p163_p2), %v606_v7  ;;  %562 = vmatpush3.bf16.msra.mxu0 (!%p163_p2), %v561_v5  ;;  %v331_v10 = vld [vmem:[%s735_s2 + $0x20] sm:$0xff] (!%p163_p2)  ;;  %v332_v11 = vld [vmem:[%s735_s2 + $0x28] sm:$0xff] (!%p163_p2) }
   0x9   : > { %563 = vmatprep.subr.bf16.mxu0 (!%p163_p2), %v604_v4  ;;  %v333_v12 = vld [vmem:[%s735_s2 + $0x30] sm:$0xff] (!%p163_p2)  ;;  %v228_v13 = vsub.s32 (!%p163_p2), 0, %v654_v8  ;;  %v238_v14 = vsub.s32 (!%p163_p2), 1, %v654_v8  ;;  %v675_v15 = vsub.s32 (!%p163_p2), 2, %v654_v8  ;;  %v567_v16 = vpack.c.bf16 (!%p163_p2), %v332_v11, %v331_v10  ;;  %v334_v20 = vld [vmem:[%s735_s2 + $0x38] sm:$0xff] (!%p163_p2)  ;;  %v335_v25 = vld [vmem:[%s735_s2 + $0x40] sm:$0xff] (!%p163_p2) }
   0xa   : > { %v220_v22 = vld [vmem:[%s734_s1] sm:$0x7] (!%p163_p2)  ;;  %v221_v23 = vld [vmem:[%s734_s1 + $0x4] sm:$0x7] (!%p163_p2)  ;;  %v570_v24 = vpack.c.bf16 (!%p163_p2), %v334_v20, %v333_v12  ;;  %v336_v26 = vld [vmem:[%s735_s2 + $0x48] sm:$0xff] (!%p163_p2) }
   0xb   : > { %v229_v27 = vrot.slane (!%p163_p2), %v220_v22, %v228_v13  ;;  %v239_v29 = vrot.slane (!%p163_p2), %v220_v22, %v238_v14  ;;  %v249_v30 = vrot.slane (!%p163_p2), %v220_v22, %v675_v15  ;;  %v222_v33 = vld [vmem:[%s734_s1 + $0x8] sm:$0x7] (!%p163_p2)  ;;  %v258_v34 = vrot.slane (!%p163_p2), %v221_v23, %v228_v13  ;;  %v337_v36 = vld [vmem:[%s735_s2 + $0x50] sm:$0xff] (!%p163_p2)  ;;  %v338_v37 = vld [vmem:[%s735_s2 + $0x58] sm:$0xff] (!%p163_p2) }
   0xc   : > { %565 = vmatpush3.bf16.msra.mxu0 (!%p163_p2), %v564_v9  ;;  %v573_v35 = vpack.c.bf16 (!%p163_p2), %v336_v26, %v335_v25  ;;  %v268_v38 = vrot.slane (!%p163_p2), %v221_v23, %v238_v14  ;;  %v278_v44 = vrot.slane (!%p163_p2), %v221_v23, %v675_v15  ;;  %v288_v49 = vrot.slane (!%p163_p2), %v222_v33, %v228_v13  ;;  %v339_v56 = vld [vmem:[%s735_s2 + $0x60] sm:$0xff] (!%p163_p2)  ;;  %v340_v57 = vld [vmem:[%s735_s2 + $0x68] sm:$0xff] (!%p163_p2) }
   0xd   : > { %s739_s16 = smov (!%p187_p3, %s496_s16), 1  ;;  %566 = vmatprep.subr.bf16.mxu0 %v604_v4  ;;  %v233_v28 = vld [vmem:[#allocation2 + $0x1] ss:$2 sm:$0x3]  ;;  %v298_v54 = vrot.slane %v222_v33, %v238_v14  ;;  %v576_v55 = vpack.c.bf16 %v338_v37, %v337_v36  ;;  %v579_v23 = vpack.c.bf16 %v340_v57, %v339_v56 }
   0xe   : > { %s507_s29 = sshll.u32 %s739_s16, 4  ;;  %v243_v32 = vld [vmem:[#allocation2 + $0x2] ss:$2 sm:$0x3]  ;;  %v240_v42 = vmul.f32 %v239_v29, %v233_v28  ;;  %s503_s11 = sshll.u32 %s739_s16, 2 }
   0xf   : > { %s191_s8 = scalar_lea.vmem %s733_s0, %s507_s29  ;;  %v223_v31 = vld [vmem:[#allocation2] ss:$2 sm:$0x3]  ;;  %v250_v43 = vmul.f32 %v249_v30, %v243_v32  ;;  %s195_s14 = scalar_lea.vmem %s737_s4, %s503_s11 }
  0x10   : > { %v211_v17 = vld [vmem:[%s191_s8] sm:$0xf]  ;;  %v212_v18 = vld [vmem:[%s191_s8 + $0x4] sm:$0xf]  ;;  %v213_v19 = vld [vmem:[%s191_s8 + $0x8] sm:$0xf]  ;;  %568 = vmatpush3.bf16.msra.mxu0 %v567_v16  ;;  %v230_v40 = vmul.f32 %v229_v27, %v223_v31  ;;  %v308_v16 = vrot.slane %v222_v33, %v675_v15 }
  0x11   : > { %v214_v21 = vld [vmem:[%s191_s8 + $0xc] sm:$0xf]  ;;  %216 = vst [vmem:[#allocation2 + $0x9] sm:$0xf] %v211_v17  ;;  %217 = vst [vmem:[#allocation2 + $0x11] sm:$0xf] %v212_v18  ;;  %569 = vmatprep.subr.bf16.mxu0 %v604_v4 }
  0x12   : > { %218 = vst [vmem:[#allocation2 + $0x19] sm:$0xf] %v213_v19  ;;  %219 = vst [vmem:[#allocation2 + $0x21] sm:$0xf] %v214_v21  ;;  %v311_v2 = vadd.f32 %v240_v42, %v230_v40  ;;  %v607_v21 = vmov 1983009808  }
  0x13   : > { %v354_v22 = vunpack.c.l.s4 %v607_v21  ;;  %v342_v15 = vld [vmem:[%s735_s2 + $0x78] sm:$0xff] }
  0x14   : > { %571 = vmatpush3.bf16.msra.mxu0 %v570_v24 }
  0x15   : > { %572 = vmatprep.subr.bf16.mxu0 %v604_v4 }
  0x18   : > { %v225_v39 = vld [vmem:[#allocation2 + $0x10] ss:$2 sm:$0x3]  ;;  %v235_v41 = vld [vmem:[#allocation2 + $0x11] ss:$2 sm:$0x3]  ;;  %574 = vmatpush3.bf16.msra.mxu0 %v573_v35 }
  0x19   : > { %v231_v45 = vmul.f32 %v229_v27, %v225_v39  ;;  %v241_v46 = vmul.f32 %v239_v29, %v235_v41  ;;  %v245_v47 = vld [vmem:[#allocation2 + $0x12] ss:$2 sm:$0x3]  ;;  %v252_v48 = vld [vmem:[#allocation2 + $0x8] ss:$2 sm:$0x3]  ;;  %575 = vmatprep.subr.bf16.mxu0 %v604_v4 }
  0x1a   : > { %v251_v50 = vmul.f32 %v249_v30, %v245_v47  ;;  %v254_v51 = vld [vmem:[#allocation2 + $0x18] ss:$2 sm:$0x3]  ;;  %v259_v52 = vmul.f32 %v258_v34, %v252_v48  ;;  %v262_v53 = vld [vmem:[#allocation2 + $0x9] ss:$2 sm:$0x3] }
  0x1b   : > { %v260_v58 = vmul.f32 %v258_v34, %v254_v51  ;;  %v264_v59 = vld [vmem:[#allocation2 + $0x19] ss:$2 sm:$0x3]  ;;  %v269_v60 = vmul.f32 %v268_v38, %v262_v53  ;;  %v272_v61 = vld [vmem:[#allocation2 + $0xa] ss:$2 sm:$0x3]  ;;  %v312_v10 = vadd.f32 %v241_v46, %v231_v45  ;;  %v355_v34 = vunpack.c.0.s8 %v354_v22 }
  0x1c   : > { %v270_v62 = vmul.f32 %v268_v38, %v264_v59  ;;  %v274_v63 = vld [vmem:[#allocation2 + $0x1a] ss:$2 sm:$0x3]  ;;  %v279_v0 = vmul.f32 %v278_v44, %v272_v61  ;;  %v282_v1 = vld [vmem:[#allocation2 + $0x10] ss:$2 sm:$0x3]  ;;  %v313_v3 = vadd.f32 %v259_v52, %v250_v43  ;;  %577 = vmatpush3.bf16.msra.mxu0 %v576_v55 }
  0x1d   : > { %v280_v5 = vmul.f32 %v278_v44, %v274_v63  ;;  %v284_v6 = vld [vmem:[#allocation2 + $0x20] ss:$2 sm:$0x3]  ;;  %v289_v7 = vmul.f32 %v288_v49, %v282_v1  ;;  %v292_v9 = vld [vmem:[#allocation2 + $0x11] ss:$2 sm:$0x3]  ;;  %v314_v11 = vadd.f32 %v260_v58, %v251_v50  ;;  %578 = vmatprep.subr.bf16.mxu0 %v604_v4  ;;  %v358_v40 = vsub.s32 %v355_v34, %v654_v8 }
  0x1e   : > { %v290_v12 = vmul.f32 %v288_v49, %v284_v6  ;;  %v294_v13 = vld [vmem:[#allocation2 + $0x21] ss:$2 sm:$0x3]  ;;  %v299_v14 = vmul.f32 %v298_v54, %v292_v9  ;;  %v315_v17 = vadd.f32 %v279_v0, %v269_v60  ;;  %v302_v19 = vld [vmem:[#allocation2 + $0x12] ss:$2 sm:$0x3]  ;;  %v319_v26 = vadd.f32 %v313_v3, %v311_v2 }
  0x1f   : > { %v300_v18 = vmul.f32 %v298_v54, %v294_v13  ;;  %v316_v20 = vadd.f32 %v280_v5, %v270_v62  ;;  %v304_v24 = vld [vmem:[#allocation2 + $0x22] ss:$2 sm:$0x3]  ;;  %v341_v27 = vld [vmem:[%s735_s2 + $0x70] sm:$0xff]  ;;  %v320_v29 = vadd.f32 %v314_v11, %v312_v10  ;;  %v309_v30 = vmul.f32 %v308_v16, %v302_v19  ;;  %v504_v43 = vld [vmem:[%s736_s3] ss:$0 sm:$0xff] }
  0x20   : > { %v317_v25 = vadd.f32 %v299_v14, %v289_v7  ;;  %v310_v32 = vmul.f32 %v308_v16, %v304_v24  ;;  %580 = vmatpush3.bf16.msra.mxu0 %v579_v23  ;;  %v582_v35 = vpack.c.bf16 %v342_v15, %v341_v27 }
  0x21   : > { %v318_v28 = vadd.f32 %v300_v18, %v290_v12  ;;  %581 = vmatprep.subr.bf16.mxu0 %v604_v4 }
  0x22   : > { %v321_v31 = vadd.f32 %v317_v25, %v315_v17 }
  0x23   : > { %v322_v33 = vadd.f32 %v318_v28, %v316_v20 }
  0x24   : > { %v323_v36 = vadd.f32 %v321_v31, %v319_v26  ;;  %583 = vmatpush3.bf16.msra.mxu0 %v582_v35 }
  0x25   : > { %v324_v37 = vadd.f32 %v322_v33, %v320_v29 }
  0x26   : > { %v325_v38 = vadd.f32 %v323_v36, %v309_v30 }
  0x27   : > { %v326_v39 = vadd.f32 %v324_v37, %v310_v32 }
  0x29   : > { %v352_v41 = vcombine.low %v325_v38, %v326_v39 }
  0x2b   : > { %v359_v42 = vrot.slane %v352_v41, %v358_v40 }
  0x2d   : > { %558 = vmatmul.mubr.f32.vlgmr.msra.gmra.mrb[0].mxu0 %v359_v42 }
 0x100   : > { %v427_v44 = vpop.f32.mrb[0].mxu0 }
 0x101   : > { %v428_v45 = vadd.f32 %v504_v43, %v427_v44  ;;  %v559_v46 = vpop.f32.mrb[1].mxu0 }
 0x103   : > { %v431_v4 = vmax.f32 %v428_v45, 0.0 }
 0x105   : > { %432 = vst [vmem:[%s195_s14] sm:$0xf] %v431_v4 }
 0x106 PF: > { %s14_s15 = sadd.s32 1, %s602_s15  }
 0x107   : > { %p11_p4 = scmp.ge.s32.totalorder %s14_s15, 4  }
 0x109   :  { %13 = sbr.rel (!%p11_p4) target bundleno = 1 (0x1), region = 84 }

// kernel: densebox_forward.24
= control target key start
LH: loop header
LB: loop body
LE: loop exit
PB: predicated region body
PF: predicated region fallthrough
CT: control target
= control target key end

     0   :  { %s1128_s24 = smov 0   ;;  %s1450_s0 = inlined_call_operand.vmem [shape: f32[2,4,4,128], index: 0, kind: input, shape index: {}]   ;;  %s1451_s1 = inlined_call_operand.vmem [shape: f32[3,3,128], index: 1, kind: input, shape index: {}]   ;;  %s1452_s2 = inlined_call_operand.vmem [shape: f32[128,128], index: 2, kind: input, shape index: {}]   ;;  %s1453_s3 = inlined_call_operand.vmem [shape: f32[1,128], index: 3, kind: input, shape index: {}]   ;;  %s1454_s4 = inlined_call_operand.vmem [shape: f32[3,3,128], index: 4, kind: input, shape index: {}]   ;;  %s1455_s5 = inlined_call_operand.vmem [shape: f32[128,128], index: 5, kind: input, shape index: {}]   ;;  %s1456_s6 = inlined_call_operand.vmem [shape: f32[1,128], index: 6, kind: input, shape index: {}]   ;;  %s1457_s7 = inlined_call_operand.vmem [shape: f32[2,16,128], index: 7, kind: output, shape index: {}]  }
   0x1 LB: > { %s883_s25 = sadd.s32 4294967295, %s1085_s24   ;;  %p887_p0 = scmp.ge.s32.totalorder %s1085_s24, 1  ;;  %s1085_s24 = sphi %s1128_s24, %s17_s24  }
   0x2   : > { %p237_p1 = scmp.lt.s32.totalorder %s1085_s24, 3 }
   0x4   : > { %p238_p2 = pnand %p887_p0, %p237_p1 }
   0x5   : > { %v447_v0 = vld [vmem:[%s1452_s2] sm:$0xff] (!%p238_p2)  ;;  %v448_v1 = vld [vmem:[%s1452_s2 + $0x8] sm:$0xff] (!%p238_p2)  ;;  %v449_v2 = vld [vmem:[%s1452_s2 + $0x10] sm:$0xff] (!%p238_p2)  ;;  %p1145_p3 = scmp.lt.s32.totalorder (!%p238_p2), %s883_s25, 1  ;;  %v310_v3 = vlaneseq (!%p238_p2)  ;;  %v1087_v6 = vmov (!%p238_p2), 0.0  }
   0x6   : > { %241 = sbr.rel (%p238_p2) target bundleno = 516 (0x204), region = 48  ;;  %v1004_v4 = vpack.c.bf16 (!%p238_p2), %v448_v1, %v447_v0  ;;  %v450_v5 = vld [vmem:[%s1452_s2 + $0x18] sm:$0xff] (!%p238_p2)  ;;  %283 = vst [vmem:[#allocation2] sm:$0x3f] (!%p238_p2), %v1087_v6  ;;  %287 = vst [vmem:[#allocation2 + $0x8] sm:$0x1] (!%p238_p2), %v1087_v6 }
   0x7   : > { %288 = vst [vmem:[#allocation2 + $0x10] sm:$0x1] (!%p238_p2), %v1087_v6  ;;  %289 = vst [vmem:[#allocation2 + $0x18] sm:$0x1] (!%p238_p2), %v1087_v6  ;;  %v1008_v7 = vpack.c.bf16 (!%p238_p2), %v450_v5, %v449_v2  ;;  %v451_v8 = vld [vmem:[%s1452_s2 + $0x20] sm:$0xff] (!%p238_p2)  ;;  %v452_v9 = vld [vmem:[%s1452_s2 + $0x28] sm:$0xff] (!%p238_p2) }
   0x8   : > { %293 = vst [vmem:[#allocation2 + $0xd] sm:$0x1] (!%p238_p2), %v1087_v6  ;;  %294 = vst [vmem:[#allocation2 + $0x15] sm:$0x1] (!%p238_p2), %v1087_v6  ;;  %v311_v10 = vshrl.u32 (!%p238_p2), %v310_v3, 7  ;;  %1005 = vmatprep.subr.bf16.mxu0 (!%p238_p2), %v1004_v4  ;;  %v1012_v13 = vpack.c.bf16 (!%p238_p2), %v452_v9, %v451_v8  ;;  %v453_v14 = vld [vmem:[%s1452_s2 + $0x30] sm:$0xff] (!%p238_p2) }
   0x9   : > { %295 = vst [vmem:[#allocation2 + $0x1d] sm:$0x1] (!%p238_p2), %v1087_v6  ;;  %285 = vst [vmem:[#allocation2 + $0x28] sm:$0x3f] (!%p238_p2), %v1087_v6  ;;  %1007 = vmatpush3.bf16.msra.mxu0 (!%p238_p2), %v1004_v4  ;;  %v454_v15 = vld [vmem:[%s1452_s2 + $0x38] sm:$0xff] (!%p238_p2)  ;;  %v708_v23 = vld [vmem:[%s1455_s5] sm:$0xff] (!%p238_p2) }
   0xa   : > { %290 = vst [vmem:[#allocation2 + $0x20] sm:$0x1] (!%p238_p2), %v1087_v6  ;;  %296 = vst [vmem:[#allocation2 + $0x25] sm:$0x1] (!%p238_p2), %v1087_v6  ;;  %v1163_v11 = vsub.s32 (!%p238_p2), 0, %v311_v10  ;;  %v1165_v12 = vsub.s32 (!%p238_p2), 1, %v311_v10  ;;  %1009 = vmatprep.subr.bf16.mxu0 (!%p238_p2), %v1008_v7  ;;  %v1016_v31 = vpack.c.bf16 (!%p238_p2), %v454_v15, %v453_v14 }
   0xb   : > { %286 = vst [vmem:[#allocation2] sm:$0x1] (!%p238_p2), %v1087_v6  ;;  %292 = vst [vmem:[#allocation2 + $0x5] sm:$0x1] (!%p238_p2), %v1087_v6  ;;  %v303_v16 = vld [vmem:[%s1451_s1] sm:$0x7] (!%p238_p2) }
   0xc   : > { %291 = vst [vmem:[#allocation2 + $0x28] sm:$0x1] (!%p238_p2), %v1087_v6  ;;  %297 = vst [vmem:[#allocation2 + $0x2d] sm:$0x1] (!%p238_p2), %v1087_v6  ;;  %v1181_v17 = vsub.s32 (!%p238_p2), 2, %v311_v10  ;;  %v455_v24 = vld [vmem:[%s1452_s2 + $0x40] sm:$0xff] (!%p238_p2)  ;;  %v1213_v28 = vrot.slane (!%p238_p2), %v303_v16, %v1163_v11  ;;  %v1216_v29 = vrot.slane (!%p238_p2), %v303_v16, %v1165_v12 }
   0xd   : > { %s1460_s25 = smov (!%p1145_p3, %s883_s25), 1  ;;  %v305_v21 = vld [vmem:[%s1451_s1 + $0x8] sm:$0x7]  ;;  %1011 = vmatpush3.bf16.msra.mxu0 %v1008_v7  ;;  %v457_v26 = vld [vmem:[%s1452_s2 + $0x50] sm:$0xff]  ;;  %v304_v27 = vld [vmem:[%s1451_s1 + $0x4] sm:$0x7] }
   0xe   : > { %s896_s16 = sshll.u32 %s1460_s25, 4  ;;  %v456_v25 = vld [vmem:[%s1452_s2 + $0x48] sm:$0xff]  ;;  %1013 = vmatprep.subr.bf16.mxu0 %v1012_v13  ;;  %v458_v32 = vld [vmem:[%s1452_s2 + $0x58] sm:$0xff]  ;;  %v318_v34 = vld [vmem:[#allocation2 + $0x1] sm:$0xf]  ;;  %v1235_v39 = vrot.slane %v303_v16, %v1181_v17  ;;  %v1238_v40 = vrot.slane %v305_v21, %v1163_v11  ;;  %v1244_v43 = vrot.slane %v304_v27, %v1163_v11  ;;  %v1247_v44 = vrot.slane %v305_v21, %v1165_v12 }
   0xf   : > { %s273_s23 = scalar_lea.vmem %s1450_s0, %s896_s16  ;;  %v709_v30 = vld [vmem:[%s1455_s5 + $0x8] sm:$0xff]  ;;  %v459_v36 = vld [vmem:[%s1452_s2 + $0x60] sm:$0xff]  ;;  %v461_v38 = vld [vmem:[%s1452_s2 + $0x70] sm:$0xff]  ;;  %v326_v47 = vmul.f32 %v1216_v29, %v318_v34  ;;  %v1252_v48 = vrot.slane %v304_v27, %v1165_v12  ;;  %v1020_v50 = vpack.c.bf16 %v456_v25, %v455_v24  ;;  %v1254_v51 = vpack.c.bf16 %v458_v32, %v457_v26  ;;  %s278_s9 = scalar_lea.vmem %s1457_s7, %s896_s16 }
  0x10   : > { %v1183_v18 = vld [vmem:[%s273_s23] sm:$0xf]  ;;  %v1185_v19 = vld [vmem:[%s273_s23 + $0x4] sm:$0xf]  ;;  %v1187_v20 = vld [vmem:[%s273_s23 + $0x8] sm:$0xf]  ;;  %v1036_v35 = vpack.c.bf16 %v709_v30, %v708_v23  ;;  %v1259_v53 = vrot.slane %v304_v27, %v1181_v17  ;;  %v1265_v59 = vrot.slane %v305_v21, %v1181_v17 }
  0x11   : > { %299 = vst [vmem:[#allocation2 + $0x9] sm:$0xf] %v1183_v18  ;;  %300 = vst [vmem:[#allocation2 + $0x11] sm:$0xf] %v1185_v19  ;;  %v1195_v22 = vld [vmem:[%s273_s23 + $0xc] sm:$0xf]  ;;  %1015 = vmatpush3.bf16.msra.mxu0 %v1012_v13 }
  0x12   : > { %301 = vst [vmem:[#allocation2 + $0x19] sm:$0xf] %v1187_v20  ;;  %302 = vst [vmem:[#allocation2 + $0x21] sm:$0xf] %v1195_v22  ;;  %v306_v33 = vld [vmem:[#allocation2] sm:$0xf]  ;;  %1037 = vmatprep.subr.bf16.mxu1 %v1036_v35  ;;  %1017 = vmatprep.subr.bf16.mxu0 %v1016_v31 }
  0x13   : > { %v460_v37 = vld [vmem:[%s1452_s2 + $0x68] sm:$0xff]  ;;  %v462_v41 = vld [vmem:[%s1452_s2 + $0x78] sm:$0xff]  ;;  %v330_v42 = vld [vmem:[#allocation2 + $0x2] sm:$0xf]  ;;  %v314_v46 = vmul.f32 %v1213_v28, %v306_v33  ;;  %1039 = vmatpush3.bf16.msra.mxu1 %v1036_v35 }
  0x14   : > { %v382_v45 = vld [vmem:[#allocation2 + $0x28] sm:$0xf]  ;;  %v1256_v52 = vpack.c.bf16 %v460_v37, %v459_v36  ;;  %v1261_v54 = vpack.c.bf16 %v462_v41, %v461_v38  ;;  %v338_v58 = vmul.f32 %v1235_v39, %v330_v42 }
  0x15   : > { %v394_v49 = vld [vmem:[#allocation2 + $0x29] sm:$0xf]  ;;  %v1268_v60 = vmul.f32 %v1238_v40, %v382_v45  ;;  %1019 = vmatpush3.bf16.msra.mxu0 %v1016_v31  ;;  %v415_v10 = vadd.f32 %v326_v47, %v314_v46 }
  0x16   : > { %v1274_v3 = vmul.f32 %v1247_v44, %v394_v49  ;;  %1021 = vmatprep.subr.bf16.mxu0 %v1020_v50 }
  0x18   : > { %v307_v55 = vld [vmem:[#allocation2 + $0x8] sm:$0xf]  ;;  %v343_v1 = vld [vmem:[#allocation2 + $0x10] sm:$0xf] }
  0x19   : > { %v319_v56 = vld [vmem:[#allocation2 + $0x9] sm:$0xf]  ;;  %v315_v61 = vmul.f32 %v1213_v28, %v307_v55  ;;  %v351_v5 = vmul.f32 %v1244_v43, %v343_v1  ;;  %v355_v6 = vld [vmem:[#allocation2 + $0x11] sm:$0xf]  ;;  %v380_v21 = vld [vmem:[#allocation2 + $0x18] sm:$0xf]  ;;  %1023 = vmatpush3.bf16.msra.mxu0 %v1020_v50 }
  0x1a   : > { %v331_v57 = vld [vmem:[#allocation2 + $0xa] sm:$0xf]  ;;  %v327_v62 = vmul.f32 %v1216_v29, %v319_v56  ;;  %v367_v9 = vld [vmem:[#allocation2 + $0x12] sm:$0xf]  ;;  %v363_v13 = vmul.f32 %v1252_v48, %v355_v6  ;;  %v388_v26 = vmul.f32 %v1238_v40, %v380_v21  ;;  %v392_v27 = vld [vmem:[#allocation2 + $0x19] sm:$0xf]  ;;  %1025 = vmatprep.subr.bf16.mxu0 %v1254_v51 }
  0x1b   : > { %v339_v63 = vmul.f32 %v1235_v39, %v331_v57  ;;  %v342_v0 = vld [vmem:[#allocation2 + $0x8] sm:$0xf]  ;;  %v375_v15 = vmul.f32 %v1259_v53, %v367_v9  ;;  %v379_v16 = vld [vmem:[#allocation2 + $0x10] sm:$0xf]  ;;  %v404_v32 = vld [vmem:[#allocation2 + $0x1a] sm:$0xf]  ;;  %v400_v34 = vmul.f32 %v1247_v44, %v392_v27 }
  0x1c   : > { %v354_v2 = vld [vmem:[#allocation2 + $0x9] sm:$0xf]  ;;  %v350_v4 = vmul.f32 %v1244_v43, %v342_v0  ;;  %v391_v23 = vld [vmem:[#allocation2 + $0x11] sm:$0xf]  ;;  %v416_v24 = vadd.f32 %v327_v62, %v315_v61  ;;  %v387_v25 = vmul.f32 %v1238_v40, %v379_v16  ;;  %v412_v36 = vmul.f32 %v1265_v59, %v404_v32  ;;  %v309_v41 = vld [vmem:[#allocation2 + $0x18] sm:$0xf] }
  0x1d   : > { %v362_v7 = vmul.f32 %v1252_v48, %v354_v2  ;;  %v366_v8 = vld [vmem:[#allocation2 + $0xa] sm:$0xf]  ;;  %v399_v30 = vmul.f32 %v1247_v44, %v391_v23  ;;  %v403_v31 = vld [vmem:[#allocation2 + $0x12] sm:$0xf]  ;;  %v420_v37 = vadd.f32 %v351_v5, %v339_v63  ;;  %v424_v46 = vadd.f32 %v375_v15, %v363_v13  ;;  %v321_v55 = vld [vmem:[#allocation2 + $0x19] sm:$0xf]  ;;  %1027 = vmatpush3.bf16.msra.mxu0 %v1254_v51 }
  0x1e   : > { %v374_v14 = vmul.f32 %v1259_v53, %v366_v8  ;;  %v419_v33 = vadd.f32 %v350_v4, %v338_v58  ;;  %v411_v35 = vmul.f32 %v1265_v59, %v403_v31  ;;  %v308_v38 = vld [vmem:[#allocation2 + $0x10] sm:$0xf]  ;;  %v333_v57 = vld [vmem:[#allocation2 + $0x1a] sm:$0xf]  ;;  %v428_v58 = vadd.f32 %v400_v34, %v388_v26  ;;  %v345_v1 = vld [vmem:[#allocation2 + $0x20] sm:$0xf]  ;;  %1029 = vmatprep.subr.bf16.mxu0 %v1256_v52 }
  0x1f   : > { %v320_v42 = vld [vmem:[#allocation2 + $0x11] sm:$0xf]  ;;  %v427_v47 = vadd.f32 %v399_v30, %v387_v25  ;;  %v432_v61 = vadd.f32 %v420_v37, %v416_v24  ;;  %v316_v62 = vmul.f32 %v1213_v28, %v308_v38  ;;  %v317_v0 = vmul.f32 %v1213_v28, %v309_v41  ;;  %v344_v63 = vld [vmem:[#allocation2 + $0x18] sm:$0xf]  ;;  %v369_v9 = vld [vmem:[#allocation2 + $0x22] sm:$0xf] }
  0x20   : > { %v423_v45 = vadd.f32 %v374_v14, %v362_v7  ;;  %v431_v49 = vadd.f32 %v419_v33, %v415_v10  ;;  %v332_v56 = vld [vmem:[#allocation2 + $0x12] sm:$0xf]  ;;  %v356_v2 = vld [vmem:[#allocation2 + $0x19] sm:$0xf]  ;;  %v328_v50 = vmul.f32 %v1216_v29, %v320_v42  ;;  %v329_v5 = vmul.f32 %v1216_v29, %v321_v55  ;;  %v357_v7 = vld [vmem:[#allocation2 + $0x21] sm:$0xf] }
  0x21   : > { %v340_v6 = vmul.f32 %v1235_v39, %v332_v56  ;;  %v368_v8 = vld [vmem:[#allocation2 + $0x1a] sm:$0xf]  ;;  %v436_v10 = vadd.f32 %v428_v58, %v424_v46  ;;  %v341_v13 = vmul.f32 %v1235_v39, %v333_v57  ;;  %v352_v14 = vmul.f32 %v1244_v43, %v344_v63  ;;  %v381_v15 = vld [vmem:[#allocation2 + $0x20] sm:$0xf]  ;;  %1031 = vmatpush3.bf16.msra.mxu0 %v1256_v52  ;;  %v710_v55 = vld [vmem:[%s1455_s5 + $0x10] sm:$0xff] }
  0x22   : > { %v435_v4 = vadd.f32 %v427_v47, %v423_v45  ;;  %v353_v28 = vmul.f32 %v1244_v43, %v345_v1  ;;  %v393_v16 = vld [vmem:[#allocation2 + $0x21] sm:$0xf]  ;;  %v364_v23 = vmul.f32 %v1252_v48, %v356_v2  ;;  %v365_v29 = vmul.f32 %v1252_v48, %v357_v7  ;;  %v406_v48 = vld [vmem:[#allocation2 + $0x2a] sm:$0xf]  ;;  %1033 = vmatprep.subr.bf16.mxu0 %v1261_v54  ;;  %v711_v56 = vld [vmem:[%s1455_s5 + $0x18] sm:$0xff] }
  0x23   : > { %v376_v24 = vmul.f32 %v1259_v53, %v368_v8  ;;  %v440_v25 = vadd.f32 %v436_v10, %v432_v61  ;;  %v377_v39 = vmul.f32 %v1259_v53, %v369_v9  ;;  %v389_v26 = vmul.f32 %v1238_v40, %v381_v15  ;;  %v405_v33 = vld [vmem:[#allocation2 + $0x22] sm:$0xf]  ;;  %v713_v57 = vld [vmem:[%s1455_s5 + $0x28] sm:$0xff]  ;;  %v714_v61 = vld [vmem:[%s1455_s5 + $0x30] sm:$0xff] }
  0x24   : > { %v439_v21 = vadd.f32 %v435_v4, %v431_v49  ;;  %v401_v43 = vmul.f32 %v1247_v44, %v393_v16  ;;  %v417_v30 = vadd.f32 %v328_v50, %v316_v62  ;;  %v418_v31 = vadd.f32 %v329_v5, %v317_v0  ;;  %v715_v62 = vld [vmem:[%s1455_s5 + $0x38] sm:$0xff]  ;;  %v716_v63 = vld [vmem:[%s1455_s5 + $0x40] sm:$0xff]  ;;  %v717_v1 = vld [vmem:[%s1455_s5 + $0x48] sm:$0xff] }
  0x25   : > { %v430_v51 = vadd.f32 %v1274_v3, %v1268_v60  ;;  %v444_v32 = vadd.f32 %v440_v25, %v412_v36  ;;  %v421_v34 = vadd.f32 %v352_v14, %v340_v6  ;;  %v422_v37 = vadd.f32 %v353_v28, %v341_v13  ;;  %1035 = vmatpush3.bf16.msra.mxu0 %v1261_v54  ;;  %v712_v54 = vld [vmem:[%s1455_s5 + $0x20] sm:$0xff]  ;;  %v718_v2 = vld [vmem:[%s1455_s5 + $0x50] sm:$0xff]  ;;  %v719_v50 = vld [vmem:[%s1455_s5 + $0x58] sm:$0xff] }
  0x26   : > { %v443_v27 = vadd.f32 %v439_v21, %v411_v35  ;;  %v425_v38 = vadd.f32 %v376_v24, %v364_v23  ;;  %v426_v41 = vadd.f32 %v377_v39, %v365_v29  ;;  %v429_v53 = vadd.f32 %v401_v43, %v389_v26  ;;  %v720_v6 = vld [vmem:[%s1455_s5 + $0x60] sm:$0xff]  ;;  %v721_v7 = vld [vmem:[%s1455_s5 + $0x68] sm:$0xff]  ;;  %v722_v9 = vld [vmem:[%s1455_s5 + $0x70] sm:$0xff] }
  0x27   : > { %v433_v44 = vadd.f32 %v421_v34, %v417_v30  ;;  %v434_v35 = vadd.f32 %v422_v37, %v418_v31  ;;  %v413_v42 = vmul.f32 %v1265_v59, %v405_v33  ;;  %v414_v45 = vmul.f32 %v1265_v59, %v406_v48  ;;  %v723_v10 = vld [vmem:[%s1455_s5 + $0x78] sm:$0xff]  ;;  %v892_v14 = vld [vmem:[%s1453_s3] ss:$0 sm:$0xff]  ;;  %v567_v31 = vld [vmem:[%s1454_s4 + $0x8] sm:$0x7] }
  0x28   : > { %v474_v40 = vcombine.low %v443_v27, %v444_v32  ;;  %v437_v60 = vadd.f32 %v429_v53, %v425_v38  ;;  %v438_v3 = vadd.f32 %v430_v51, %v426_v41  ;;  %v1040_v59 = vpack.c.bf16 %v711_v56, %v710_v55  ;;  %v565_v21 = vld [vmem:[%s1454_s4] sm:$0x7]  ;;  %v566_v51 = vld [vmem:[%s1454_s4 + $0x4] sm:$0x7]  ;;  %v643_v53 = vld [vmem:[#allocation2 + $0x28] sm:$0xf] }
  0x29   : > { %v1044_v58 = vpack.c.bf16 %v713_v57, %v712_v54  ;;  %v1048_v0 = vpack.c.bf16 %v715_v62, %v714_v61  ;;  %v1052_v4 = vpack.c.bf16 %v717_v1, %v716_v63  ;;  %v1056_v5 = vpack.c.bf16 %v719_v50, %v718_v2  ;;  %v568_v43 = vld [vmem:[#allocation2] sm:$0xf] }
  0x2a   : > { %966 = vmatprep.mubr.f32.mxu0 %v474_v40  ;;  %v441_v36 = vadd.f32 %v437_v60, %v433_v44  ;;  %v442_v46 = vadd.f32 %v438_v3, %v434_v35  ;;  %1041 = vmatprep.subr.bf16.mxu1 %v1040_v59  ;;  %v1060_v8 = vpack.c.bf16 %v721_v7, %v720_v6  ;;  %v580_v27 = vld [vmem:[#allocation2 + $0x1] sm:$0xf]  ;;  %v655_v40 = vld [vmem:[#allocation2 + $0x29] sm:$0xf] }
  0x2b   : > { %1043 = vmatpush3.bf16.msra.mxu1 %v1040_v59  ;;  %v1064_v13 = vpack.c.bf16 %v723_v10, %v722_v9  ;;  %v1361_v25 = vrot.slane %v565_v21, %v1163_v11  ;;  %v1364_v39 = vrot.slane %v565_v21, %v1165_v12  ;;  %v1375_v48 = vrot.slane %v565_v21, %v1181_v17  ;;  %v592_v34 = vld [vmem:[#allocation2 + $0x2] sm:$0xf] }
  0x2c   : > { %v445_v47 = vadd.f32 %v441_v36, %v413_v42  ;;  %v446_v52 = vadd.f32 %v442_v46, %v414_v45  ;;  %1045 = vmatprep.subr.bf16.mxu1 %v1044_v58  ;;  %v1378_v37 = vrot.slane %v567_v31, %v1163_v11  ;;  %v1381_v38 = vrot.slane %v567_v31, %v1165_v12 }
  0x2d   : > { %v576_v32 = vmul.f32 %v1361_v25, %v568_v43  ;;  %v588_v33 = vmul.f32 %v1364_v39, %v580_v27  ;;  %v1384_v41 = vrot.slane %v567_v31, %v1181_v17  ;;  %v1387_v44 = vrot.slane %v566_v51, %v1163_v11 }
  0x2e   : > { %v475_v49 = vcombine.low %v445_v47, %v446_v52  ;;  %v1390_v35 = vrot.slane %v566_v51, %v1165_v12  ;;  %v1393_v42 = vrot.slane %v566_v51, %v1181_v17  ;;  %v600_v45 = vmul.f32 %v1375_v48, %v592_v34 }
  0x2f   : > { %1047 = vmatpush3.bf16.msra.mxu1 %v1044_v58  ;;  %v676_v46 = vadd.f32 %v588_v33, %v576_v32  ;;  %v1399_v56 = vmul.f32 %v1378_v37, %v643_v53  ;;  %v1402_v12 = vmul.f32 %v1381_v38, %v655_v40 }
  0x30   : > { %967 = vmatmul.mubr.f32.vlgmr.msra.gmra.mrb[0].mxu0 %v475_v49  ;;  %1049 = vmatprep.subr.bf16.mxu1 %v1048_v0 }
  0x33   : > { %1051 = vmatpush3.bf16.msra.mxu1 %v1048_v0 }
  0x34   : > { %1053 = vmatprep.subr.bf16.mxu1 %v1052_v4 }
  0x37   : > { %1055 = vmatpush3.bf16.msra.mxu1 %v1052_v4 }
  0x38   : > { %1057 = vmatprep.subr.bf16.mxu1 %v1056_v5 }
  0x3b   : > { %1059 = vmatpush3.bf16.msra.mxu1 %v1056_v5 }
  0x3c   : > { %1061 = vmatprep.subr.bf16.mxu1 %v1060_v8 }
  0x3f   : > { %1063 = vmatpush3.bf16.msra.mxu1 %v1060_v8 }
  0x40   : > { %1065 = vmatprep.subr.bf16.mxu1 %v1064_v13 }
  0x43   : > { %1067 = vmatpush3.bf16.msra.mxu1 %v1064_v13 }
 0x103   : > { %v968_v28 = vpop.f32.mrb[0].mxu0 }
 0x104   : > { %v550_v15 = vadd.f32 %v968_v28, %v892_v14  ;;  %v544_v16 = vpop.f32.mrb[1].mxu0 }
 0x105   : > { %v545_v23 = vadd.f32 %v892_v14, %v544_v16 }
 0x106   : > { %v554_v29 = vmax.f32 %v550_v15, 0.0 }
 0x107   : > { %v553_v24 = vmax.f32 %v545_v23, 0.0 }
 0x108   : > { %v558_v26 = vcombine.high %v554_v29, %v554_v29  ;;  %563 = vst [vmem:[#allocation2 + $0x19] sm:$0xf] %v554_v29 }
 0x109   : > { %v557_v30 = vcombine.high %v553_v24, %v553_v24  ;;  %561 = vst [vmem:[#allocation2 + $0x9] sm:$0xf] %v553_v24 }
 0x10a   : > { %564 = vst [vmem:[#allocation2 + $0x21] sm:$0xf] %v558_v26 }
 0x10b   : > { %562 = vst [vmem:[#allocation2 + $0x11] sm:$0xf] %v557_v30 }
 0x10f   : > { %v641_v60 = vld [vmem:[#allocation2 + $0x18] sm:$0xf] }
 0x110   : > { %v653_v3 = vld [vmem:[#allocation2 + $0x19] sm:$0xf]  ;;  %v569_v47 = vld [vmem:[#allocation2 + $0x8] sm:$0xf]  ;;  %v649_v55 = vmul.f32 %v1378_v37, %v641_v60 }
 0x111   : > { %v665_v36 = vld [vmem:[#allocation2 + $0x1a] sm:$0xf]  ;;  %v581_v52 = vld [vmem:[#allocation2 + $0x9] sm:$0xf]  ;;  %v661_v11 = vmul.f32 %v1381_v38, %v653_v3  ;;  %v577_v17 = vmul.f32 %v1361_v25, %v569_v47  ;;  %v607_v3 = vld [vmem:[#allocation2 + $0x20] sm:$0xf] }
 0x112   : > { %v593_v49 = vld [vmem:[#allocation2 + $0xa] sm:$0xf]  ;;  %v589_v59 = vmul.f32 %v1364_v39, %v581_v52  ;;  %v673_v62 = vmul.f32 %v1384_v41, %v665_v36  ;;  %v605_v0 = vld [vmem:[#allocation2 + $0x10] sm:$0xf]  ;;  %v571_v29 = vld [vmem:[#allocation2 + $0x18] sm:$0xf] }
 0x113   : > { %v601_v54 = vmul.f32 %v1375_v48, %v593_v49  ;;  %v604_v57 = vld [vmem:[#allocation2 + $0x8] sm:$0xf]  ;;  %v617_v1 = vld [vmem:[#allocation2 + $0x11] sm:$0xf]  ;;  %v689_v5 = vadd.f32 %v661_v11, %v649_v55  ;;  %v613_v6 = vmul.f32 %v1387_v44, %v605_v0  ;;  %v583_v31 = vld [vmem:[#allocation2 + $0x19] sm:$0xf]  ;;  %v579_v53 = vmul.f32 %v1361_v25, %v571_v29 }
 0x114   : > { %v616_v58 = vld [vmem:[#allocation2 + $0x9] sm:$0xf]  ;;  %v612_v63 = vmul.f32 %v1387_v44, %v604_v57  ;;  %v629_v4 = vld [vmem:[#allocation2 + $0x12] sm:$0xf]  ;;  %v625_v7 = vmul.f32 %v1390_v35, %v617_v1  ;;  %v677_v14 = vadd.f32 %v589_v59, %v577_v17  ;;  %v595_v32 = vld [vmem:[#allocation2 + $0x1a] sm:$0xf]  ;;  %v591_v52 = vmul.f32 %v1364_v39, %v583_v31 }
 0x115   : > { %v628_v61 = vld [vmem:[#allocation2 + $0xa] sm:$0xf]  ;;  %v624_v2 = vmul.f32 %v1390_v35, %v616_v58  ;;  %v637_v8 = vmul.f32 %v1393_v42, %v629_v4  ;;  %v640_v9 = vld [vmem:[#allocation2 + $0x10] sm:$0xf]  ;;  %v681_v26 = vadd.f32 %v613_v6, %v601_v54  ;;  %v606_v60 = vld [vmem:[#allocation2 + $0x18] sm:$0xf]  ;;  %v603_v54 = vmul.f32 %v1375_v48, %v595_v32 }
 0x116   : > { %v636_v50 = vmul.f32 %v1393_v42, %v628_v61  ;;  %v652_v10 = vld [vmem:[#allocation2 + $0x11] sm:$0xf]  ;;  %v648_v28 = vmul.f32 %v1378_v37, %v640_v9  ;;  %v680_v21 = vadd.f32 %v612_v63, %v600_v45  ;;  %v618_v45 = vld [vmem:[#allocation2 + $0x19] sm:$0xf]  ;;  %v619_v55 = vld [vmem:[#allocation2 + $0x21] sm:$0xf] }
 0x117   : > { %v664_v13 = vld [vmem:[#allocation2 + $0x12] sm:$0xf]  ;;  %v660_v15 = vmul.f32 %v1381_v38, %v652_v10  ;;  %v685_v27 = vadd.f32 %v637_v8, %v625_v7  ;;  %v693_v36 = vadd.f32 %v681_v26, %v677_v14  ;;  %v630_v11 = vld [vmem:[#allocation2 + $0x1a] sm:$0xf]  ;;  %v631_v17 = vld [vmem:[#allocation2 + $0x22] sm:$0xf]  ;;  %v626_v0 = vmul.f32 %v1390_v35, %v618_v45 }
 0x118   : > { %v672_v16 = vmul.f32 %v1384_v41, %v664_v13  ;;  %v570_v23 = vld [vmem:[#allocation2 + $0x10] sm:$0xf]  ;;  %v684_v43 = vadd.f32 %v636_v50, %v624_v2  ;;  %v692_v34 = vadd.f32 %v680_v21, %v676_v46  ;;  %v614_v46 = vmul.f32 %v1387_v44, %v606_v60  ;;  %v642_v57 = vld [vmem:[#allocation2 + $0x20] sm:$0xf]  ;;  %v667_v7 = vld [vmem:[#allocation2 + $0x2a] sm:$0xf] }
 0x119   : > { %v582_v24 = vld [vmem:[#allocation2 + $0x11] sm:$0xf]  ;;  %v578_v30 = vmul.f32 %v1361_v25, %v570_v23  ;;  %v688_v33 = vadd.f32 %v660_v15, %v648_v28  ;;  %v697_v47 = vadd.f32 %v689_v5, %v685_v27  ;;  %v615_v25 = vmul.f32 %v1387_v44, %v607_v3  ;;  %v654_v58 = vld [vmem:[#allocation2 + $0x21] sm:$0xf]  ;;  %v893_v26 = vld [vmem:[%s1456_s6] ss:$0 sm:$0xff] }
 0x11a   : > { %v594_v51 = vld [vmem:[#allocation2 + $0x12] sm:$0xf]  ;;  %v590_v40 = vmul.f32 %v1364_v39, %v582_v24  ;;  %v627_v63 = vmul.f32 %v1390_v35, %v619_v55  ;;  %v638_v39 = vmul.f32 %v1393_v42, %v630_v11  ;;  %v639_v2 = vmul.f32 %v1393_v42, %v631_v17  ;;  %v666_v15 = vld [vmem:[#allocation2 + $0x22] sm:$0xf] }
 0x11b   : > { %v602_v49 = vmul.f32 %v1375_v48, %v594_v51  ;;  %v696_v59 = vadd.f32 %v688_v33, %v684_v43  ;;  %v701_v61 = vadd.f32 %v697_v47, %v693_v36  ;;  %v650_v4 = vmul.f32 %v1378_v37, %v642_v57 }
 0x11c   : > { %v662_v48 = vmul.f32 %v1381_v38, %v654_v58  ;;  %v678_v5 = vadd.f32 %v590_v40, %v578_v30  ;;  %v691_v44 = vadd.f32 %v1402_v12, %v1399_v56  ;;  %v679_v8 = vadd.f32 %v591_v52, %v579_v53 }
 0x11d   : > { %v700_v1 = vadd.f32 %v696_v59, %v692_v34  ;;  %v705_v50 = vadd.f32 %v701_v61, %v673_v62  ;;  %v682_v9 = vadd.f32 %v614_v46, %v602_v49  ;;  %v683_v10 = vadd.f32 %v615_v25, %v603_v54 }
 0x11e   : > { %v686_v35 = vadd.f32 %v638_v39, %v626_v0  ;;  %v687_v13 = vadd.f32 %v639_v2, %v627_v63  ;;  %v690_v14 = vadd.f32 %v662_v48, %v650_v4  ;;  %v675_v37 = vmul.f32 %v1384_v41, %v667_v7 }
 0x11f   : > { %v704_v6 = vadd.f32 %v700_v1, %v672_v16  ;;  %v694_v42 = vadd.f32 %v682_v9, %v678_v5  ;;  %v695_v21 = vadd.f32 %v683_v10, %v679_v8  ;;  %v674_v56 = vmul.f32 %v1384_v41, %v666_v15 }
 0x120   : > { %v698_v38 = vadd.f32 %v690_v14, %v686_v35  ;;  %v699_v62 = vadd.f32 %v691_v44, %v687_v13  ;;  %v819_v43 = vcombine.low %v1187_v20, %v1195_v22  ;;  %v818_v30 = vcombine.low %v1183_v18, %v1185_v19 }
 0x121   : > { %v735_v28 = vcombine.low %v704_v6, %v705_v50 }
 0x122   : > { %v702_v12 = vadd.f32 %v698_v38, %v694_v42  ;;  %v703_v16 = vadd.f32 %v699_v62, %v695_v21 }
 0x123   : > { %1001 = vmatprep.mubr.f32.mxu1 %v735_v28 }
 0x124   : > { %v706_v23 = vadd.f32 %v702_v12, %v674_v56  ;;  %v707_v29 = vadd.f32 %v703_v16, %v675_v37 }
 0x126   : > { %v736_v24 = vcombine.low %v706_v23, %v707_v29 }
 0x128   : > { %1002 = vmatmul.mubr.f32.vlgmr.msra.gmra.mrb[0].mxu1 %v736_v24 }
 0x1fb   : > { %v1003_v27 = vpop.f32.mrb[0].mxu1 }
 0x1fc   : > { %v811_v31 = vadd.f32 %v1003_v27, %v893_v26  ;;  %v805_v51 = vpop.f32.mrb[1].mxu1 }
 0x1fd   : > { %v806_v41 = vadd.f32 %v893_v26, %v805_v51 }
 0x1fe   : > { %v823_v32 = vadd.f32 %v819_v43, %v811_v31 }
 0x1ff   : > { %v822_v33 = vadd.f32 %v818_v30, %v806_v41 }
 0x200   : > { %v825_v34 = vmax.f32 %v823_v32, 0.0 }
 0x201   : > { %v824_v53 = vmax.f32 %v822_v33, 0.0 }
 0x202   : > { %827 = vst [vmem:[%s278_s9 + $0x8] sm:$0xff] %v825_v34 }
 0x203   : > { %826 = vst [vmem:[%s278_s9] sm:$0xff] %v824_v53 }
 0x204 PF: > { %s17_s24 = sadd.s32 1, %s1085_s24  }
 0x205   : > { %p14_p4 = scmp.ge.s32.totalorder %s17_s24, 4  }
 0x207   :  { %16 = sbr.rel (!%p14_p4) target bundleno = 1 (0x1), region = 81 }

// kernel: densebox_forward.26
= control target key start
LH: loop header
LB: loop body
LE: loop exit
PB: predicated region body
PF: predicated region fallthrough
CT: control target
= control target key end

     0   :  { %s600_s15 = smov 0   ;;  %s702_s0 = inlined_call_operand.vmem [shape: f32[2,2,2,128], index: 0, kind: input, shape index: {}]   ;;  %s703_s1 = inlined_call_operand.vmem [shape: f32[3,3,128], index: 1, kind: input, shape index: {}]   ;;  %s704_s2 = inlined_call_operand.vmem [shape: f32[128,128], index: 2, kind: input, shape index: {}]   ;;  %s705_s3 = inlined_call_operand.vmem [shape: f32[1,128], index: 3, kind: input, shape index: {}]   ;;  %s706_s4 = inlined_call_operand.vmem [shape: f32[2,4,128], index: 4, kind: output, shape index: {}]  }
   0x1 LB: > { %s463_s16 = sadd.s32 4294967295, %s569_s15   ;;  %p467_p0 = scmp.ge.s32.totalorder %s569_s15, 1  ;;  %s569_s15 = sphi %s600_s15, %s14_s15  }
   0x2   : > { %p162_p1 = scmp.lt.s32.totalorder %s569_s15, 3 }
   0x4   : > { %p163_p2 = pnand %p467_p0, %p162_p1 }
   0x5   : > { %v304_v0 = vld [vmem:[%s704_s2] sm:$0xff] (!%p163_p2)  ;;  %v305_v1 = vld [vmem:[%s704_s2 + $0x8] sm:$0xff] (!%p163_p2)  ;;  %v306_v2 = vld [vmem:[%s704_s2 + $0x10] sm:$0xff] (!%p163_p2)  ;;  %v217_v3 = vlaneseq (!%p163_p2)  ;;  %v571_v4 = vmov (!%p163_p2), 0.0|0.0   ;;  %vm572_vm0 = vmmov (!%p163_p2), 0   ;;  %v573_v7 = vmov (!%p163_p2), 0.0  }
   0x6   : > { %166 = sbr.rel (%p163_p2) target bundleno = 260 (0x104), region = 36  ;;  %527 = vmatprep.subr.bf16.mxu0 (!%p163_p2), %v571_v4  ;;  %v528_v5 = vpack.c.bf16 (!%p163_p2), %v305_v1, %v304_v0  ;;  %v307_v6 = vld [vmem:[%s704_s2 + $0x18] sm:$0xff] (!%p163_p2)  ;;  %524 = vmatprep.mubr.msk.f32.mxu0 (!%p163_p2), %vm572_vm0, %v573_v7  ;;  %196 = vst [vmem:[#allocation2] sm:$0xf] (!%p163_p2), %v573_v7  ;;  %198 = vst [vmem:[#allocation2 + $0xc] sm:$0xf] (!%p163_p2), %v573_v7 }
   0x7   : > { %200 = vst [vmem:[#allocation2 + $0x4] sm:$0x1] (!%p163_p2), %v573_v7  ;;  %201 = vst [vmem:[#allocation2 + $0x8] sm:$0x1] (!%p163_p2), %v573_v7  ;;  %p187_p3 = scmp.lt.s32.totalorder (!%p163_p2), %s463_s16, 1  ;;  %v623_v8 = vshrl.u32 (!%p163_p2), %v217_v3, 7  ;;  %v531_v9 = vpack.c.bf16 (!%p163_p2), %v307_v6, %v306_v2 }
   0x8   : > { %204 = vst [vmem:[#allocation2 + $0x7] sm:$0x1] (!%p163_p2), %v573_v7  ;;  %205 = vst [vmem:[#allocation2 + $0xb] sm:$0x1] (!%p163_p2), %v573_v7  ;;  %529 = vmatpush3.bf16.msra.mxu0 (!%p163_p2), %v528_v5  ;;  %v308_v10 = vld [vmem:[%s704_s2 + $0x20] sm:$0xff] (!%p163_p2)  ;;  %v309_v11 = vld [vmem:[%s704_s2 + $0x28] sm:$0xff] (!%p163_p2) }
   0x9   : > { %199 = vst [vmem:[#allocation2] sm:$0x1] (!%p163_p2), %v573_v7  ;;  %202 = vst [vmem:[#allocation2 + $0xc] sm:$0x1] (!%p163_p2), %v573_v7  ;;  %530 = vmatprep.subr.bf16.mxu0 (!%p163_p2), %v571_v4  ;;  %v219_v12 = vsub.s32 (!%p163_p2), 0, %v623_v8  ;;  %v227_v13 = vsub.s32 (!%p163_p2), 1, %v623_v8  ;;  %v534_v16 = vpack.c.bf16 (!%p163_p2), %v309_v11, %v308_v10 }
   0xa   : > { %203 = vst [vmem:[#allocation2 + $0x3] sm:$0x1] (!%p163_p2), %v573_v7  ;;  %206 = vst [vmem:[#allocation2 + $0xf] sm:$0x1] (!%p163_p2), %v573_v7  ;;  %v212_v14 = vld [vmem:[%s703_s1] sm:$0x7] (!%p163_p2) }
   0xb   : > { %v214_v15 = vld [vmem:[%s703_s1 + $0x8] sm:$0x7] (!%p163_p2)  ;;  %v235_v19 = vsub.s32 (!%p163_p2), 2, %v623_v8  ;;  %v310_v20 = vld [vmem:[%s704_s2 + $0x30] sm:$0xff] (!%p163_p2)  ;;  %v311_v21 = vld [vmem:[%s704_s2 + $0x38] sm:$0xff] (!%p163_p2)  ;;  %v220_v22 = vrot.slane (!%p163_p2), %v212_v14, %v219_v12  ;;  %v228_v23 = vrot.slane (!%p163_p2), %v212_v14, %v227_v13 }
   0xc   : > { %532 = vmatpush3.bf16.msra.mxu0 (!%p163_p2), %v531_v9  ;;  %v269_v26 = vrot.slane (!%p163_p2), %v214_v15, %v219_v12  ;;  %v277_v27 = vrot.slane (!%p163_p2), %v214_v15, %v227_v13  ;;  %v213_v28 = vld [vmem:[%s703_s1 + $0x4] sm:$0x7] (!%p163_p2)  ;;  %v537_v31 = vpack.c.bf16 (!%p163_p2), %v311_v21, %v310_v20  ;;  %v313_v34 = vld [vmem:[%s704_s2 + $0x48] sm:$0xff] (!%p163_p2)  ;;  %v314_v42 = vld [vmem:[%s704_s2 + $0x50] sm:$0xff] (!%p163_p2)  ;;  %v574_v51 = vmov (!%p163_p2), 1983009808  }
   0xd   : > { %s708_s16 = smov (!%p187_p3, %s463_s16), 1  ;;  %533 = vmatprep.subr.bf16.mxu0 %v571_v4  ;;  %v223_v25 = vld [vmem:[#allocation2 + $0x1] sm:$0x3]  ;;  %v273_v30 = vld [vmem:[#allocation2 + $0xd] sm:$0x3]  ;;  %v236_v32 = vrot.slane %v212_v14, %v235_v19  ;;  %v244_v38 = vrot.slane %v213_v28, %v219_v12  ;;  %v252_v39 = vrot.slane %v213_v28, %v227_v13  ;;  %v315_v43 = vld [vmem:[%s704_s2 + $0x58] sm:$0xff]  ;;  %v260_v44 = vrot.slane %v213_v28, %v235_v19 }
   0xe   : > { %s474_s29 = sshll.u32 %s708_s16, 2  ;;  %v312_v33 = vld [vmem:[%s704_s2 + $0x40] sm:$0xff]  ;;  %v229_v36 = vmul.f32 %v228_v23, %v223_v25  ;;  %v279_v41 = vmul.f32 %v277_v27, %v273_v30  ;;  %v285_v50 = vrot.slane %v214_v15, %v235_v19  ;;  %v331_v52 = vunpack.c.l.s4 %v574_v51 }
   0xf   : > { %s191_s8 = scalar_lea.vmem %s702_s0, %s474_s29  ;;  %v540_v45 = vpack.c.bf16 %v313_v34, %v312_v33  ;;  %v543_v11 = vpack.c.bf16 %v315_v43, %v314_v42  ;;  %s195_s14 = scalar_lea.vmem %s706_s4, %s474_s29 }
  0x10   : > { %v207_v17 = vld [vmem:[%s191_s8] sm:$0x3]  ;;  %v208_v18 = vld [vmem:[%s191_s8 + $0x2] sm:$0x3]  ;;  %v265_v29 = vld [vmem:[#allocation2 + $0xc] sm:$0x3]  ;;  %535 = vmatpush3.bf16.msra.mxu0 %v534_v16  ;;  %v332_v30 = vunpack.c.0.s8 %v331_v52 }
  0x11   : > { %210 = vst [vmem:[#allocation2 + $0x5] sm:$0x3] %v207_v17  ;;  %211 = vst [vmem:[#allocation2 + $0x9] sm:$0x3] %v208_v18  ;;  %v215_v24 = vld [vmem:[#allocation2] sm:$0x3]  ;;  %536 = vmatprep.subr.bf16.mxu0 %v571_v4  ;;  %v271_v40 = vmul.f32 %v269_v26, %v265_v29 }
  0x12   : > { %v221_v35 = vmul.f32 %v220_v22, %v215_v24  ;;  %v231_v37 = vld [vmem:[#allocation2 + $0x2] sm:$0x3]  ;;  %v281_v14 = vld [vmem:[#allocation2 + $0xe] sm:$0x3] }
  0x13   : > { %v237_v49 = vmul.f32 %v236_v32, %v231_v37  ;;  %v295_v2 = vadd.f32 %v279_v41, %v271_v40  ;;  %v316_v16 = vld [vmem:[%s704_s2 + $0x60] sm:$0xff]  ;;  %v317_v17 = vld [vmem:[%s704_s2 + $0x68] sm:$0xff]  ;;  %v287_v24 = vmul.f32 %v285_v50, %v281_v14 }
  0x14   : > { %538 = vmatpush3.bf16.msra.mxu0 %v537_v31  ;;  %v288_v59 = vadd.f32 %v229_v36, %v221_v35  ;;  %v318_v31 = vld [vmem:[%s704_s2 + $0x70] sm:$0xff]  ;;  %v471_v41 = vld [vmem:[%s705_s3] ss:$0 sm:$0xff] }
  0x15   : > { %539 = vmatprep.subr.bf16.mxu0 %v571_v4 }
  0x18   : > { %v216_v46 = vld [vmem:[#allocation2 + $0x4] sm:$0x3]  ;;  %v232_v48 = vld [vmem:[#allocation2 + $0x6] sm:$0x3]  ;;  %v240_v57 = vld [vmem:[#allocation2 + $0x8] sm:$0x3]  ;;  %541 = vmatpush3.bf16.msra.mxu0 %v540_v45 }
  0x19   : > { %v224_v47 = vld [vmem:[#allocation2 + $0x5] sm:$0x3]  ;;  %v222_v53 = vmul.f32 %v220_v22, %v216_v46  ;;  %v238_v55 = vmul.f32 %v236_v32, %v232_v48  ;;  %v246_v61 = vmul.f32 %v244_v38, %v240_v57  ;;  %v248_v62 = vld [vmem:[#allocation2 + $0x9] sm:$0x3]  ;;  %542 = vmatprep.subr.bf16.mxu0 %v571_v4  ;;  %v319_v32 = vld [vmem:[%s704_s2 + $0x78] sm:$0xff] }
  0x1a   : > { %v230_v54 = vmul.f32 %v228_v23, %v224_v47  ;;  %v239_v56 = vld [vmem:[#allocation2 + $0x4] sm:$0x3]  ;;  %v255_v0 = vld [vmem:[#allocation2 + $0x6] sm:$0x3]  ;;  %v256_v1 = vld [vmem:[#allocation2 + $0xa] sm:$0x3]  ;;  %v254_v3 = vmul.f32 %v252_v39, %v248_v62  ;;  %v549_v36 = vpack.c.bf16 %v319_v32, %v318_v31 }
  0x1b   : > { %v247_v58 = vld [vmem:[#allocation2 + $0x5] sm:$0x3]  ;;  %v245_v60 = vmul.f32 %v244_v38, %v239_v56  ;;  %v261_v5 = vmul.f32 %v260_v44, %v255_v0  ;;  %v262_v6 = vmul.f32 %v260_v44, %v256_v1  ;;  %v264_v7 = vld [vmem:[#allocation2 + $0x8] sm:$0x3]  ;;  %v280_v18 = vld [vmem:[#allocation2 + $0xa] sm:$0x3]  ;;  %v291_v19 = vadd.f32 %v246_v61, %v238_v55 }
  0x1c   : > { %v253_v63 = vmul.f32 %v252_v39, %v247_v58  ;;  %v272_v9 = vld [vmem:[#allocation2 + $0x9] sm:$0x3]  ;;  %v289_v10 = vadd.f32 %v230_v54, %v222_v53  ;;  %v270_v12 = vmul.f32 %v269_v26, %v264_v7  ;;  %544 = vmatpush3.bf16.msra.mxu0 %v543_v11  ;;  %v286_v28 = vmul.f32 %v285_v50, %v280_v18 }
  0x1d   : > { %v278_v13 = vmul.f32 %v277_v27, %v272_v9  ;;  %v290_v15 = vadd.f32 %v245_v60, %v237_v49  ;;  %v293_v21 = vadd.f32 %v262_v6, %v254_v3  ;;  %v546_v27 = vpack.c.bf16 %v317_v17, %v316_v16  ;;  %545 = vmatprep.subr.bf16.mxu0 %v571_v4 }
  0x1e   : > { %v292_v20 = vadd.f32 %v261_v5, %v253_v63  ;;  %v297_v25 = vadd.f32 %v291_v19, %v289_v10  ;;  %v335_v38 = vsub.s32 %v332_v30, %v623_v8 }
  0x1f   : > { %v294_v22 = vadd.f32 %v278_v13, %v270_v12  ;;  %v296_v23 = vadd.f32 %v290_v15, %v288_v59  ;;  %v299_v26 = vadd.f32 %v295_v2, %v293_v21 }
  0x20   : > { %547 = vmatpush3.bf16.msra.mxu0 %v546_v27 }
  0x21   : > { %v298_v29 = vadd.f32 %v294_v22, %v292_v20  ;;  %v301_v33 = vadd.f32 %v299_v26, %v297_v25  ;;  %548 = vmatprep.subr.bf16.mxu0 %v571_v4 }
  0x23   : > { %v300_v34 = vadd.f32 %v298_v29, %v296_v23  ;;  %v303_v35 = vadd.f32 %v301_v33, %v287_v24 }
  0x24   : > { %550 = vmatpush3.bf16.msra.mxu0 %v549_v36 }
  0x25   : > { %v302_v37 = vadd.f32 %v300_v34, %v286_v28 }
  0x27   : > { %v329_v39 = vcombine.low %v302_v37, %v303_v35 }
  0x29   : > { %v336_v40 = vrot.slane %v329_v39, %v335_v38 }
  0x2b   : > { %525 = vmatmul.mubr.f32.vlgmr.msra.gmra.mrb[0].mxu0 %v336_v40 }
  0xfe   : > { %v404_v42 = vpop.f32.mrb[0].mxu0 }
  0xff   : > { %v405_v43 = vadd.f32 %v471_v41, %v404_v42  ;;  %v526_v44 = vpop.f32.mrb[1].mxu0 }
 0x101   : > { %v408_v45 = vmax.f32 %v405_v43, 0.0 }
 0x103   : > { %409 = vst [vmem:[%s195_s14] sm:$0xf] %v408_v45 }
 0x104 PF: > { %s14_s15 = sadd.s32 1, %s569_s15  }
 0x105   : > { %p11_p4 = scmp.ge.s32.totalorder %s14_s15, 4  }
 0x107   :  { %13 = sbr.rel (!%p11_p4) target bundleno = 1 (0x1), region = 69 }

// kernel: densebox_forward.28
= control target key start
LH: loop header
LB: loop body
LE: loop exit
PB: predicated region body
PF: predicated region fallthrough
CT: control target
= control target key end

     0   :  { %s1233_s30 = smov 0   ;;  %s1516_s0 = inlined_call_operand.vmem [shape: f32[2,2,2,128], index: 0, kind: input, shape index: {}]   ;;  %s1517_s1 = inlined_call_operand.vmem [shape: f32[3,3,128], index: 1, kind: input, shape index: {}]   ;;  %s1518_s2 = inlined_call_operand.vmem [shape: f32[128,128], index: 2, kind: input, shape index: {}]   ;;  %s1519_s3 = inlined_call_operand.vmem [shape: f32[1,128], index: 3, kind: input, shape index: {}]   ;;  %s1520_s4 = inlined_call_operand.vmem [shape: f32[3,3,128], index: 4, kind: input, shape index: {}]   ;;  %s1521_s5 = inlined_call_operand.vmem [shape: f32[128,128], index: 5, kind: input, shape index: {}]   ;;  %s1522_s6 = inlined_call_operand.vmem [shape: f32[1,128], index: 6, kind: input, shape index: {}]   ;;  %s1523_s7 = inlined_call_operand.vmem [shape: f32[128,128], index: 7, kind: input, shape index: {}]   ;;  %s1524_s8 = inlined_call_operand.vmem [shape: f32[1,128], index: 8, kind: input, shape index: {}]   ;;  %s1525_s9 = inlined_call_operand.vmem [shape: f32[2,4,128], index: 9, kind: output, shape index: {}]  }
   0x1 LB: > { %s912_s10 = sadd.s32 4294967295, %s1177_s30   ;;  %p916_p0 = scmp.ge.s32.totalorder %s1177_s30, 1  ;;  %s1177_s30 = sphi %s1233_s30, %s19_s30  }
   0x2   : > { %p287_p1 = scmp.lt.s32.totalorder %s1177_s30, 3 }
   0x4   : > { %p288_p2 = pnand %p916_p0, %p287_p1 }
   0x5   : > { %v439_v0 = vld [vmem:[%s1518_s2] sm:$0xff] (!%p288_p2)  ;;  %v440_v1 = vld [vmem:[%s1518_s2 + $0x8] sm:$0xff] (!%p288_p2)  ;;  %v441_v2 = vld [vmem:[%s1518_s2 + $0x10] sm:$0xff] (!%p288_p2)  ;;  %v352_v3 = vlaneseq (!%p288_p2)  ;;  %v1179_v4 = vmov (!%p288_p2), 0.0|0.0   ;;  %vm1180_vm0 = vmmov (!%p288_p2), 0   ;;  %v1181_v7 = vmov (!%p288_p2), 0.0  }
   0x6   : > { %291 = sbr.rel (%p288_p2) target bundleno = 537 (0x219), region = 56  ;;  %1083 = vmatprep.subr.bf16.mxu0 (!%p288_p2), %v1179_v4  ;;  %v1084_v5 = vpack.c.bf16 (!%p288_p2), %v440_v1, %v439_v0  ;;  %v442_v6 = vld [vmem:[%s1518_s2 + $0x18] sm:$0xff] (!%p288_p2)  ;;  %1010 = vmatprep.mubr.msk.f32.mxu0 (!%p288_p2), %vm1180_vm0, %v1181_v7  ;;  %333 = vst [vmem:[#allocation2] sm:$0xf] (!%p288_p2), %v1181_v7  ;;  %335 = vst [vmem:[#allocation2 + $0xc] sm:$0xf] (!%p288_p2), %v1181_v7 }
   0x7   : > { %337 = vst [vmem:[#allocation2 + $0x4] sm:$0x1] (!%p288_p2), %v1181_v7  ;;  %338 = vst [vmem:[#allocation2 + $0x8] sm:$0x1] (!%p288_p2), %v1181_v7  ;;  %p322_p3 = scmp.lt.s32.totalorder (!%p288_p2), %s912_s10, 1  ;;  %v1268_v8 = vshrl.u32 (!%p288_p2), %v352_v3, 7  ;;  %1107 = vmatprep.subr.bf16.mxu1 (!%p288_p2), %v1179_v4  ;;  %1045 = vmatprep.mubr.msk.f32.mxu1 (!%p288_p2), %vm1180_vm0, %v1181_v7  ;;  %v1087_v9 = vpack.c.bf16 (!%p288_p2), %v442_v6, %v441_v2 }
   0x8   : > { %341 = vst [vmem:[#allocation2 + $0x7] sm:$0x1] (!%p288_p2), %v1181_v7  ;;  %342 = vst [vmem:[#allocation2 + $0xb] sm:$0x1] (!%p288_p2), %v1181_v7  ;;  %1085 = vmatpush3.bf16.msra.mxu0 (!%p288_p2), %v1084_v5  ;;  %v443_v10 = vld [vmem:[%s1518_s2 + $0x20] sm:$0xff] (!%p288_p2)  ;;  %v444_v11 = vld [vmem:[%s1518_s2 + $0x28] sm:$0xff] (!%p288_p2) }
   0x9   : > { %336 = vst [vmem:[#allocation2] sm:$0x1] (!%p288_p2), %v1181_v7  ;;  %339 = vst [vmem:[#allocation2 + $0xc] sm:$0x1] (!%p288_p2), %v1181_v7  ;;  %1086 = vmatprep.subr.bf16.mxu0 (!%p288_p2), %v1179_v4  ;;  %v1285_v12 = vsub.s32 (!%p288_p2), 0, %v1268_v8  ;;  %v1288_v13 = vsub.s32 (!%p288_p2), 1, %v1268_v8  ;;  %v1090_v18 = vpack.c.bf16 (!%p288_p2), %v444_v11, %v443_v10 }
   0xa   : > { %340 = vst [vmem:[#allocation2 + $0x3] sm:$0x1] (!%p288_p2), %v1181_v7  ;;  %343 = vst [vmem:[#allocation2 + $0xf] sm:$0x1] (!%p288_p2), %v1181_v7  ;;  %v347_v14 = vld [vmem:[%s1517_s1] sm:$0x7] (!%p288_p2) }
   0xb   : > { %v349_v15 = vld [vmem:[%s1517_s1 + $0x8] sm:$0x7] (!%p288_p2)  ;;  %v648_v16 = vld [vmem:[%s1521_s5] sm:$0xff] (!%p288_p2)  ;;  %v1313_v21 = vsub.s32 (!%p288_p2), 2, %v1268_v8  ;;  %v445_v22 = vld [vmem:[%s1518_s2 + $0x30] sm:$0xff] (!%p288_p2)  ;;  %v355_v24 = vrot.slane (!%p288_p2), %v347_v14, %v1285_v12  ;;  %v363_v25 = vrot.slane (!%p288_p2), %v347_v14, %v1288_v13 }
   0xc   : > { %v649_v17 = vld [vmem:[%s1521_s5 + $0x8] sm:$0xff] (!%p288_p2)  ;;  %1088 = vmatpush3.bf16.msra.mxu0 (!%p288_p2), %v1087_v9  ;;  %v446_v23 = vld [vmem:[%s1518_s2 + $0x38] sm:$0xff] (!%p288_p2)  ;;  %v404_v28 = vrot.slane (!%p288_p2), %v349_v15, %v1285_v12  ;;  %v412_v29 = vrot.slane (!%p288_p2), %v349_v15, %v1288_v13  ;;  %v348_v31 = vld [vmem:[%s1517_s1 + $0x4] sm:$0x7] (!%p288_p2)  ;;  %v1182_v54 = vmov (!%p288_p2), 1983009808  }
   0xd   : > { %s1527_s10 = smov (!%p322_p3, %s912_s10), 1  ;;  %1089 = vmatprep.subr.bf16.mxu0 %v1179_v4  ;;  %v358_v27 = vld [vmem:[#allocation2 + $0x1] sm:$0x3]  ;;  %v1108_v30 = vpack.c.bf16 %v649_v17, %v648_v16  ;;  %v408_v33 = vld [vmem:[#allocation2 + $0xd] sm:$0x3]  ;;  %v1093_v34 = vpack.c.bf16 %v446_v23, %v445_v22  ;;  %v371_v35 = vrot.slane %v347_v14, %v1313_v21  ;;  %v379_v41 = vrot.slane %v348_v31, %v1285_v12  ;;  %v449_v45 = vld [vmem:[%s1518_s2 + $0x50] sm:$0xff] }
   0xe   : > { %s926_s23 = sshll.u32 %s1527_s10, 2  ;;  %v447_v36 = vld [vmem:[%s1518_s2 + $0x40] sm:$0xff]  ;;  %v448_v37 = vld [vmem:[%s1518_s2 + $0x48] sm:$0xff]  ;;  %v364_v39 = vmul.f32 %v363_v25, %v358_v27  ;;  %v387_v42 = vrot.slane %v348_v31, %v1288_v13  ;;  %v414_v44 = vmul.f32 %v412_v29, %v408_v33  ;;  %v450_v46 = vld [vmem:[%s1518_s2 + $0x58] sm:$0xff]  ;;  %v395_v47 = vrot.slane %v348_v31, %v1313_v21 }
   0xf   : > { %s326_s28 = scalar_lea.vmem %s1516_s0, %s926_s23  ;;  %1109 = vmatpush3.bf16.msra.mxu1 %v1108_v30  ;;  %v1096_v48 = vpack.c.bf16 %v448_v37, %v447_v36  ;;  %v420_v53 = vrot.slane %v349_v15, %v1313_v21  ;;  %v466_v55 = vunpack.c.l.s4 %v1182_v54  ;;  %v1099_v17 = vpack.c.bf16 %v450_v46, %v449_v45  ;;  %s330_s22 = scalar_lea.vmem %s1525_s9, %s926_s23 }
  0x10   : > { %v1308_v19 = vld [vmem:[%s326_s28] sm:$0x3]  ;;  %v1310_v20 = vld [vmem:[%s326_s28 + $0x2] sm:$0x3]  ;;  %v400_v32 = vld [vmem:[#allocation2 + $0xc] sm:$0x3]  ;;  %1091 = vmatpush3.bf16.msra.mxu0 %v1090_v18  ;;  %1110 = vmatprep.subr.bf16.mxu1 %v1179_v4 }
  0x11   : > { %345 = vst [vmem:[#allocation2 + $0x5] sm:$0x3] %v1308_v19  ;;  %346 = vst [vmem:[#allocation2 + $0x9] sm:$0x3] %v1310_v20  ;;  %v350_v26 = vld [vmem:[#allocation2] sm:$0x3]  ;;  %1092 = vmatprep.subr.bf16.mxu0 %v1179_v4  ;;  %v406_v43 = vmul.f32 %v404_v28, %v400_v32 }
  0x12   : > { %v356_v38 = vmul.f32 %v355_v24, %v350_v26  ;;  %v366_v40 = vld [vmem:[#allocation2 + $0x2] sm:$0x3]  ;;  %v416_v23 = vld [vmem:[#allocation2 + $0xe] sm:$0x3] }
  0x13   : > { %v372_v52 = vmul.f32 %v371_v35, %v366_v40  ;;  %v430_v6 = vadd.f32 %v414_v44, %v406_v43  ;;  %v452_v26 = vld [vmem:[%s1518_s2 + $0x68] sm:$0xff]  ;;  %v453_v40 = vld [vmem:[%s1518_s2 + $0x70] sm:$0xff] }
  0x14   : > { %1094 = vmatpush3.bf16.msra.mxu0 %v1093_v34  ;;  %v423_v62 = vadd.f32 %v364_v39, %v356_v38  ;;  %v467_v39 = vunpack.c.0.s8 %v466_v55  ;;  %v654_v55 = vld [vmem:[%s1521_s5 + $0x30] sm:$0xff] }
  0x15   : > { %1095 = vmatprep.subr.bf16.mxu0 %v1179_v4 }
  0x18   : > { %v351_v49 = vld [vmem:[#allocation2 + $0x4] sm:$0x3]  ;;  %v367_v51 = vld [vmem:[#allocation2 + $0x6] sm:$0x3]  ;;  %v375_v60 = vld [vmem:[#allocation2 + $0x8] sm:$0x3]  ;;  %1097 = vmatpush3.bf16.msra.mxu0 %v1096_v48 }
  0x19   : > { %v359_v50 = vld [vmem:[#allocation2 + $0x5] sm:$0x3]  ;;  %v357_v56 = vmul.f32 %v355_v24, %v351_v49  ;;  %v373_v58 = vmul.f32 %v371_v35, %v367_v51  ;;  %v381_v0 = vmul.f32 %v379_v41, %v375_v60  ;;  %v383_v1 = vld [vmem:[#allocation2 + $0x9] sm:$0x3]  ;;  %1098 = vmatprep.subr.bf16.mxu0 %v1179_v4  ;;  %v651_v51 = vld [vmem:[%s1521_s5 + $0x18] sm:$0xff] }
  0x1a   : > { %v365_v57 = vmul.f32 %v363_v25, %v359_v50  ;;  %v374_v59 = vld [vmem:[#allocation2 + $0x4] sm:$0x3]  ;;  %v390_v3 = vld [vmem:[#allocation2 + $0x6] sm:$0x3]  ;;  %v391_v5 = vld [vmem:[#allocation2 + $0xa] sm:$0x3]  ;;  %v389_v9 = vmul.f32 %v387_v42, %v383_v1 }
  0x1b   : > { %v382_v61 = vld [vmem:[#allocation2 + $0x5] sm:$0x3]  ;;  %v380_v63 = vmul.f32 %v379_v41, %v374_v59  ;;  %v396_v10 = vmul.f32 %v395_v47, %v390_v3  ;;  %v397_v11 = vmul.f32 %v395_v47, %v391_v5  ;;  %v399_v14 = vld [vmem:[#allocation2 + $0x8] sm:$0x3]  ;;  %v415_v27 = vld [vmem:[#allocation2 + $0xa] sm:$0x3]  ;;  %v426_v30 = vadd.f32 %v381_v0, %v373_v58 }
  0x1c   : > { %v388_v2 = vmul.f32 %v387_v42, %v382_v61  ;;  %v407_v15 = vld [vmem:[#allocation2 + $0x9] sm:$0x3]  ;;  %v424_v16 = vadd.f32 %v365_v57, %v357_v56  ;;  %v405_v18 = vmul.f32 %v404_v28, %v399_v14  ;;  %v451_v25 = vld [vmem:[%s1518_s2 + $0x60] sm:$0xff]  ;;  %v422_v28 = vmul.f32 %v420_v53, %v416_v23  ;;  %1100 = vmatpush3.bf16.msra.mxu0 %v1099_v17  ;;  %v454_v41 = vld [vmem:[%s1518_s2 + $0x78] sm:$0xff] }
  0x1d   : > { %v413_v22 = vmul.f32 %v412_v29, %v407_v15  ;;  %v425_v24 = vadd.f32 %v380_v63, %v372_v52  ;;  %v428_v32 = vadd.f32 %v397_v11, %v389_v9  ;;  %v1102_v36 = vpack.c.bf16 %v452_v26, %v451_v25  ;;  %1101 = vmatprep.subr.bf16.mxu0 %v1179_v4  ;;  %v650_v50 = vld [vmem:[%s1521_s5 + $0x10] sm:$0xff]  ;;  %v655_v56 = vld [vmem:[%s1521_s5 + $0x38] sm:$0xff]  ;;  %v656_v58 = vld [vmem:[%s1521_s5 + $0x40] sm:$0xff] }
  0x1e   : > { %v427_v31 = vadd.f32 %v396_v10, %v388_v2  ;;  %v432_v29 = vadd.f32 %v426_v30, %v424_v16  ;;  %v421_v37 = vmul.f32 %v420_v53, %v415_v27  ;;  %v1105_v45 = vpack.c.bf16 %v454_v41, %v453_v40  ;;  %v653_v53 = vld [vmem:[%s1521_s5 + $0x28] sm:$0xff]  ;;  %v658_v61 = vld [vmem:[%s1521_s5 + $0x50] sm:$0xff]  ;;  %v660_v0 = vld [vmem:[%s1521_s5 + $0x60] sm:$0xff] }
  0x1f   : > { %v429_v33 = vadd.f32 %v413_v22, %v405_v18  ;;  %v431_v34 = vadd.f32 %v425_v24, %v423_v62  ;;  %v434_v35 = vadd.f32 %v430_v6, %v428_v32  ;;  %v1366_v47 = vsub.s32 %v467_v39, %v1268_v8  ;;  %v652_v8 = vld [vmem:[%s1521_s5 + $0x20] sm:$0xff]  ;;  %v657_v59 = vld [vmem:[%s1521_s5 + $0x48] sm:$0xff]  ;;  %v659_v62 = vld [vmem:[%s1521_s5 + $0x58] sm:$0xff] }
  0x20   : > { %1103 = vmatpush3.bf16.msra.mxu0 %v1102_v36  ;;  %v1111_v52 = vpack.c.bf16 %v651_v51, %v650_v50  ;;  %v1114_v54 = vpack.c.bf16 %v653_v53, %v652_v8  ;;  %v1117_v57 = vpack.c.bf16 %v655_v56, %v654_v55  ;;  %v1120_v60 = vpack.c.bf16 %v657_v59, %v656_v58  ;;  %v661_v1 = vld [vmem:[%s1521_s5 + $0x68] sm:$0xff]  ;;  %v662_v3 = vld [vmem:[%s1521_s5 + $0x70] sm:$0xff]  ;;  %v663_v5 = vld [vmem:[%s1521_s5 + $0x78] sm:$0xff] }
  0x21   : > { %v433_v38 = vadd.f32 %v429_v33, %v427_v31  ;;  %v436_v42 = vadd.f32 %v434_v35, %v432_v29  ;;  %1104 = vmatprep.subr.bf16.mxu0 %v1179_v4  ;;  %v1123_v63 = vpack.c.bf16 %v659_v62, %v658_v61  ;;  %v1126_v2 = vpack.c.bf16 %v661_v1, %v660_v0  ;;  %v920_v9 = vld [vmem:[%s1519_s3] ss:$0 sm:$0xff]  ;;  %v559_v17 = vld [vmem:[%s1520_s4 + $0x8] sm:$0x7]  ;;  %v558_v23 = vld [vmem:[%s1520_s4 + $0x4] sm:$0x7] }
  0x22   : > { %1112 = vmatpush3.bf16.msra.mxu1 %v1111_v52  ;;  %v1129_v6 = vpack.c.bf16 %v663_v5, %v662_v3  ;;  %v557_v22 = vld [vmem:[%s1520_s4] sm:$0x7]  ;;  %v613_v24 = vrot.slane %v559_v17, %v1285_v12  ;;  %v621_v25 = vrot.slane %v559_v17, %v1288_v13  ;;  %v609_v26 = vld [vmem:[#allocation2 + $0xc] sm:$0x3]  ;;  %v589_v33 = vrot.slane %v558_v23, %v1285_v12 }
  0x23   : > { %v435_v43 = vadd.f32 %v433_v38, %v431_v34  ;;  %v438_v44 = vadd.f32 %v436_v42, %v422_v28  ;;  %1113 = vmatprep.subr.bf16.mxu1 %v1179_v4  ;;  %v617_v27 = vld [vmem:[#allocation2 + $0xd] sm:$0x3]  ;;  %v565_v30 = vrot.slane %v557_v22, %v1285_v12  ;;  %v573_v31 = vrot.slane %v557_v22, %v1288_v13  ;;  %v560_v34 = vld [vmem:[#allocation2] sm:$0x3]  ;;  %v576_v29 = vld [vmem:[#allocation2 + $0x2] sm:$0x3] }
  0x24   : > { %1106 = vmatpush3.bf16.msra.mxu0 %v1105_v45  ;;  %v581_v32 = vrot.slane %v557_v22, %v1313_v21  ;;  %v568_v28 = vld [vmem:[#allocation2 + $0x1] sm:$0x3]  ;;  %v605_v38 = vrot.slane %v558_v23, %v1313_v21  ;;  %v615_v39 = vmul.f32 %v613_v24, %v609_v26  ;;  %v623_v40 = vmul.f32 %v621_v25, %v617_v27 }
  0x25   : > { %v437_v46 = vadd.f32 %v435_v43, %v421_v37  ;;  %v597_v37 = vrot.slane %v558_v23, %v1288_v13  ;;  %v574_v45 = vmul.f32 %v573_v31, %v568_v28 }
  0x26   : > { %1115 = vmatpush3.bf16.msra.mxu1 %v1114_v54  ;;  %v639_v13 = vadd.f32 %v623_v40, %v615_v39  ;;  %v760_v39 = vld [vmem:[%s1523_s7 + $0x40] sm:$0xff]  ;;  %v761_v40 = vld [vmem:[%s1523_s7 + $0x48] sm:$0xff] }
  0x27   : > { %v464_v48 = vcombine.low %v437_v46, %v438_v44  ;;  %1116 = vmatprep.subr.bf16.mxu1 %v1179_v4  ;;  %v566_v44 = vmul.f32 %v565_v30, %v560_v34  ;;  %v755_v34 = vld [vmem:[%s1523_s7 + $0x18] sm:$0xff] }
  0x29   : > { %v471_v49 = vrot.slane %v464_v48, %v1366_v47  ;;  %v582_v48 = vmul.f32 %v581_v32, %v576_v29  ;;  %v632_v0 = vadd.f32 %v574_v45, %v566_v44  ;;  %v756_v29 = vld [vmem:[%s1523_s7 + $0x20] sm:$0xff] }
  0x2a   : > { %1118 = vmatpush3.bf16.msra.mxu1 %v1117_v57  ;;  %v764_v45 = vld [vmem:[%s1523_s7 + $0x60] sm:$0xff] }
  0x2b   : > { %1011 = vmatmul.mubr.f32.vlgmr.msra.gmra.mrb[0].mxu0 %v471_v49  ;;  %1119 = vmatprep.subr.bf16.mxu1 %v1179_v4 }
  0x2e   : > { %1121 = vmatpush3.bf16.msra.mxu1 %v1120_v60 }
  0x2f   : > { %1122 = vmatprep.subr.bf16.mxu1 %v1179_v4 }
  0x32   : > { %1124 = vmatpush3.bf16.msra.mxu1 %v1123_v63  ;;  %v625_v63 = vld [vmem:[#allocation2 + $0xe] sm:$0x3] }
  0x33   : > { %1125 = vmatprep.subr.bf16.mxu1 %v1179_v4 }
  0x36   : > { %1127 = vmatpush3.bf16.msra.mxu1 %v1126_v2  ;;  %v629_v2 = vrot.slane %v559_v17, %v1313_v21  ;;  %v752_v21 = vld [vmem:[%s1523_s7] sm:$0xff]  ;;  %v753_v17 = vld [vmem:[%s1523_s7 + $0x8] sm:$0xff] }
  0x37   : > { %1128 = vmatprep.subr.bf16.mxu1 %v1179_v4 }
  0x3a   : > { %1130 = vmatpush3.bf16.msra.mxu1 %v1129_v6 }
  0x3b   : > { %1131 = vmatprep.subr.bf16.mxu1 %v1179_v4 }
  0xfe   : > { %v539_v10 = vpop.f32.mrb[0].mxu0 }
  0xff   : > { %v540_v11 = vadd.f32 %v920_v9, %v539_v10  ;;  %v1012_v14 = vpop.f32.mrb[1].mxu0 }
 0x100   : > { %v631_v14 = vmul.f32 %v629_v2, %v625_v63 }
 0x101   : > { %v543_v15 = vmax.f32 %v540_v11, 0.0 }
 0x103   : > { %v551_v16 = vrot.slane %v543_v15, %v1366_v47  ;;  %921 = vst.sshfl [vmem:[#allocation2 + $0x5] sm:$0x3 pattern:$0x76325410] %v543_v15 }
 0x105   : > { %v552_v18 = vcombine.high %v551_v16, %v551_v16 }
 0x107   : > { %556 = vst [vmem:[#allocation2 + $0x9] sm:$0x3] %v552_v18 }
 0x10a   : > { %v561_v35 = vld [vmem:[#allocation2 + $0x4] sm:$0x3]  ;;  %v600_v43 = vld [vmem:[#allocation2 + $0x6] sm:$0x3] }
 0x10b   : > { %v569_v36 = vld [vmem:[#allocation2 + $0x5] sm:$0x3]  ;;  %v567_v12 = vmul.f32 %v565_v30, %v561_v35  ;;  %v606_v54 = vmul.f32 %v605_v38, %v600_v43  ;;  %v757_v35 = vld [vmem:[%s1523_s7 + $0x28] sm:$0xff]  ;;  %v763_v43 = vld [vmem:[%s1523_s7 + $0x58] sm:$0xff] }
 0x10c   : > { %v584_v41 = vld [vmem:[#allocation2 + $0x4] sm:$0x3]  ;;  %v577_v46 = vld [vmem:[#allocation2 + $0x6] sm:$0x3]  ;;  %v575_v50 = vmul.f32 %v573_v31, %v569_v36  ;;  %v1132_v31 = vpack.c.bf16 %v753_v17, %v752_v21  ;;  %v1138_v36 = vpack.c.bf16 %v757_v35, %v756_v29 }
 0x10d   : > { %v592_v42 = vld [vmem:[#allocation2 + $0x5] sm:$0x3]  ;;  %v590_v49 = vmul.f32 %v589_v33, %v584_v41  ;;  %v583_v55 = vmul.f32 %v581_v32, %v577_v46  ;;  %v1144_v41 = vpack.c.bf16 %v761_v40, %v760_v39  ;;  %v765_v46 = vld [vmem:[%s1523_s7 + $0x68] sm:$0xff] }
 0x10e   : > { %v585_v51 = vld [vmem:[#allocation2 + $0x8] sm:$0x3]  ;;  %v598_v8 = vmul.f32 %v597_v37, %v592_v42  ;;  %v601_v53 = vld [vmem:[#allocation2 + $0xa] sm:$0x3]  ;;  %v633_v3 = vadd.f32 %v575_v50, %v567_v12  ;;  %v762_v42 = vld [vmem:[%s1523_s7 + $0x50] sm:$0xff]  ;;  %v777_v50 = vcombine.low %v1308_v19, %v1310_v20 }
 0x10f   : > { %v593_v52 = vld [vmem:[#allocation2 + $0x9] sm:$0x3]  ;;  %v591_v56 = vmul.f32 %v589_v33, %v585_v51  ;;  %v607_v58 = vmul.f32 %v605_v38, %v601_v53  ;;  %v634_v1 = vadd.f32 %v590_v49, %v582_v48  ;;  %v754_v33 = vld [vmem:[%s1523_s7 + $0x10] sm:$0xff]  ;;  %v1147_v44 = vpack.c.bf16 %v763_v43, %v762_v42  ;;  %v767_v12 = vld [vmem:[%s1523_s7 + $0x78] sm:$0xff] }
 0x110   : > { %v599_v57 = vmul.f32 %v597_v37, %v593_v52  ;;  %v608_v59 = vld [vmem:[#allocation2 + $0x8] sm:$0x3]  ;;  %v636_v9 = vadd.f32 %v606_v54, %v598_v8  ;;  %v624_v11 = vld [vmem:[#allocation2 + $0xa] sm:$0x3]  ;;  %v1135_v28 = vpack.c.bf16 %v755_v34, %v754_v33  ;;  %v758_v37 = vld [vmem:[%s1523_s7 + $0x30] sm:$0xff]  ;;  %v1150_v48 = vpack.c.bf16 %v765_v46, %v764_v45 }
 0x111   : > { %v616_v60 = vld [vmem:[#allocation2 + $0x9] sm:$0x3]  ;;  %v614_v61 = vmul.f32 %v613_v24, %v608_v59  ;;  %v635_v5 = vadd.f32 %v591_v56, %v583_v55  ;;  %v640_v18 = vadd.f32 %v634_v1, %v632_v0  ;;  %v630_v26 = vmul.f32 %v629_v2, %v624_v11  ;;  %v766_v49 = vld [vmem:[%s1523_s7 + $0x70] sm:$0xff]  ;;  %v922_v8 = vld [vmem:[%s1522_s6] ss:$0 sm:$0xff] }
 0x112   : > { %v622_v62 = vmul.f32 %v621_v25, %v616_v60  ;;  %v637_v6 = vadd.f32 %v607_v58, %v599_v57  ;;  %v1153_v51 = vpack.c.bf16 %v767_v12, %v766_v49  ;;  %v784_v52 = vrot.slane %v777_v50, %v1366_v47  ;;  %v923_v53 = vld [vmem:[%s1524_s8] ss:$0 sm:$0xff] }
 0x113   : > { %v641_v15 = vadd.f32 %v635_v5, %v633_v3  ;;  %v1155_v54 = vadd.f32 %v923_v53, %v922_v8 }
 0x114   : > { %v638_v10 = vadd.f32 %v622_v62, %v614_v61  ;;  %v643_v16 = vadd.f32 %v639_v13, %v637_v6 }
 0x116   : > { %v642_v22 = vadd.f32 %v638_v10, %v636_v9  ;;  %v645_v23 = vadd.f32 %v643_v16, %v641_v15 }
 0x118   : > { %v644_v24 = vadd.f32 %v642_v22, %v640_v18  ;;  %v647_v25 = vadd.f32 %v645_v23, %v631_v14 }
 0x11a   : > { %v646_v27 = vadd.f32 %v644_v24, %v630_v26 }
 0x11c   : > { %v673_v30 = vcombine.low %v646_v27, %v647_v25 }
 0x11e   : > { %v680_v32 = vrot.slane %v673_v30, %v1366_v47 }
 0x120   : > { %1046 = vmatmul.mubr.f32.vlgmr.msra.gmra.mrb[0].mxu1 %v680_v32 }
 0x121   : > { %1133 = vmatpush3.bf16.msra.mxu1 %v1132_v31  ;;  %1080 = vmatprep.mubr.msk.f32.mxu1 %vm1180_vm0, %v1181_v7  ;;  %v759_v7 = vld [vmem:[%s1523_s7 + $0x38] sm:$0xff] }
 0x122   : > { %1134 = vmatprep.subr.bf16.mxu1 %v1179_v4  ;;  %v1141_v38 = vpack.c.bf16 %v759_v7, %v758_v37 }
 0x125   : > { %1136 = vmatpush3.bf16.msra.mxu1 %v1135_v28 }
 0x126   : > { %1137 = vmatprep.subr.bf16.mxu1 %v1179_v4 }
 0x129   : > { %1139 = vmatpush3.bf16.msra.mxu1 %v1138_v36 }
 0x12a   : > { %1140 = vmatprep.subr.bf16.mxu1 %v1179_v4 }
 0x12d   : > { %1142 = vmatpush3.bf16.msra.mxu1 %v1141_v38 }
 0x12e   : > { %1143 = vmatprep.subr.bf16.mxu1 %v1179_v4 }
 0x131   : > { %1145 = vmatpush3.bf16.msra.mxu1 %v1144_v41 }
 0x132   : > { %1146 = vmatprep.subr.bf16.mxu1 %v1179_v4 }
 0x135   : > { %1148 = vmatpush3.bf16.msra.mxu1 %v1147_v44 }
 0x136   : > { %1149 = vmatprep.subr.bf16.mxu1 %v1179_v4 }
 0x139   : > { %1151 = vmatpush3.bf16.msra.mxu1 %v1150_v48 }
 0x13a   : > { %1152 = vmatprep.subr.bf16.mxu1 %v1179_v4 }
 0x13d   : > { %1154 = vmatpush3.bf16.msra.mxu1 %v1153_v51 }
 0x140   : > { %1081 = vmatmul.mubr.f32.vlgmr.msra.gmra.mrb[0].mxu1 %v784_v52 }
 0x213   : > { %v852_v13 = vpop.f32.mrb[0].mxu1 }
 0x214   : > { %v1156_v55 = vadd.f32 %v1155_v54, %v852_v13  ;;  %v1082_v19 = vpop.f32.mrb[1].mxu1 }
 0x216   : > { %v857_v4 = vmax.f32 %v1156_v55, 0.0 }
 0x218   : > { %858 = vst [vmem:[%s330_s22] sm:$0xf] %v857_v4 }
 0x219 PF: > { %s19_s30 = sadd.s32 1, %s1177_s30  }
 0x21a   : > { %p16_p4 = scmp.ge.s32.totalorder %s19_s30, 4  }
 0x21c   :  { %18 = sbr.rel (!%p16_p4) target bundleno = 1 (0x1), region = 89 }

// kernel: densebox_forward.31
= control target key start
LH: loop header
LB: loop body
LE: loop exit
PB: predicated region body
PF: predicated region fallthrough
CT: control target
= control target key end

     0   :  { %s534_s15 = smov 0   ;;  %s623_s0 = inlined_call_operand.vmem [shape: f32[2,2,2,128], index: 0, kind: input, shape index: {}]   ;;  %s624_s1 = inlined_call_operand.vmem [shape: f32[3,3,128], index: 1, kind: input, shape index: {}]   ;;  %s625_s2 = inlined_call_operand.vmem [shape: f32[128,128], index: 2, kind: input, shape index: {}]   ;;  %s626_s3 = inlined_call_operand.vmem [shape: f32[1,128], index: 3, kind: input, shape index: {}]   ;;  %s627_s4 = inlined_call_operand.vmem [shape: f32[2,1,128], index: 4, kind: output, shape index: {}]  }
   0x1 LB: > { %s401_s16 = sadd.s32 4294967295, %s504_s15   ;;  %p405_p0 = scmp.ge.s32.totalorder %s504_s15, 1  ;;  %s504_s15 = sphi %s534_s15, %s14_s15  }
   0x2   : > { %p162_p1 = scmp.lt.s32.totalorder %s504_s15, 3 }
   0x4   : > { %p163_p2 = pnand %p405_p0, %p162_p1 }
   0x5   : > { %v261_v0 = vld [vmem:[%s625_s2] sm:$0xff] (!%p163_p2)  ;;  %v262_v1 = vld [vmem:[%s625_s2 + $0x8] sm:$0xff] (!%p163_p2)  ;;  %v263_v2 = vld [vmem:[%s625_s2 + $0x10] sm:$0xff] (!%p163_p2)  ;;  %v506_v3 = vmov (!%p163_p2), 0.0|0.0   ;;  %vm507_vm0 = vmmov (!%p163_p2), 0   ;;  %v508_v6 = vmov (!%p163_p2), 0.0  }
   0x6   : > { %166 = sbr.rel (%p163_p2) target bundleno = 256 (0x100), region = 36  ;;  %463 = vmatprep.subr.bf16.mxu0 (!%p163_p2), %v506_v3  ;;  %v464_v4 = vpack.c.bf16 (!%p163_p2), %v262_v1, %v261_v0  ;;  %v264_v5 = vld [vmem:[%s625_s2 + $0x18] sm:$0xff] (!%p163_p2)  ;;  %460 = vmatprep.mubr.msk.f32.mxu0 (!%p163_p2), %vm507_vm0, %v508_v6  ;;  %194 = vst [vmem:[#allocation2] sm:$0xf] (!%p163_p2), %v508_v6  ;;  %198 = vst [vmem:[#allocation2 + $0x4] sm:$0x1] (!%p163_p2), %v508_v6 }
   0x7   : > { %199 = vst [vmem:[#allocation2 + $0x8] sm:$0x1] (!%p163_p2), %v508_v6  ;;  %p186_p3 = scmp.lt.s32.totalorder (!%p163_p2), %s401_s16, 1  ;;  %197 = vst [vmem:[#allocation2] sm:$0x1] (!%p163_p2), %v508_v6  ;;  %v467_v7 = vpack.c.bf16 (!%p163_p2), %v264_v5, %v263_v2  ;;  %v265_v8 = vld [vmem:[%s625_s2 + $0x20] sm:$0xff] (!%p163_p2) }
   0x8   : > { %465 = vmatpush3.bf16.msra.mxu0 (!%p163_p2), %v464_v4  ;;  %v266_v9 = vld [vmem:[%s625_s2 + $0x28] sm:$0xff] (!%p163_p2)  ;;  %v210_v10 = vld [vmem:[%s624_s1] sm:$0x7] (!%p163_p2)  ;;  %v267_v14 = vld [vmem:[%s625_s2 + $0x30] sm:$0xff] (!%p163_p2) }
   0x9   : > { %466 = vmatprep.subr.bf16.mxu0 (!%p163_p2), %v506_v3  ;;  %v470_v11 = vpack.c.bf16 (!%p163_p2), %v266_v9, %v265_v8  ;;  %v268_v15 = vld [vmem:[%s625_s2 + $0x38] sm:$0xff] (!%p163_p2)  ;;  %v211_v16 = vld [vmem:[%s624_s1 + $0x4] sm:$0x7] (!%p163_p2)  ;;  %v212_v17 = vld [vmem:[%s624_s1 + $0x8] sm:$0x7] (!%p163_p2)  ;;  %v218_v18 = vrot.slane (!%p163_p2), %v210_v10, 1 }
   0xa   : > { %v223_v19 = vrot.slane (!%p163_p2), %v210_v10, 2  ;;  %v269_v20 = vld [vmem:[%s625_s2 + $0x40] sm:$0xff] (!%p163_p2)  ;;  %v473_v23 = vpack.c.bf16 (!%p163_p2), %v268_v15, %v267_v14  ;;  %v270_v26 = vld [vmem:[%s625_s2 + $0x48] sm:$0xff] (!%p163_p2)  ;;  %v231_v27 = vrot.slane (!%p163_p2), %v211_v16, 1  ;;  %v236_v28 = vrot.slane (!%p163_p2), %v211_v16, 2  ;;  %v271_v39 = vld [vmem:[%s625_s2 + $0x50] sm:$0xff] (!%p163_p2) }
   0xb   : > { %v245_v30 = vrot.slane (!%p163_p2), %v212_v17, 1  ;;  %v476_v35 = vpack.c.bf16 (!%p163_p2), %v270_v26, %v269_v20  ;;  %v272_v40 = vld [vmem:[%s625_s2 + $0x58] sm:$0xff] (!%p163_p2)  ;;  %v273_v50 = vld [vmem:[%s625_s2 + $0x60] sm:$0xff] (!%p163_p2)  ;;  %v274_v51 = vld [vmem:[%s625_s2 + $0x68] sm:$0xff] (!%p163_p2)  ;;  %v250_v52 = vrot.slane (!%p163_p2), %v212_v17, 2 }
   0xc   : > { %468 = vmatpush3.bf16.msra.mxu0 (!%p163_p2), %v467_v7  ;;  %v479_v48 = vpack.c.bf16 (!%p163_p2), %v272_v40, %v271_v39  ;;  %v482_v55 = vpack.c.bf16 (!%p163_p2), %v274_v51, %v273_v50  ;;  %v275_v57 = vld [vmem:[%s625_s2 + $0x70] sm:$0xff] (!%p163_p2)  ;;  %v276_v58 = vld [vmem:[%s625_s2 + $0x78] sm:$0xff] (!%p163_p2)  ;;  %v277_v63 = vld [vmem:[%s626_s3] sm:$0x1] (!%p163_p2) }
   0xd   : > { %s629_s16 = smov (!%p186_p3, %s401_s16), 1  ;;  %469 = vmatprep.subr.bf16.mxu0 %v506_v3  ;;  %v216_v21 = vld [vmem:[#allocation2 + $0x1] ss:$2 sm:$0x1]  ;;  %v485_v61 = vpack.c.bf16 %v276_v58, %v275_v57 }
   0xe   : > { %s410_s29 = sshll.u32 %s629_s16, 2  ;;  %v222_v22 = vld [vmem:[#allocation2 + $0x2] ss:$2 sm:$0x1]  ;;  %v220_v32 = vmul.f32 %v218_v18, %v216_v21  ;;  %s193_s13 = scalar_lea.vmem %s627_s4, %s629_s16 }
   0xf   : > { %s190_s6 = scalar_lea.vmem %s623_s0, %s410_s29  ;;  %v213_v24 = vld [vmem:[#allocation2] ss:$2 sm:$0x1]  ;;  %v226_v25 = vld [vmem:[#allocation2 + $0x4] ss:$2 sm:$0x1]  ;;  %v225_v33 = vmul.f32 %v223_v19, %v222_v22 }
  0x10   : > { %v205_v12 = vld [vmem:[%s190_s6] sm:$0x3]  ;;  %v206_v13 = vld [vmem:[%s190_s6 + $0x2] sm:$0x3]  ;;  %471 = vmatpush3.bf16.msra.mxu0 %v470_v11  ;;  %v214_v31 = vmul.f32 %v213_v24, %v210_v10  ;;  %v227_v34 = vmul.f32 %v226_v25, %v211_v16 }
  0x11   : > { %208 = vst [vmem:[#allocation2 + $0x5] sm:$0x3] %v205_v12  ;;  %209 = vst [vmem:[#allocation2 + $0x9] sm:$0x3] %v206_v13  ;;  %472 = vmatprep.subr.bf16.mxu0 %v506_v3 }
  0x12   : > { %v240_v29 = vld [vmem:[#allocation2 + $0x8] ss:$2 sm:$0x1]  ;;  %v253_v45 = vadd.f32 %v220_v32, %v214_v31  ;;  %v254_v46 = vadd.f32 %v227_v34, %v225_v33 }
  0x13   : > { %v241_v38 = vmul.f32 %v240_v29, %v212_v17 }
  0x14   : > { %474 = vmatpush3.bf16.msra.mxu0 %v473_v23  ;;  %v257_v53 = vadd.f32 %v254_v46, %v253_v45 }
  0x15   : > { %475 = vmatprep.subr.bf16.mxu0 %v506_v3 }
  0x18   : > { %v229_v36 = vld [vmem:[#allocation2 + $0x5] ss:$2 sm:$0x1]  ;;  %v235_v37 = vld [vmem:[#allocation2 + $0x6] ss:$2 sm:$0x1]  ;;  %477 = vmatpush3.bf16.msra.mxu0 %v476_v35 }
  0x19   : > { %v233_v41 = vmul.f32 %v231_v27, %v229_v36  ;;  %v238_v42 = vmul.f32 %v236_v28, %v235_v37  ;;  %v243_v43 = vld [vmem:[#allocation2 + $0x9] ss:$2 sm:$0x1]  ;;  %478 = vmatprep.subr.bf16.mxu0 %v506_v3  ;;  %v249_v56 = vld [vmem:[#allocation2 + $0xa] ss:$2 sm:$0x1] }
  0x1a   : > { %v247_v44 = vmul.f32 %v245_v30, %v243_v43  ;;  %v252_v59 = vmul.f32 %v250_v52, %v249_v56 }
  0x1b   : > { %v255_v47 = vadd.f32 %v238_v42, %v233_v41 }
  0x1c   : > { %v256_v49 = vadd.f32 %v247_v44, %v241_v38  ;;  %480 = vmatpush3.bf16.msra.mxu0 %v479_v48 }
  0x1d   : > { %481 = vmatprep.subr.bf16.mxu0 %v506_v3 }
  0x1e   : > { %v258_v54 = vadd.f32 %v256_v49, %v255_v47 }
  0x20   : > { %v259_v60 = vadd.f32 %v258_v54, %v257_v53  ;;  %483 = vmatpush3.bf16.msra.mxu0 %v482_v55 }
  0x21   : > { %484 = vmatprep.subr.bf16.mxu0 %v506_v3 }
  0x22   : > { %v260_v62 = vadd.f32 %v259_v60, %v252_v59 }
  0x24   : > { %486 = vmatpush3.bf16.msra.mxu0 %v485_v61 }
  0x27   : > { %461 = vmatmul.mubr.f32.vlgmr.msra.gmra.mrb[0].mxu0 %v260_v62 }
  0xfa   : > { %v344_v0 = vpop.f32.mrb[0].mxu0 }
  0xfb   : > { %v345_v1 = vadd.f32 %v344_v0, %v277_v63  ;;  %v462_v2 = vpop.f32.mrb[1].mxu0 }
  0xfd   : > { %v348_v4 = vmax.f32 %v345_v1, 0.0 }
  0xff   : > { %349 = vst [vmem:[%s193_s13] sm:$0x1] %v348_v4 }
 0x100 PF: > { %s14_s15 = sadd.s32 1, %s504_s15  }
 0x101   : > { %p11_p4 = scmp.ge.s32.totalorder %s14_s15, 4  }
 0x103   :  { %13 = sbr.rel (!%p11_p4) target bundleno = 1 (0x1), region = 75 }

// kernel: densebox_forward.29
= control target key start
LH: loop header
LB: loop body
LE: loop exit
PB: predicated region body
PF: predicated region fallthrough
CT: control target
= control target key end

     0   :  { %s995_s24 = smov 0   ;;  %s1205_s0 = inlined_call_operand.vmem [shape: f32[2,2,2,128], index: 0, kind: input, shape index: {}]   ;;  %s1206_s1 = inlined_call_operand.vmem [shape: f32[3,3,128], index: 1, kind: input, shape index: {}]   ;;  %s1207_s2 = inlined_call_operand.vmem [shape: f32[128,128], index: 2, kind: input, shape index: {}]   ;;  %s1208_s3 = inlined_call_operand.vmem [shape: f32[1,128], index: 3, kind: input, shape index: {}]   ;;  %s1209_s4 = inlined_call_operand.vmem [shape: f32[3,3,128], index: 4, kind: input, shape index: {}]   ;;  %s1210_s5 = inlined_call_operand.vmem [shape: f32[128,128], index: 5, kind: input, shape index: {}]   ;;  %s1211_s6 = inlined_call_operand.vmem [shape: f32[1,128], index: 6, kind: input, shape index: {}]   ;;  %s1212_s7 = inlined_call_operand.vmem [shape: f32[2,4,128], index: 7, kind: output, shape index: {}]  }
   0x1 LB: > { %s765_s25 = sadd.s32 4294967295, %s949_s24   ;;  %p769_p0 = scmp.ge.s32.totalorder %s949_s24, 1  ;;  %s949_s24 = sphi %s995_s24, %s17_s24  }
   0x2   : > { %p237_p1 = scmp.lt.s32.totalorder %s949_s24, 3 }
   0x4   : > { %p238_p2 = pnand %p769_p0, %p237_p1 }
   0x5   : > { %v385_v0 = vld [vmem:[%s1207_s2] sm:$0xff] (!%p238_p2)  ;;  %v386_v1 = vld [vmem:[%s1207_s2 + $0x8] sm:$0xff] (!%p238_p2)  ;;  %v387_v2 = vld [vmem:[%s1207_s2 + $0x10] sm:$0xff] (!%p238_p2)  ;;  %v298_v3 = vlaneseq (!%p238_p2)  ;;  %v951_v4 = vmov (!%p238_p2), 0.0|0.0   ;;  %vm952_vm0 = vmmov (!%p238_p2), 0   ;;  %v953_v7 = vmov (!%p238_p2), 0.0  }
   0x6   : > { %241 = sbr.rel (%p238_p2) target bundleno = 507 (0x1fb), region = 48  ;;  %883 = vmatprep.subr.bf16.mxu0 (!%p238_p2), %v951_v4  ;;  %v884_v5 = vpack.c.bf16 (!%p238_p2), %v386_v1, %v385_v0  ;;  %v388_v6 = vld [vmem:[%s1207_s2 + $0x18] sm:$0xff] (!%p238_p2)  ;;  %845 = vmatprep.mubr.msk.f32.mxu0 (!%p238_p2), %vm952_vm0, %v953_v7  ;;  %279 = vst [vmem:[#allocation2] sm:$0xf] (!%p238_p2), %v953_v7  ;;  %281 = vst [vmem:[#allocation2 + $0xc] sm:$0xf] (!%p238_p2), %v953_v7 }
   0x7   : > { %283 = vst [vmem:[#allocation2 + $0x4] sm:$0x1] (!%p238_p2), %v953_v7  ;;  %284 = vst [vmem:[#allocation2 + $0x8] sm:$0x1] (!%p238_p2), %v953_v7  ;;  %p268_p3 = scmp.lt.s32.totalorder (!%p238_p2), %s765_s25, 1  ;;  %v1019_v8 = vshrl.u32 (!%p238_p2), %v298_v3, 7  ;;  %907 = vmatprep.subr.bf16.mxu1 (!%p238_p2), %v951_v4  ;;  %880 = vmatprep.mubr.msk.f32.mxu1 (!%p238_p2), %vm952_vm0, %v953_v7  ;;  %v887_v9 = vpack.c.bf16 (!%p238_p2), %v388_v6, %v387_v2 }
   0x8   : > { %287 = vst [vmem:[#allocation2 + $0x7] sm:$0x1] (!%p238_p2), %v953_v7  ;;  %288 = vst [vmem:[#allocation2 + $0xb] sm:$0x1] (!%p238_p2), %v953_v7  ;;  %885 = vmatpush3.bf16.msra.mxu0 (!%p238_p2), %v884_v5  ;;  %v389_v10 = vld [vmem:[%s1207_s2 + $0x20] sm:$0xff] (!%p238_p2)  ;;  %v390_v11 = vld [vmem:[%s1207_s2 + $0x28] sm:$0xff] (!%p238_p2) }
   0x9   : > { %282 = vst [vmem:[#allocation2] sm:$0x1] (!%p238_p2), %v953_v7  ;;  %285 = vst [vmem:[#allocation2 + $0xc] sm:$0x1] (!%p238_p2), %v953_v7  ;;  %886 = vmatprep.subr.bf16.mxu0 (!%p238_p2), %v951_v4  ;;  %v1035_v12 = vsub.s32 (!%p238_p2), 0, %v1019_v8  ;;  %v1038_v13 = vsub.s32 (!%p238_p2), 1, %v1019_v8  ;;  %v890_v16 = vpack.c.bf16 (!%p238_p2), %v390_v11, %v389_v10 }
   0xa   : > { %286 = vst [vmem:[#allocation2 + $0x3] sm:$0x1] (!%p238_p2), %v953_v7  ;;  %289 = vst [vmem:[#allocation2 + $0xf] sm:$0x1] (!%p238_p2), %v953_v7  ;;  %v293_v14 = vld [vmem:[%s1206_s1] sm:$0x7] (!%p238_p2) }
   0xb   : > { %v295_v15 = vld [vmem:[%s1206_s1 + $0x8] sm:$0x7] (!%p238_p2)  ;;  %v1057_v19 = vsub.s32 (!%p238_p2), 2, %v1019_v8  ;;  %v391_v20 = vld [vmem:[%s1207_s2 + $0x30] sm:$0xff] (!%p238_p2)  ;;  %v392_v21 = vld [vmem:[%s1207_s2 + $0x38] sm:$0xff] (!%p238_p2)  ;;  %v301_v22 = vrot.slane (!%p238_p2), %v293_v14, %v1035_v12  ;;  %v309_v23 = vrot.slane (!%p238_p2), %v293_v14, %v1038_v13 }
   0xc   : > { %888 = vmatpush3.bf16.msra.mxu0 (!%p238_p2), %v887_v9  ;;  %v350_v26 = vrot.slane (!%p238_p2), %v295_v15, %v1035_v12  ;;  %v358_v27 = vrot.slane (!%p238_p2), %v295_v15, %v1038_v13  ;;  %v294_v28 = vld [vmem:[%s1206_s1 + $0x4] sm:$0x7] (!%p238_p2)  ;;  %v893_v31 = vpack.c.bf16 (!%p238_p2), %v392_v21, %v391_v20  ;;  %v394_v34 = vld [vmem:[%s1207_s2 + $0x48] sm:$0xff] (!%p238_p2)  ;;  %v395_v42 = vld [vmem:[%s1207_s2 + $0x50] sm:$0xff] (!%p238_p2)  ;;  %v954_v51 = vmov (!%p238_p2), 1983009808  }
   0xd   : > { %s1214_s25 = smov (!%p268_p3, %s765_s25), 1  ;;  %889 = vmatprep.subr.bf16.mxu0 %v951_v4  ;;  %v304_v25 = vld [vmem:[#allocation2 + $0x1] sm:$0x3]  ;;  %v354_v30 = vld [vmem:[#allocation2 + $0xd] sm:$0x3]  ;;  %v317_v32 = vrot.slane %v293_v14, %v1057_v19  ;;  %v325_v38 = vrot.slane %v294_v28, %v1035_v12  ;;  %v333_v39 = vrot.slane %v294_v28, %v1038_v13  ;;  %v396_v43 = vld [vmem:[%s1207_s2 + $0x58] sm:$0xff]  ;;  %v341_v44 = vrot.slane %v294_v28, %v1057_v19 }
   0xe   : > { %s778_s15 = sshll.u32 %s1214_s25, 2  ;;  %v393_v33 = vld [vmem:[%s1207_s2 + $0x40] sm:$0xff]  ;;  %v310_v36 = vmul.f32 %v309_v23, %v304_v25  ;;  %v360_v41 = vmul.f32 %v358_v27, %v354_v30  ;;  %v366_v50 = vrot.slane %v295_v15, %v1057_v19  ;;  %v412_v52 = vunpack.c.l.s4 %v954_v51 }
   0xf   : > { %s272_s20 = scalar_lea.vmem %s1205_s0, %s778_s15  ;;  %v896_v45 = vpack.c.bf16 %v394_v34, %v393_v33  ;;  %v899_v11 = vpack.c.bf16 %v396_v43, %v395_v42  ;;  %v397_v21 = vld [vmem:[%s1207_s2 + $0x60] sm:$0xff]  ;;  %s276_s8 = scalar_lea.vmem %s1212_s7, %s778_s15 }
  0x10   : > { %v1052_v17 = vld [vmem:[%s272_s20] sm:$0x3]  ;;  %v1054_v18 = vld [vmem:[%s272_s20 + $0x2] sm:$0x3]  ;;  %v346_v29 = vld [vmem:[#allocation2 + $0xc] sm:$0x3]  ;;  %891 = vmatpush3.bf16.msra.mxu0 %v890_v16 }
  0x11   : > { %291 = vst [vmem:[#allocation2 + $0x5] sm:$0x3] %v1052_v17  ;;  %292 = vst [vmem:[#allocation2 + $0x9] sm:$0x3] %v1054_v18  ;;  %v296_v24 = vld [vmem:[#allocation2] sm:$0x3]  ;;  %892 = vmatprep.subr.bf16.mxu0 %v951_v4  ;;  %v352_v40 = vmul.f32 %v350_v26, %v346_v29 }
  0x12   : > { %v302_v35 = vmul.f32 %v301_v22, %v296_v24  ;;  %v312_v37 = vld [vmem:[#allocation2 + $0x2] sm:$0x3]  ;;  %v362_v16 = vld [vmem:[#allocation2 + $0xe] sm:$0x3] }
  0x13   : > { %v318_v49 = vmul.f32 %v317_v32, %v312_v37  ;;  %v376_v2 = vadd.f32 %v360_v41, %v352_v40  ;;  %v400_v37 = vld [vmem:[%s1207_s2 + $0x78] sm:$0xff]  ;;  %v598_v51 = vld [vmem:[%s1210_s5 + $0x20] sm:$0xff] }
  0x14   : > { %894 = vmatpush3.bf16.msra.mxu0 %v893_v31  ;;  %v369_v59 = vadd.f32 %v310_v36, %v302_v35  ;;  %v413_v35 = vunpack.c.0.s8 %v412_v52  ;;  %v399_v36 = vld [vmem:[%s1207_s2 + $0x70] sm:$0xff]  ;;  %v599_v52 = vld [vmem:[%s1210_s5 + $0x28] sm:$0xff] }
  0x15   : > { %895 = vmatprep.subr.bf16.mxu0 %v951_v4  ;;  %v905_v41 = vpack.c.bf16 %v400_v37, %v399_v36 }
  0x16   : > { %v1109_v43 = vsub.s32 %v413_v35, %v1019_v8  ;;  %v596_v8 = vld [vmem:[%s1210_s5 + $0x10] sm:$0xff] }
  0x18   : > { %v297_v46 = vld [vmem:[#allocation2 + $0x4] sm:$0x3]  ;;  %v313_v48 = vld [vmem:[#allocation2 + $0x6] sm:$0x3]  ;;  %v321_v57 = vld [vmem:[#allocation2 + $0x8] sm:$0x3]  ;;  %897 = vmatpush3.bf16.msra.mxu0 %v896_v45 }
  0x19   : > { %v305_v47 = vld [vmem:[#allocation2 + $0x5] sm:$0x3]  ;;  %v303_v53 = vmul.f32 %v301_v22, %v297_v46  ;;  %v319_v55 = vmul.f32 %v317_v32, %v313_v48  ;;  %v327_v61 = vmul.f32 %v325_v38, %v321_v57  ;;  %v329_v62 = vld [vmem:[#allocation2 + $0x9] sm:$0x3]  ;;  %898 = vmatprep.subr.bf16.mxu0 %v951_v4 }
  0x1a   : > { %v311_v54 = vmul.f32 %v309_v23, %v305_v47  ;;  %v320_v56 = vld [vmem:[#allocation2 + $0x4] sm:$0x3]  ;;  %v336_v0 = vld [vmem:[#allocation2 + $0x6] sm:$0x3]  ;;  %v337_v1 = vld [vmem:[#allocation2 + $0xa] sm:$0x3]  ;;  %v335_v3 = vmul.f32 %v333_v39, %v329_v62 }
  0x1b   : > { %v328_v58 = vld [vmem:[#allocation2 + $0x5] sm:$0x3]  ;;  %v326_v60 = vmul.f32 %v325_v38, %v320_v56  ;;  %v342_v5 = vmul.f32 %v341_v44, %v336_v0  ;;  %v343_v6 = vmul.f32 %v341_v44, %v337_v1  ;;  %v345_v7 = vld [vmem:[#allocation2 + $0x8] sm:$0x3]  ;;  %v361_v23 = vld [vmem:[#allocation2 + $0xa] sm:$0x3]  ;;  %v372_v24 = vadd.f32 %v327_v61, %v319_v55 }
  0x1c   : > { %v334_v63 = vmul.f32 %v333_v39, %v328_v58  ;;  %v353_v9 = vld [vmem:[#allocation2 + $0x9] sm:$0x3]  ;;  %v370_v10 = vadd.f32 %v311_v54, %v303_v53  ;;  %v351_v14 = vmul.f32 %v350_v26, %v345_v7  ;;  %v368_v26 = vmul.f32 %v366_v50, %v362_v16  ;;  %900 = vmatpush3.bf16.msra.mxu0 %v899_v11  ;;  %v594_v46 = vld [vmem:[%s1210_s5] sm:$0xff]  ;;  %v600_v54 = vld [vmem:[%s1210_s5 + $0x30] sm:$0xff] }
  0x1d   : > { %v359_v15 = vmul.f32 %v358_v27, %v353_v9  ;;  %v371_v20 = vadd.f32 %v326_v60, %v318_v49  ;;  %v398_v22 = vld [vmem:[%s1207_s2 + $0x68] sm:$0xff]  ;;  %v374_v28 = vadd.f32 %v343_v6, %v335_v3  ;;  %v367_v33 = vmul.f32 %v366_v50, %v361_v23  ;;  %901 = vmatprep.subr.bf16.mxu0 %v951_v4  ;;  %v597_v49 = vld [vmem:[%s1210_s5 + $0x18] sm:$0xff]  ;;  %v602_v56 = vld [vmem:[%s1210_s5 + $0x40] sm:$0xff] }
  0x1e   : > { %v373_v25 = vadd.f32 %v342_v5, %v334_v63  ;;  %v378_v27 = vadd.f32 %v372_v24, %v370_v10  ;;  %v902_v32 = vpack.c.bf16 %v398_v22, %v397_v21  ;;  %v595_v47 = vld [vmem:[%s1210_s5 + $0x8] sm:$0xff]  ;;  %v911_v50 = vpack.c.bf16 %v597_v49, %v596_v8  ;;  %v601_v55 = vld [vmem:[%s1210_s5 + $0x38] sm:$0xff]  ;;  %v604_v60 = vld [vmem:[%s1210_s5 + $0x50] sm:$0xff] }
  0x1f   : > { %v375_v29 = vadd.f32 %v359_v15, %v351_v14  ;;  %v377_v30 = vadd.f32 %v371_v20, %v369_v59  ;;  %v380_v31 = vadd.f32 %v376_v2, %v374_v28  ;;  %v908_v48 = vpack.c.bf16 %v595_v47, %v594_v46  ;;  %v603_v58 = vld [vmem:[%s1210_s5 + $0x48] sm:$0xff]  ;;  %v605_v61 = vld [vmem:[%s1210_s5 + $0x58] sm:$0xff]  ;;  %v606_v63 = vld [vmem:[%s1210_s5 + $0x60] sm:$0xff] }
  0x20   : > { %903 = vmatpush3.bf16.msra.mxu0 %v902_v32  ;;  %v914_v53 = vpack.c.bf16 %v599_v52, %v598_v51  ;;  %v917_v57 = vpack.c.bf16 %v601_v55, %v600_v54  ;;  %v920_v59 = vpack.c.bf16 %v603_v58, %v602_v56  ;;  %v923_v62 = vpack.c.bf16 %v605_v61, %v604_v60  ;;  %v607_v0 = vld [vmem:[%s1210_s5 + $0x68] sm:$0xff]  ;;  %v608_v2 = vld [vmem:[%s1210_s5 + $0x70] sm:$0xff]  ;;  %v609_v3 = vld [vmem:[%s1210_s5 + $0x78] sm:$0xff] }
  0x21   : > { %v379_v34 = vadd.f32 %v375_v29, %v373_v25  ;;  %v382_v38 = vadd.f32 %v380_v31, %v378_v27  ;;  %904 = vmatprep.subr.bf16.mxu0 %v951_v4  ;;  %909 = vmatpush3.bf16.msra.mxu1 %v908_v48  ;;  %v926_v1 = vpack.c.bf16 %v607_v0, %v606_v63  ;;  %v773_v6 = vld [vmem:[%s1208_s3] ss:$0 sm:$0xff]  ;;  %v505_v15 = vld [vmem:[%s1209_s4 + $0x8] sm:$0x7]  ;;  %v504_v20 = vld [vmem:[%s1209_s4 + $0x4] sm:$0x7] }
  0x22   : > { %910 = vmatprep.subr.bf16.mxu1 %v951_v4  ;;  %v929_v5 = vpack.c.bf16 %v609_v3, %v608_v2  ;;  %v559_v21 = vrot.slane %v505_v15, %v1035_v12  ;;  %v567_v22 = vrot.slane %v505_v15, %v1038_v13  ;;  %v555_v23 = vld [vmem:[#allocation2 + $0xc] sm:$0x3]  ;;  %v514_v27 = vld [vmem:[#allocation2 + $0x1] sm:$0x3]  ;;  %v551_v35 = vrot.slane %v504_v20, %v1057_v19  ;;  %v571_v60 = vld [vmem:[#allocation2 + $0xe] sm:$0x3] }
  0x23   : > { %v381_v39 = vadd.f32 %v379_v34, %v377_v30  ;;  %v384_v40 = vadd.f32 %v382_v38, %v368_v26  ;;  %v563_v24 = vld [vmem:[#allocation2 + $0xd] sm:$0x3]  ;;  %v535_v30 = vrot.slane %v504_v20, %v1035_v12  ;;  %v506_v26 = vld [vmem:[#allocation2] sm:$0x3]  ;;  %v522_v31 = vld [vmem:[#allocation2 + $0x2] sm:$0x3]  ;;  %v543_v34 = vrot.slane %v504_v20, %v1038_v13 }
  0x24   : > { %906 = vmatpush3.bf16.msra.mxu0 %v905_v41  ;;  %v561_v36 = vmul.f32 %v559_v21, %v555_v23  ;;  %v569_v37 = vmul.f32 %v567_v22, %v563_v24  ;;  %v575_v63 = vrot.slane %v505_v15, %v1057_v19  ;;  %v700_v15 = vcombine.low %v1052_v17, %v1054_v18  ;;  %v775_v24 = vld [vmem:[%s1211_s6] ss:$0 sm:$0xff] }
  0x25   : > { %v383_v42 = vadd.f32 %v381_v39, %v367_v33  ;;  %912 = vmatpush3.bf16.msra.mxu1 %v911_v50 }
  0x26   : > { %913 = vmatprep.subr.bf16.mxu1 %v951_v4 }
  0x27   : > { %v410_v44 = vcombine.low %v383_v42, %v384_v40 }
  0x29   : > { %v417_v45 = vrot.slane %v410_v44, %v1109_v43  ;;  %915 = vmatpush3.bf16.msra.mxu1 %v914_v53 }
  0x2a   : > { %916 = vmatprep.subr.bf16.mxu1 %v951_v4 }
  0x2b   : > { %846 = vmatmul.mubr.f32.vlgmr.msra.gmra.mrb[0].mxu0 %v417_v45 }
  0x2d   : > { %918 = vmatpush3.bf16.msra.mxu1 %v917_v57 }
  0x2e   : > { %919 = vmatprep.subr.bf16.mxu1 %v951_v4 }
  0x31   : > { %921 = vmatpush3.bf16.msra.mxu1 %v920_v59 }
  0x32   : > { %922 = vmatprep.subr.bf16.mxu1 %v951_v4 }
  0x35   : > { %924 = vmatpush3.bf16.msra.mxu1 %v923_v62 }
  0x36   : > { %925 = vmatprep.subr.bf16.mxu1 %v951_v4 }
  0x39   : > { %927 = vmatpush3.bf16.msra.mxu1 %v926_v1 }
  0x3a   : > { %928 = vmatprep.subr.bf16.mxu1 %v951_v4  ;;  %v503_v4 = vld [vmem:[%s1209_s4] sm:$0x7] }
  0x3b   : > { %v511_v25 = vrot.slane %v503_v4, %v1035_v12  ;;  %v519_v28 = vrot.slane %v503_v4, %v1038_v13  ;;  %v527_v29 = vrot.slane %v503_v4, %v1057_v19  ;;  %v585_v13 = vadd.f32 %v569_v37, %v561_v36 }
  0x3d   : > { %930 = vmatpush3.bf16.msra.mxu1 %v929_v5  ;;  %v512_v41 = vmul.f32 %v511_v25, %v506_v26  ;;  %v520_v42 = vmul.f32 %v519_v28, %v514_v27  ;;  %v528_v45 = vmul.f32 %v527_v29, %v522_v31 }
  0x3f   : > { %v578_v61 = vadd.f32 %v520_v42, %v512_v41 }
  0xfe   : > { %v485_v7 = vpop.f32.mrb[0].mxu0 }
  0xff   : > { %v486_v9 = vadd.f32 %v773_v6, %v485_v7  ;;  %v847_v10 = vpop.f32.mrb[1].mxu0  ;;  %v577_v7 = vmul.f32 %v575_v63, %v571_v60 }
 0x101   : > { %v489_v11 = vmax.f32 %v486_v9, 0.0 }
 0x103   : > { %v497_v14 = vrot.slane %v489_v11, %v1109_v43  ;;  %774 = vst.sshfl [vmem:[#allocation2 + $0x5] sm:$0x3 pattern:$0x76325410] %v489_v11 }
 0x105   : > { %v498_v16 = vcombine.high %v497_v14, %v497_v14 }
 0x107   : > { %502 = vst [vmem:[#allocation2 + $0x9] sm:$0x3] %v498_v16 }
 0x10a   : > { %v507_v32 = vld [vmem:[#allocation2 + $0x4] sm:$0x3]  ;;  %v546_v40 = vld [vmem:[#allocation2 + $0x6] sm:$0x3] }
 0x10b   : > { %v515_v33 = vld [vmem:[#allocation2 + $0x5] sm:$0x3]  ;;  %v513_v12 = vmul.f32 %v511_v25, %v507_v32  ;;  %v552_v51 = vmul.f32 %v551_v35, %v546_v40  ;;  %v707_v25 = vrot.slane %v700_v15, %v1109_v43 }
 0x10c   : > { %v530_v38 = vld [vmem:[#allocation2 + $0x4] sm:$0x3]  ;;  %v523_v44 = vld [vmem:[#allocation2 + $0x6] sm:$0x3]  ;;  %v521_v47 = vmul.f32 %v519_v28, %v515_v33 }
 0x10d   : > { %v538_v39 = vld [vmem:[#allocation2 + $0x5] sm:$0x3]  ;;  %v536_v46 = vmul.f32 %v535_v30, %v530_v38  ;;  %v529_v52 = vmul.f32 %v527_v29, %v523_v44 }
 0x10e   : > { %v531_v48 = vld [vmem:[#allocation2 + $0x8] sm:$0x3]  ;;  %v544_v49 = vmul.f32 %v543_v34, %v538_v39  ;;  %v547_v50 = vld [vmem:[#allocation2 + $0xa] sm:$0x3]  ;;  %v579_v0 = vadd.f32 %v521_v47, %v513_v12 }
 0x10f   : > { %v539_v8 = vld [vmem:[#allocation2 + $0x9] sm:$0x3]  ;;  %v537_v53 = vmul.f32 %v535_v30, %v531_v48  ;;  %v553_v55 = vmul.f32 %v551_v35, %v547_v50  ;;  %v580_v62 = vadd.f32 %v536_v46, %v528_v45 }
 0x110   : > { %v545_v54 = vmul.f32 %v543_v34, %v539_v8  ;;  %v554_v56 = vld [vmem:[#allocation2 + $0x8] sm:$0x3]  ;;  %v582_v3 = vadd.f32 %v552_v51, %v544_v49  ;;  %v570_v6 = vld [vmem:[#allocation2 + $0xa] sm:$0x3] }
 0x111   : > { %v562_v57 = vld [vmem:[#allocation2 + $0x9] sm:$0x3]  ;;  %v560_v58 = vmul.f32 %v559_v21, %v554_v56  ;;  %v581_v1 = vadd.f32 %v537_v53, %v529_v52  ;;  %v586_v11 = vadd.f32 %v580_v62, %v578_v61  ;;  %v576_v4 = vmul.f32 %v575_v63, %v570_v6 }
 0x112   : > { %v568_v59 = vmul.f32 %v567_v22, %v562_v57  ;;  %v583_v2 = vadd.f32 %v553_v55, %v545_v54 }
 0x113   : > { %v587_v9 = vadd.f32 %v581_v1, %v579_v0 }
 0x114   : > { %v584_v5 = vadd.f32 %v568_v59, %v560_v58  ;;  %v589_v10 = vadd.f32 %v585_v13, %v583_v2 }
 0x116   : > { %v588_v14 = vadd.f32 %v584_v5, %v582_v3  ;;  %v591_v16 = vadd.f32 %v589_v10, %v587_v9 }
 0x118   : > { %v590_v20 = vadd.f32 %v588_v14, %v586_v11  ;;  %v593_v21 = vadd.f32 %v591_v16, %v577_v7 }
 0x11a   : > { %v592_v22 = vadd.f32 %v590_v20, %v576_v4 }
 0x11c   : > { %v619_v23 = vcombine.low %v592_v22, %v593_v21 }
 0x11e   : > { %v626_v19 = vrot.slane %v619_v23, %v1109_v43 }
 0x120   : > { %881 = vmatmul.mubr.f32.vlgmr.msra.gmra.mrb[0].mxu1 %v626_v19 }
 0x1f3   : > { %v694_v28 = vpop.f32.mrb[0].mxu1 }
 0x1f4   : > { %v695_v29 = vadd.f32 %v775_v24, %v694_v28  ;;  %v882_v30 = vpop.f32.mrb[1].mxu1 }
 0x1f6   : > { %v709_v26 = vadd.f32 %v707_v25, %v695_v29 }
 0x1f8   : > { %v710_v27 = vmax.f32 %v709_v26, 0.0 }
 0x1fa   : > { %711 = vst [vmem:[%s276_s8] sm:$0xf] %v710_v27 }
 0x1fb PF: > { %s17_s24 = sadd.s32 1, %s949_s24  }
 0x1fc   : > { %p14_p4 = scmp.ge.s32.totalorder %s17_s24, 4  }
 0x1fe   :  { %16 = sbr.rel (!%p14_p4) target bundleno = 1 (0x1), region = 81 }

// kernel: densebox_forward.32
= control target key start
LH: loop header
LB: loop body
LE: loop exit
PB: predicated region body
PF: predicated region fallthrough
CT: control target
= control target key end

     0   :  { %s507_s15 = smov 0   ;;  %s596_s0 = inlined_call_operand.vmem [shape: f32[2,1,1,128], index: 0, kind: input, shape index: {}]   ;;  %s597_s1 = inlined_call_operand.vmem [shape: f32[3,3,128], index: 1, kind: input, shape index: {}]   ;;  %s598_s2 = inlined_call_operand.vmem [shape: f32[128,128], index: 2, kind: input, shape index: {}]   ;;  %s599_s3 = inlined_call_operand.vmem [shape: f32[1,128], index: 3, kind: input, shape index: {}]   ;;  %s600_s4 = inlined_call_operand.vmem [shape: f32[2,1,128], index: 4, kind: output, shape index: {}]  }
   0x1 LB: > { %s377_s16 = sadd.s32 4294967295, %s477_s15   ;;  %p381_p0 = scmp.ge.s32.totalorder %s477_s15, 1  ;;  %s477_s15 = sphi %s507_s15, %s14_s15  }
   0x2   : > { %p160_p1 = scmp.lt.s32.totalorder %s477_s15, 3 }
   0x4   : > { %p161_p2 = pnand %p381_p0, %p160_p1 }
   0x5   : > { %v244_v0 = vld [vmem:[%s598_s2] sm:$0xff] (!%p161_p2)  ;;  %v245_v1 = vld [vmem:[%s598_s2 + $0x8] sm:$0xff] (!%p161_p2)  ;;  %v246_v2 = vld [vmem:[%s598_s2 + $0x10] sm:$0xff] (!%p161_p2)  ;;  %v479_v3 = vmov (!%p161_p2), 0.0|0.0   ;;  %v480_v6 = vmov (!%p161_p2), 0.0   ;;  %vm481_vm0 = vmmov (!%p161_p2), 0  }
   0x6   : > { %164 = sbr.rel (%p161_p2) target bundleno = 256 (0x100), region = 36  ;;  %436 = vmatprep.subr.bf16.mxu0 (!%p161_p2), %v479_v3  ;;  %v437_v4 = vpack.c.bf16 (!%p161_p2), %v245_v1, %v244_v0  ;;  %v247_v5 = vld [vmem:[%s598_s2 + $0x18] sm:$0xff] (!%p161_p2)  ;;  %188 = vst [vmem:[#allocation2] sm:$0x7] (!%p161_p2), %v480_v6  ;;  %190 = vst [vmem:[#allocation2 + $0x8] sm:$0x7] (!%p161_p2), %v480_v6  ;;  %433 = vmatprep.mubr.msk.f32.mxu0 (!%p161_p2), %vm481_vm0, %v480_v6 }
   0x7   : > { %192 = vst [vmem:[#allocation2 + $0x4] sm:$0x1] (!%p161_p2), %v480_v6  ;;  %195 = vst [vmem:[#allocation2 + $0x6] sm:$0x1] (!%p161_p2), %v480_v6  ;;  %p182_p3 = scmp.lt.s32.totalorder (!%p161_p2), %s377_s16, 1  ;;  %v440_v7 = vpack.c.bf16 (!%p161_p2), %v247_v5, %v246_v2  ;;  %v248_v8 = vld [vmem:[%s598_s2 + $0x20] sm:$0xff] (!%p161_p2) }
   0x8   : > { %191 = vst [vmem:[#allocation2] sm:$0x1] (!%p161_p2), %v480_v6  ;;  %193 = vst [vmem:[#allocation2 + $0x8] sm:$0x1] (!%p161_p2), %v480_v6  ;;  %438 = vmatpush3.bf16.msra.mxu0 (!%p161_p2), %v437_v4  ;;  %v249_v9 = vld [vmem:[%s598_s2 + $0x28] sm:$0xff] (!%p161_p2)  ;;  %v250_v15 = vld [vmem:[%s598_s2 + $0x30] sm:$0xff] (!%p161_p2) }
   0x9   : > { %194 = vst [vmem:[#allocation2 + $0x2] sm:$0x1] (!%p161_p2), %v480_v6  ;;  %196 = vst [vmem:[#allocation2 + $0xa] sm:$0x1] (!%p161_p2), %v480_v6  ;;  %439 = vmatprep.subr.bf16.mxu0 (!%p161_p2), %v479_v3  ;;  %v200_v10 = vld [vmem:[%s597_s1] sm:$0x7] (!%p161_p2)  ;;  %v443_v14 = vpack.c.bf16 (!%p161_p2), %v249_v9, %v248_v8 }
   0xa   : > { %v201_v12 = vld [vmem:[%s597_s1 + $0x4] sm:$0x7] (!%p161_p2)  ;;  %v202_v13 = vld [vmem:[%s597_s1 + $0x8] sm:$0x7] (!%p161_p2)  ;;  %v251_v16 = vld [vmem:[%s598_s2 + $0x38] sm:$0xff] (!%p161_p2)  ;;  %v207_v17 = vrot.slane (!%p161_p2), %v200_v10, 1 }
   0xb   : > { %v211_v19 = vrot.slane (!%p161_p2), %v200_v10, 2  ;;  %v218_v20 = vrot.slane (!%p161_p2), %v201_v12, 1  ;;  %v222_v21 = vrot.slane (!%p161_p2), %v201_v12, 2  ;;  %v229_v22 = vrot.slane (!%p161_p2), %v202_v13, 1  ;;  %v252_v30 = vld [vmem:[%s598_s2 + $0x40] sm:$0xff] (!%p161_p2)  ;;  %v253_v31 = vld [vmem:[%s598_s2 + $0x48] sm:$0xff] (!%p161_p2) }
   0xc   : > { %441 = vmatpush3.bf16.msra.mxu0 (!%p161_p2), %v440_v7  ;;  %v446_v26 = vpack.c.bf16 (!%p161_p2), %v251_v16, %v250_v15  ;;  %v449_v40 = vpack.c.bf16 (!%p161_p2), %v253_v31, %v252_v30  ;;  %v254_v42 = vld [vmem:[%s598_s2 + $0x50] sm:$0xff] (!%p161_p2)  ;;  %v255_v43 = vld [vmem:[%s598_s2 + $0x58] sm:$0xff] (!%p161_p2)  ;;  %v256_v49 = vld [vmem:[%s598_s2 + $0x60] sm:$0xff] (!%p161_p2)  ;;  %v233_v51 = vrot.slane (!%p161_p2), %v202_v13, 2 }
   0xd   : > { %s602_s16 = smov (!%p182_p3, %s377_s16), 1  ;;  %442 = vmatprep.subr.bf16.mxu0 %v479_v3  ;;  %v205_v18 = vld [vmem:[#allocation2 + $0x1] sm:$0x1]  ;;  %v227_v29 = vld [vmem:[#allocation2 + $0x9] sm:$0x1]  ;;  %v452_v48 = vpack.c.bf16 %v255_v43, %v254_v42  ;;  %v258_v56 = vld [vmem:[%s598_s2 + $0x70] sm:$0xff] }
   0xe   : > { %s184_s5 = scalar_lea.vmem %s596_s0, %s602_s16  ;;  %v214_v24 = vld [vmem:[#allocation2 + $0x4] sm:$0x1]  ;;  %v221_v25 = vld [vmem:[#allocation2 + $0x6] sm:$0x1]  ;;  %v209_v32 = vmul.f32 %v207_v17, %v205_v18  ;;  %v231_v39 = vmul.f32 %v229_v22, %v227_v29  ;;  %v257_v50 = vld [vmem:[%s598_s2 + $0x68] sm:$0xff]  ;;  %s187_s12 = scalar_lea.vmem %s600_s4, %s602_s16 }
   0xf   : > { %v197_v11 = vld [vmem:[%s184_s5] sm:$0x1]  ;;  %v225_v28 = vld [vmem:[#allocation2 + $0x8] sm:$0x1]  ;;  %v215_v33 = vmul.f32 %v214_v24, %v201_v12  ;;  %v224_v34 = vmul.f32 %v222_v21, %v221_v25  ;;  %v455_v54 = vpack.c.bf16 %v257_v50, %v256_v49  ;;  %v259_v57 = vld [vmem:[%s598_s2 + $0x78] sm:$0xff] }
  0x10   : > { %199 = vst [vmem:[#allocation2 + $0x5] sm:$0x1] %v197_v11  ;;  %v203_v23 = vld [vmem:[#allocation2] sm:$0x1]  ;;  %444 = vmatpush3.bf16.msra.mxu0 %v443_v14  ;;  %v210_v27 = vld [vmem:[#allocation2 + $0x2] sm:$0x1]  ;;  %v226_v38 = vmul.f32 %v225_v28, %v202_v13  ;;  %v458_v60 = vpack.c.bf16 %v259_v57, %v258_v56 }
  0x11   : > { %445 = vmatprep.subr.bf16.mxu0 %v479_v3  ;;  %v204_v35 = vmul.f32 %v203_v23, %v200_v10  ;;  %v213_v36 = vmul.f32 %v211_v19, %v210_v27  ;;  %v232_v55 = vld [vmem:[#allocation2 + $0xa] sm:$0x1]  ;;  %v260_v62 = vld [vmem:[%s599_s3] sm:$0x1] }
  0x12   : > { %v239_v47 = vadd.f32 %v231_v39, %v226_v38  ;;  %v235_v58 = vmul.f32 %v233_v51, %v232_v55 }
  0x13   : > { %v236_v44 = vadd.f32 %v209_v32, %v204_v35  ;;  %v237_v45 = vadd.f32 %v215_v33, %v213_v36 }
  0x14   : > { %447 = vmatpush3.bf16.msra.mxu0 %v446_v26 }
  0x15   : > { %448 = vmatprep.subr.bf16.mxu0 %v479_v3  ;;  %v240_v52 = vadd.f32 %v237_v45, %v236_v44 }
  0x17   : > { %v216_v37 = vld [vmem:[#allocation2 + $0x5] sm:$0x1] }
  0x18   : > { %v220_v41 = vmul.f32 %v218_v20, %v216_v37  ;;  %450 = vmatpush3.bf16.msra.mxu0 %v449_v40 }
  0x19   : > { %451 = vmatprep.subr.bf16.mxu0 %v479_v3 }
  0x1a   : > { %v238_v46 = vadd.f32 %v224_v34, %v220_v41 }
  0x1c   : > { %v241_v53 = vadd.f32 %v239_v47, %v238_v46  ;;  %453 = vmatpush3.bf16.msra.mxu0 %v452_v48 }
  0x1d   : > { %454 = vmatprep.subr.bf16.mxu0 %v479_v3 }
  0x1e   : > { %v242_v59 = vadd.f32 %v241_v53, %v240_v52 }
  0x20   : > { %456 = vmatpush3.bf16.msra.mxu0 %v455_v54  ;;  %v243_v61 = vadd.f32 %v242_v59, %v235_v58 }
  0x21   : > { %457 = vmatprep.subr.bf16.mxu0 %v479_v3 }
  0x24   : > { %459 = vmatpush3.bf16.msra.mxu0 %v458_v60 }
  0x27   : > { %434 = vmatmul.mubr.f32.vlgmr.msra.gmra.mrb[0].mxu0 %v243_v61 }
  0xfa   : > { %v327_v63 = vpop.f32.mrb[0].mxu0 }
  0xfb   : > { %v328_v0 = vadd.f32 %v327_v63, %v260_v62  ;;  %v435_v1 = vpop.f32.mrb[1].mxu0 }
  0xfd   : > { %v331_v2 = vmax.f32 %v328_v0, 0.0 }
  0xff   : > { %332 = vst [vmem:[%s187_s12] sm:$0x1] %v331_v2 }
 0x100 PF: > { %s14_s15 = sadd.s32 1, %s477_s15  }
 0x101   : > { %p11_p4 = scmp.ge.s32.totalorder %s14_s15, 4  }
 0x103   :  { %13 = sbr.rel (!%p11_p4) target bundleno = 1 (0x1), region = 68 }

// kernel: densebox_forward.35
= control target key start
LH: loop header
LB: loop body
LE: loop exit
PB: predicated region body
PF: predicated region fallthrough
CT: control target
= control target key end

     0   :  { %s813_s24 = smov 0   ;;  %s979_s0 = inlined_call_operand.vmem [shape: f32[2,1,1,128], index: 0, kind: input, shape index: {}]   ;;  %s980_s1 = inlined_call_operand.vmem [shape: f32[3,3,128], index: 1, kind: input, shape index: {}]   ;;  %s981_s2 = inlined_call_operand.vmem [shape: f32[128,128], index: 2, kind: input, shape index: {}]   ;;  %s982_s3 = inlined_call_operand.vmem [shape: f32[1,128], index: 3, kind: input, shape index: {}]   ;;  %s983_s4 = inlined_call_operand.vmem [shape: f32[3,3,128], index: 4, kind: input, shape index: {}]   ;;  %s984_s5 = inlined_call_operand.vmem [shape: f32[128,128], index: 5, kind: input, shape index: {}]   ;;  %s985_s6 = inlined_call_operand.vmem [shape: f32[1,128], index: 6, kind: input, shape index: {}]   ;;  %s986_s7 = inlined_call_operand.vmem [shape: f32[2,1,128], index: 7, kind: output, shape index: {}]  }
   0x1 LB: > { %s592_s25 = sadd.s32 4294967295, %s768_s24   ;;  %p596_p0 = scmp.ge.s32.totalorder %s768_s24, 1  ;;  %s768_s24 = sphi %s813_s24, %s17_s24  }
   0x2   : > { %p235_p1 = scmp.lt.s32.totalorder %s768_s24, 3 }
   0x4   : > { %p236_p2 = pnand %p596_p0, %p235_p1 }
   0x5   : > { %v325_v0 = vld [vmem:[%s981_s2] sm:$0xff] (!%p236_p2)  ;;  %v326_v1 = vld [vmem:[%s981_s2 + $0x8] sm:$0xff] (!%p236_p2)  ;;  %v327_v2 = vld [vmem:[%s981_s2 + $0x10] sm:$0xff] (!%p236_p2)  ;;  %v770_v3 = vmov (!%p236_p2), 0.0|0.0   ;;  %vm771_vm0 = vmmov (!%p236_p2), 0   ;;  %v772_v6 = vmov (!%p236_p2), 0.0  }
   0x6   : > { %239 = sbr.rel (%p236_p2) target bundleno = 492 (0x1ec), region = 48  ;;  %703 = vmatprep.subr.bf16.mxu0 (!%p236_p2), %v770_v3  ;;  %v704_v4 = vpack.c.bf16 (!%p236_p2), %v326_v1, %v325_v0  ;;  %v328_v5 = vld [vmem:[%s981_s2 + $0x18] sm:$0xff] (!%p236_p2)  ;;  %665 = vmatprep.mubr.msk.f32.mxu0 (!%p236_p2), %vm771_vm0, %v772_v6  ;;  %270 = vst [vmem:[#allocation2] sm:$0x7] (!%p236_p2), %v772_v6  ;;  %272 = vst [vmem:[#allocation2 + $0x8] sm:$0x7] (!%p236_p2), %v772_v6 }
   0x7   : > { %274 = vst [vmem:[#allocation2 + $0x4] sm:$0x1] (!%p236_p2), %v772_v6  ;;  %277 = vst [vmem:[#allocation2 + $0x6] sm:$0x1] (!%p236_p2), %v772_v6  ;;  %p263_p3 = scmp.lt.s32.totalorder (!%p236_p2), %s592_s25, 1  ;;  %727 = vmatprep.subr.bf16.mxu1 (!%p236_p2), %v770_v3  ;;  %700 = vmatprep.mubr.msk.f32.mxu1 (!%p236_p2), %vm771_vm0, %v772_v6  ;;  %v707_v7 = vpack.c.bf16 (!%p236_p2), %v328_v5, %v327_v2  ;;  %v329_v8 = vld [vmem:[%s981_s2 + $0x20] sm:$0xff] (!%p236_p2) }
   0x8   : > { %273 = vst [vmem:[#allocation2] sm:$0x1] (!%p236_p2), %v772_v6  ;;  %275 = vst [vmem:[#allocation2 + $0x8] sm:$0x1] (!%p236_p2), %v772_v6  ;;  %705 = vmatpush3.bf16.msra.mxu0 (!%p236_p2), %v704_v4  ;;  %v330_v9 = vld [vmem:[%s981_s2 + $0x28] sm:$0xff] (!%p236_p2)  ;;  %v458_v15 = vld [vmem:[%s984_s5] sm:$0xff] (!%p236_p2) }
   0x9   : > { %276 = vst [vmem:[#allocation2 + $0x2] sm:$0x1] (!%p236_p2), %v772_v6  ;;  %278 = vst [vmem:[#allocation2 + $0xa] sm:$0x1] (!%p236_p2), %v772_v6  ;;  %706 = vmatprep.subr.bf16.mxu0 (!%p236_p2), %v770_v3  ;;  %v281_v10 = vld [vmem:[%s980_s1] sm:$0x7] (!%p236_p2)  ;;  %v710_v13 = vpack.c.bf16 (!%p236_p2), %v330_v9, %v329_v8 }
   0xa   : > { %v282_v11 = vld [vmem:[%s980_s1 + $0x4] sm:$0x7] (!%p236_p2)  ;;  %v860_v14 = vld [vmem:[%s980_s1 + $0x8] sm:$0x7] (!%p236_p2)  ;;  %v331_v17 = vld [vmem:[%s981_s2 + $0x30] sm:$0xff] (!%p236_p2)  ;;  %v288_v19 = vrot.slane (!%p236_p2), %v281_v10, 1 }
   0xb   : > { %v459_v16 = vld [vmem:[%s984_s5 + $0x8] sm:$0xff] (!%p236_p2)  ;;  %v332_v18 = vld [vmem:[%s981_s2 + $0x38] sm:$0xff] (!%p236_p2)  ;;  %v292_v20 = vrot.slane (!%p236_p2), %v281_v10, 2  ;;  %v303_v21 = vrot.slane (!%p236_p2), %v282_v11, 2  ;;  %v310_v28 = vrot.slane (!%p236_p2), %v860_v14, 1  ;;  %v460_v29 = vld [vmem:[%s984_s5 + $0x10] sm:$0xff] (!%p236_p2) }
   0xc   : > { %708 = vmatpush3.bf16.msra.mxu0 (!%p236_p2), %v707_v7  ;;  %v728_v22 = vpack.c.bf16 (!%p236_p2), %v459_v16, %v458_v15  ;;  %v713_v30 = vpack.c.bf16 (!%p236_p2), %v332_v18, %v331_v17  ;;  %v299_v31 = vrot.slane (!%p236_p2), %v282_v11, 1  ;;  %v461_v34 = vld [vmem:[%s984_s5 + $0x18] sm:$0xff] (!%p236_p2)  ;;  %v333_v35 = vld [vmem:[%s981_s2 + $0x40] sm:$0xff] (!%p236_p2)  ;;  %v334_v36 = vld [vmem:[%s981_s2 + $0x48] sm:$0xff] (!%p236_p2)  ;;  %v314_v57 = vrot.slane (!%p236_p2), %v860_v14, 2 }
   0xd   : > { %s988_s25 = smov (!%p263_p3, %s592_s25), 1  ;;  %709 = vmatprep.subr.bf16.mxu0 %v770_v3  ;;  %v286_v23 = vld [vmem:[#allocation2 + $0x1] sm:$0x1]  ;;  %v308_v33 = vld [vmem:[#allocation2 + $0x9] sm:$0x1]  ;;  %v731_v37 = vpack.c.bf16 %v461_v34, %v460_v29  ;;  %v716_v46 = vpack.c.bf16 %v334_v36, %v333_v35  ;;  %v335_v48 = vld [vmem:[%s981_s2 + $0x50] sm:$0xff] }
   0xe   : > { %s265_s17 = scalar_lea.vmem %s979_s0, %s988_s25  ;;  %v295_v24 = vld [vmem:[#allocation2 + $0x4] sm:$0x1]  ;;  %v302_v25 = vld [vmem:[#allocation2 + $0x6] sm:$0x1]  ;;  %729 = vmatpush3.bf16.msra.mxu1 %v728_v22  ;;  %v290_v38 = vmul.f32 %v288_v19, %v286_v23  ;;  %v312_v45 = vmul.f32 %v310_v28, %v308_v33  ;;  %v336_v49 = vld [vmem:[%s981_s2 + $0x58] sm:$0xff]  ;;  %s268_s27 = scalar_lea.vmem %s986_s7, %s988_s25 }
   0xf   : > { %v854_v12 = vld [vmem:[%s265_s17] sm:$0x1]  ;;  %v306_v32 = vld [vmem:[#allocation2 + $0x8] sm:$0x1]  ;;  %730 = vmatprep.subr.bf16.mxu1 %v770_v3  ;;  %v296_v39 = vmul.f32 %v295_v24, %v282_v11  ;;  %v305_v40 = vmul.f32 %v303_v21, %v302_v25  ;;  %v719_v54 = vpack.c.bf16 %v336_v49, %v335_v48  ;;  %v339_v62 = vld [vmem:[%s981_s2 + $0x70] sm:$0xff] }
  0x10   : > { %280 = vst [vmem:[#allocation2 + $0x5] sm:$0x1] %v854_v12  ;;  %v284_v26 = vld [vmem:[#allocation2] sm:$0x1]  ;;  %v291_v27 = vld [vmem:[#allocation2 + $0x2] sm:$0x1]  ;;  %711 = vmatpush3.bf16.msra.mxu0 %v710_v13  ;;  %v307_v44 = vmul.f32 %v306_v32, %v860_v14 }
  0x11   : > { %712 = vmatprep.subr.bf16.mxu0 %v770_v3  ;;  %v285_v41 = vmul.f32 %v284_v26, %v281_v10  ;;  %v294_v42 = vmul.f32 %v292_v20, %v291_v27  ;;  %v337_v55 = vld [vmem:[%s981_s2 + $0x60] sm:$0xff]  ;;  %v338_v56 = vld [vmem:[%s981_s2 + $0x68] sm:$0xff]  ;;  %v340_v63 = vld [vmem:[%s981_s2 + $0x78] sm:$0xff] }
  0x12   : > { %732 = vmatpush3.bf16.msra.mxu1 %v731_v37  ;;  %v320_v53 = vadd.f32 %v312_v45, %v307_v44  ;;  %v722_v60 = vpack.c.bf16 %v338_v56, %v337_v55  ;;  %v313_v61 = vld [vmem:[#allocation2 + $0xa] sm:$0x1]  ;;  %v725_v2 = vpack.c.bf16 %v340_v63, %v339_v62  ;;  %v462_v5 = vld [vmem:[%s984_s5 + $0x20] sm:$0xff]  ;;  %v464_v8 = vld [vmem:[%s984_s5 + $0x30] sm:$0xff] }
  0x13   : > { %733 = vmatprep.subr.bf16.mxu1 %v770_v3  ;;  %v317_v50 = vadd.f32 %v290_v38, %v285_v41  ;;  %v318_v51 = vadd.f32 %v296_v39, %v294_v42  ;;  %v316_v0 = vmul.f32 %v314_v57, %v313_v61  ;;  %v463_v6 = vld [vmem:[%s984_s5 + $0x28] sm:$0xff]  ;;  %v465_v9 = vld [vmem:[%s984_s5 + $0x38] sm:$0xff]  ;;  %v466_v11 = vld [vmem:[%s984_s5 + $0x40] sm:$0xff] }
  0x14   : > { %714 = vmatpush3.bf16.msra.mxu0 %v713_v30  ;;  %v734_v7 = vpack.c.bf16 %v463_v6, %v462_v5  ;;  %v737_v10 = vpack.c.bf16 %v465_v9, %v464_v8  ;;  %v467_v13 = vld [vmem:[%s984_s5 + $0x48] sm:$0xff]  ;;  %v468_v14 = vld [vmem:[%s984_s5 + $0x50] sm:$0xff]  ;;  %v469_v16 = vld [vmem:[%s984_s5 + $0x58] sm:$0xff] }
  0x15   : > { %715 = vmatprep.subr.bf16.mxu0 %v770_v3  ;;  %v321_v58 = vadd.f32 %v318_v51, %v317_v50  ;;  %v740_v15 = vpack.c.bf16 %v467_v13, %v466_v11  ;;  %v743_v17 = vpack.c.bf16 %v469_v16, %v468_v14  ;;  %v470_v18 = vld [vmem:[%s984_s5 + $0x60] sm:$0xff]  ;;  %v471_v19 = vld [vmem:[%s984_s5 + $0x68] sm:$0xff]  ;;  %v472_v21 = vld [vmem:[%s984_s5 + $0x70] sm:$0xff] }
  0x16   : > { %735 = vmatpush3.bf16.msra.mxu1 %v734_v7  ;;  %v746_v20 = vpack.c.bf16 %v471_v19, %v470_v18  ;;  %v473_v22 = vld [vmem:[%s984_s5 + $0x78] sm:$0xff]  ;;  %v341_v24 = vld [vmem:[%s982_s3] sm:$0x1]  ;;  %v415_v29 = vld [vmem:[%s983_s4 + $0x4] sm:$0x7] }
  0x17   : > { %v297_v43 = vld [vmem:[#allocation2 + $0x5] sm:$0x1]  ;;  %736 = vmatprep.subr.bf16.mxu1 %v770_v3  ;;  %v749_v23 = vpack.c.bf16 %v473_v22, %v472_v21  ;;  %v414_v26 = vld [vmem:[%s983_s4] sm:$0x7]  ;;  %v428_v36 = vld [vmem:[#allocation2 + $0x4] sm:$0x1] }
  0x18   : > { %v301_v47 = vmul.f32 %v299_v31, %v297_v43  ;;  %717 = vmatpush3.bf16.msra.mxu0 %v716_v46  ;;  %v417_v31 = vld [vmem:[#allocation2] sm:$0x1]  ;;  %v421_v32 = vrot.slane %v414_v26, 1  ;;  %v425_v33 = vrot.slane %v414_v26, 2  ;;  %v419_v34 = vld [vmem:[#allocation2 + $0x1] sm:$0x1]  ;;  %v429_v43 = vmul.f32 %v428_v36, %v415_v29 }
  0x19   : > { %718 = vmatprep.subr.bf16.mxu0 %v770_v3  ;;  %v424_v35 = vld [vmem:[#allocation2 + $0x2] sm:$0x1]  ;;  %v418_v38 = vmul.f32 %v417_v31, %v414_v26  ;;  %v439_v39 = vld [vmem:[#allocation2 + $0x8] sm:$0x1]  ;;  %v436_v44 = vrot.slane %v415_v29, 2  ;;  %v432_v46 = vrot.slane %v415_v29, 1 }
  0x1a   : > { %v319_v52 = vadd.f32 %v305_v40, %v301_v47  ;;  %738 = vmatpush3.bf16.msra.mxu1 %v737_v10  ;;  %v441_v40 = vld [vmem:[#allocation2 + $0x9] sm:$0x1]  ;;  %v423_v41 = vmul.f32 %v421_v32, %v419_v34  ;;  %v427_v42 = vmul.f32 %v425_v33, %v424_v35  ;;  %v435_v45 = vld [vmem:[#allocation2 + $0x6] sm:$0x1]  ;;  %v446_v56 = vld [vmem:[#allocation2 + $0xa] sm:$0x1] }
  0x1b   : > { %739 = vmatprep.subr.bf16.mxu1 %v770_v3  ;;  %v438_v49 = vmul.f32 %v436_v44, %v435_v45  ;;  %v474_v63 = vld [vmem:[%s985_s6] sm:$0x1] }
  0x1c   : > { %v322_v59 = vadd.f32 %v320_v53, %v319_v52  ;;  %720 = vmatpush3.bf16.msra.mxu0 %v719_v54  ;;  %v450_v50 = vadd.f32 %v423_v41, %v418_v38  ;;  %v451_v51 = vadd.f32 %v429_v43, %v427_v42 }
  0x1d   : > { %721 = vmatprep.subr.bf16.mxu0 %v770_v3 }
  0x1e   : > { %v323_v1 = vadd.f32 %v322_v59, %v321_v58  ;;  %741 = vmatpush3.bf16.msra.mxu1 %v740_v15  ;;  %v454_v58 = vadd.f32 %v451_v51, %v450_v50 }
  0x1f   : > { %742 = vmatprep.subr.bf16.mxu1 %v770_v3 }
  0x20   : > { %723 = vmatpush3.bf16.msra.mxu0 %v722_v60  ;;  %v324_v4 = vadd.f32 %v323_v1, %v316_v0 }
  0x21   : > { %724 = vmatprep.subr.bf16.mxu0 %v770_v3 }
  0x22   : > { %744 = vmatpush3.bf16.msra.mxu1 %v743_v17 }
  0x23   : > { %745 = vmatprep.subr.bf16.mxu1 %v770_v3 }
  0x24   : > { %726 = vmatpush3.bf16.msra.mxu0 %v725_v2 }
  0x26   : > { %747 = vmatpush3.bf16.msra.mxu1 %v746_v20 }
  0x27   : > { %666 = vmatmul.mubr.f32.vlgmr.msra.gmra.mrb[0].mxu0 %v324_v4  ;;  %748 = vmatprep.subr.bf16.mxu1 %v770_v3  ;;  %v416_v3 = vld [vmem:[%s983_s4 + $0x8] sm:$0x7] }
  0x28   : > { %v443_v37 = vrot.slane %v416_v3, 1  ;;  %v440_v47 = vmul.f32 %v439_v39, %v416_v3  ;;  %v447_v54 = vrot.slane %v416_v3, 2 }
  0x2a   : > { %750 = vmatpush3.bf16.msra.mxu1 %v749_v23  ;;  %v445_v48 = vmul.f32 %v443_v37, %v441_v40  ;;  %v449_v59 = vmul.f32 %v447_v54, %v446_v56 }
  0x2c   : > { %v453_v55 = vadd.f32 %v445_v48, %v440_v47 }
  0xfa   : > { %v408_v25 = vpop.f32.mrb[0].mxu0 }
  0xfb   : > { %v409_v27 = vadd.f32 %v408_v25, %v341_v24  ;;  %v667_v28 = vpop.f32.mrb[1].mxu0 }
  0xfd   : > { %v412_v30 = vmax.f32 %v409_v27, 0.0 }
  0xff   : > { %413 = vst [vmem:[#allocation2 + $0x5] sm:$0x1] %v412_v30 }
 0x106   : > { %v430_v52 = vld [vmem:[#allocation2 + $0x5] sm:$0x1] }
 0x107   : > { %v434_v53 = vmul.f32 %v432_v46, %v430_v52 }
 0x109   : > { %v452_v57 = vadd.f32 %v438_v49, %v434_v53 }
 0x10b   : > { %v455_v60 = vadd.f32 %v453_v55, %v452_v57 }
 0x10d   : > { %v456_v61 = vadd.f32 %v455_v60, %v454_v58 }
 0x10f   : > { %v457_v62 = vadd.f32 %v456_v61, %v449_v59 }
 0x111   : > { %701 = vmatmul.mubr.f32.vlgmr.msra.gmra.mrb[0].mxu1 %v457_v62 }
 0x1e4   : > { %v541_v0 = vpop.f32.mrb[0].mxu1 }
 0x1e5   : > { %v542_v1 = vadd.f32 %v541_v0, %v474_v63  ;;  %v702_v2 = vpop.f32.mrb[1].mxu1 }
 0x1e7   : > { %v545_v4 = vadd.f32 %v542_v1, %v854_v12 }
 0x1e9   : > { %v546_v5 = vmax.f32 %v545_v4, 0.0 }
 0x1eb   : > { %547 = vst [vmem:[%s268_s27] sm:$0x1] %v546_v5 }
 0x1ec PF: > { %s17_s24 = sadd.s32 1, %s768_s24  }
 0x1ed   : > { %p14_p4 = scmp.ge.s32.totalorder %s17_s24, 4  }
 0x1ef   :  { %16 = sbr.rel (!%p14_p4) target bundleno = 1 (0x1), region = 80 }

// kernel: densebox_forward.34
= control target key start
LH: loop header
LB: loop body
LE: loop exit
PB: predicated region body
PF: predicated region fallthrough
CT: control target
= control target key end

     0   :  { %s1044_s30 = smov 0   ;;  %s1283_s0 = inlined_call_operand.vmem [shape: f32[2,1,1,128], index: 0, kind: input, shape index: {}]   ;;  %s1284_s1 = inlined_call_operand.vmem [shape: f32[3,3,128], index: 1, kind: input, shape index: {}]   ;;  %s1285_s2 = inlined_call_operand.vmem [shape: f32[128,128], index: 2, kind: input, shape index: {}]   ;;  %s1286_s3 = inlined_call_operand.vmem [shape: f32[1,128], index: 3, kind: input, shape index: {}]   ;;  %s1287_s4 = inlined_call_operand.vmem [shape: f32[3,3,128], index: 4, kind: input, shape index: {}]   ;;  %s1288_s5 = inlined_call_operand.vmem [shape: f32[128,128], index: 5, kind: input, shape index: {}]   ;;  %s1289_s6 = inlined_call_operand.vmem [shape: f32[1,128], index: 6, kind: input, shape index: {}]   ;;  %s1290_s7 = inlined_call_operand.vmem [shape: f32[128,128], index: 7, kind: input, shape index: {}]   ;;  %s1291_s8 = inlined_call_operand.vmem [shape: f32[1,128], index: 8, kind: input, shape index: {}]   ;;  %s1292_s9 = inlined_call_operand.vmem [shape: f32[2,1,128], index: 9, kind: output, shape index: {}]  }
   0x1 LB: > { %s733_s10 = sadd.s32 4294967295, %s989_s30   ;;  %p737_p0 = scmp.ge.s32.totalorder %s989_s30, 1  ;;  %s989_s30 = sphi %s1044_s30, %s19_s30  }
   0x2   : > { %p285_p1 = scmp.lt.s32.totalorder %s989_s30, 3 }
   0x4   : > { %p286_p2 = pnand %p737_p0, %p285_p1 }
   0x5   : > { %v379_v0 = vld [vmem:[%s1285_s2] sm:$0xff] (!%p286_p2)  ;;  %v380_v1 = vld [vmem:[%s1285_s2 + $0x8] sm:$0xff] (!%p286_p2)  ;;  %v381_v2 = vld [vmem:[%s1285_s2 + $0x10] sm:$0xff] (!%p286_p2)  ;;  %v991_v3 = vmov (!%p286_p2), 0.0|0.0   ;;  %vm992_vm0 = vmmov (!%p286_p2), 0   ;;  %v993_v6 = vmov (!%p286_p2), 0.0  }
   0x6   : > { %289 = sbr.rel (%p286_p2) target bundleno = 522 (0x20a), region = 56  ;;  %896 = vmatprep.subr.bf16.mxu0 (!%p286_p2), %v991_v3  ;;  %v897_v4 = vpack.c.bf16 (!%p286_p2), %v380_v1, %v379_v0  ;;  %v382_v5 = vld [vmem:[%s1285_s2 + $0x18] sm:$0xff] (!%p286_p2)  ;;  %823 = vmatprep.mubr.msk.f32.mxu0 (!%p286_p2), %vm992_vm0, %v993_v6  ;;  %324 = vst [vmem:[#allocation2] sm:$0x7] (!%p286_p2), %v993_v6  ;;  %326 = vst [vmem:[#allocation2 + $0x8] sm:$0x7] (!%p286_p2), %v993_v6 }
   0x7   : > { %328 = vst [vmem:[#allocation2 + $0x4] sm:$0x1] (!%p286_p2), %v993_v6  ;;  %331 = vst [vmem:[#allocation2 + $0x6] sm:$0x1] (!%p286_p2), %v993_v6  ;;  %p317_p3 = scmp.lt.s32.totalorder (!%p286_p2), %s733_s10, 1  ;;  %920 = vmatprep.subr.bf16.mxu1 (!%p286_p2), %v991_v3  ;;  %858 = vmatprep.mubr.msk.f32.mxu1 (!%p286_p2), %vm992_vm0, %v993_v6  ;;  %v900_v7 = vpack.c.bf16 (!%p286_p2), %v382_v5, %v381_v2  ;;  %v383_v8 = vld [vmem:[%s1285_s2 + $0x20] sm:$0xff] (!%p286_p2) }
   0x8   : > { %327 = vst [vmem:[#allocation2] sm:$0x1] (!%p286_p2), %v993_v6  ;;  %329 = vst [vmem:[#allocation2 + $0x8] sm:$0x1] (!%p286_p2), %v993_v6  ;;  %898 = vmatpush3.bf16.msra.mxu0 (!%p286_p2), %v897_v4  ;;  %v384_v9 = vld [vmem:[%s1285_s2 + $0x28] sm:$0xff] (!%p286_p2)  ;;  %v385_v12 = vld [vmem:[%s1285_s2 + $0x30] sm:$0xff] (!%p286_p2) }
   0x9   : > { %330 = vst [vmem:[#allocation2 + $0x2] sm:$0x1] (!%p286_p2), %v993_v6  ;;  %332 = vst [vmem:[#allocation2 + $0xa] sm:$0x1] (!%p286_p2), %v993_v6  ;;  %899 = vmatprep.subr.bf16.mxu0 (!%p286_p2), %v991_v3  ;;  %v335_v10 = vld [vmem:[%s1284_s1] sm:$0x7] (!%p286_p2)  ;;  %v903_v15 = vpack.c.bf16 (!%p286_p2), %v384_v9, %v383_v8 }
   0xa   : > { %v336_v11 = vld [vmem:[%s1284_s1 + $0x4] sm:$0x7] (!%p286_p2)  ;;  %v386_v13 = vld [vmem:[%s1285_s2 + $0x38] sm:$0xff] (!%p286_p2)  ;;  %v1109_v16 = vld [vmem:[%s1284_s1 + $0x8] sm:$0x7] (!%p286_p2)  ;;  %v342_v17 = vrot.slane (!%p286_p2), %v335_v10, 1 }
   0xb   : > { %v512_v18 = vld [vmem:[%s1288_s5] sm:$0xff] (!%p286_p2)  ;;  %v513_v19 = vld [vmem:[%s1288_s5 + $0x8] sm:$0xff] (!%p286_p2)  ;;  %v346_v21 = vrot.slane (!%p286_p2), %v335_v10, 2  ;;  %v357_v23 = vrot.slane (!%p286_p2), %v336_v11, 2  ;;  %v364_v30 = vrot.slane (!%p286_p2), %v1109_v16, 1  ;;  %v514_v31 = vld [vmem:[%s1288_s5 + $0x10] sm:$0xff] (!%p286_p2)  ;;  %v906_v32 = vpack.c.bf16 (!%p286_p2), %v386_v13, %v385_v12 }
   0xc   : > { %901 = vmatpush3.bf16.msra.mxu0 (!%p286_p2), %v900_v7  ;;  %v921_v24 = vpack.c.bf16 (!%p286_p2), %v513_v19, %v512_v18  ;;  %v353_v33 = vrot.slane (!%p286_p2), %v336_v11, 1  ;;  %v515_v34 = vld [vmem:[%s1288_s5 + $0x18] sm:$0xff] (!%p286_p2)  ;;  %v516_v35 = vld [vmem:[%s1288_s5 + $0x20] sm:$0xff] (!%p286_p2)  ;;  %v517_v36 = vld [vmem:[%s1288_s5 + $0x28] sm:$0xff] (!%p286_p2)  ;;  %v368_v60 = vrot.slane (!%p286_p2), %v1109_v16, 2 }
   0xd   : > { %s1294_s10 = smov (!%p317_p3, %s733_s10), 1  ;;  %902 = vmatprep.subr.bf16.mxu0 %v991_v3  ;;  %v340_v20 = vld [vmem:[#allocation2 + $0x1] sm:$0x1]  ;;  %v362_v29 = vld [vmem:[#allocation2 + $0x9] sm:$0x1]  ;;  %v924_v39 = vpack.c.bf16 %v515_v34, %v514_v31  ;;  %v927_v48 = vpack.c.bf16 %v517_v36, %v516_v35  ;;  %v389_v51 = vld [vmem:[%s1285_s2 + $0x50] sm:$0xff] }
   0xe   : > { %s319_s25 = scalar_lea.vmem %s1283_s0, %s1294_s10  ;;  %v349_v22 = vld [vmem:[#allocation2 + $0x4] sm:$0x1]  ;;  %v356_v27 = vld [vmem:[#allocation2 + $0x6] sm:$0x1]  ;;  %922 = vmatpush3.bf16.msra.mxu1 %v921_v24  ;;  %v388_v38 = vld [vmem:[%s1285_s2 + $0x48] sm:$0xff]  ;;  %v344_v41 = vmul.f32 %v342_v17, %v340_v20  ;;  %v366_v47 = vmul.f32 %v364_v30, %v362_v29  ;;  %s322_s16 = scalar_lea.vmem %s1292_s9, %s1294_s10 }
   0xf   : > { %v1103_v14 = vld [vmem:[%s319_s25] sm:$0x1]  ;;  %v360_v28 = vld [vmem:[#allocation2 + $0x8] sm:$0x1]  ;;  %923 = vmatprep.subr.bf16.mxu1 %v991_v3  ;;  %v350_v42 = vmul.f32 %v349_v22, %v336_v11  ;;  %v359_v43 = vmul.f32 %v357_v23, %v356_v27  ;;  %v390_v52 = vld [vmem:[%s1285_s2 + $0x58] sm:$0xff] }
  0x10   : > { %334 = vst [vmem:[#allocation2 + $0x5] sm:$0x1] %v1103_v14  ;;  %v338_v25 = vld [vmem:[#allocation2] sm:$0x1]  ;;  %v345_v26 = vld [vmem:[#allocation2 + $0x2] sm:$0x1]  ;;  %904 = vmatpush3.bf16.msra.mxu0 %v903_v15  ;;  %v361_v46 = vmul.f32 %v360_v28, %v1109_v16  ;;  %v912_v57 = vpack.c.bf16 %v390_v52, %v389_v51 }
  0x11   : > { %905 = vmatprep.subr.bf16.mxu0 %v991_v3  ;;  %v387_v37 = vld [vmem:[%s1285_s2 + $0x40] sm:$0xff]  ;;  %v339_v40 = vmul.f32 %v338_v25, %v335_v10  ;;  %v348_v44 = vmul.f32 %v346_v21, %v345_v26  ;;  %v392_v59 = vld [vmem:[%s1285_s2 + $0x68] sm:$0xff]  ;;  %v393_v1 = vld [vmem:[%s1285_s2 + $0x70] sm:$0xff] }
  0x12   : > { %925 = vmatpush3.bf16.msra.mxu1 %v924_v39  ;;  %v909_v49 = vpack.c.bf16 %v388_v38, %v387_v37  ;;  %v374_v56 = vadd.f32 %v366_v47, %v361_v46  ;;  %v391_v58 = vld [vmem:[%s1285_s2 + $0x60] sm:$0xff]  ;;  %v367_v0 = vld [vmem:[#allocation2 + $0xa] sm:$0x1]  ;;  %v394_v2 = vld [vmem:[%s1285_s2 + $0x78] sm:$0xff] }
  0x13   : > { %926 = vmatprep.subr.bf16.mxu1 %v991_v3  ;;  %v371_v53 = vadd.f32 %v344_v41, %v339_v40  ;;  %v372_v54 = vadd.f32 %v350_v42, %v348_v44  ;;  %v915_v63 = vpack.c.bf16 %v392_v59, %v391_v58  ;;  %v370_v4 = vmul.f32 %v368_v60, %v367_v0  ;;  %v518_v9 = vld [vmem:[%s1288_s5 + $0x30] sm:$0xff]  ;;  %v519_v10 = vld [vmem:[%s1288_s5 + $0x38] sm:$0xff]  ;;  %v520_v12 = vld [vmem:[%s1288_s5 + $0x40] sm:$0xff] }
  0x14   : > { %907 = vmatpush3.bf16.msra.mxu0 %v906_v32  ;;  %v918_v7 = vpack.c.bf16 %v394_v2, %v393_v1  ;;  %v930_v11 = vpack.c.bf16 %v519_v10, %v518_v9  ;;  %v521_v13 = vld [vmem:[%s1288_s5 + $0x48] sm:$0xff]  ;;  %v522_v16 = vld [vmem:[%s1288_s5 + $0x50] sm:$0xff]  ;;  %v523_v17 = vld [vmem:[%s1288_s5 + $0x58] sm:$0xff] }
  0x15   : > { %908 = vmatprep.subr.bf16.mxu0 %v991_v3  ;;  %v375_v61 = vadd.f32 %v372_v54, %v371_v53  ;;  %v933_v15 = vpack.c.bf16 %v521_v13, %v520_v12  ;;  %v936_v18 = vpack.c.bf16 %v523_v17, %v522_v16  ;;  %v524_v19 = vld [vmem:[%s1288_s5 + $0x60] sm:$0xff]  ;;  %v525_v20 = vld [vmem:[%s1288_s5 + $0x68] sm:$0xff]  ;;  %v526_v22 = vld [vmem:[%s1288_s5 + $0x70] sm:$0xff] }
  0x16   : > { %928 = vmatpush3.bf16.msra.mxu1 %v927_v48  ;;  %v939_v21 = vpack.c.bf16 %v525_v20, %v524_v19  ;;  %v527_v23 = vld [vmem:[%s1288_s5 + $0x78] sm:$0xff]  ;;  %v395_v25 = vld [vmem:[%s1286_s3] sm:$0x1]  ;;  %v469_v30 = vld [vmem:[%s1287_s4 + $0x4] sm:$0x7] }
  0x17   : > { %v351_v45 = vld [vmem:[#allocation2 + $0x5] sm:$0x1]  ;;  %929 = vmatprep.subr.bf16.mxu1 %v991_v3  ;;  %v942_v24 = vpack.c.bf16 %v527_v23, %v526_v22  ;;  %v468_v27 = vld [vmem:[%s1287_s4] sm:$0x7]  ;;  %v470_v31 = vld [vmem:[%s1287_s4 + $0x8] sm:$0x7] }
  0x18   : > { %v355_v50 = vmul.f32 %v353_v33, %v351_v45  ;;  %910 = vmatpush3.bf16.msra.mxu0 %v909_v49  ;;  %v471_v33 = vld [vmem:[#allocation2] sm:$0x1]  ;;  %v475_v34 = vrot.slane %v468_v27, 1  ;;  %v479_v35 = vrot.slane %v468_v27, 2  ;;  %v473_v36 = vld [vmem:[#allocation2 + $0x1] sm:$0x1] }
  0x19   : > { %911 = vmatprep.subr.bf16.mxu0 %v991_v3  ;;  %v478_v37 = vld [vmem:[#allocation2 + $0x2] sm:$0x1]  ;;  %v482_v38 = vld [vmem:[#allocation2 + $0x4] sm:$0x1]  ;;  %v497_v39 = vrot.slane %v470_v31, 1  ;;  %v472_v40 = vmul.f32 %v471_v33, %v468_v27  ;;  %v490_v46 = vrot.slane %v469_v30, 2 }
  0x1a   : > { %v373_v55 = vadd.f32 %v359_v43, %v355_v50  ;;  %931 = vmatpush3.bf16.msra.mxu1 %v930_v11  ;;  %v493_v41 = vld [vmem:[#allocation2 + $0x8] sm:$0x1]  ;;  %v495_v42 = vld [vmem:[#allocation2 + $0x9] sm:$0x1]  ;;  %v477_v43 = vmul.f32 %v475_v34, %v473_v36  ;;  %v481_v44 = vmul.f32 %v479_v35, %v478_v37  ;;  %v483_v45 = vmul.f32 %v482_v38, %v469_v30  ;;  %v489_v47 = vld [vmem:[#allocation2 + $0x6] sm:$0x1] }
  0x1b   : > { %932 = vmatprep.subr.bf16.mxu1 %v991_v3  ;;  %v486_v48 = vrot.slane %v469_v30, 1  ;;  %v494_v49 = vmul.f32 %v493_v41, %v470_v31  ;;  %v499_v50 = vmul.f32 %v497_v39, %v495_v42  ;;  %v492_v51 = vmul.f32 %v490_v46, %v489_v47  ;;  %v500_v58 = vld [vmem:[#allocation2 + $0xa] sm:$0x1]  ;;  %v603_v9 = vld [vmem:[%s1290_s7 + $0x20] sm:$0xff]  ;;  %v605_v12 = vld [vmem:[%s1290_s7 + $0x30] sm:$0xff] }
  0x1c   : > { %v376_v62 = vadd.f32 %v374_v56, %v373_v55  ;;  %913 = vmatpush3.bf16.msra.mxu0 %v912_v57  ;;  %v504_v52 = vadd.f32 %v477_v43, %v472_v40  ;;  %v505_v53 = vadd.f32 %v483_v45, %v481_v44  ;;  %v501_v56 = vrot.slane %v470_v31, 2  ;;  %v600_v0 = vld [vmem:[%s1290_s7 + $0x8] sm:$0xff]  ;;  %v610_v19 = vld [vmem:[%s1290_s7 + $0x58] sm:$0xff]  ;;  %v528_v27 = vld [vmem:[%s1289_s6] sm:$0x1] }
  0x1d   : > { %914 = vmatprep.subr.bf16.mxu0 %v991_v3  ;;  %v507_v57 = vadd.f32 %v499_v50, %v494_v49  ;;  %v604_v10 = vld [vmem:[%s1290_s7 + $0x28] sm:$0xff] }
  0x1e   : > { %v377_v5 = vadd.f32 %v376_v62, %v375_v61  ;;  %934 = vmatpush3.bf16.msra.mxu1 %v933_v15  ;;  %v508_v60 = vadd.f32 %v505_v53, %v504_v52  ;;  %v503_v61 = vmul.f32 %v501_v56, %v500_v58  ;;  %v951_v11 = vpack.c.bf16 %v604_v10, %v603_v9  ;;  %v607_v15 = vld [vmem:[%s1290_s7 + $0x40] sm:$0xff]  ;;  %v608_v16 = vld [vmem:[%s1290_s7 + $0x48] sm:$0xff] }
  0x1f   : > { %935 = vmatprep.subr.bf16.mxu1 %v991_v3  ;;  %v957_v17 = vpack.c.bf16 %v608_v16, %v607_v15  ;;  %v612_v22 = vld [vmem:[%s1290_s7 + $0x68] sm:$0xff] }
  0x20   : > { %916 = vmatpush3.bf16.msra.mxu0 %v915_v63  ;;  %v378_v8 = vadd.f32 %v377_v5, %v370_v4  ;;  %v599_v63 = vld [vmem:[%s1290_s7] sm:$0xff]  ;;  %v601_v5 = vld [vmem:[%s1290_s7 + $0x10] sm:$0xff] }
  0x21   : > { %917 = vmatprep.subr.bf16.mxu0 %v991_v3  ;;  %v945_v2 = vpack.c.bf16 %v600_v0, %v599_v63 }
  0x22   : > { %937 = vmatpush3.bf16.msra.mxu1 %v936_v18  ;;  %v609_v18 = vld [vmem:[%s1290_s7 + $0x50] sm:$0xff] }
  0x23   : > { %938 = vmatprep.subr.bf16.mxu1 %v991_v3  ;;  %v960_v20 = vpack.c.bf16 %v610_v19, %v609_v18 }
  0x24   : > { %919 = vmatpush3.bf16.msra.mxu0 %v918_v7  ;;  %v602_v7 = vld [vmem:[%s1290_s7 + $0x18] sm:$0xff] }
  0x26   : > { %940 = vmatpush3.bf16.msra.mxu1 %v939_v21  ;;  %v611_v21 = vld [vmem:[%s1290_s7 + $0x60] sm:$0xff] }
  0x27   : > { %824 = vmatmul.mubr.f32.vlgmr.msra.gmra.mrb[0].mxu0 %v378_v8  ;;  %941 = vmatprep.subr.bf16.mxu1 %v991_v3  ;;  %v948_v8 = vpack.c.bf16 %v602_v7, %v601_v5  ;;  %v963_v23 = vpack.c.bf16 %v612_v22, %v611_v21 }
  0x2a   : > { %943 = vmatpush3.bf16.msra.mxu1 %v942_v24  ;;  %v613_v24 = vld [vmem:[%s1290_s7 + $0x70] sm:$0xff] }
  0x2b   : > { %944 = vmatprep.subr.bf16.mxu1 %v991_v3 }
  0xfa   : > { %v462_v26 = vpop.f32.mrb[0].mxu0 }
  0xfb   : > { %v463_v28 = vadd.f32 %v462_v26, %v395_v25  ;;  %v825_v29 = vpop.f32.mrb[1].mxu0  ;;  %v614_v25 = vld [vmem:[%s1290_s7 + $0x78] sm:$0xff] }
  0xfc   : > { %v966_v26 = vpack.c.bf16 %v614_v25, %v613_v24 }
  0xfd   : > { %v466_v32 = vmax.f32 %v463_v28, 0.0  ;;  %v615_v28 = vld [vmem:[%s1291_s8] sm:$0x1] }
  0xfe   : > { %v968_v29 = vadd.f32 %v615_v28, %v528_v27 }
  0xff   : > { %467 = vst [vmem:[#allocation2 + $0x5] sm:$0x1] %v466_v32 }
 0x106   : > { %v484_v54 = vld [vmem:[#allocation2 + $0x5] sm:$0x1] }
 0x107   : > { %v488_v55 = vmul.f32 %v486_v48, %v484_v54 }
 0x109   : > { %v506_v59 = vadd.f32 %v492_v51, %v488_v55 }
 0x10b   : > { %v509_v62 = vadd.f32 %v507_v57, %v506_v59 }
 0x10d   : > { %v510_v1 = vadd.f32 %v509_v62, %v508_v60 }
 0x10f   : > { %v511_v4 = vadd.f32 %v510_v1, %v503_v61 }
 0x111   : > { %859 = vmatmul.mubr.f32.vlgmr.msra.gmra.mrb[0].mxu1 %v511_v4 }
 0x112   : > { %946 = vmatpush3.bf16.msra.mxu1 %v945_v2  ;;  %893 = vmatprep.mubr.msk.f32.mxu1 %vm992_vm0, %v993_v6  ;;  %v606_v6 = vld [vmem:[%s1290_s7 + $0x38] sm:$0xff] }
 0x113   : > { %947 = vmatprep.subr.bf16.mxu1 %v991_v3  ;;  %v954_v13 = vpack.c.bf16 %v606_v6, %v605_v12 }
 0x116   : > { %949 = vmatpush3.bf16.msra.mxu1 %v948_v8 }
 0x117   : > { %950 = vmatprep.subr.bf16.mxu1 %v991_v3 }
 0x11a   : > { %952 = vmatpush3.bf16.msra.mxu1 %v951_v11 }
 0x11b   : > { %953 = vmatprep.subr.bf16.mxu1 %v991_v3 }
 0x11e   : > { %955 = vmatpush3.bf16.msra.mxu1 %v954_v13 }
 0x11f   : > { %956 = vmatprep.subr.bf16.mxu1 %v991_v3 }
 0x122   : > { %958 = vmatpush3.bf16.msra.mxu1 %v957_v17 }
 0x123   : > { %959 = vmatprep.subr.bf16.mxu1 %v991_v3 }
 0x126   : > { %961 = vmatpush3.bf16.msra.mxu1 %v960_v20 }
 0x127   : > { %962 = vmatprep.subr.bf16.mxu1 %v991_v3 }
 0x12a   : > { %964 = vmatpush3.bf16.msra.mxu1 %v963_v23 }
 0x12b   : > { %965 = vmatprep.subr.bf16.mxu1 %v991_v3 }
 0x12e   : > { %967 = vmatpush3.bf16.msra.mxu1 %v966_v26 }
 0x131   : > { %894 = vmatmul.mubr.f32.vlgmr.msra.gmra.mrb[0].mxu1 %v1103_v14 }
 0x204   : > { %v682_v30 = vpop.f32.mrb[0].mxu1 }
 0x205   : > { %v969_v31 = vadd.f32 %v968_v29, %v682_v30  ;;  %v895_v32 = vpop.f32.mrb[1].mxu1 }
 0x207   : > { %v687_v3 = vmax.f32 %v969_v31, 0.0 }
 0x209   : > { %688 = vst [vmem:[%s322_s16] sm:$0x1] %v687_v3 }
 0x20a PF: > { %s19_s30 = sadd.s32 1, %s989_s30  }
 0x20b   : > { %p16_p4 = scmp.ge.s32.totalorder %s19_s30, 4  }
 0x20d   :  { %18 = sbr.rel (!%p16_p4) target bundleno = 1 (0x1), region = 88 }

// kernel: densebox_forward.37
= control target key start
LH: loop header
LB: loop body
LE: loop exit
PB: predicated region body
PF: predicated region fallthrough
CT: control target
= control target key end

     0   :  { %12 = vsyncpa [#allocation4], 0  ;;  %s1168_s0 = inlined_call_operand.vmem [shape: f32[2,1,1,128], index: 0, kind: input, shape index: {}]   ;;  %s1169_s1 = inlined_call_operand.vmem [shape: f32[3,3,128], index: 1, kind: input, shape index: {}]   ;;  %s1170_s2 = inlined_call_operand.vmem [shape: f32[128,128], index: 2, kind: input, shape index: {}]   ;;  %s1171_s3 = inlined_call_operand.vmem [shape: f32[1,128], index: 3, kind: input, shape index: {}]   ;;  %s1172_s4 = inlined_call_operand.vmem [shape: f32[3,3,128], index: 4, kind: input, shape index: {}]   ;;  %s1173_s5 = inlined_call_operand.vmem [shape: f32[128,128], index: 5, kind: input, shape index: {}]   ;;  %s1174_s6 = inlined_call_operand.vmem [shape: f32[1,128], index: 6, kind: input, shape index: {}]   ;;  %s1175_s7 = inlined_call_operand.hbm [shape: f32[2,1,128], index: 7, kind: output, shape index: {}]  }
   0x1   :  { %14 = vsyncpa [#allocation4 + $0x1], 0  ;;  %s923_s24 = smov 0   ;;  %s925_s25 = smov 0  }
   0x2   :  { %s927_s26 = smov 0   ;;  %s929_s27 = smov 0  }
   0x3 LB: > { %s944_s28 = sadd.s32 4294967295, %s877_s27   ;;  %s614_s29 = sadd.s32 4294967294, %s877_s27   ;;  %s877_s27 = sphi %s929_s27, %s1181_s27   ;;  %s873_s26 = sphi %s927_s26, %s1180_s26   ;;  %s869_s25 = sphi %s925_s25, %s1179_s25   ;;  %s865_s24 = sphi %s923_s24, %s1178_s24  }
   0x4   : > { %s948_s30 = sadd.s32 1, %s877_s27   ;;  %s179_s8 = sadd.s32 1, %s873_s26 }
   0x5   : > { %s176_s9 = ssub.s32 %s877_s27, %s948_s30  ;;  %p189_p0 = scmp.ne.s32.totalorder %s873_s26, %s869_s25 }
   0x6   : > { %p177_p1 = scmp.eq.s32.totalorder %s176_s9, 0  ;;  %p190_p2 = scmp.eq.s32.totalorder %s944_s28, 1 }
   0x7   : > { %p195_p3 = scmp.ne.s32.totalorder %s869_s25, %s865_s24  ;;  %p196_p4 = scmp.eq.s32.totalorder %s614_s29, 1 }
   0x8   : > { %s959_s10 = scalar_select %p177_p1, %s873_s26, %s179_s8  }
   0x9   : > { %p961_p5 = por %p190_p2, %p189_p0  ;;  %p965_p6 = por %p196_p4, %p195_p3 }
   0xa   : > { %p617_p7 = scmp.ge.s32.totalorder %s877_s27, 1  ;;  %p238_p8 = scmp.lt.s32.totalorder %s877_s27, 3 }
   0xc   : > { %p239_p9 = pnand %p617_p7, %p238_p8 }
   0xd   : > { %v326_v0 = vld [vmem:[%s1170_s2] sm:$0xff] (!%p239_p9)  ;;  %v327_v1 = vld [vmem:[%s1170_s2 + $0x8] sm:$0xff] (!%p239_p9)  ;;  %v328_v2 = vld [vmem:[%s1170_s2 + $0x10] sm:$0xff] (!%p239_p9)  ;;  %v879_v3 = vmov (!%p239_p9), 0.0|0.0   ;;  %vm880_vm0 = vmmov (!%p239_p9), 0   ;;  %v881_v6 = vmov (!%p239_p9), 0.0  }
   0xe   : > { %242 = sbr.rel (%p239_p9) target bundleno = 513 (0x201), region = 48  ;;  %725 = vmatprep.subr.bf16.mxu0 (!%p239_p9), %v879_v3  ;;  %v726_v4 = vpack.c.bf16 (!%p239_p9), %v327_v1, %v326_v0  ;;  %v329_v5 = vld [vmem:[%s1170_s2 + $0x18] sm:$0xff] (!%p239_p9)  ;;  %687 = vmatprep.mubr.msk.f32.mxu0 (!%p239_p9), %vm880_vm0, %v881_v6  ;;  %271 = vst [vmem:[#allocation2] sm:$0x7] (!%p239_p9), %v881_v6  ;;  %273 = vst [vmem:[#allocation2 + $0x8] sm:$0x7] (!%p239_p9), %v881_v6 }
   0xf   : > { %275 = vst [vmem:[#allocation2 + $0x4] sm:$0x1] (!%p239_p9), %v881_v6  ;;  %278 = vst [vmem:[#allocation2 + $0x6] sm:$0x1] (!%p239_p9), %v881_v6  ;;  %p267_p10 = scmp.lt.s32.totalorder (!%p239_p9), %s944_s28, 1  ;;  %749 = vmatprep.subr.bf16.mxu1 (!%p239_p9), %v879_v3  ;;  %722 = vmatprep.mubr.msk.f32.mxu1 (!%p239_p9), %vm880_vm0, %v881_v6  ;;  %v729_v7 = vpack.c.bf16 (!%p239_p9), %v329_v5, %v328_v2  ;;  %v330_v8 = vld [vmem:[%s1170_s2 + $0x20] sm:$0xff] (!%p239_p9) }
  0x10   : > { %274 = vst [vmem:[#allocation2] sm:$0x1] (!%p239_p9), %v881_v6  ;;  %276 = vst [vmem:[#allocation2 + $0x8] sm:$0x1] (!%p239_p9), %v881_v6  ;;  %727 = vmatpush3.bf16.msra.mxu0 (!%p239_p9), %v726_v4  ;;  %v331_v9 = vld [vmem:[%s1170_s2 + $0x28] sm:$0xff] (!%p239_p9)  ;;  %v459_v15 = vld [vmem:[%s1173_s5] sm:$0xff] (!%p239_p9) }
  0x11   : > { %277 = vst [vmem:[#allocation2 + $0x2] sm:$0x1] (!%p239_p9), %v881_v6  ;;  %279 = vst [vmem:[#allocation2 + $0xa] sm:$0x1] (!%p239_p9), %v881_v6  ;;  %728 = vmatprep.subr.bf16.mxu0 (!%p239_p9), %v879_v3  ;;  %v282_v10 = vld [vmem:[%s1169_s1] sm:$0x7] (!%p239_p9)  ;;  %v732_v13 = vpack.c.bf16 (!%p239_p9), %v331_v9, %v330_v8 }
  0x12   : > { %v283_v11 = vld [vmem:[%s1169_s1 + $0x4] sm:$0x7] (!%p239_p9)  ;;  %v1009_v14 = vld [vmem:[%s1169_s1 + $0x8] sm:$0x7] (!%p239_p9)  ;;  %v332_v17 = vld [vmem:[%s1170_s2 + $0x30] sm:$0xff] (!%p239_p9)  ;;  %v289_v19 = vrot.slane (!%p239_p9), %v282_v10, 1 }
  0x13   : > { %v460_v16 = vld [vmem:[%s1173_s5 + $0x8] sm:$0xff] (!%p239_p9)  ;;  %v333_v18 = vld [vmem:[%s1170_s2 + $0x38] sm:$0xff] (!%p239_p9)  ;;  %v293_v20 = vrot.slane (!%p239_p9), %v282_v10, 2  ;;  %v304_v21 = vrot.slane (!%p239_p9), %v283_v11, 2  ;;  %v311_v28 = vrot.slane (!%p239_p9), %v1009_v14, 1  ;;  %v461_v29 = vld [vmem:[%s1173_s5 + $0x10] sm:$0xff] (!%p239_p9) }
  0x14   : > { %730 = vmatpush3.bf16.msra.mxu0 (!%p239_p9), %v729_v7  ;;  %v750_v22 = vpack.c.bf16 (!%p239_p9), %v460_v16, %v459_v15  ;;  %v735_v30 = vpack.c.bf16 (!%p239_p9), %v333_v18, %v332_v17  ;;  %v300_v31 = vrot.slane (!%p239_p9), %v283_v11, 1  ;;  %v462_v34 = vld [vmem:[%s1173_s5 + $0x18] sm:$0xff] (!%p239_p9)  ;;  %v334_v35 = vld [vmem:[%s1170_s2 + $0x40] sm:$0xff] (!%p239_p9)  ;;  %v335_v36 = vld [vmem:[%s1170_s2 + $0x48] sm:$0xff] (!%p239_p9)  ;;  %v315_v57 = vrot.slane (!%p239_p9), %v1009_v14, 2  ;;  %s265_s8 = sand.u32 (!%p239_p9), 1, %s869_s25  }
  0x15   : > { %s268_s21 = scalar_select %p267_p10, %s944_s28, 1  ;;  %731 = vmatprep.subr.bf16.mxu0 %v879_v3  ;;  %v287_v23 = vld [vmem:[#allocation2 + $0x1] sm:$0x1]  ;;  %v309_v33 = vld [vmem:[#allocation2 + $0x9] sm:$0x1]  ;;  %v753_v37 = vpack.c.bf16 %v462_v34, %v461_v29  ;;  %v738_v46 = vpack.c.bf16 %v335_v36, %v334_v35  ;;  %v336_v48 = vld [vmem:[%s1170_s2 + $0x50] sm:$0xff] }
  0x16   : > { %v296_v24 = vld [vmem:[#allocation2 + $0x4] sm:$0x1]  ;;  %v303_v25 = vld [vmem:[#allocation2 + $0x6] sm:$0x1]  ;;  %751 = vmatpush3.bf16.msra.mxu1 %v750_v22  ;;  %v291_v38 = vmul.f32 %v289_v19, %v287_v23  ;;  %v313_v45 = vmul.f32 %v311_v28, %v309_v33  ;;  %v337_v49 = vld [vmem:[%s1170_s2 + $0x58] sm:$0xff]  ;;  %s266_s15 = scalar_lea.vmem [#allocation3], %s265_s8 }
  0x17   : > { %s269_s14 = scalar_lea.vmem %s1168_s0, %s268_s21  ;;  %v285_v26 = vld [vmem:[#allocation2] sm:$0x1]  ;;  %v307_v32 = vld [vmem:[#allocation2 + $0x8] sm:$0x1]  ;;  %752 = vmatprep.subr.bf16.mxu1 %v879_v3  ;;  %v297_v39 = vmul.f32 %v296_v24, %v283_v11  ;;  %v306_v40 = vmul.f32 %v304_v21, %v303_v25  ;;  %v741_v54 = vpack.c.bf16 %v337_v49, %v336_v48  ;;  %v340_v62 = vld [vmem:[%s1170_s2 + $0x70] sm:$0xff]  ;;  %s562_s16 = sshll.u32 %s266_s15, 4  ;;  %s1128_s16 = int_to_ptr.vmem [resolvable:$true] %s562_s16 }
  0x18   : > { %v1003_v12 = vld [vmem:[%s269_s14] sm:$0x1]  ;;  %v292_v27 = vld [vmem:[#allocation2 + $0x2] sm:$0x1]  ;;  %733 = vmatpush3.bf16.msra.mxu0 %v732_v13  ;;  %v286_v41 = vmul.f32 %v285_v26, %v282_v10  ;;  %v308_v44 = vmul.f32 %v307_v32, %v1009_v14  ;;  %v339_v56 = vld [vmem:[%s1170_s2 + $0x68] sm:$0xff]  ;;  %s618_s14 = sshll.u32 %s944_s28, 4 }
  0x19   : > { %281 = vst [vmem:[#allocation2 + $0x5] sm:$0x1] %v1003_v12  ;;  %734 = vmatprep.subr.bf16.mxu0 %v879_v3  ;;  %v295_v42 = vmul.f32 %v293_v20, %v292_v27  ;;  %v338_v55 = vld [vmem:[%s1170_s2 + $0x60] sm:$0xff]  ;;  %v314_v61 = vld [vmem:[#allocation2 + $0xa] sm:$0x1]  ;;  %v341_v63 = vld [vmem:[%s1170_s2 + $0x78] sm:$0xff]  ;;  %s1126_s19 = scalar_lea.hbm %s1175_s7, %s618_s14 }
  0x1a   : > { %754 = vmatpush3.bf16.msra.mxu1 %v753_v37  ;;  %v318_v50 = vadd.f32 %v291_v38, %v286_v41  ;;  %v321_v53 = vadd.f32 %v313_v45, %v308_v44  ;;  %v744_v60 = vpack.c.bf16 %v339_v56, %v338_v55  ;;  %v317_v0 = vmul.f32 %v315_v57, %v314_v61  ;;  %v463_v5 = vld [vmem:[%s1173_s5 + $0x20] sm:$0xff]  ;;  %v464_v6 = vld [vmem:[%s1173_s5 + $0x28] sm:$0xff]  ;;  %v465_v8 = vld [vmem:[%s1173_s5 + $0x30] sm:$0xff]  ;;  %s550_s20 = scalar_lea.sflag [#allocation4], %s265_s8  ;;  %s815_s21 = scalar_lea.vmem %s1128_s16, 16 }
  0x1b   : > { %755 = vmatprep.subr.bf16.mxu1 %v879_v3  ;;  %v319_v51 = vadd.f32 %v297_v39, %v295_v42  ;;  %v747_v2 = vpack.c.bf16 %v341_v63, %v340_v62  ;;  %v756_v7 = vpack.c.bf16 %v464_v6, %v463_v5  ;;  %v466_v9 = vld [vmem:[%s1173_s5 + $0x38] sm:$0xff]  ;;  %v467_v11 = vld [vmem:[%s1173_s5 + $0x40] sm:$0xff]  ;;  %v468_v13 = vld [vmem:[%s1173_s5 + $0x48] sm:$0xff]  ;;  %p816_p11 = scmp.ne.s32.totalorder %s1128_s16, %s815_s21  ;;  %s882_s28 = smov [#allocation3]  }
  0x1c   : > { %736 = vmatpush3.bf16.msra.mxu0 %v735_v30  ;;  %v759_v10 = vpack.c.bf16 %v466_v9, %v465_v8  ;;  %v469_v14 = vld [vmem:[%s1173_s5 + $0x50] sm:$0xff]  ;;  %v762_v15 = vpack.c.bf16 %v468_v13, %v467_v11  ;;  %v470_v16 = vld [vmem:[%s1173_s5 + $0x58] sm:$0xff]  ;;  %v471_v18 = vld [vmem:[%s1173_s5 + $0x60] sm:$0xff]  ;;  %s819_s22 = sshll.u32 %s882_s28, 4  ;;  %s820_s22 = int_to_ptr.vmem [resolvable:$false] %s819_s22 }
  0x1d   : > { %737 = vmatprep.subr.bf16.mxu0 %v879_v3  ;;  %v322_v58 = vadd.f32 %v319_v51, %v318_v50  ;;  %v765_v17 = vpack.c.bf16 %v470_v16, %v469_v14  ;;  %v472_v19 = vld [vmem:[%s1173_s5 + $0x68] sm:$0xff]  ;;  %v473_v21 = vld [vmem:[%s1173_s5 + $0x70] sm:$0xff]  ;;  %v474_v22 = vld [vmem:[%s1173_s5 + $0x78] sm:$0xff]  ;;  %p817_p12 = pnand %p816_p11, %p961_p5  ;;  %s821_s23 = scalar_lea.vmem %s820_s22, 32 }
  0x1e   : > { %757 = vmatpush3.bf16.msra.mxu1 %v756_v7  ;;  %v768_v20 = vpack.c.bf16 %v472_v19, %v471_v18  ;;  %v771_v23 = vpack.c.bf16 %v474_v22, %v473_v21  ;;  %v342_v24 = vld [vmem:[%s1171_s3] sm:$0x1]  ;;  %v416_v29 = vld [vmem:[%s1172_s4 + $0x4] sm:$0x7]  ;;  %v420_v34 = vld [vmem:[#allocation2 + $0x1] sm:$0x1]  ;;  %p822_p0 = scmp.lt.s32.totalorder %s1128_s16, %s820_s22  ;;  %p823_p1 = scmp.lt.s32.totalorder %s821_s23, %s815_s21 }
  0x1f   : > { %758 = vmatprep.subr.bf16.mxu1 %v879_v3  ;;  %v415_v26 = vld [vmem:[%s1172_s4] sm:$0x7]  ;;  %v429_v36 = vld [vmem:[#allocation2 + $0x4] sm:$0x1]  ;;  %v440_v39 = vld [vmem:[#allocation2 + $0x8] sm:$0x1]  ;;  %p818_p13 = pneg %p817_p12 }
  0x20   : > { %v298_v43 = vld [vmem:[#allocation2 + $0x5] sm:$0x1]  ;;  %739 = vmatpush3.bf16.msra.mxu0 %v738_v46  ;;  %v422_v32 = vrot.slane %v415_v26, 1  ;;  %v426_v33 = vrot.slane %v415_v26, 2  ;;  %v425_v35 = vld [vmem:[#allocation2 + $0x2] sm:$0x1]  ;;  %p824_p2 = por %p823_p1, %p822_p0 }
  0x21   : > { %v302_v47 = vmul.f32 %v300_v31, %v298_v43  ;;  %740 = vmatprep.subr.bf16.mxu0 %v879_v3  ;;  %v418_v31 = vld [vmem:[#allocation2] sm:$0x1]  ;;  %v430_v43 = vmul.f32 %v429_v36, %v416_v29  ;;  %v437_v44 = vrot.slane %v416_v29, 2  ;;  %v436_v45 = vld [vmem:[#allocation2 + $0x6] sm:$0x1]  ;;  %v433_v46 = vrot.slane %v416_v29, 1 }
  0x22   : > { %760 = vmatpush3.bf16.msra.mxu1 %v759_v10  ;;  %v419_v38 = vmul.f32 %v418_v31, %v415_v26  ;;  %v424_v41 = vmul.f32 %v422_v32, %v420_v34  ;;  %v428_v42 = vmul.f32 %v426_v33, %v425_v35  ;;  %v447_v56 = vld [vmem:[#allocation2 + $0xa] sm:$0x1]  ;;  %v475_v63 = vld [vmem:[%s1174_s6] sm:$0x1]  ;;  %p825_p3 = pnand %p824_p2, %p818_p13 }
  0x23   : > { %v320_v52 = vadd.f32 %v306_v40, %v302_v47  ;;  %761 = vmatprep.subr.bf16.mxu1 %v879_v3  ;;  %v442_v40 = vld [vmem:[#allocation2 + $0x9] sm:$0x1]  ;;  %v439_v49 = vmul.f32 %v437_v44, %v436_v45 }
  0x24   : > { %742 = vmatpush3.bf16.msra.mxu0 %v741_v54  ;;  %v451_v50 = vadd.f32 %v424_v41, %v419_v38  ;;  %v452_v51 = vadd.f32 %v430_v43, %v428_v42 }
  0x25   : > { %v323_v59 = vadd.f32 %v321_v53, %v320_v52  ;;  %743 = vmatprep.subr.bf16.mxu0 %v879_v3 }
  0x26   : > { %763 = vmatpush3.bf16.msra.mxu1 %v762_v15 }
  0x27   : > { %v324_v1 = vadd.f32 %v323_v59, %v322_v58  ;;  %764 = vmatprep.subr.bf16.mxu1 %v879_v3  ;;  %v455_v58 = vadd.f32 %v452_v51, %v451_v50 }
  0x28   : > { %745 = vmatpush3.bf16.msra.mxu0 %v744_v60 }
  0x29   : > { %746 = vmatprep.subr.bf16.mxu0 %v879_v3  ;;  %v325_v4 = vadd.f32 %v324_v1, %v317_v0 }
  0x2a   : > { %766 = vmatpush3.bf16.msra.mxu1 %v765_v17 }
  0x2b   : > { %767 = vmatprep.subr.bf16.mxu1 %v879_v3 }
  0x2c   : > { %748 = vmatpush3.bf16.msra.mxu0 %v747_v2 }
  0x2e   : > { %769 = vmatpush3.bf16.msra.mxu1 %v768_v20 }
  0x2f   : > { %688 = vmatmul.mubr.f32.vlgmr.msra.gmra.mrb[0].mxu0 %v325_v4  ;;  %770 = vmatprep.subr.bf16.mxu1 %v879_v3  ;;  %v417_v3 = vld [vmem:[%s1172_s4 + $0x8] sm:$0x7] }
  0x30   : > { %v444_v37 = vrot.slane %v417_v3, 1  ;;  %v441_v47 = vmul.f32 %v440_v39, %v417_v3  ;;  %v448_v54 = vrot.slane %v417_v3, 2 }
  0x32   : > { %772 = vmatpush3.bf16.msra.mxu1 %v771_v23  ;;  %v446_v48 = vmul.f32 %v444_v37, %v442_v40  ;;  %v450_v59 = vmul.f32 %v448_v54, %v447_v56 }
  0x34   : > { %v454_v55 = vadd.f32 %v446_v48, %v441_v47 }
 0x102   : > { %v409_v25 = vpop.f32.mrb[0].mxu0 }
 0x103   : > { %v410_v27 = vadd.f32 %v409_v25, %v342_v24  ;;  %v689_v28 = vpop.f32.mrb[1].mxu0 }
 0x105   : > { %v413_v30 = vmax.f32 %v410_v27, 0.0 }
 0x107   : > { %414 = vst [vmem:[#allocation2 + $0x5] sm:$0x1] %v413_v30 }
 0x10e   : > { %v431_v52 = vld [vmem:[#allocation2 + $0x5] sm:$0x1] }
 0x10f   : > { %v435_v53 = vmul.f32 %v433_v46, %v431_v52 }
 0x111   : > { %v453_v57 = vadd.f32 %v439_v49, %v435_v53 }
 0x113   : > { %v456_v60 = vadd.f32 %v454_v55, %v453_v57 }
 0x115   : > { %v457_v61 = vadd.f32 %v456_v60, %v455_v58 }
 0x117   : > { %v458_v62 = vadd.f32 %v457_v61, %v450_v59 }
 0x119   : > { %723 = vmatmul.mubr.f32.vlgmr.msra.gmra.mrb[0].mxu1 %v458_v62 }
 0x1ec   : > { %v542_v0 = vpop.f32.mrb[0].mxu1 }
 0x1ed   : > { %v543_v1 = vadd.f32 %v542_v0, %v475_v63  ;;  %v724_v2 = vpop.f32.mrb[1].mxu1 }
 0x1ef   : > { %v546_v4 = vadd.f32 %v543_v1, %v1003_v12 }
 0x1f1   : > { %v547_v5 = vmax.f32 %v546_v4, 0.0 }
 0x1f3   : > { %548 = vst [vmem:[%s266_s15] sm:$0x1] %v547_v5 }
 0x1f4   : > { %828 = shalt.err (!%p825_p3)
}
 0x1f5   : > { %s829_s29 = scalar_lea.hbm %s1126_s19, 16  ;;  %s833_s13 = scalar_lea.hbm %s1175_s7, 32 }
 0x1f6   : > { %p830_p4 = scmp.ne.s32.totalorder %s1126_s19, %s829_s29  ;;  %p834_p9 = scmp.lt.u32.totalorder %s1126_s19, %s1175_s7 }
 0x1f7   : > { %p835_p10 = scmp.lt.u32.totalorder %s833_s13, %s829_s29  ;;  %p837_p12 = scmp.lt.u32.totalorder %s829_s29, %s1126_s19 }
 0x1f8   : > { %p831_p7 = pnand %p830_p4, %p961_p5 }
 0x1f9   : > { %p836_p11 = por %p835_p10, %p834_p9 }
 0x1fa   : > { %p832_p8 = pneg %p831_p7 }
 0x1fb   : > { %p838_p13 = por %p837_p12, %p836_p11 }
 0x1fd   : > { %p839_p0 = pnand %p838_p13, %p832_p8 }
 0x1ff   : > { %842 = shalt.err (!%p839_p0)
}
 0x200   : > { %773 = dma.vmem_to_hbm [thread:$0]  (%p961_p5), %s1128_s16, 16, %s1126_s19, %s550_s20  }
 0x201 PF: > { %p779_p1 = scmp.ge.s32.totalorder %s877_s27, 2  ;;  %s574_s17 = sand.u32 1, %s865_s24  }
 0x202   : > { %s575_s18 = scalar_lea.sflag [#allocation4], %s574_s17 }
 0x203   : > { %p776_p2 = pnand %p779_p1, %p965_p6 }
 0x205   : > { %860 = dma.done.wait (!%p776_p2), %s575_s18, 16  }
 0x206   : > { %862 = vsyncadd (!%p776_p2), %s575_s18, 4294967280  ;;  %p17_p3 = scmp.ge.s32.totalorder %s948_s30, 4   ;;  %s1178_s24 = smov %s869_s25 }
 0x207   : > { %s1179_s25 = smov %s873_s26  ;;  %s1180_s26 = smov %s959_s10 }
 0x208   : > { %s1181_s27 = smov %s948_s30  ;;  %19 = sbr.rel (!%p17_p3) target bundleno = 3 (0x3), region = 85 }
 0x20f   :  { %579 = vsyncpa [#allocation4], 1 }
 0x210   :  { %581 = vsyncpa [#allocation4 + $0x1], 1 }

</bundles_post_ra>
